<compile_context>
chip_gen: v5e
topology: v5e:2x2
jax: 0.10.0
libtpu: 0.0.40
codegen_flags: <defaults>
</compile_context>

<pallas_src>
import functools
import math

import jax
import jax.numpy as jnp
from jax.experimental import pallas as pl
from jax.experimental.pallas import tpu as pltpu


def _split_tn(idx, N):
    """Split flattened index r = t*N + n into (t, n) without integer division
    when N is a power of two (bit ops are guaranteed-supported VPU ops)."""
    if (N & (N - 1)) == 0:
        shift = N.bit_length() - 1
        t = jax.lax.shift_right_logical(idx, shift)
        n = jax.lax.bitwise_and(idx, N - 1)
    else:
        t = idx // N
        n = idx - t * N
    return t, n


# ----------------------------------------------------------------------------
# Fully fused kernel: one grid step == one batch sample.
# ----------------------------------------------------------------------------
def _gst_kernel(x_ref, ste_ref,
                wqkv_t_ref, bqkv_t_ref, wf1_t_ref, bf1_t_ref, wf2_t_ref, bf2_t_ref,
                wqkv_s_ref, bqkv_s_ref, wf1_s_ref, bf1_s_ref, wf2_s_ref, bf2_s_ref,
                n1_ref, n2_ref, wg_ref, bg_ref,
                o_ref, *, K, d, T, N, nb):
    f32 = jnp.float32
    E = K * d
    L = T * N

    x = x_ref[0]                                        # [L, E]
    ste = ste_ref[0]                                    # [L, E]

    # --- in-kernel block-structure masks (row/col index r = t*N + n) --------
    row = jax.lax.broadcasted_iota(jnp.int32, (L, L), 0)
    col = jax.lax.broadcasted_iota(jnp.int32, (L, L), 1)
    t_row, n_row = _split_tn(row, N)
    t_col, n_col = _split_tn(col, N)
    same_t = t_row == t_col
    neg = jnp.float32(-1e9)                             # exp(<-1e3) == 0 in f32
    # temporal: same node AND torch.triu mask (keep t_key >= t_query, as in
    # the reference module's registered upper-triangular mask)
    bias_t = jnp.where((n_row == n_col) & (t_col >= t_row), 0.0, neg)
    # spatial: same timestep (the module's registered adj mask is never used)
    bias_s = jnp.where(same_t, 0.0, neg)

    # --- one multi-head attention block (QKV proj -> softmax -> FC1 -> FC2) -
    def attn(inp, bias, wqkv, bqkv, wf1, bf1, wf2, bf2):
        qkv = jnp.dot(inp, wqkv, preferred_element_type=f32) + bqkv
        qkv = jnp.maximum(qkv, 0.0)                     # relu Q/K/V (scale
        q = qkv[:, :E]                                  # already folded into Q)
        k = qkv[:, E:2 * E]
        v = qkv[:, 2 * E:]
        acc = jnp.zeros((L, E), f32)                    # FC1 pre-activation
        for h in range(K):                              # K=4, unrolled
            qh = q[:, h * d:(h + 1) * d]
            kh = k[:, h * d:(h + 1) * d]
            vh = v[:, h * d:(h + 1) * d]
            s = jax.lax.dot_general(qh, kh, (((1,), (1,)), ((), ())),
                                    preferred_element_type=f32) + bias
            s = s - jnp.max(s, axis=-1, keepdims=True)
            p = jnp.exp(s)
            p = p * pl.reciprocal(jnp.sum(p, axis=-1, keepdims=True),
                                  approx=True)
            # concat_h(p_h @ v_h) @ Wf1 == sum_h p_h @ (v_h @ Wf1[h*d:(h+1)*d])
            vw = jnp.dot(vh, wf1[h * d:(h + 1) * d, :],
                         preferred_element_type=f32)
            acc = acc + jnp.dot(p, vw, preferred_element_type=f32)
        h1 = jnp.maximum(acc + bf1, 0.0)
        return jnp.dot(h1, wf2, preferred_element_type=f32) + bf2

    # --- temporal branch: HT = TemporalAttn(HT + STE), chained over blocks --
    ht = x
    for blk in range(nb):
        ht = attn(ht + ste, bias_t,
                  wqkv_t_ref[blk], bqkv_t_ref[blk], wf1_t_ref[blk],
                  bf1_t_ref[blk], wf2_t_ref[blk], bf2_t_ref[blk])

    # --- spatial branch: HS = SpatialAttn(HS) -------------------------------
    hs = x
    for blk in range(nb):
        hs = attn(hs, bias_s,
                  wqkv_s_ref[blk], bqkv_s_ref[blk], wf1_s_ref[blk],
                  bf1_s_ref[blk], wf2_s_ref[blk], bf2_s_ref[blk])

    # --- GCN: block-diag A = per-timestep softmax(relu(n1 n2^T)) ------------
    # TODO(synk): graph_constructor class body is not provided; implemented as
    # an adaptive-adjacency single-layer GCN: out = relu(A @ (X W + b)).
    xs_in = x + ste
    sa = jax.lax.dot_general(n1_ref[...], n2_ref[...], (((1,), (1,)), ((), ())),
                             preferred_element_type=f32)    # [L, L]
    sa = jnp.maximum(sa, 0.0)
    sa = jnp.where(same_t, sa, neg)
    sa = sa - jnp.max(sa, axis=-1, keepdims=True)
    pa = jnp.exp(sa)
    a_big = pa * pl.reciprocal(jnp.sum(pa, axis=-1, keepdims=True), approx=True)
    xw = jnp.dot(xs_in, wg_ref[...], preferred_element_type=f32) + bg_ref[...]
    xs_gcn = jnp.maximum(jnp.dot(a_big, xw, preferred_element_type=f32), 0.0)

    # --- fusion gates + residual --------------------------------------------
    z1 = jax.nn.sigmoid(hs * xs_gcn)
    g1 = z1 * hs + (1.0 - z1) * xs_gcn                  # fusionGate(HS, XS)
    z2 = jax.nn.sigmoid(g1 * ht)
    g2 = z2 * g1 + (1.0 - z2) * ht                      # fusionGate(., HT)
    o_ref[0] = x + g2


# ----------------------------------------------------------------------------
# Module forward (glue is only free reshapes)
# ----------------------------------------------------------------------------
def gst_forward(params, speed, speed_all, STE, conf):
    del speed_all  # unused by SpatioTemporal.forward
    B, T, N, E = speed.shape
    K = conf["num_heads"]
    d = E // K
    L = T * N
    nb = conf["num_blocks"]
    ste = STE[:, :conf["input_length"]]

    x2 = speed.reshape(B, L, E)
    ste2 = ste.reshape(B, L, E)

    batched = pl.BlockSpec((1, L, E), lambda b: (b, 0, 0))

    def full(a):
        nd = a.ndim
        return pl.BlockSpec(a.shape, lambda b: (0,) * nd)

    t = params["temporal"]
    s = params["spatial"]
    args = [x2, ste2,
            t["Wqkv"], t["bqkv"], t["Wf1"], t["bf1"], t["Wf2"], t["bf2"],
            s["Wqkv"], s["bqkv"], s["Wf1"], s["bf1"], s["Wf2"], s["bf2"],
            params["n1_big"], params["n2_big"], params["Wg"], params["bg"]]
    in_specs = [batched, batched] + [full(a) for a in args[2:]]

    out = pl.pallas_call(
        functools.partial(_gst_kernel, K=K, d=d, T=T, N=N, nb=nb),
        out_shape=jax.ShapeDtypeStruct((B, L, E), jnp.float32),
        grid=(B,),
        in_specs=in_specs,
        out_specs=batched,
        compiler_params=pltpu.CompilerParams(dimension_semantics=("parallel",)),
    )(*args)
    return out.reshape(B, T, N, E)


# ----------------------------------------------------------------------------
# Deterministic parameter init
# ----------------------------------------------------------------------------
def _init_fc(key, cin, cout):
    kw, kb = jax.random.split(key)
    w = jax.random.normal(kw, (cin, cout), jnp.float32) * (1.0 / math.sqrt(cin))
    b = jax.random.normal(kb, (cout,), jnp.float32) * 0.01
    return w, b


def init_params(key, conf):
    # TODO(synk): FC is assumed to be Linear(+activation); bn / dropout ignored.
    E = conf["emb_size"]
    K = conf["num_heads"]
    d = E // K
    N = conf["site_num"]
    T = conf["input_length"]
    nb = conf["num_blocks"]
    scale = 1.0 / math.sqrt(d)
    k_t, k_s, k_g = jax.random.split(key, 3)

    def attn_block_params(k):
        ks = jax.random.split(k, 5)
        wq, bq = _init_fc(ks[0], E, E)
        wk, bk = _init_fc(ks[1], E, E)
        wv, bv = _init_fc(ks[2], E, E)
        wf1, bf1 = _init_fc(ks[3], E, E)
        wf2, bf2 = _init_fc(ks[4], E, E)
        # fold 1/sqrt(d) into Q (exact: relu(c*x) == c*relu(x) for c > 0)
        wqkv = jnp.concatenate([wq * scale, wk, wv], axis=1)   # [E, 3E]
        bqkv = jnp.concatenate([bq * scale, bk, bv], axis=0)   # [3E]
        return dict(Wqkv=wqkv, bqkv=bqkv.reshape(1, -1),
                    Wf1=wf1, bf1=bf1.reshape(1, -1),
                    Wf2=wf2, bf2=bf2.reshape(1, -1))

    def stack_blocks(keys):
        blocks = [attn_block_params(k) for k in keys]
        return {name: jnp.stack([b[name] for b in blocks], axis=0)
                for name in blocks[0]}

    params = {
        "temporal": stack_blocks(list(jax.random.split(k_t, nb))),
        "spatial": stack_blocks(list(jax.random.split(k_s, nb))),
    }

    g1, g2, g3 = jax.random.split(k_g, 3)
    nv_dim = 20  # graph_constructor node-embedding dim; zero-padded to 32 lanes
    pad = 32
    n1 = jnp.zeros((N, pad), jnp.float32).at[:, :nv_dim].set(
        jax.random.normal(g1, (N, nv_dim), jnp.float32))
    n2 = jnp.zeros((N, pad), jnp.float32).at[:, :nv_dim].set(
        jax.random.normal(g2, (N, nv_dim), jnp.float32))
    # pre-tile node embeddings to [T*N, 32] so the kernel builds the full
    # block-diagonal adjacency with a single [128,128] matmul.
    params["n1_big"] = jnp.tile(n1, (T, 1))
    params["n2_big"] = jnp.tile(n2, (T, 1))
    params["Wg"], bg = _init_fc(g3, E, E)
    params["bg"] = bg.reshape(1, -1)
    return params


# ----------------------------------------------------------------------------
if __name__ == "__main__":
    conf = dict(
        emb_size=32, num_heads=4, input_length=8, site_num=16, batch_size=2,
        num_blocks=1, dropout=0.0, hidden_size=32, hidden_layer=1,
    )
    B, T, N, E = (conf["batch_size"], conf["input_length"],
                  conf["site_num"], conf["emb_size"])

    key = jax.random.PRNGKey(0)
    k1, k2, k3, kp = jax.random.split(key, 4)
    speed = jax.random.normal(k1, (B, T, N, E), jnp.float32)
    speed_all = jax.random.normal(k2, (B, T, N, E), jnp.float32)  # unused in fwd
    STE = jax.random.normal(k3, (B, T + 2, N, E), jnp.float32)    # sliced to [:T]

    params = init_params(kp, conf)

    fwd = jax.jit(lambda p, s, sa, ste: gst_forward(p, s, sa, ste, conf))
    out = fwd(params, speed, speed_all, STE)
    jax.block_until_ready(out)
    assert out.shape == (B, T, N, E) and out.dtype == jnp.float32
    print("KERNEL_OK")
</pallas_src>

<mosaic_0001>
module attributes {stable_mosaic.version = 11 : i64} {
  func.func @_gst_kernel(%arg0: i32, %arg1: memref<1x128x32xf32, #tpu.memory_space<vmem>>, %arg2: memref<1x128x32xf32, #tpu.memory_space<vmem>>, %arg3: memref<1x32x96xf32, #tpu.memory_space<vmem>>, %arg4: memref<1x1x96xf32, #tpu.memory_space<vmem>>, %arg5: memref<1x32x32xf32, #tpu.memory_space<vmem>>, %arg6: memref<1x1x32xf32, #tpu.memory_space<vmem>>, %arg7: memref<1x32x32xf32, #tpu.memory_space<vmem>>, %arg8: memref<1x1x32xf32, #tpu.memory_space<vmem>>, %arg9: memref<1x32x96xf32, #tpu.memory_space<vmem>>, %arg10: memref<1x1x96xf32, #tpu.memory_space<vmem>>, %arg11: memref<1x32x32xf32, #tpu.memory_space<vmem>>, %arg12: memref<1x1x32xf32, #tpu.memory_space<vmem>>, %arg13: memref<1x32x32xf32, #tpu.memory_space<vmem>>, %arg14: memref<1x1x32xf32, #tpu.memory_space<vmem>>, %arg15: memref<128x32xf32, #tpu.memory_space<vmem>>, %arg16: memref<128x32xf32, #tpu.memory_space<vmem>>, %arg17: memref<32x32xf32, #tpu.memory_space<vmem>>, %arg18: memref<1x32xf32, #tpu.memory_space<vmem>>, %arg19: memref<1x128x32xf32, #tpu.memory_space<vmem>>) attributes {dimension_semantics = [#tpu.dimension_semantics<parallel>], iteration_bounds = array<i64: 2>, scalar_prefetch = 0 : i64, scratch_operands = 0 : i64, tpu.core_type = #tpu.core_type<tc>, window_params = [{transform_indices = @transform_0, window_bounds = array<i64: 1, 128, 32>}, {transform_indices = @transform_1, window_bounds = array<i64: 1, 128, 32>}, {pipeline_mode = #tpu.pipeline_mode<synchronous>, transform_indices = @transform_2, window_bounds = array<i64: 1, 32, 96>}, {pipeline_mode = #tpu.pipeline_mode<synchronous>, transform_indices = @transform_3, window_bounds = array<i64: 1, 1, 96>}, {pipeline_mode = #tpu.pipeline_mode<synchronous>, transform_indices = @transform_4, window_bounds = array<i64: 1, 32, 32>}, {pipeline_mode = #tpu.pipeline_mode<synchronous>, transform_indices = @transform_5, window_bounds = array<i64: 1, 1, 32>}, {pipeline_mode = #tpu.pipeline_mode<synchronous>, transform_indices = @transform_6, window_bounds = array<i64: 1, 32, 32>}, {pipeline_mode = #tpu.pipeline_mode<synchronous>, transform_indices = @transform_7, window_bounds = array<i64: 1, 1, 32>}, {pipeline_mode = #tpu.pipeline_mode<synchronous>, transform_indices = @transform_8, window_bounds = array<i64: 1, 32, 96>}, {pipeline_mode = #tpu.pipeline_mode<synchronous>, transform_indices = @transform_9, window_bounds = array<i64: 1, 1, 96>}, {pipeline_mode = #tpu.pipeline_mode<synchronous>, transform_indices = @transform_10, window_bounds = array<i64: 1, 32, 32>}, {pipeline_mode = #tpu.pipeline_mode<synchronous>, transform_indices = @transform_11, window_bounds = array<i64: 1, 1, 32>}, {pipeline_mode = #tpu.pipeline_mode<synchronous>, transform_indices = @transform_12, window_bounds = array<i64: 1, 32, 32>}, {pipeline_mode = #tpu.pipeline_mode<synchronous>, transform_indices = @transform_13, window_bounds = array<i64: 1, 1, 32>}, {pipeline_mode = #tpu.pipeline_mode<synchronous>, transform_indices = @transform_14, window_bounds = array<i64: 128, 32>}, {pipeline_mode = #tpu.pipeline_mode<synchronous>, transform_indices = @transform_15, window_bounds = array<i64: 128, 32>}, {pipeline_mode = #tpu.pipeline_mode<synchronous>, transform_indices = @transform_16, window_bounds = array<i64: 32, 32>}, {pipeline_mode = #tpu.pipeline_mode<synchronous>, transform_indices = @transform_17, window_bounds = array<i64: 1, 32>}, {transform_indices = @transform_18, window_bounds = array<i64: 1, 128, 32>}]} {
    %c0 = arith.constant 0 : index
    %c0_0 = arith.constant 0 : index
    %c0_1 = arith.constant 0 : index
    %0 = vector.load %arg1[%c0, %c0_0, %c0_1] : memref<1x128x32xf32, #tpu.memory_space<vmem>>, vector<1x128x32xf32>
    %1 = vector.shape_cast %0 : vector<1x128x32xf32> to vector<128x32xf32>
    %c0_2 = arith.constant 0 : index
    %c0_3 = arith.constant 0 : index
    %c0_4 = arith.constant 0 : index
    %2 = vector.load %arg2[%c0_2, %c0_3, %c0_4] : memref<1x128x32xf32, #tpu.memory_space<vmem>>, vector<1x128x32xf32>
    %3 = vector.shape_cast %2 : vector<1x128x32xf32> to vector<128x32xf32>
    %4 = tpu.iota {dimensions = array<i32: 0>} : vector<128x128xi32>
    %5 = tpu.iota {dimensions = array<i32: 1>} : vector<128x128xi32>
    %c4_i32 = arith.constant 4 : i32
    %6 = vector.broadcast %c4_i32 : i32 to vector<128x128xi32>
    %7 = arith.shrui %4, %6 : vector<128x128xi32>
    %c15_i32 = arith.constant 15 : i32
    %8 = vector.broadcast %c15_i32 : i32 to vector<128x128xi32>
    %9 = arith.andi %4, %8 : vector<128x128xi32>
    %c4_i32_5 = arith.constant 4 : i32
    %10 = vector.broadcast %c4_i32_5 : i32 to vector<128x128xi32>
    %11 = arith.shrui %5, %10 : vector<128x128xi32>
    %c15_i32_6 = arith.constant 15 : i32
    %12 = vector.broadcast %c15_i32_6 : i32 to vector<128x128xi32>
    %13 = arith.andi %5, %12 : vector<128x128xi32>
    %14 = arith.cmpi eq, %7, %11 : vector<128x128xi32>
    %15 = arith.cmpi eq, %9, %13 : vector<128x128xi32>
    %16 = arith.cmpi sge, %11, %7 : vector<128x128xi32>
    %17 = arith.andi %15, %16 : vector<128x128xi1>
    %cst = arith.constant 0.000000e+00 : f32
    %cst_7 = arith.constant -1.000000e+09 : f32
    %18 = vector.broadcast %cst : f32 to vector<128x128xf32>
    %19 = vector.broadcast %cst_7 : f32 to vector<128x128xf32>
    %20 = arith.select %17, %18, %19 : vector<128x128xi1>, vector<128x128xf32>
    %cst_8 = arith.constant 0.000000e+00 : f32
    %cst_9 = arith.constant -1.000000e+09 : f32
    %21 = vector.broadcast %cst_8 : f32 to vector<128x128xf32>
    %22 = vector.broadcast %cst_9 : f32 to vector<128x128xf32>
    %23 = arith.select %14, %21, %22 : vector<128x128xi1>, vector<128x128xf32>
    %24 = arith.addf %1, %3 : vector<128x32xf32>
    %c0_10 = arith.constant 0 : index
    %c0_11 = arith.constant 0 : index
    %c0_12 = arith.constant 0 : index
    %25 = vector.load %arg3[%c0_10, %c0_11, %c0_12] : memref<1x32x96xf32, #tpu.memory_space<vmem>>, vector<1x32x96xf32>
    %26 = vector.shape_cast %25 : vector<1x32x96xf32> to vector<32x96xf32>
    %c0_13 = arith.constant 0 : index
    %c0_14 = arith.constant 0 : index
    %c0_15 = arith.constant 0 : index
    %27 = vector.load %arg4[%c0_13, %c0_14, %c0_15] : memref<1x1x96xf32, #tpu.memory_space<vmem>>, vector<1x1x96xf32>
    %28 = vector.shape_cast %27 : vector<1x1x96xf32> to vector<1x96xf32>
    %c0_16 = arith.constant 0 : index
    %c0_17 = arith.constant 0 : index
    %c0_18 = arith.constant 0 : index
    %29 = vector.load %arg5[%c0_16, %c0_17, %c0_18] : memref<1x32x32xf32, #tpu.memory_space<vmem>>, vector<1x32x32xf32>
    %30 = vector.shape_cast %29 : vector<1x32x32xf32> to vector<32x32xf32>
    %c0_19 = arith.constant 0 : index
    %c0_20 = arith.constant 0 : index
    %c0_21 = arith.constant 0 : index
    %31 = vector.load %arg6[%c0_19, %c0_20, %c0_21] : memref<1x1x32xf32, #tpu.memory_space<vmem>>, vector<1x1x32xf32>
    %32 = vector.shape_cast %31 : vector<1x1x32xf32> to vector<1x32xf32>
    %c0_22 = arith.constant 0 : index
    %c0_23 = arith.constant 0 : index
    %c0_24 = arith.constant 0 : index
    %33 = vector.load %arg7[%c0_22, %c0_23, %c0_24] : memref<1x32x32xf32, #tpu.memory_space<vmem>>, vector<1x32x32xf32>
    %34 = vector.shape_cast %33 : vector<1x32x32xf32> to vector<32x32xf32>
    %c0_25 = arith.constant 0 : index
    %c0_26 = arith.constant 0 : index
    %c0_27 = arith.constant 0 : index
    %35 = vector.load %arg8[%c0_25, %c0_26, %c0_27] : memref<1x1x32xf32, #tpu.memory_space<vmem>>, vector<1x1x32xf32>
    %36 = vector.shape_cast %35 : vector<1x1x32xf32> to vector<1x32xf32>
    %cst_28 = arith.constant dense<0.000000e+00> : vector<128x96xf32>
    %37 = tpu.matmul %24, %26, %cst_28 {dimension_numbers = #tpu.dot_dimension_numbers<[1], [0], [0], [1], [0, 0, 1, 1], [], []>} : vector<128x32xf32>, vector<32x96xf32>, vector<128x96xf32> -> vector<128x96xf32>
    %38 = vector.broadcast %28 : vector<1x96xf32> to vector<128x96xf32>
    %39 = arith.addf %37, %38 : vector<128x96xf32>
    %cst_29 = arith.constant 0.000000e+00 : f32
    %40 = vector.broadcast %cst_29 : f32 to vector<128x96xf32>
    %41 = arith.maximumf %39, %40 : vector<128x96xf32>
    %42 = vector.extract_strided_slice %41 {offsets = [0, 0], sizes = [128, 32], strides = [1, 1]} : vector<128x96xf32> to vector<128x32xf32>
    %43 = vector.extract_strided_slice %41 {offsets = [0, 32], sizes = [128, 32], strides = [1, 1]} : vector<128x96xf32> to vector<128x32xf32>
    %44 = vector.extract_strided_slice %41 {offsets = [0, 64], sizes = [128, 32], strides = [1, 1]} : vector<128x96xf32> to vector<128x32xf32>
    %cst_30 = arith.constant 0.000000e+00 : f32
    %45 = vector.broadcast %cst_30 : f32 to vector<128x32xf32>
    %46 = vector.extract_strided_slice %42 {offsets = [0, 0], sizes = [128, 8], strides = [1, 1]} : vector<128x32xf32> to vector<128x8xf32>
    %47 = vector.extract_strided_slice %43 {offsets = [0, 0], sizes = [128, 8], strides = [1, 1]} : vector<128x32xf32> to vector<128x8xf32>
    %48 = vector.extract_strided_slice %44 {offsets = [0, 0], sizes = [128, 8], strides = [1, 1]} : vector<128x32xf32> to vector<128x8xf32>
    %cst_31 = arith.constant dense<0.000000e+00> : vector<128x128xf32>
    %49 = tpu.matmul %46, %47, %cst_31 {dimension_numbers = #tpu.dot_dimension_numbers<[1], [1], [0], [0], [0, 0, 1, 0], [], []>} : vector<128x8xf32>, vector<128x8xf32>, vector<128x128xf32> -> vector<128x128xf32>
    %50 = arith.addf %49, %20 : vector<128x128xf32>
    %cst_32 = arith.constant dense<0xFF800000> : vector<128xf32>
    %51 = vector.multi_reduction <maximumf>, %50, %cst_32 [1] : vector<128x128xf32> to vector<128xf32>
    %52 = vector.shape_cast %51 : vector<128xf32> to vector<128x1xf32>
    %53 = vector.broadcast %52 : vector<128x1xf32> to vector<128x128xf32>
    %54 = arith.subf %50, %53 : vector<128x128xf32>
    %55 = math.exp %54 : vector<128x128xf32>
    %cst_33 = arith.constant dense<0.000000e+00> : vector<128xf32>
    %56 = vector.multi_reduction <add>, %55, %cst_33 [1] : vector<128x128xf32> to vector<128xf32>
    %57 = vector.shape_cast %56 : vector<128xf32> to vector<128x1xf32>
    %58 = tpu.reciprocal %57 {approx = true} : vector<128x1xf32> -> vector<128x1xf32>
    %59 = vector.broadcast %58 : vector<128x1xf32> to vector<128x128xf32>
    %60 = arith.mulf %55, %59 : vector<128x128xf32>
    %61 = vector.extract_strided_slice %30 {offsets = [0, 0], sizes = [8, 32], strides = [1, 1]} : vector<32x32xf32> to vector<8x32xf32>
    %cst_34 = arith.constant dense<0.000000e+00> : vector<128x32xf32>
    %62 = tpu.matmul %48, %61, %cst_34 {dimension_numbers = #tpu.dot_dimension_numbers<[1], [0], [0], [1], [0, 0, 1, 1], [], []>} : vector<128x8xf32>, vector<8x32xf32>, vector<128x32xf32> -> vector<128x32xf32>
    %cst_35 = arith.constant dense<0.000000e+00> : vector<128x32xf32>
    %63 = tpu.matmul %60, %62, %cst_35 {dimension_numbers = #tpu.dot_dimension_numbers<[1], [0], [0], [1], [0, 0, 1, 1], [], []>} : vector<128x128xf32>, vector<128x32xf32>, vector<128x32xf32> -> vector<128x32xf32>
    %64 = arith.addf %45, %63 : vector<128x32xf32>
    %65 = vector.extract_strided_slice %42 {offsets = [0, 8], sizes = [128, 8], strides = [1, 1]} : vector<128x32xf32> to vector<128x8xf32>
    %66 = vector.extract_strided_slice %43 {offsets = [0, 8], sizes = [128, 8], strides = [1, 1]} : vector<128x32xf32> to vector<128x8xf32>
    %67 = vector.extract_strided_slice %44 {offsets = [0, 8], sizes = [128, 8], strides = [1, 1]} : vector<128x32xf32> to vector<128x8xf32>
    %cst_36 = arith.constant dense<0.000000e+00> : vector<128x128xf32>
    %68 = tpu.matmul %65, %66, %cst_36 {dimension_numbers = #tpu.dot_dimension_numbers<[1], [1], [0], [0], [0, 0, 1, 0], [], []>} : vector<128x8xf32>, vector<128x8xf32>, vector<128x128xf32> -> vector<128x128xf32>
    %69 = arith.addf %68, %20 : vector<128x128xf32>
    %cst_37 = arith.constant dense<0xFF800000> : vector<128xf32>
    %70 = vector.multi_reduction <maximumf>, %69, %cst_37 [1] : vector<128x128xf32> to vector<128xf32>
    %71 = vector.shape_cast %70 : vector<128xf32> to vector<128x1xf32>
    %72 = vector.broadcast %71 : vector<128x1xf32> to vector<128x128xf32>
    %73 = arith.subf %69, %72 : vector<128x128xf32>
    %74 = math.exp %73 : vector<128x128xf32>
    %cst_38 = arith.constant dense<0.000000e+00> : vector<128xf32>
    %75 = vector.multi_reduction <add>, %74, %cst_38 [1] : vector<128x128xf32> to vector<128xf32>
    %76 = vector.shape_cast %75 : vector<128xf32> to vector<128x1xf32>
    %77 = tpu.reciprocal %76 {approx = true} : vector<128x1xf32> -> vector<128x1xf32>
    %78 = vector.broadcast %77 : vector<128x1xf32> to vector<128x128xf32>
    %79 = arith.mulf %74, %78 : vector<128x128xf32>
    %80 = vector.extract_strided_slice %30 {offsets = [8, 0], sizes = [8, 32], strides = [1, 1]} : vector<32x32xf32> to vector<8x32xf32>
    %cst_39 = arith.constant dense<0.000000e+00> : vector<128x32xf32>
    %81 = tpu.matmul %67, %80, %cst_39 {dimension_numbers = #tpu.dot_dimension_numbers<[1], [0], [0], [1], [0, 0, 1, 1], [], []>} : vector<128x8xf32>, vector<8x32xf32>, vector<128x32xf32> -> vector<128x32xf32>
    %cst_40 = arith.constant dense<0.000000e+00> : vector<128x32xf32>
    %82 = tpu.matmul %79, %81, %cst_40 {dimension_numbers = #tpu.dot_dimension_numbers<[1], [0], [0], [1], [0, 0, 1, 1], [], []>} : vector<128x128xf32>, vector<128x32xf32>, vector<128x32xf32> -> vector<128x32xf32>
    %83 = arith.addf %64, %82 : vector<128x32xf32>
    %84 = vector.extract_strided_slice %42 {offsets = [0, 16], sizes = [128, 8], strides = [1, 1]} : vector<128x32xf32> to vector<128x8xf32>
    %85 = vector.extract_strided_slice %43 {offsets = [0, 16], sizes = [128, 8], strides = [1, 1]} : vector<128x32xf32> to vector<128x8xf32>
    %86 = vector.extract_strided_slice %44 {offsets = [0, 16], sizes = [128, 8], strides = [1, 1]} : vector<128x32xf32> to vector<128x8xf32>
    %cst_41 = arith.constant dense<0.000000e+00> : vector<128x128xf32>
    %87 = tpu.matmul %84, %85, %cst_41 {dimension_numbers = #tpu.dot_dimension_numbers<[1], [1], [0], [0], [0, 0, 1, 0], [], []>} : vector<128x8xf32>, vector<128x8xf32>, vector<128x128xf32> -> vector<128x128xf32>
    %88 = arith.addf %87, %20 : vector<128x128xf32>
    %cst_42 = arith.constant dense<0xFF800000> : vector<128xf32>
    %89 = vector.multi_reduction <maximumf>, %88, %cst_42 [1] : vector<128x128xf32> to vector<128xf32>
    %90 = vector.shape_cast %89 : vector<128xf32> to vector<128x1xf32>
    %91 = vector.broadcast %90 : vector<128x1xf32> to vector<128x128xf32>
    %92 = arith.subf %88, %91 : vector<128x128xf32>
    %93 = math.exp %92 : vector<128x128xf32>
    %cst_43 = arith.constant dense<0.000000e+00> : vector<128xf32>
    %94 = vector.multi_reduction <add>, %93, %cst_43 [1] : vector<128x128xf32> to vector<128xf32>
    %95 = vector.shape_cast %94 : vector<128xf32> to vector<128x1xf32>
    %96 = tpu.reciprocal %95 {approx = true} : vector<128x1xf32> -> vector<128x1xf32>
    %97 = vector.broadcast %96 : vector<128x1xf32> to vector<128x128xf32>
    %98 = arith.mulf %93, %97 : vector<128x128xf32>
    %99 = vector.extract_strided_slice %30 {offsets = [16, 0], sizes = [8, 32], strides = [1, 1]} : vector<32x32xf32> to vector<8x32xf32>
    %cst_44 = arith.constant dense<0.000000e+00> : vector<128x32xf32>
    %100 = tpu.matmul %86, %99, %cst_44 {dimension_numbers = #tpu.dot_dimension_numbers<[1], [0], [0], [1], [0, 0, 1, 1], [], []>} : vector<128x8xf32>, vector<8x32xf32>, vector<128x32xf32> -> vector<128x32xf32>
    %cst_45 = arith.constant dense<0.000000e+00> : vector<128x32xf32>
    %101 = tpu.matmul %98, %100, %cst_45 {dimension_numbers = #tpu.dot_dimension_numbers<[1], [0], [0], [1], [0, 0, 1, 1], [], []>} : vector<128x128xf32>, vector<128x32xf32>, vector<128x32xf32> -> vector<128x32xf32>
    %102 = arith.addf %83, %101 : vector<128x32xf32>
    %103 = vector.extract_strided_slice %42 {offsets = [0, 24], sizes = [128, 8], strides = [1, 1]} : vector<128x32xf32> to vector<128x8xf32>
    %104 = vector.extract_strided_slice %43 {offsets = [0, 24], sizes = [128, 8], strides = [1, 1]} : vector<128x32xf32> to vector<128x8xf32>
    %105 = vector.extract_strided_slice %44 {offsets = [0, 24], sizes = [128, 8], strides = [1, 1]} : vector<128x32xf32> to vector<128x8xf32>
    %cst_46 = arith.constant dense<0.000000e+00> : vector<128x128xf32>
    %106 = tpu.matmul %103, %104, %cst_46 {dimension_numbers = #tpu.dot_dimension_numbers<[1], [1], [0], [0], [0, 0, 1, 0], [], []>} : vector<128x8xf32>, vector<128x8xf32>, vector<128x128xf32> -> vector<128x128xf32>
    %107 = arith.addf %106, %20 : vector<128x128xf32>
    %cst_47 = arith.constant dense<0xFF800000> : vector<128xf32>
    %108 = vector.multi_reduction <maximumf>, %107, %cst_47 [1] : vector<128x128xf32> to vector<128xf32>
    %109 = vector.shape_cast %108 : vector<128xf32> to vector<128x1xf32>
    %110 = vector.broadcast %109 : vector<128x1xf32> to vector<128x128xf32>
    %111 = arith.subf %107, %110 : vector<128x128xf32>
    %112 = math.exp %111 : vector<128x128xf32>
    %cst_48 = arith.constant dense<0.000000e+00> : vector<128xf32>
    %113 = vector.multi_reduction <add>, %112, %cst_48 [1] : vector<128x128xf32> to vector<128xf32>
    %114 = vector.shape_cast %113 : vector<128xf32> to vector<128x1xf32>
    %115 = tpu.reciprocal %114 {approx = true} : vector<128x1xf32> -> vector<128x1xf32>
    %116 = vector.broadcast %115 : vector<128x1xf32> to vector<128x128xf32>
    %117 = arith.mulf %112, %116 : vector<128x128xf32>
    %118 = vector.extract_strided_slice %30 {offsets = [24, 0], sizes = [8, 32], strides = [1, 1]} : vector<32x32xf32> to vector<8x32xf32>
    %cst_49 = arith.constant dense<0.000000e+00> : vector<128x32xf32>
    %119 = tpu.matmul %105, %118, %cst_49 {dimension_numbers = #tpu.dot_dimension_numbers<[1], [0], [0], [1], [0, 0, 1, 1], [], []>} : vector<128x8xf32>, vector<8x32xf32>, vector<128x32xf32> -> vector<128x32xf32>
    %cst_50 = arith.constant dense<0.000000e+00> : vector<128x32xf32>
    %120 = tpu.matmul %117, %119, %cst_50 {dimension_numbers = #tpu.dot_dimension_numbers<[1], [0], [0], [1], [0, 0, 1, 1], [], []>} : vector<128x128xf32>, vector<128x32xf32>, vector<128x32xf32> -> vector<128x32xf32>
    %121 = arith.addf %102, %120 : vector<128x32xf32>
    %122 = vector.broadcast %32 : vector<1x32xf32> to vector<128x32xf32>
    %123 = arith.addf %121, %122 : vector<128x32xf32>
    %cst_51 = arith.constant 0.000000e+00 : f32
    %124 = vector.broadcast %cst_51 : f32 to vector<128x32xf32>
    %125 = arith.maximumf %123, %124 : vector<128x32xf32>
    %cst_52 = arith.constant dense<0.000000e+00> : vector<128x32xf32>
    %126 = tpu.matmul %125, %34, %cst_52 {dimension_numbers = #tpu.dot_dimension_numbers<[1], [0], [0], [1], [0, 0, 1, 1], [], []>} : vector<128x32xf32>, vector<32x32xf32>, vector<128x32xf32> -> vector<128x32xf32>
    %127 = vector.broadcast %36 : vector<1x32xf32> to vector<128x32xf32>
    %128 = arith.addf %126, %127 : vector<128x32xf32>
    %c0_53 = arith.constant 0 : index
    %c0_54 = arith.constant 0 : index
    %c0_55 = arith.constant 0 : index
    %129 = vector.load %arg9[%c0_53, %c0_54, %c0_55] : memref<1x32x96xf32, #tpu.memory_space<vmem>>, vector<1x32x96xf32>
    %130 = vector.shape_cast %129 : vector<1x32x96xf32> to vector<32x96xf32>
    %c0_56 = arith.constant 0 : index
    %c0_57 = arith.constant 0 : index
    %c0_58 = arith.constant 0 : index
    %131 = vector.load %arg10[%c0_56, %c0_57, %c0_58] : memref<1x1x96xf32, #tpu.memory_space<vmem>>, vector<1x1x96xf32>
    %132 = vector.shape_cast %131 : vector<1x1x96xf32> to vector<1x96xf32>
    %c0_59 = arith.constant 0 : index
    %c0_60 = arith.constant 0 : index
    %c0_61 = arith.constant 0 : index
    %133 = vector.load %arg11[%c0_59, %c0_60, %c0_61] : memref<1x32x32xf32, #tpu.memory_space<vmem>>, vector<1x32x32xf32>
    %134 = vector.shape_cast %133 : vector<1x32x32xf32> to vector<32x32xf32>
    %c0_62 = arith.constant 0 : index
    %c0_63 = arith.constant 0 : index
    %c0_64 = arith.constant 0 : index
    %135 = vector.load %arg12[%c0_62, %c0_63, %c0_64] : memref<1x1x32xf32, #tpu.memory_space<vmem>>, vector<1x1x32xf32>
    %136 = vector.shape_cast %135 : vector<1x1x32xf32> to vector<1x32xf32>
    %c0_65 = arith.constant 0 : index
    %c0_66 = arith.constant 0 : index
    %c0_67 = arith.constant 0 : index
    %137 = vector.load %arg13[%c0_65, %c0_66, %c0_67] : memref<1x32x32xf32, #tpu.memory_space<vmem>>, vector<1x32x32xf32>
    %138 = vector.shape_cast %137 : vector<1x32x32xf32> to vector<32x32xf32>
    %c0_68 = arith.constant 0 : index
    %c0_69 = arith.constant 0 : index
    %c0_70 = arith.constant 0 : index
    %139 = vector.load %arg14[%c0_68, %c0_69, %c0_70] : memref<1x1x32xf32, #tpu.memory_space<vmem>>, vector<1x1x32xf32>
    %140 = vector.shape_cast %139 : vector<1x1x32xf32> to vector<1x32xf32>
    %cst_71 = arith.constant dense<0.000000e+00> : vector<128x96xf32>
    %141 = tpu.matmul %1, %130, %cst_71 {dimension_numbers = #tpu.dot_dimension_numbers<[1], [0], [0], [1], [0, 0, 1, 1], [], []>} : vector<128x32xf32>, vector<32x96xf32>, vector<128x96xf32> -> vector<128x96xf32>
    %142 = vector.broadcast %132 : vector<1x96xf32> to vector<128x96xf32>
    %143 = arith.addf %141, %142 : vector<128x96xf32>
    %cst_72 = arith.constant 0.000000e+00 : f32
    %144 = vector.broadcast %cst_72 : f32 to vector<128x96xf32>
    %145 = arith.maximumf %143, %144 : vector<128x96xf32>
    %146 = vector.extract_strided_slice %145 {offsets = [0, 0], sizes = [128, 32], strides = [1, 1]} : vector<128x96xf32> to vector<128x32xf32>
    %147 = vector.extract_strided_slice %145 {offsets = [0, 32], sizes = [128, 32], strides = [1, 1]} : vector<128x96xf32> to vector<128x32xf32>
    %148 = vector.extract_strided_slice %145 {offsets = [0, 64], sizes = [128, 32], strides = [1, 1]} : vector<128x96xf32> to vector<128x32xf32>
    %cst_73 = arith.constant 0.000000e+00 : f32
    %149 = vector.broadcast %cst_73 : f32 to vector<128x32xf32>
    %150 = vector.extract_strided_slice %146 {offsets = [0, 0], sizes = [128, 8], strides = [1, 1]} : vector<128x32xf32> to vector<128x8xf32>
    %151 = vector.extract_strided_slice %147 {offsets = [0, 0], sizes = [128, 8], strides = [1, 1]} : vector<128x32xf32> to vector<128x8xf32>
    %152 = vector.extract_strided_slice %148 {offsets = [0, 0], sizes = [128, 8], strides = [1, 1]} : vector<128x32xf32> to vector<128x8xf32>
    %cst_74 = arith.constant dense<0.000000e+00> : vector<128x128xf32>
    %153 = tpu.matmul %150, %151, %cst_74 {dimension_numbers = #tpu.dot_dimension_numbers<[1], [1], [0], [0], [0, 0, 1, 0], [], []>} : vector<128x8xf32>, vector<128x8xf32>, vector<128x128xf32> -> vector<128x128xf32>
    %154 = arith.addf %153, %23 : vector<128x128xf32>
    %cst_75 = arith.constant dense<0xFF800000> : vector<128xf32>
    %155 = vector.multi_reduction <maximumf>, %154, %cst_75 [1] : vector<128x128xf32> to vector<128xf32>
    %156 = vector.shape_cast %155 : vector<128xf32> to vector<128x1xf32>
    %157 = vector.broadcast %156 : vector<128x1xf32> to vector<128x128xf32>
    %158 = arith.subf %154, %157 : vector<128x128xf32>
    %159 = math.exp %158 : vector<128x128xf32>
    %cst_76 = arith.constant dense<0.000000e+00> : vector<128xf32>
    %160 = vector.multi_reduction <add>, %159, %cst_76 [1] : vector<128x128xf32> to vector<128xf32>
    %161 = vector.shape_cast %160 : vector<128xf32> to vector<128x1xf32>
    %162 = tpu.reciprocal %161 {approx = true} : vector<128x1xf32> -> vector<128x1xf32>
    %163 = vector.broadcast %162 : vector<128x1xf32> to vector<128x128xf32>
    %164 = arith.mulf %159, %163 : vector<128x128xf32>
    %165 = vector.extract_strided_slice %134 {offsets = [0, 0], sizes = [8, 32], strides = [1, 1]} : vector<32x32xf32> to vector<8x32xf32>
    %cst_77 = arith.constant dense<0.000000e+00> : vector<128x32xf32>
    %166 = tpu.matmul %152, %165, %cst_77 {dimension_numbers = #tpu.dot_dimension_numbers<[1], [0], [0], [1], [0, 0, 1, 1], [], []>} : vector<128x8xf32>, vector<8x32xf32>, vector<128x32xf32> -> vector<128x32xf32>
    %cst_78 = arith.constant dense<0.000000e+00> : vector<128x32xf32>
    %167 = tpu.matmul %164, %166, %cst_78 {dimension_numbers = #tpu.dot_dimension_numbers<[1], [0], [0], [1], [0, 0, 1, 1], [], []>} : vector<128x128xf32>, vector<128x32xf32>, vector<128x32xf32> -> vector<128x32xf32>
    %168 = arith.addf %149, %167 : vector<128x32xf32>
    %169 = vector.extract_strided_slice %146 {offsets = [0, 8], sizes = [128, 8], strides = [1, 1]} : vector<128x32xf32> to vector<128x8xf32>
    %170 = vector.extract_strided_slice %147 {offsets = [0, 8], sizes = [128, 8], strides = [1, 1]} : vector<128x32xf32> to vector<128x8xf32>
    %171 = vector.extract_strided_slice %148 {offsets = [0, 8], sizes = [128, 8], strides = [1, 1]} : vector<128x32xf32> to vector<128x8xf32>
    %cst_79 = arith.constant dense<0.000000e+00> : vector<128x128xf32>
    %172 = tpu.matmul %169, %170, %cst_79 {dimension_numbers = #tpu.dot_dimension_numbers<[1], [1], [0], [0], [0, 0, 1, 0], [], []>} : vector<128x8xf32>, vector<128x8xf32>, vector<128x128xf32> -> vector<128x128xf32>
    %173 = arith.addf %172, %23 : vector<128x128xf32>
    %cst_80 = arith.constant dense<0xFF800000> : vector<128xf32>
    %174 = vector.multi_reduction <maximumf>, %173, %cst_80 [1] : vector<128x128xf32> to vector<128xf32>
    %175 = vector.shape_cast %174 : vector<128xf32> to vector<128x1xf32>
    %176 = vector.broadcast %175 : vector<128x1xf32> to vector<128x128xf32>
    %177 = arith.subf %173, %176 : vector<128x128xf32>
    %178 = math.exp %177 : vector<128x128xf32>
    %cst_81 = arith.constant dense<0.000000e+00> : vector<128xf32>
    %179 = vector.multi_reduction <add>, %178, %cst_81 [1] : vector<128x128xf32> to vector<128xf32>
    %180 = vector.shape_cast %179 : vector<128xf32> to vector<128x1xf32>
    %181 = tpu.reciprocal %180 {approx = true} : vector<128x1xf32> -> vector<128x1xf32>
    %182 = vector.broadcast %181 : vector<128x1xf32> to vector<128x128xf32>
    %183 = arith.mulf %178, %182 : vector<128x128xf32>
    %184 = vector.extract_strided_slice %134 {offsets = [8, 0], sizes = [8, 32], strides = [1, 1]} : vector<32x32xf32> to vector<8x32xf32>
    %cst_82 = arith.constant dense<0.000000e+00> : vector<128x32xf32>
    %185 = tpu.matmul %171, %184, %cst_82 {dimension_numbers = #tpu.dot_dimension_numbers<[1], [0], [0], [1], [0, 0, 1, 1], [], []>} : vector<128x8xf32>, vector<8x32xf32>, vector<128x32xf32> -> vector<128x32xf32>
    %cst_83 = arith.constant dense<0.000000e+00> : vector<128x32xf32>
    %186 = tpu.matmul %183, %185, %cst_83 {dimension_numbers = #tpu.dot_dimension_numbers<[1], [0], [0], [1], [0, 0, 1, 1], [], []>} : vector<128x128xf32>, vector<128x32xf32>, vector<128x32xf32> -> vector<128x32xf32>
    %187 = arith.addf %168, %186 : vector<128x32xf32>
    %188 = vector.extract_strided_slice %146 {offsets = [0, 16], sizes = [128, 8], strides = [1, 1]} : vector<128x32xf32> to vector<128x8xf32>
    %189 = vector.extract_strided_slice %147 {offsets = [0, 16], sizes = [128, 8], strides = [1, 1]} : vector<128x32xf32> to vector<128x8xf32>
    %190 = vector.extract_strided_slice %148 {offsets = [0, 16], sizes = [128, 8], strides = [1, 1]} : vector<128x32xf32> to vector<128x8xf32>
    %cst_84 = arith.constant dense<0.000000e+00> : vector<128x128xf32>
    %191 = tpu.matmul %188, %189, %cst_84 {dimension_numbers = #tpu.dot_dimension_numbers<[1], [1], [0], [0], [0, 0, 1, 0], [], []>} : vector<128x8xf32>, vector<128x8xf32>, vector<128x128xf32> -> vector<128x128xf32>
    %192 = arith.addf %191, %23 : vector<128x128xf32>
    %cst_85 = arith.constant dense<0xFF800000> : vector<128xf32>
    %193 = vector.multi_reduction <maximumf>, %192, %cst_85 [1] : vector<128x128xf32> to vector<128xf32>
    %194 = vector.shape_cast %193 : vector<128xf32> to vector<128x1xf32>
    %195 = vector.broadcast %194 : vector<128x1xf32> to vector<128x128xf32>
    %196 = arith.subf %192, %195 : vector<128x128xf32>
    %197 = math.exp %196 : vector<128x128xf32>
    %cst_86 = arith.constant dense<0.000000e+00> : vector<128xf32>
    %198 = vector.multi_reduction <add>, %197, %cst_86 [1] : vector<128x128xf32> to vector<128xf32>
    %199 = vector.shape_cast %198 : vector<128xf32> to vector<128x1xf32>
    %200 = tpu.reciprocal %199 {approx = true} : vector<128x1xf32> -> vector<128x1xf32>
    %201 = vector.broadcast %200 : vector<128x1xf32> to vector<128x128xf32>
    %202 = arith.mulf %197, %201 : vector<128x128xf32>
    %203 = vector.extract_strided_slice %134 {offsets = [16, 0], sizes = [8, 32], strides = [1, 1]} : vector<32x32xf32> to vector<8x32xf32>
    %cst_87 = arith.constant dense<0.000000e+00> : vector<128x32xf32>
    %204 = tpu.matmul %190, %203, %cst_87 {dimension_numbers = #tpu.dot_dimension_numbers<[1], [0], [0], [1], [0, 0, 1, 1], [], []>} : vector<128x8xf32>, vector<8x32xf32>, vector<128x32xf32> -> vector<128x32xf32>
    %cst_88 = arith.constant dense<0.000000e+00> : vector<128x32xf32>
    %205 = tpu.matmul %202, %204, %cst_88 {dimension_numbers = #tpu.dot_dimension_numbers<[1], [0], [0], [1], [0, 0, 1, 1], [], []>} : vector<128x128xf32>, vector<128x32xf32>, vector<128x32xf32> -> vector<128x32xf32>
    %206 = arith.addf %187, %205 : vector<128x32xf32>
    %207 = vector.extract_strided_slice %146 {offsets = [0, 24], sizes = [128, 8], strides = [1, 1]} : vector<128x32xf32> to vector<128x8xf32>
    %208 = vector.extract_strided_slice %147 {offsets = [0, 24], sizes = [128, 8], strides = [1, 1]} : vector<128x32xf32> to vector<128x8xf32>
    %209 = vector.extract_strided_slice %148 {offsets = [0, 24], sizes = [128, 8], strides = [1, 1]} : vector<128x32xf32> to vector<128x8xf32>
    %cst_89 = arith.constant dense<0.000000e+00> : vector<128x128xf32>
    %210 = tpu.matmul %207, %208, %cst_89 {dimension_numbers = #tpu.dot_dimension_numbers<[1], [1], [0], [0], [0, 0, 1, 0], [], []>} : vector<128x8xf32>, vector<128x8xf32>, vector<128x128xf32> -> vector<128x128xf32>
    %211 = arith.addf %210, %23 : vector<128x128xf32>
    %cst_90 = arith.constant dense<0xFF800000> : vector<128xf32>
    %212 = vector.multi_reduction <maximumf>, %211, %cst_90 [1] : vector<128x128xf32> to vector<128xf32>
    %213 = vector.shape_cast %212 : vector<128xf32> to vector<128x1xf32>
    %214 = vector.broadcast %213 : vector<128x1xf32> to vector<128x128xf32>
    %215 = arith.subf %211, %214 : vector<128x128xf32>
    %216 = math.exp %215 : vector<128x128xf32>
    %cst_91 = arith.constant dense<0.000000e+00> : vector<128xf32>
    %217 = vector.multi_reduction <add>, %216, %cst_91 [1] : vector<128x128xf32> to vector<128xf32>
    %218 = vector.shape_cast %217 : vector<128xf32> to vector<128x1xf32>
    %219 = tpu.reciprocal %218 {approx = true} : vector<128x1xf32> -> vector<128x1xf32>
    %220 = vector.broadcast %219 : vector<128x1xf32> to vector<128x128xf32>
    %221 = arith.mulf %216, %220 : vector<128x128xf32>
    %222 = vector.extract_strided_slice %134 {offsets = [24, 0], sizes = [8, 32], strides = [1, 1]} : vector<32x32xf32> to vector<8x32xf32>
    %cst_92 = arith.constant dense<0.000000e+00> : vector<128x32xf32>
    %223 = tpu.matmul %209, %222, %cst_92 {dimension_numbers = #tpu.dot_dimension_numbers<[1], [0], [0], [1], [0, 0, 1, 1], [], []>} : vector<128x8xf32>, vector<8x32xf32>, vector<128x32xf32> -> vector<128x32xf32>
    %cst_93 = arith.constant dense<0.000000e+00> : vector<128x32xf32>
    %224 = tpu.matmul %221, %223, %cst_93 {dimension_numbers = #tpu.dot_dimension_numbers<[1], [0], [0], [1], [0, 0, 1, 1], [], []>} : vector<128x128xf32>, vector<128x32xf32>, vector<128x32xf32> -> vector<128x32xf32>
    %225 = arith.addf %206, %224 : vector<128x32xf32>
    %226 = vector.broadcast %136 : vector<1x32xf32> to vector<128x32xf32>
    %227 = arith.addf %225, %226 : vector<128x32xf32>
    %cst_94 = arith.constant 0.000000e+00 : f32
    %228 = vector.broadcast %cst_94 : f32 to vector<128x32xf32>
    %229 = arith.maximumf %227, %228 : vector<128x32xf32>
    %cst_95 = arith.constant dense<0.000000e+00> : vector<128x32xf32>
    %230 = tpu.matmul %229, %138, %cst_95 {dimension_numbers = #tpu.dot_dimension_numbers<[1], [0], [0], [1], [0, 0, 1, 1], [], []>} : vector<128x32xf32>, vector<32x32xf32>, vector<128x32xf32> -> vector<128x32xf32>
    %231 = vector.broadcast %140 : vector<1x32xf32> to vector<128x32xf32>
    %232 = arith.addf %230, %231 : vector<128x32xf32>
    %233 = arith.addf %1, %3 : vector<128x32xf32>
    %c0_96 = arith.constant 0 : index
    %c0_97 = arith.constant 0 : index
    %234 = vector.load %arg15[%c0_96, %c0_97] : memref<128x32xf32, #tpu.memory_space<vmem>>, vector<128x32xf32>
    %c0_98 = arith.constant 0 : index
    %c0_99 = arith.constant 0 : index
    %235 = vector.load %arg16[%c0_98, %c0_99] : memref<128x32xf32, #tpu.memory_space<vmem>>, vector<128x32xf32>
    %cst_100 = arith.constant dense<0.000000e+00> : vector<128x128xf32>
    %236 = tpu.matmul %234, %235, %cst_100 {dimension_numbers = #tpu.dot_dimension_numbers<[1], [1], [0], [0], [0, 0, 1, 0], [], []>} : vector<128x32xf32>, vector<128x32xf32>, vector<128x128xf32> -> vector<128x128xf32>
    %cst_101 = arith.constant 0.000000e+00 : f32
    %237 = vector.broadcast %cst_101 : f32 to vector<128x128xf32>
    %238 = arith.maximumf %236, %237 : vector<128x128xf32>
    %cst_102 = arith.constant -1.000000e+09 : f32
    %239 = vector.broadcast %cst_102 : f32 to vector<128x128xf32>
    %240 = arith.select %14, %238, %239 : vector<128x128xi1>, vector<128x128xf32>
    %cst_103 = arith.constant dense<0xFF800000> : vector<128xf32>
    %241 = vector.multi_reduction <maximumf>, %240, %cst_103 [1] : vector<128x128xf32> to vector<128xf32>
    %242 = vector.shape_cast %241 : vector<128xf32> to vector<128x1xf32>
    %243 = vector.broadcast %242 : vector<128x1xf32> to vector<128x128xf32>
    %244 = arith.subf %240, %243 : vector<128x128xf32>
    %245 = math.exp %244 : vector<128x128xf32>
    %cst_104 = arith.constant dense<0.000000e+00> : vector<128xf32>
    %246 = vector.multi_reduction <add>, %245, %cst_104 [1] : vector<128x128xf32> to vector<128xf32>
    %247 = vector.shape_cast %246 : vector<128xf32> to vector<128x1xf32>
    %248 = tpu.reciprocal %247 {approx = true} : vector<128x1xf32> -> vector<128x1xf32>
    %249 = vector.broadcast %248 : vector<128x1xf32> to vector<128x128xf32>
    %250 = arith.mulf %245, %249 : vector<128x128xf32>
    %c0_105 = arith.constant 0 : index
    %c0_106 = arith.constant 0 : index
    %251 = vector.load %arg17[%c0_105, %c0_106] : memref<32x32xf32, #tpu.memory_space<vmem>>, vector<32x32xf32>
    %cst_107 = arith.constant dense<0.000000e+00> : vector<128x32xf32>
    %252 = tpu.matmul %233, %251, %cst_107 {dimension_numbers = #tpu.dot_dimension_numbers<[1], [0], [0], [1], [0, 0, 1, 1], [], []>} : vector<128x32xf32>, vector<32x32xf32>, vector<128x32xf32> -> vector<128x32xf32>
    %c0_108 = arith.constant 0 : index
    %c0_109 = arith.constant 0 : index
    %253 = vector.load %arg18[%c0_108, %c0_109] : memref<1x32xf32, #tpu.memory_space<vmem>>, vector<1x32xf32>
    %254 = vector.broadcast %253 : vector<1x32xf32> to vector<128x32xf32>
    %255 = arith.addf %252, %254 : vector<128x32xf32>
    %cst_110 = arith.constant dense<0.000000e+00> : vector<128x32xf32>
    %256 = tpu.matmul %250, %255, %cst_110 {dimension_numbers = #tpu.dot_dimension_numbers<[1], [0], [0], [1], [0, 0, 1, 1], [], []>} : vector<128x128xf32>, vector<128x32xf32>, vector<128x32xf32> -> vector<128x32xf32>
    %cst_111 = arith.constant 0.000000e+00 : f32
    %257 = vector.broadcast %cst_111 : f32 to vector<128x32xf32>
    %258 = arith.maximumf %256, %257 : vector<128x32xf32>
    %259 = arith.mulf %232, %258 : vector<128x32xf32>
    %260 = arith.negf %259 : vector<128x32xf32>
    %261 = math.exp %260 : vector<128x32xf32>
    %cst_112 = arith.constant 1.000000e+00 : f32
    %262 = vector.broadcast %cst_112 : f32 to vector<128x32xf32>
    %263 = arith.addf %262, %261 : vector<128x32xf32>
    %264 = arith.divf %262, %263 : vector<128x32xf32>
    %265 = arith.mulf %264, %232 : vector<128x32xf32>
    %cst_113 = arith.constant 1.000000e+00 : f32
    %266 = vector.broadcast %cst_113 : f32 to vector<128x32xf32>
    %267 = arith.subf %266, %264 : vector<128x32xf32>
    %268 = arith.mulf %267, %258 : vector<128x32xf32>
    %269 = arith.addf %265, %268 : vector<128x32xf32>
    %270 = arith.mulf %269, %128 : vector<128x32xf32>
    %271 = arith.negf %270 : vector<128x32xf32>
    %272 = math.exp %271 : vector<128x32xf32>
    %cst_114 = arith.constant 1.000000e+00 : f32
    %273 = vector.broadcast %cst_114 : f32 to vector<128x32xf32>
    %274 = arith.addf %273, %272 : vector<128x32xf32>
    %275 = arith.divf %273, %274 : vector<128x32xf32>
    %276 = arith.mulf %275, %269 : vector<128x32xf32>
    %cst_115 = arith.constant 1.000000e+00 : f32
    %277 = vector.broadcast %cst_115 : f32 to vector<128x32xf32>
    %278 = arith.subf %277, %275 : vector<128x32xf32>
    %279 = arith.mulf %278, %128 : vector<128x32xf32>
    %280 = arith.addf %276, %279 : vector<128x32xf32>
    %281 = arith.addf %1, %280 : vector<128x32xf32>
    %c0_116 = arith.constant 0 : index
    %c0_117 = arith.constant 0 : index
    %c0_118 = arith.constant 0 : index
    %282 = vector.load %arg19[%c0_116, %c0_117, %c0_118] : memref<1x128x32xf32, #tpu.memory_space<vmem>>, vector<1x128x32xf32>
    %283 = vector.shape_cast %282 : vector<1x128x32xf32> to vector<128x32xf32>
    %284 = vector.shape_cast %281 : vector<128x32xf32> to vector<1x128x32xf32>
    tpu.vector_store %arg19[%c0_116, %c0_117, %c0_118], %284 {strides = array<i32>} : memref<1x128x32xf32, #tpu.memory_space<vmem>>, vector<1x128x32xf32>,
    return
  }
  func.func @transform_0(%arg0: i32) -> (i32, i32, i32) {
    %c0_i32 = arith.constant 0 : i32
    %c0_i32_0 = arith.constant 0 : i32
    %c0_i32_1 = arith.constant 0 : i32
    return %arg0, %c0_i32, %c0_i32_0 : i32, i32, i32
  }
  func.func @transform_1(%arg0: i32) -> (i32, i32, i32) {
    %c0_i32 = arith.constant 0 : i32
    %c0_i32_0 = arith.constant 0 : i32
    %c0_i32_1 = arith.constant 0 : i32
    return %arg0, %c0_i32, %c0_i32_0 : i32, i32, i32
  }
  func.func @transform_2(%arg0: i32) -> (i32, i32, i32) {
    %c0_i32 = arith.constant 0 : i32
    %c0_i32_0 = arith.constant 0 : i32
    %c0_i32_1 = arith.constant 0 : i32
    %c0_i32_2 = arith.constant 0 : i32
    return %c0_i32, %c0_i32_0, %c0_i32_1 : i32, i32, i32
  }
  func.func @transform_3(%arg0: i32) -> (i32, i32, i32) {
    %c0_i32 = arith.constant 0 : i32
    %c0_i32_0 = arith.constant 0 : i32
    %c0_i32_1 = arith.constant 0 : i32
    %c0_i32_2 = arith.constant 0 : i32
    return %c0_i32, %c0_i32_0, %c0_i32_1 : i32, i32, i32
  }
  func.func @transform_4(%arg0: i32) -> (i32, i32, i32) {
    %c0_i32 = arith.constant 0 : i32
    %c0_i32_0 = arith.constant 0 : i32
    %c0_i32_1 = arith.constant 0 : i32
    %c0_i32_2 = arith.constant 0 : i32
    return %c0_i32, %c0_i32_0, %c0_i32_1 : i32, i32, i32
  }
  func.func @transform_5(%arg0: i32) -> (i32, i32, i32) {
    %c0_i32 = arith.constant 0 : i32
    %c0_i32_0 = arith.constant 0 : i32
    %c0_i32_1 = arith.constant 0 : i32
    %c0_i32_2 = arith.constant 0 : i32
    return %c0_i32, %c0_i32_0, %c0_i32_1 : i32, i32, i32
  }
  func.func @transform_6(%arg0: i32) -> (i32, i32, i32) {
    %c0_i32 = arith.constant 0 : i32
    %c0_i32_0 = arith.constant 0 : i32
    %c0_i32_1 = arith.constant 0 : i32
    %c0_i32_2 = arith.constant 0 : i32
    return %c0_i32, %c0_i32_0, %c0_i32_1 : i32, i32, i32
  }
  func.func @transform_7(%arg0: i32) -> (i32, i32, i32) {
    %c0_i32 = arith.constant 0 : i32
    %c0_i32_0 = arith.constant 0 : i32
    %c0_i32_1 = arith.constant 0 : i32
    %c0_i32_2 = arith.constant 0 : i32
    return %c0_i32, %c0_i32_0, %c0_i32_1 : i32, i32, i32
  }
  func.func @transform_8(%arg0: i32) -> (i32, i32, i32) {
    %c0_i32 = arith.constant 0 : i32
    %c0_i32_0 = arith.constant 0 : i32
    %c0_i32_1 = arith.constant 0 : i32
    %c0_i32_2 = arith.constant 0 : i32
    return %c0_i32, %c0_i32_0, %c0_i32_1 : i32, i32, i32
  }
  func.func @transform_9(%arg0: i32) -> (i32, i32, i32) {
    %c0_i32 = arith.constant 0 : i32
    %c0_i32_0 = arith.constant 0 : i32
    %c0_i32_1 = arith.constant 0 : i32
    %c0_i32_2 = arith.constant 0 : i32
    return %c0_i32, %c0_i32_0, %c0_i32_1 : i32, i32, i32
  }
  func.func @transform_10(%arg0: i32) -> (i32, i32, i32) {
    %c0_i32 = arith.constant 0 : i32
    %c0_i32_0 = arith.constant 0 : i32
    %c0_i32_1 = arith.constant 0 : i32
    %c0_i32_2 = arith.constant 0 : i32
    return %c0_i32, %c0_i32_0, %c0_i32_1 : i32, i32, i32
  }
  func.func @transform_11(%arg0: i32) -> (i32, i32, i32) {
    %c0_i32 = arith.constant 0 : i32
    %c0_i32_0 = arith.constant 0 : i32
    %c0_i32_1 = arith.constant 0 : i32
    %c0_i32_2 = arith.constant 0 : i32
    return %c0_i32, %c0_i32_0, %c0_i32_1 : i32, i32, i32
  }
  func.func @transform_12(%arg0: i32) -> (i32, i32, i32) {
    %c0_i32 = arith.constant 0 : i32
    %c0_i32_0 = arith.constant 0 : i32
    %c0_i32_1 = arith.constant 0 : i32
    %c0_i32_2 = arith.constant 0 : i32
    return %c0_i32, %c0_i32_0, %c0_i32_1 : i32, i32, i32
  }
  func.func @transform_13(%arg0: i32) -> (i32, i32, i32) {
    %c0_i32 = arith.constant 0 : i32
    %c0_i32_0 = arith.constant 0 : i32
    %c0_i32_1 = arith.constant 0 : i32
    %c0_i32_2 = arith.constant 0 : i32
    return %c0_i32, %c0_i32_0, %c0_i32_1 : i32, i32, i32
  }
  func.func @transform_14(%arg0: i32) -> (i32, i32) {
    %c0_i32 = arith.constant 0 : i32
    %c0_i32_0 = arith.constant 0 : i32
    %c0_i32_1 = arith.constant 0 : i32
    return %c0_i32, %c0_i32_0 : i32, i32
  }
  func.func @transform_15(%arg0: i32) -> (i32, i32) {
    %c0_i32 = arith.constant 0 : i32
    %c0_i32_0 = arith.constant 0 : i32
    %c0_i32_1 = arith.constant 0 : i32
    return %c0_i32, %c0_i32_0 : i32, i32
  }
  func.func @transform_16(%arg0: i32) -> (i32, i32) {
    %c0_i32 = arith.constant 0 : i32
    %c0_i32_0 = arith.constant 0 : i32
    %c0_i32_1 = arith.constant 0 : i32
    return %c0_i32, %c0_i32_0 : i32, i32
  }
  func.func @transform_17(%arg0: i32) -> (i32, i32) {
    %c0_i32 = arith.constant 0 : i32
    %c0_i32_0 = arith.constant 0 : i32
    %c0_i32_1 = arith.constant 0 : i32
    return %c0_i32, %c0_i32_0 : i32, i32
  }
  func.func @transform_18(%arg0: i32) -> (i32, i32, i32) {
    %c0_i32 = arith.constant 0 : i32
    %c0_i32_0 = arith.constant 0 : i32
    %c0_i32_1 = arith.constant 0 : i32
    return %arg0, %c0_i32, %c0_i32_0 : i32, i32, i32
  }
}

</mosaic_0001>

<bundles_post_ra>
// kernel: _lambda_.1
= control target key start
LH: loop header
LB: loop body
LE: loop exit
PB: predicated region body
PF: predicated region fallthrough
CT: control target
= control target key end

     0   :  { %s14045_s0 = inlined_call_operand.vmem [shape: f32[2,128,32], index: 0, kind: input, shape index: {}]   ;;  %s14046_s1 = inlined_call_operand.vmem [shape: f32[2,128,32], index: 1, kind: input, shape index: {}]   ;;  %s14047_s2 = inlined_call_operand.vmem [shape: f32[1,32,96], index: 2, kind: input, shape index: {}]   ;;  %s14048_s3 = inlined_call_operand.vmem [shape: f32[1,1,96], index: 3, kind: input, shape index: {}]   ;;  %s14049_s4 = inlined_call_operand.vmem [shape: f32[1,32,32], index: 4, kind: input, shape index: {}]   ;;  %s14050_s5 = inlined_call_operand.vmem [shape: f32[1,1,32], index: 5, kind: input, shape index: {}]   ;;  %s14051_s6 = inlined_call_operand.vmem [shape: f32[1,32,32], index: 6, kind: input, shape index: {}]   ;;  %s14052_s7 = inlined_call_operand.vmem [shape: f32[1,1,32], index: 7, kind: input, shape index: {}]   ;;  %s14053_s8 = inlined_call_operand.vmem [shape: f32[1,32,96], index: 8, kind: input, shape index: {}]   ;;  %s14054_s9 = inlined_call_operand.vmem [shape: f32[1,1,96], index: 9, kind: input, shape index: {}]   ;;  %s14055_s10 = inlined_call_operand.vmem [shape: f32[1,32,32], index: 10, kind: input, shape index: {}]   ;;  %s14056_s11 = inlined_call_operand.vmem [shape: f32[1,1,32], index: 11, kind: input, shape index: {}]   ;;  %s14057_s12 = inlined_call_operand.vmem [shape: f32[1,32,32], index: 12, kind: input, shape index: {}]   ;;  %s14058_s13 = inlined_call_operand.vmem [shape: f32[1,1,32], index: 13, kind: input, shape index: {}]   ;;  %s14059_s14 = inlined_call_operand.vmem [shape: f32[128,32], index: 14, kind: input, shape index: {}]   ;;  %s14060_s15 = inlined_call_operand.vmem [shape: f32[128,32], index: 15, kind: input, shape index: {}]   ;;  %s14061_s16 = inlined_call_operand.vmem [shape: f32[32,32], index: 16, kind: input, shape index: {}]   ;;  %s14062_s17 = inlined_call_operand.vmem [shape: f32[1,32], index: 17, kind: input, shape index: {}]   ;;  %s14063_s18 = inlined_call_operand.hbm [shape: f32[2,128,32], index: 18, kind: output, shape index: {}]  }
   0x1   :  { %14219 = sst [smem:[#allocation95_spill]] %s14045_s0 }
   0x2   :  { %14220 = sst [smem:[#allocation96_spill]] %s14046_s1 }
   0x3   :  { %14221 = sst [smem:[#allocation97_spill]] %s14047_s2 }
   0x4   :  { %14222 = sst [smem:[#allocation98_spill]] %s14048_s3 }
   0x5   :  { %14223 = sst [smem:[#allocation99_spill]] %s14049_s4 }
   0x6   :  { %14224 = sst [smem:[#allocation100_spill]] %s14050_s5 }
   0x7   :  { %14225 = sst [smem:[#allocation101_spill]] %s14063_s18 }
   0x8   :  { %23 = vsyncpa [#allocation3], 0 }
   0x9   :  { %25 = vsyncpa [#allocation3 + $0x1], 0  ;;  %s8614_s27 = smov 0   ;;  %s8616_s28 = smov 0  }
   0xa   :  { %s8618_s29 = smov 0   ;;  %s8620_s30 = smov 0  }
   0xb LB: > { %14226 = sst [smem:[#allocation5_spill]] %s8491_s27  ;;  %s8635_s0 = sadd.s32 4294967295, %s8503_s30   ;;  %s8503_s30 = sphi %s8620_s30, %s14734_s30   ;;  %s8499_s29 = sphi %s8618_s29, %s14736_s29   ;;  %s8495_s28 = sphi %s8616_s28, %s14738_s28   ;;  %s8491_s27 = sphi %s8614_s27, %s14737_s27  }
   0xc   : > { %14227 = sst [smem:[#allocation6_spill]] %s8499_s29  ;;  %s7082_s19 = sadd.s32 4294967294, %s8503_s30  }
   0xd   : > { %14228 = sst [smem:[#allocation7_spill]] %s8503_s30  ;;  %s8639_s1 = sadd.s32 1, %s8503_s30  }
   0xe   : > { %14229 = sst [smem:[#allocation8_spill]] %s8639_s1  ;;  %s426_s20 = sadd.s32 1, %s8499_s29 }
   0xf   : > { %s423_s21 = ssub.s32 %s8503_s30, %s8639_s1  ;;  %p436_p0 = scmp.ne.s32.totalorder %s8499_s29, %s8495_s28 }
  0x10   : > { %p424_p1 = scmp.eq.s32.totalorder %s423_s21, 0  ;;  %p437_p2 = scmp.eq.s32.totalorder %s8635_s0, 1 }
  0x11   : > { %p442_p3 = scmp.ne.s32.totalorder %s8495_s28, %s8491_s27  ;;  %p443_p4 = scmp.eq.s32.totalorder %s7082_s19, 1 }
  0x12   : > { %s8650_s22 = scalar_select %p424_p1, %s8499_s29, %s426_s20  }
  0x13   : > { %p8652_p5 = por %p437_p2, %p436_p0  ;;  %p8656_p6 = por %p443_p4, %p442_p3 }
  0x14   : > { %14230 = sst [smem:[#allocation9_spill]] %s8650_s22  ;;  %p7085_p7 = scmp.ge.s32.totalorder %s8503_s30, 1 }
  0x15   : > { %s14231_s2 = scalar_select %p8652_p5, 1, 0 }
  0x16   : > { %s14233_s23 = scalar_select %p8656_p6, 1, 0 }
  0x17   : > { %14232 = sst [smem:[#allocation10_spill]] %s14231_s2  ;;  %p525_p8 = scmp.lt.s32.totalorder %s8503_s30, 3 }
  0x18   : > { %14234 = sst [smem:[#allocation11_spill]] %s14233_s23 }
  0x19   : > { %p526_p9 = pnand %p7085_p7, %p525_p8 }
  0x1b   : > { %529 = sbr.rel (%p526_p9) target bundleno = 4096 (0x1000), region = 92 }
  0x20   : > { %s14235_s26 = sld [smem:[#allocation97_spill]]  ;;  %p584_p10 = scmp.lt.s32.totalorder %s8635_s0, 1  ;;  %vm14188_vm0 = vcmask 261120   ;;  %vm14217_vm1 = vcmask 64512  }
  0x21   : > { %s14236_s30 = sld [smem:[#allocation95_spill]]  ;;  %s8507_s1 = smov 120  }
  0x22   : > { %s585_s29 = scalar_select %p584_p10, %s8635_s0, 1 }
  0x23   : > { %s14237_s18 = sld [smem:[#allocation96_spill]]  ;;  %s8508_s23 = smov 88  }
  0x24   : > { %s7624_s24 = sshll.u32 %s585_s29, 7  ;;  %s14253_s3 = sld [smem:[#allocation98_spill]] }
  0x25   : > { %s8505_s29 = smov 64   ;;  %s8509_s21 = smov 80  }
  0x26   : > { %v794_v0 = vld [vmem:[%s14235_s26 + $0x18] sm:$0xff]  ;;  %v793_v1 = vld [vmem:[%s14235_s26 + $0x10] sm:$0xff]  ;;  %v792_v2 = vld [vmem:[%s14235_s26 + $0x8] sm:$0xff]  ;;  %s14255_s4 = sld [smem:[#allocation99_spill]]  ;;  %s14153_s19 = smov 112  }
  0x27   : > { %870 = vmatpush.msra.mxu0 %v794_v0  ;;  %v791_v3 = vld [vmem:[%s14235_s26] sm:$0xff]  ;;  %s8679_s2 = scalar_lea.vmem %s14236_s30, %s7624_s24  ;;  %s8506_s30 = smov 96  }
  0x28   : > { %v594_v4 = vld [vmem:[%s8679_s2] sm:$0xff]  ;;  %v595_v7 = vld [vmem:[%s8679_s2 + $0x8] sm:$0xff]  ;;  %v596_v10 = vld [vmem:[%s8679_s2 + $0x10] sm:$0xff]  ;;  %s8511_s20 = smov 56   ;;  %s14147_s25 = smov 104  }
  0x29   : > { %871 = vmatpush.msra.mxu0 %v793_v1  ;;  %s8684_s22 = scalar_lea.vmem %s14237_s18, %s7624_s24  ;;  %v597_v13 = vld [vmem:[%s8679_s2 + $0x18] sm:$0xff]  ;;  %v598_v16 = vld [vmem:[%s8679_s2 + $0x20] sm:$0xff]  ;;  %v599_v19 = vld [vmem:[%s8679_s2 + $0x28] sm:$0xff]  ;;  %s14149_s24 = smov 40  }
  0x2a   : > { %v610_v5 = vld [vmem:[%s8684_s22] sm:$0xff]  ;;  %v611_v8 = vld [vmem:[%s8684_s22 + $0x8] sm:$0xff]  ;;  %v612_v11 = vld [vmem:[%s8684_s22 + $0x10] sm:$0xff]  ;;  %s14151_s18 = smov 48   ;;  %s14409_s5 = sld [smem:[#allocation100_spill]] }
  0x2b   : > { %872 = vmatpush.msra.mxu0 %v792_v2  ;;  %v8688_v6 = vadd.f32 %v610_v5, %v594_v4  ;;  %v8694_v9 = vadd.f32 %v611_v8, %v595_v7  ;;  %v8700_v12 = vadd.f32 %v612_v11, %v596_v10  ;;  %v613_v14 = vld [vmem:[%s8684_s22 + $0x18] sm:$0xff]  ;;  %v614_v17 = vld [vmem:[%s8684_s22 + $0x20] sm:$0xff]  ;;  %v615_v20 = vld [vmem:[%s8684_s22 + $0x28] sm:$0xff] }
  0x2c   : > { %v8706_v15 = vadd.f32 %v613_v14, %v597_v13  ;;  %v8712_v18 = vadd.f32 %v614_v17, %v598_v16  ;;  %v8718_v21 = vadd.f32 %v615_v20, %v599_v19  ;;  %v600_v22 = vld [vmem:[%s8679_s2 + $0x30] sm:$0xff]  ;;  %v601_v25 = vld [vmem:[%s8679_s2 + $0x38] sm:$0xff]  ;;  %v602_v28 = vld [vmem:[%s8679_s2 + $0x40] sm:$0xff] }
  0x2d   : > { %873 = vmatpush.msra.mxu0 %v791_v3  ;;  %14238 = vst [vmem:[#allocation12_spill] sm:$0xff] %v8688_v6  ;;  %v616_v23 = vld [vmem:[%s8684_s22 + $0x30] sm:$0xff]  ;;  %v617_v26 = vld [vmem:[%s8684_s22 + $0x38] sm:$0xff]  ;;  %v618_v29 = vld [vmem:[%s8684_s22 + $0x40] sm:$0xff] }
  0x2e   : > { %7091 = vmatmul.msk.f32.vlgmr.msra.gmra.mxu0 %vm14188_vm0, %v8688_v6  ;;  %14239 = vst [vmem:[#allocation13_spill] sm:$0xff] %v8694_v9  ;;  %v8724_v24 = vadd.f32 %v616_v23, %v600_v22  ;;  %v8730_v27 = vadd.f32 %v617_v26, %v601_v25  ;;  %v8736_v30 = vadd.f32 %v618_v29, %v602_v28  ;;  %v603_v31 = vld [vmem:[%s8679_s2 + $0x48] sm:$0xff]  ;;  %v604_v34 = vld [vmem:[%s8679_s2 + $0x50] sm:$0xff]  ;;  %v605_v37 = vld [vmem:[%s8679_s2 + $0x58] sm:$0xff] }
  0x2f   : > { %14240 = vst [vmem:[#allocation14_spill] sm:$0xff] %v8700_v12  ;;  %v619_v32 = vld [vmem:[%s8684_s22 + $0x48] sm:$0xff]  ;;  %v620_v35 = vld [vmem:[%s8684_s22 + $0x50] sm:$0xff]  ;;  %v621_v38 = vld [vmem:[%s8684_s22 + $0x58] sm:$0xff] }
  0x30   : > { %14241 = vst [vmem:[#allocation15_spill] sm:$0xff] %v8706_v15  ;;  %v8742_v33 = vadd.f32 %v619_v32, %v603_v31  ;;  %v8748_v36 = vadd.f32 %v620_v35, %v604_v34  ;;  %v8754_v39 = vadd.f32 %v621_v38, %v605_v37  ;;  %v606_v40 = vld [vmem:[%s8679_s2 + $0x60] sm:$0xff]  ;;  %v607_v43 = vld [vmem:[%s8679_s2 + $0x68] sm:$0xff]  ;;  %v608_v46 = vld [vmem:[%s8679_s2 + $0x70] sm:$0xff] }
  0x31   : > { %14242 = vst [vmem:[#allocation16_spill] sm:$0xff] %v8712_v18  ;;  %v622_v41 = vld [vmem:[%s8684_s22 + $0x60] sm:$0xff]  ;;  %v623_v44 = vld [vmem:[%s8684_s22 + $0x68] sm:$0xff]  ;;  %v624_v47 = vld [vmem:[%s8684_s22 + $0x70] sm:$0xff] }
  0x32   : > { %14243 = vst [vmem:[#allocation17_spill] sm:$0xff] %v8718_v21  ;;  %v8760_v42 = vadd.f32 %v622_v41, %v606_v40  ;;  %v8766_v45 = vadd.f32 %v623_v44, %v607_v43  ;;  %v8772_v48 = vadd.f32 %v624_v47, %v608_v46  ;;  %v8779_v49 = vld [vmem:[%s14253_s3] ss:$0 sm:$0xff]  ;;  %v609_v52 = vld [vmem:[%s8679_s2 + $0x78] sm:$0xff] }
  0x33   : > { %14244 = vst [vmem:[#allocation18_spill] sm:$0xff] %v8724_v24  ;;  %v625_v53 = vld [vmem:[%s8684_s22 + $0x78] sm:$0xff]  ;;  %v796_v26 = vld [vmem:[%s14255_s4] sm:$0xff]  ;;  %s14145_s22 = smov 72  }
  0x34   : > { %14245 = vst [vmem:[#allocation19_spill] sm:$0xff] %v8730_v27  ;;  %v8784_v54 = vadd.f32 %v625_v53, %v609_v52  ;;  %1340 = vmatpush.msra.mxu2 %v796_v26 }
  0x35   : > { %14246 = vst [vmem:[#allocation20_spill] sm:$0xff] %v8736_v30 }
  0x36   : > { %7092 = vmatmul.msk.f32.gmra.mxu0 %vm14188_vm0, %v8694_v9  ;;  %14247 = vst [vmem:[#allocation21_spill] sm:$0xff] %v8742_v33 }
  0x37   : > { %14248 = vst [vmem:[#allocation22_spill] sm:$0xff] %v8748_v36 }
  0x38   : > { %14249 = vst [vmem:[#allocation23_spill] sm:$0xff] %v8754_v39 }
  0x39   : > { %14250 = vst [vmem:[#allocation24_spill] sm:$0xff] %v8760_v42 }
  0x3a   : > { %14251 = vst [vmem:[#allocation25_spill] sm:$0xff] %v8766_v45 }
  0x3b   : > { %14252 = vst [vmem:[#allocation26_spill] sm:$0xff] %v8772_v48 }
  0x3c   : > { %14254 = vst [vmem:[#allocation27_spill] sm:$0xff] %v8784_v54 }
  0x3e   : > { %7093 = vmatmul.msk.f32.gmra.mxu0 %vm14188_vm0, %v8700_v12 }
  0x46   : > { %7094 = vmatmul.msk.f32.gmra.mxu0 %vm14188_vm0, %v8706_v15 }
  0x4e   : > { %7095 = vmatmul.msk.f32.gmra.mxu0 %vm14188_vm0, %v8712_v18 }
  0x56   : > { %7096 = vmatmul.msk.f32.gmra.mxu0 %vm14188_vm0, %v8718_v21 }
  0x5e   : > { %7097 = vmatmul.msk.f32.gmra.mxu0 %vm14188_vm0, %v8724_v24 }
  0x66   : > { %7098 = vmatmul.msk.f32.gmra.mxu0 %vm14188_vm0, %v8730_v27 }
  0x6e   : > { %7099 = vmatmul.msk.f32.gmra.mxu0 %vm14188_vm0, %v8736_v30 }
  0x76   : > { %7100 = vmatmul.msk.f32.gmra.mxu0 %vm14188_vm0, %v8742_v33 }
  0x7e   : > { %7101 = vmatmul.msk.f32.gmra.mxu0 %vm14188_vm0, %v8748_v36 }
  0x86   : > { %7102 = vmatmul.msk.f32.gmra.mxu0 %vm14188_vm0, %v8754_v39 }
  0x8e   : > { %7103 = vmatmul.msk.f32.gmra.mxu0 %vm14188_vm0, %v8760_v42 }
  0x96   : > { %7104 = vmatmul.msk.f32.gmra.mxu0 %vm14188_vm0, %v8766_v45 }
  0x9e   : > { %7105 = vmatmul.msk.f32.gmra.mxu0 %vm14188_vm0, %v8772_v48 }
  0xa6   : > { %7106 = vmatmul.msk.f32.gmra.mxu0 %vm14188_vm0, %v8784_v54 }
  0xab   : > { %v875_v50 = vpop.f32.mrf.mxu0 }
  0xac   : > { %v876_v51 = vadd.f32 %v8779_v49, %v875_v50 }
  0xae   : > { %v8786_v55 = vmax.f32 %v876_v51, 0.0 }
  0xb0   : > { %1261 = vrot.lane.b32.xlu1 %v8786_v55, %s8505_s29  ;;  %955 = vrot.lane.b32.xlu0 %v8786_v55, %s8506_s30 }
  0xb3   : > { %v878_v56 = vpop.f32.mrf.mxu0 }
  0xb4   : > { %v879_v57 = vadd.f32 %v8779_v49, %v878_v56 }
  0xb6   : > { %v8795_v58 = vmax.f32 %v879_v57, 0.0 }
  0xb8   : > { %957 = vrot.lane.b32.xlu2 %v8795_v58, %s8506_s30  ;;  %1390 = vrot.lane.b32.xlu1 %v8786_v55, %s8507_s1 }
  0xb9   : > { %1422 = vrot.lane.b32.xlu0 %v8786_v55, %s8508_s23 }
  0xbb   : > { %v881_v59 = vpop.f32.mrf.mxu0 }
  0xbc   : > { %v882_v60 = vadd.f32 %v8779_v49, %v881_v59 }
  0xbe   : > { %v8804_v61 = vmax.f32 %v882_v60, 0.0 }
  0xc0   : > { %1263 = vrot.lane.b32.xlu2 %v8795_v58, %s8505_s29  ;;  %959 = vrot.lane.b32.xlu1 %v8804_v61, %s8506_s30 }
  0xc1   : > { %1265 = vrot.lane.b32.xlu0 %v8804_v61, %s8505_s29 }
  0xc3   : > { %v884_v62 = vpop.f32.mrf.mxu0 }
  0xc4   : > { %v885_v63 = vadd.f32 %v8779_v49, %v884_v62 }
  0xc6   : > { %v8819_v1 = vmax.f32 %v885_v63, 0.0 }
  0xc8   : > { %1424 = vrot.lane.b32.xlu2 %v8795_v58, %s8508_s23  ;;  %1426 = vrot.lane.b32.xlu1 %v8804_v61, %s8508_s23 }
  0xc9   : > { %1394 = vrot.lane.b32.xlu0 %v8804_v61, %s8507_s1 }
  0xcb   : > { %v887_v0 = vpop.f32.mrf.mxu0 }
  0xcc   : > { %v888_v5 = vadd.f32 %v8779_v49, %v887_v0 }
  0xce   : > { %v8837_v8 = vmax.f32 %v888_v5, 0.0 }
  0xd0   : > { %1392 = vrot.lane.b32.xlu2 %v8795_v58, %s8507_s1  ;;  %1267 = vrot.lane.b32.xlu1 %v8819_v1, %s8505_s29 }
  0xd1   : > { %961 = vrot.lane.b32.xlu0 %v8819_v1, %s8506_s30 }
  0xd3   : > { %v890_v2 = vpop.f32.mrf.mxu0 }
  0xd4   : > { %v891_v3 = vadd.f32 %v8779_v49, %v890_v2 }
  0xd6   : > { %v8828_v4 = vmax.f32 %v891_v3, 0.0 }
  0xd8   : > { %1396 = vrot.lane.b32.xlu2 %v8819_v1, %s8507_s1  ;;  %965 = vrot.lane.b32.xlu1 %v8828_v4, %s8506_s30 }
  0xd9   : > { %1428 = vrot.lane.b32.xlu0 %v8819_v1, %s8508_s23 }
  0xdb   : > { %v893_v7 = vpop.f32.mrf.mxu0 }
  0xdc   : > { %v894_v10 = vadd.f32 %v8779_v49, %v893_v7 }
  0xde   : > { %v8846_v13 = vmax.f32 %v894_v10, 0.0 }
  0xe0   : > { %963 = vrot.lane.b32.xlu2 %v8837_v8, %s8506_s30  ;;  %1432 = vrot.lane.b32.xlu1 %v8828_v4, %s8508_s23 }
  0xe1   : > { %1398 = vrot.lane.b32.xlu0 %v8837_v8, %s8507_s1 }
  0xe3   : > { %v896_v11 = vpop.f32.mrf.mxu0 }
  0xe4   : > { %v897_v14 = vadd.f32 %v8779_v49, %v896_v11 }
  0xe6   : > { %v8855_v17 = vmax.f32 %v897_v14, 0.0 }
  0xe8   : > { %1269 = vrot.lane.b32.xlu2 %v8837_v8, %s8505_s29  ;;  %1273 = vrot.lane.b32.xlu1 %v8846_v13, %s8505_s29 }
  0xe9   : > { %1271 = vrot.lane.b32.xlu0 %v8828_v4, %s8505_s29 }
  0xeb   : > { %v899_v16 = vpop.f32.mrf.mxu0 }
  0xec   : > { %v900_v19 = vadd.f32 %v8779_v49, %v899_v16 }
  0xee   : > { %v8864_v20 = vmax.f32 %v900_v19, 0.0 }
  0xf0   : > { %1430 = vrot.lane.b32.xlu2 %v8837_v8, %s8508_s23  ;;  %1436 = vrot.lane.b32.xlu1 %v8855_v17, %s8508_s23 }
  0xf1   : > { %967 = vrot.lane.b32.xlu0 %v8846_v13, %s8506_s30 }
  0xf3   : > { %v902_v22 = vpop.f32.mrf.mxu0 }
  0xf4   : > { %v903_v23 = vadd.f32 %v8779_v49, %v902_v22 }
  0xf6   : > { %v8873_v25 = vmax.f32 %v903_v23, 0.0 }
  0xf8   : > { %1400 = vrot.lane.b32.xlu2 %v8828_v4, %s8507_s1  ;;  %971 = vrot.lane.b32.xlu1 %v8864_v20, %s8506_s30 }
  0xf9   : > { %1402 = vrot.lane.b32.xlu0 %v8846_v13, %s8507_s1 }
  0xfb   : > { %v905_v29 = vpop.f32.mrf.mxu0 }
  0xfc   : > { %v906_v31 = vadd.f32 %v8779_v49, %v905_v29 }
  0xfe   : > { %v8905_v34 = vmax.f32 %v906_v31, 0.0 }
 0x100   : > { %2028 = vrot.lane.b32.xlu2 %v8828_v4, %s8509_s21  ;;  %1279 = vrot.lane.b32.xlu1 %v8873_v25, %s8505_s29 }
 0x101   : > { %1404 = vrot.lane.b32.xlu0 %v8855_v17, %s8507_s1 }
 0x103   : > { %v908_v35 = vpop.f32.mrf.mxu0 }
 0x104   : > { %v909_v37 = vadd.f32 %v8779_v49, %v908_v35 }
 0x106   : > { %v8919_v43 = vmax.f32 %v909_v37, 0.0 }
 0x108   : > { %1434 = vrot.lane.b32.xlu2 %v8846_v13, %s8508_s23  ;;  %1440 = vrot.lane.b32.xlu1 %v8873_v25, %s8508_s23 }
 0x109   : > { %2032 = vrot.lane.b32.xlu0 %v8855_v17, %s8509_s21 }
 0x10b   : > { %v911_v44 = vpop.f32.mrf.mxu0 }
 0x10c   : > { %v912_v51 = vadd.f32 %v8779_v49, %v911_v44 }
 0x10e   : > { %v8945_v59 = vmax.f32 %v912_v51, 0.0 }
 0x110   : > { %2030 = vrot.lane.b32.xlu2 %v8846_v13, %s8509_s21  ;;  %1408 = vrot.lane.b32.xlu1 %v8873_v25, %s8507_s1 }
 0x111   : > { %1277 = vrot.lane.b32.xlu0 %v8864_v20, %s8505_s29 }
 0x112   : > { %v8896_v28 = vpop.permute.xlu2 %957 }
 0x113   : > { %v914_v52 = vpop.f32.mrf.mxu0 }
 0x114   : > { %v915_v16 = vadd.f32 %v8779_v49, %v914_v52 }
 0x116   : > { %v8989_v29 = vmax.f32 %v915_v16, 0.0 }
 0x118   : > { %969 = vrot.lane.b32.xlu2 %v8855_v17, %s8506_s30  ;;  %2036 = vrot.lane.b32.xlu1 %v8873_v25, %s8509_s21 }
 0x119   : > { %1438 = vrot.lane.b32.xlu0 %v8864_v20, %s8508_s23 }
 0x11a   : > { %v1264_v32 = vpop.permute.xlu2 %1263 }
 0x11b   : > { %v917_v0 = vpop.f32.mrf.mxu0 }
 0x11c   : > { %v918_v2 = vadd.f32 %v8779_v49, %v917_v0 }
 0x11e   : > { %v8970_v10 = vmax.f32 %v918_v2, 0.0 }
 0x120   : > { %1275 = vrot.lane.b32.xlu2 %v8855_v17, %s8505_s29  ;;  %2038 = vrot.lane.b32.xlu1 %v8905_v34, %s8509_s21 }
 0x121   : > { %1406 = vrot.lane.b32.xlu0 %v8864_v20, %s8507_s1 }
 0x122   : > { %v8914_v38 = vpop.permute.xlu2 %1424  ;;  %v1262_v40 = vpop.permute.xlu1 %1261 }
 0x123   : > { %v8916_v41 = vpop.permute.xlu0 %955  ;;  %7139 = vmatmul.msk.f32.vlgmr.msra.gmra.mxu2 %vm14217_vm1, %v1262_v40  ;;  %v920_v11 = vpop.f32.mrf.mxu0 }
 0x124   : > { %v921_v14 = vadd.f32 %v8779_v49, %v920_v11 }
 0x126   : > { %v8987_v26 = vmax.f32 %v921_v14, 0.0 }
 0x128   : > { %2034 = vrot.lane.b32.xlu2 %v8864_v20, %s8509_s21  ;;  %1283 = vrot.lane.b32.xlu1 %v8919_v43, %s8505_s29 }
 0x129   : > { %973 = vrot.lane.b32.xlu0 %v8873_v25, %s8506_s30 }
 0x12a   : > { %v8927_v46 = vpop.permute.xlu2 %1392  ;;  %v8929_v47 = vpop.permute.xlu1 %1390 }
 0x12b   : > { %v8931_v50 = vpop.permute.xlu0 %1422  ;;  %7140 = vmatmul.msk.f32.gmra.mxu2 %vm14217_vm1, %v1264_v32 }
 0x130   : > { %975 = vrot.lane.b32.xlu2 %v8905_v34, %s8506_s30  ;;  %2040 = vrot.lane.b32.xlu1 %v8919_v43, %s8509_s21 }
 0x131   : > { %1412 = vrot.lane.b32.xlu0 %v8919_v43, %s8507_s1 }
 0x132   : > { %v8941_v53 = vpop.permute.xlu2 %1396  ;;  %v8943_v56 = vpop.permute.xlu1 %959 }
 0x133   : > { %v1266_v57 = vpop.permute.xlu0 %1265 }
 0x134   : > { %7141 = vmatmul.msk.f32.gmra.mxu2 %vm14217_vm1, %v1266_v57 }
 0x138   : > { %1281 = vrot.lane.b32.xlu2 %v8905_v34, %s8505_s29  ;;  %979 = vrot.lane.b32.xlu1 %v8945_v59, %s8506_s30 }
 0x139   : > { %1414 = vrot.lane.b32.xlu0 %v8945_v59, %s8507_s1 }
 0x13a   : > { %v8954_v60 = vpop.permute.xlu2 %963  ;;  %v8956_v62 = vpop.permute.xlu1 %1426 }
 0x13b   : > { %v8958_v63 = vpop.permute.xlu0 %1394 }
 0x140   : > { %1442 = vrot.lane.b32.xlu2 %v8905_v34, %s8508_s23  ;;  %1285 = vrot.lane.b32.xlu1 %v8945_v59, %s8505_s29 }
 0x141   : > { %2042 = vrot.lane.b32.xlu0 %v8945_v59, %s8509_s21 }
 0x142   : > { %v1270_v3 = vpop.permute.xlu2 %1269  ;;  %v1268_v5 = vpop.permute.xlu1 %1267 }
 0x143   : > { %v8967_v7 = vpop.permute.xlu0 %961  ;;  %7142 = vmatmul.msk.f32.gmra.mxu2 %vm14217_vm1, %v1268_v5 }
 0x148   : > { %1410 = vrot.lane.b32.xlu2 %v8905_v34, %s8507_s1  ;;  %1446 = vrot.lane.b32.xlu1 %v8945_v59, %s8508_s23 }
 0x149   : > { %983 = vrot.lane.b32.xlu0 %v8970_v10, %s8506_s30 }
 0x14a   : > { %v8980_v19 = vpop.permute.xlu2 %1430  ;;  %v8982_v22 = vpop.permute.xlu1 %965 }
 0x14b   : > { %v8984_v23 = vpop.permute.xlu0 %1428  ;;  %7143 = vmatmul.msk.f32.gmra.mxu2 %vm14217_vm1, %v1270_v3 }
 0x150   : > { %977 = vrot.lane.b32.xlu2 %v8919_v43, %s8506_s30  ;;  %981 = vrot.lane.b32.xlu1 %v8989_v29, %s8506_s30 }
 0x151   : > { %985 = vrot.lane.b32.xlu0 %v8987_v26, %s8506_s30 }
 0x152   : > { %v8997_v49 = vpop.permute.xlu2 %1400  ;;  %v8999_v31 = vpop.permute.xlu1 %1432 }
 0x153   : > { %v9001_v32 = vpop.permute.xlu0 %1398 }
 0x158   : > { %1444 = vrot.lane.b32.xlu2 %v8919_v43, %s8508_s23  ;;  %1448 = vrot.lane.b32.xlu1 %v8989_v29, %s8508_s23 }
 0x159   : > { %1986 = vrot.lane.b32.xlu0 %v8786_v55, %s14153_s19 }
 0x15a   : > { %v9009_v35 = vpop.permute.xlu2 %2028  ;;  %v1274_v37 = vpop.permute.xlu1 %1273 }
 0x15b   : > { %14256 = vst [vmem:[#allocation28_spill] sm:$0xff] %v9009_v35  ;;  %v1272_v40 = vpop.permute.xlu0 %1271 }
 0x15c   : > { %7144 = vmatmul.msk.f32.gmra.mxu2 %vm14217_vm1, %v1272_v40 }
 0x160   : > { %1287 = vrot.lane.b32.xlu2 %v8989_v29, %s8505_s29  ;;  %1416 = vrot.lane.b32.xlu1 %v8989_v29, %s8507_s1 }
 0x161   : > { %1992 = vrot.lane.b32.xlu0 %v8819_v1, %s14153_s19 }
 0x162   : > { %v9018_v44 = vpop.permute.xlu2 %1434  ;;  %v9020_v51 = vpop.permute.xlu1 %1436 }
 0x163   : > { %v9022_v52 = vpop.permute.xlu0 %967 }
 0x164   : > { %7145 = vmatmul.msk.f32.gmra.mxu2 %vm14217_vm1, %v1274_v37 }
 0x168   : > { %1450 = vrot.lane.b32.xlu2 %v8970_v10, %s8508_s23  ;;  %2044 = vrot.lane.b32.xlu1 %v8989_v29, %s8509_s21 }
 0x169   : > { %2048 = vrot.lane.b32.xlu0 %v8987_v26, %s8509_s21 }
 0x16a   : > { %v9031_v57 = vpop.permute.xlu2 %2030  ;;  %v9033_v0 = vpop.permute.xlu1 %971 }
 0x16b   : > { %14257 = vst [vmem:[#allocation29_spill] sm:$0xff] %v9031_v57  ;;  %v9035_v2 = vpop.permute.xlu0 %1402 }
 0x170   : > { %2046 = vrot.lane.b32.xlu2 %v8970_v10, %s8509_s21  ;;  %1289 = vrot.lane.b32.xlu1 %v8970_v10, %s8505_s29 }
 0x171   : > { %1739 = vrot.lane.b32.xlu0 %v8846_v13, %s8511_s20 }
 0x172   : > { %v9043_v3 = vpop.permute.xlu2 %969  ;;  %v1280_v5 = vpop.permute.xlu1 %1279 }
 0x173   : > { %v9045_v11 = vpop.permute.xlu0 %1404 }
 0x178   : > { %1452 = vrot.lane.b32.xlu2 %v8987_v26, %s8508_s23  ;;  %1418 = vrot.lane.b32.xlu1 %v8970_v10, %s8507_s1 }
 0x179   : > { %2595 = vrot.lane.b32.xlu0 %v8987_v26, %s14145_s22 }
 0x17a   : > { %v1276_v14 = vpop.permute.xlu2 %1275  ;;  %v9053_v16 = vpop.permute.xlu1 %1440 }
 0x17b   : > { %v9055_v37 = vpop.permute.xlu0 %2032  ;;  %7146 = vmatmul.msk.f32.gmra.mxu2 %vm14217_vm1, %v1276_v14 }
 0x17c   : > { %14258 = vst [vmem:[#allocation30_spill] sm:$0xff] %v9055_v37 }
 0x180   : > { %1291 = vrot.lane.b32.xlu2 %v8987_v26, %s8505_s29  ;;  %2022 = vrot.lane.b32.xlu1 %v8804_v61, %s8509_s21 }
 0x181   : > { %2591 = vrot.lane.b32.xlu0 %v8989_v29, %s14145_s22 }
 0x182   : > { %v9064_v40 = vpop.permute.xlu2 %2034  ;;  %v9066_v54 = vpop.permute.xlu1 %1408 }
 0x183   : > { %14259 = vst [vmem:[#allocation31_spill] sm:$0xff] %v9064_v40  ;;  %v1278_v48 = vpop.permute.xlu0 %1277 }
 0x184   : > { %7147 = vmatmul.msk.f32.gmra.mxu2 %vm14217_vm1, %v1278_v48 }
 0x188   : > { %1420 = vrot.lane.b32.xlu2 %v8987_v26, %s8507_s1  ;;  %1729 = vrot.lane.b32.xlu1 %v8795_v58, %s8511_s20 }
 0x189   : > { %2010 = vrot.lane.b32.xlu0 %v8945_v59, %s14153_s19 }
 0x18a   : > { %v9075_v14 = vpop.permute.xlu2 %975  ;;  %v9077_v45 = vpop.permute.xlu1 %2036 }
 0x18b   : > { %14260 = vst [vmem:[#allocation32_spill] sm:$0xff] %v9077_v45  ;;  %v9079_v42 = vpop.permute.xlu0 %1438 }
 0x18c   : > { %7148 = vmatmul.msk.f32.gmra.mxu2 %vm14217_vm1, %v1280_v5 }
 0x190   : > { %2026 = vrot.lane.b32.xlu2 %v8837_v8, %s8509_s21  ;;  %1731 = vrot.lane.b32.xlu1 %v8804_v61, %s8511_s20 }
 0x191   : > { %1751 = vrot.lane.b32.xlu0 %v8945_v59, %s8511_s20 }
 0x192   : > { %v1282_v48 = vpop.permute.xlu2 %1281  ;;  %v9088_v39 = vpop.permute.xlu1 %2038 }
 0x193   : > { %v9090_v36 = vpop.permute.xlu0 %1406 }
 0x194   : > { %7149 = vmatmul.msk.f32.gmra.mxu2 %vm14217_vm1, %v1282_v48 }
 0x198   : > { %2024 = vrot.lane.b32.xlu2 %v8819_v1, %s8509_s21  ;;  %1994 = vrot.lane.b32.xlu1 %v8837_v8, %s14153_s19 }
 0x199   : > { %2012 = vrot.lane.b32.xlu0 %v8989_v29, %s14153_s19 }
 0x19a   : > { %v9099_v5 = vpop.permute.xlu2 %1442  ;;  %v1284_v33 = vpop.permute.xlu1 %1283 }
 0x19b   : > { %v974_v30 = vpop.permute.xlu0 %973 }
 0x19c   : > { %7150 = vmatmul.msk.f32.gmra.mxu2 %vm14217_vm1, %v1284_v33 }
 0x1a0   : > { %2020 = vrot.lane.b32.xlu2 %v8795_v58, %s8509_s21  ;;  %1996 = vrot.lane.b32.xlu1 %v8828_v4, %s14153_s19 }
 0x1a1   : > { %2577 = vrot.lane.b32.xlu0 %v8846_v13, %s14145_s22 }
 0x1a2   : > { %v9108_v48 = vpop.permute.xlu2 %1410  ;;  %v9110_v27 = vpop.permute.xlu1 %2040 }
 0x1a3   : > { %v9112_v24 = vpop.permute.xlu0 %1412 }
 0x1a8   : > { %2018 = vrot.lane.b32.xlu2 %v8786_v55, %s8509_s21  ;;  %1737 = vrot.lane.b32.xlu1 %v8828_v4, %s8511_s20 }
 0x1a9   : > { %2571 = vrot.lane.b32.xlu0 %v8819_v1, %s14145_s22 }
 0x1aa   : > { %v978_v33 = vpop.permute.xlu2 %977  ;;  %v980_v21 = vpop.permute.xlu1 %979 }
 0x1ab   : > { %v9120_v18 = vpop.permute.xlu0 %1414 }
 0x1b0   : > { %1727 = vrot.lane.b32.xlu2 %v8786_v55, %s8511_s20  ;;  %1998 = vrot.lane.b32.xlu1 %v8846_v13, %s14153_s19 }
 0x1b1   : > { %2567 = vrot.lane.b32.xlu0 %v8795_v58, %s14145_s22 }
 0x1b2   : > { %v1445_v15 = vpop.permute.xlu2 %1444  ;;  %v1286_v12 = vpop.permute.xlu1 %1285 }
 0x1b3   : > { %v9128_v9 = vpop.permute.xlu0 %2042  ;;  %7151 = vmatmul.msk.f32.gmra.mxu2 %vm14217_vm1, %v1286_v12 }
 0x1b8   : > { %1988 = vrot.lane.b32.xlu2 %v8795_v58, %s14153_s19  ;;  %2002 = vrot.lane.b32.xlu1 %v8864_v20, %s14153_s19 }
 0x1b9   : > { %2565 = vrot.lane.b32.xlu0 %v8786_v55, %s14145_s22 }
 0x1ba   : > { %v1288_v6 = vpop.permute.xlu2 %1287  ;;  %v1447_v35 = vpop.permute.xlu1 %1446 }
 0x1bb   : > { %v984_v57 = vpop.permute.xlu0 %983  ;;  %7152 = vmatmul.msk.f32.gmra.mxu2 %vm14217_vm1, %v1288_v6 }
 0x1c0   : > { %1990 = vrot.lane.b32.xlu2 %v8804_v61, %s14153_s19  ;;  %1743 = vrot.lane.b32.xlu1 %v8864_v20, %s8511_s20 }
 0x1c2   : > { %v1451_v12 = vpop.permute.xlu2 %1450  ;;  %v982_v37 = vpop.permute.xlu1 %981 }
 0x1c3   : > { %v986_v40 = vpop.permute.xlu0 %985 }
 0x1c4   : > { %7107 = vmatpush.xpose.msk.msra.mxu1 %vm14217_vm1, %v986_v40 }
 0x1c8   : > { %7108 = vmatpush.xpose.msk.msra.mxu1 %vm14217_vm1, %v984_v57  ;;  %1733 = vrot.lane.b32.xlu2 %v8819_v1, %s8511_s20 }
 0x1c9   : > { %2004 = vrot.lane.b32.xlu1 %v8873_v25, %s14153_s19 }
 0x1ca   : > { %v9148_v6 = vpop.permute.xlu2 %2046  ;;  %v1449_v45 = vpop.permute.xlu1 %1448 }
 0x1cc   : > { %7109 = vmatpush.xpose.msk.msra.mxu1 %vm14217_vm1, %v982_v37 }
 0x1d0   : > { %7110 = vmatpush.xpose.msk.msra.mxu1 %vm14217_vm1, %v980_v21  ;;  %1735 = vrot.lane.b32.xlu2 %v8837_v8, %s8511_s20 }
 0x1d1   : > { %2593 = vrot.lane.b32.xlu1 %v8970_v10, %s14145_s22 }
 0x1d2   : > { %v1453_v57 = vpop.permute.xlu2 %1452  ;;  %v9156_v40 = vpop.permute.xlu1 %1416 }
 0x1d3   : > { %7155 = vmatpush.xpose.msk.msra.mxu3 %vm14217_vm1, %v1453_v57 }
 0x1d4   : > { %7111 = vmatpush.xpose.msk.msra.mxu1 %vm14217_vm1, %v978_v33 }
 0x1d7   : > { %7156 = vmatpush.xpose.msk.msra.mxu3 %vm14217_vm1, %v1451_v12 }
 0x1d8   : > { %7112 = vmatpush.xpose.msk.msra.mxu1 %vm14217_vm1, %v9075_v14  ;;  %2000 = vrot.lane.b32.xlu2 %v8855_v17, %s14153_s19 }
 0x1d9   : > { %1745 = vrot.lane.b32.xlu1 %v8873_v25, %s8511_s20 }
 0x1da   : > { %v1292_v21 = vpop.permute.xlu2 %1291  ;;  %v9167_v37 = vpop.permute.xlu1 %2044 }
 0x1db   : > { %7157 = vmatpush.xpose.msk.msra.mxu3 %vm14217_vm1, %v1449_v45 }
 0x1dc   : > { %7113 = vmatpush.xpose.msk.msra.mxu1 %vm14217_vm1, %v974_v30  ;;  %v9184_v30 = vpop.f32.mrf.mxu2 }
 0x1df   : > { %7158 = vmatpush.xpose.msk.msra.mxu3 %vm14217_vm1, %v1447_v35 }
 0x1e0   : > { %7114 = vmatpush.xpose.msk.msra.mxu1 %vm14217_vm1, %v9033_v0  ;;  %1741 = vrot.lane.b32.xlu2 %v8855_v17, %s8511_s20 }
 0x1e1   : > { %2589 = vrot.lane.b32.xlu1 %v8945_v59, %s14145_s22 }
 0x1e2   : > { %v9178_v14 = vpop.permute.xlu2 %1420  ;;  %v1290_v33 = vpop.permute.xlu1 %1289 }
 0x1e3   : > { %7153 = vmatmul.msk.f32.gmra.mxu2 %vm14217_vm1, %v1290_v33  ;;  %7159 = vmatpush.xpose.msk.msra.mxu3 %vm14217_vm1, %v1445_v15  ;;  %v797_v15 = vld [vmem:[%s14255_s4 + $0x8] sm:$0xff] }
 0x1e4   : > { %7115 = vmatpush.xpose.msk.msra.mxu1 %vm14217_vm1, %v9043_v3  ;;  %1806 = vmatpush.msrb.mxu2 %v797_v15 }
 0x1e7   : > { %7160 = vmatpush.xpose.msk.msra.mxu3 %vm14217_vm1, %v9099_v5 }
 0x1e8   : > { %7116 = vmatpush.xpose.msk.msra.mxu1 %vm14217_vm1, %v9022_v52  ;;  %2006 = vrot.lane.b32.xlu2 %v8905_v34, %s14153_s19  ;;  %v9206_v52 = vpop.f32.mrf.mxu2 }
 0x1e9   : > { %1747 = vrot.lane.b32.xlu1 %v8905_v34, %s8511_s20 }
 0x1ea   : > { %v9197_v45 = vpop.permute.xlu2 %2026  ;;  %v9199_v35 = vpop.permute.xlu1 %1418 }
 0x1eb   : > { %7154 = vmatmul.msk.f32.gmra.mxu2 %vm14217_vm1, %v1292_v21  ;;  %7161 = vmatpush.xpose.msk.msra.mxu3 %vm14217_vm1, %v9053_v16 }
 0x1ec   : > { %7117 = vmatpush.xpose.msk.msra.mxu1 %vm14217_vm1, %v8982_v22 }
 0x1ef   : > { %7162 = vmatpush.xpose.msk.msra.mxu3 %vm14217_vm1, %v9079_v42 }
 0x1f0   : > { %7118 = vmatpush.xpose.msk.msra.mxu1 %vm14217_vm1, %v8954_v60  ;;  %2008 = vrot.lane.b32.xlu2 %v8919_v43, %s14153_s19  ;;  %v9230_v42 = vpop.f32.mrf.mxu2 }
 0x1f1   : > { %2587 = vrot.lane.b32.xlu1 %v8919_v43, %s14145_s22 }
 0x1f2   : > { %v9216_v0 = vpop.permute.xlu2 %2024  ;;  %v9218_v3 = vpop.permute.xlu1 %2022 }
 0x1f3   : > { %7163 = vmatpush.xpose.msk.msra.mxu3 %vm14217_vm1, %v9020_v51 }
 0x1f4   : > { %7119 = vmatpush.xpose.msk.msra.mxu1 %vm14217_vm1, %v8967_v7 }
 0x1f7   : > { %7164 = vmatpush.xpose.msk.msra.mxu3 %vm14217_vm1, %v9018_v44 }
 0x1f8   : > { %7120 = vmatpush.xpose.msk.msra.mxu1 %vm14217_vm1, %v8943_v56  ;;  %2579 = vrot.lane.b32.xlu2 %v8855_v17, %s14145_s22  ;;  %v9246_v56 = vpop.f32.mrf.mxu2 }
 0x1f9   : > { %2585 = vrot.lane.b32.xlu1 %v8905_v34, %s14145_s22 }
 0x1fa   : > { %v9234_v60 = vpop.permute.xlu2 %2020  ;;  %v1730_v22 = vpop.permute.xlu1 %1729 }
 0x1fb   : > { %7165 = vmatpush.xpose.msk.msra.mxu3 %vm14217_vm1, %v8999_v31 }
 0x1fc   : > { %7121 = vmatpush.xpose.msk.msra.mxu1 %vm14217_vm1, %v8896_v28 }
 0x1ff   : > { %7166 = vmatpush.xpose.msk.msra.mxu3 %vm14217_vm1, %v8980_v19 }
 0x200   : > { %7122 = vmatpush.xpose.msk.msra.mxu1 %vm14217_vm1, %v8916_v41  ;;  %1753 = vrot.lane.b32.xlu2 %v8989_v29, %s8511_s20  ;;  %v9268_v19 = vpop.f32.mrf.mxu2 }
 0x201   : > { %1749 = vrot.lane.b32.xlu1 %v8919_v43, %s8511_s20 }
 0x202   : > { %v9250_v7 = vpop.permute.xlu2 %2018  ;;  %v1732_v31 = vpop.permute.xlu1 %1731 }
 0x203   : > { %7123 = vmatmul.msk.f32.vlgmr.msra.gmra.mxu1 %vm14217_vm1, %v8786_v55  ;;  %7167 = vmatpush.xpose.msk.msra.mxu3 %vm14217_vm1, %v8984_v23 }
 0x207   : > { %7168 = vmatpush.xpose.msk.msra.mxu3 %vm14217_vm1, %v8956_v62 }
 0x208   : > { %2014 = vrot.lane.b32.xlu2 %v8970_v10, %s14153_s19 }
 0x209   : > { %2583 = vrot.lane.b32.xlu1 %v8873_v25, %s14145_s22 }
 0x20a   : > { %v1728_v28 = vpop.permute.xlu2 %1727  ;;  %v9262_v41 = vpop.permute.xlu1 %1994 }
 0x20b   : > { %14261 = vst [vmem:[#allocation33_spill] sm:$0xff] %v9262_v41  ;;  %7124 = vmatmul.msk.f32.gmra.mxu1 %vm14217_vm1, %v8795_v58  ;;  %7169 = vmatpush.xpose.msk.msra.mxu3 %vm14217_vm1, %v8914_v38  ;;  %v9285_v38 = vpop.f32.mrf.mxu2 }
 0x20c   : > { %7187 = vmatmul.msk.f32.vlgmr.msrb.gmra.mxu2 %vm14217_vm1, %v1728_v28 }
 0x20f   : > { %7170 = vmatpush.xpose.msk.msra.mxu3 %vm14217_vm1, %v8931_v50 }
 0x210   : > { %2573 = vrot.lane.b32.xlu2 %v8837_v8, %s14145_s22 }
 0x211   : > { %2581 = vrot.lane.b32.xlu1 %v8864_v20, %s14145_s22 }
 0x212   : > { %v9277_v62 = vpop.permute.xlu2 %1988  ;;  %v9279_v23 = vpop.permute.xlu1 %1996  ;;  %7171 = vmatmul.msk.f32.vlgmr.msra.gmra.mxu3 %vm14217_vm1, %v8929_v47 }
 0x213   : > { %14262 = vst [vmem:[#allocation34_spill] sm:$0xff] %v9279_v23  ;;  %7125 = vmatmul.msk.f32.gmra.mxu1 %vm14217_vm1, %v8804_v61  ;;  %v9297_v47 = vpop.permute.xlu0 %1986  ;;  %v9299_v51 = vpop.f32.mrf.mxu2 }
 0x214   : > { %7188 = vmatmul.msk.f32.gmra.mxu2 %vm14217_vm1, %v1730_v22 }
 0x219   : > { %2575 = vrot.lane.b32.xlu1 %v8828_v4, %s14145_s22 }
 0x21a   : > { %v9290_v50 = vpop.permute.xlu2 %1990  ;;  %v1738_v44 = vpop.permute.xlu1 %1737  ;;  %7172 = vmatmul.msk.f32.gmra.mxu3 %vm14217_vm1, %v8927_v46 }
 0x21b   : > { %14263 = vst [vmem:[#allocation35_spill] sm:$0xff] %v9290_v50  ;;  %7126 = vmatmul.msk.f32.gmra.mxu1 %vm14217_vm1, %v8819_v1  ;;  %v9310_v46 = vpop.f32.mrf.mxu2  ;;  %v9312_v12 = vpop.permute.xlu0 %1992 }
 0x21c   : > { %7189 = vmatmul.msk.f32.gmra.mxu2 %vm14217_vm1, %v1732_v31  ;;  %14265 = vst [vmem:[#allocation37_spill] sm:$0xff] %v9312_v12 }
 0x221   : > { %1755 = vrot.lane.b32.xlu1 %v8970_v10, %s8511_s20 }
 0x222   : > { %v1734_v16 = vpop.permute.xlu2 %1733  ;;  %v9303_v5 = vpop.permute.xlu1 %1998  ;;  %7173 = vmatmul.msk.f32.gmra.mxu3 %vm14217_vm1, %v8958_v63 }
 0x223   : > { %14264 = vst [vmem:[#allocation36_spill] sm:$0xff] %v9303_v5  ;;  %7127 = vmatmul.msk.f32.gmra.mxu1 %vm14217_vm1, %v8837_v8  ;;  %v9323_v63 = vpop.f32.mrf.mxu2  ;;  %v9325_v33 = vpop.permute.xlu0 %2048 }
 0x224   : > { %7190 = vmatmul.msk.f32.gmra.mxu2 %vm14217_vm1, %v1734_v16 }
 0x229   : > { %2016 = vrot.lane.b32.xlu1 %v8987_v26, %s14153_s19  ;;  %s14545_s19 = smov 40  }
 0x22a   : > { %v1736_v57 = vpop.permute.xlu2 %1735  ;;  %v9316_v21 = vpop.permute.xlu1 %2002  ;;  %7174 = vmatmul.msk.f32.gmra.mxu3 %vm14217_vm1, %v8941_v53 }
 0x22b   : > { %14266 = vst [vmem:[#allocation38_spill] sm:$0xff] %v9316_v21  ;;  %7128 = vmatmul.msk.f32.gmra.mxu1 %vm14217_vm1, %v8828_v4  ;;  %v9338_v22 = vpop.f32.mrf.mxu2  ;;  %v1740_v31 = vpop.permute.xlu0 %1739 }
 0x22c   : > { %7191 = vmatmul.msk.f32.gmra.mxu2 %vm14217_vm1, %v1736_v57 }
 0x231   : > { %2569 = vrot.lane.b32.xlu1 %v8804_v61, %s14145_s22 }
 0x232   : > { %v1744_v15 = vpop.permute.xlu1 %1743  ;;  %7175 = vmatmul.msk.f32.gmra.mxu3 %vm14217_vm1, %v9001_v32  ;;  %v9334_v53 = vpop.permute.xlu2 %2000 }
 0x233   : > { %7129 = vmatmul.msk.f32.gmra.mxu1 %vm14217_vm1, %v8846_v13  ;;  %14267 = vst [vmem:[#allocation39_spill] sm:$0xff] %v9334_v53  ;;  %v626_v53 = vlaneseq }
 0x234   : > { %7192 = vmatmul.msk.f32.gmra.mxu2 %vm14217_vm1, %v1738_v44 }
 0x235   : > { %v644_v23 = vand.u32 127, %v626_v53 }
 0x239   : > { %1757 = vrot.lane.b32.xlu1 %v8987_v26, %s8511_s20 }
 0x23a   : > { %7176 = vmatmul.msk.f32.gmra.mxu3 %vm14217_vm1, %v8997_v49  ;;  %v1742_v32 = vpop.permute.xlu2 %1741  ;;  %v1372_v49 = vpop.f32.mrf.mxu2 }
 0x23b   : > { %v9342_v28 = vpop.permute.xlu1 %2004  ;;  %7130 = vmatmul.msk.f32.gmra.mxu1 %vm14217_vm1, %v8855_v17 }
 0x23c   : > { %14268 = vst [vmem:[#allocation40_spill] sm:$0xff] %v9342_v28  ;;  %7193 = vmatmul.msk.f32.gmra.mxu2 %vm14217_vm1, %v1740_v31 }
 0x241   : > { %2870 = vrot.lane.b32.xlu1 %v8786_v55, %s14149_s24 }
 0x242   : > { %7177 = vmatmul.msk.f32.gmra.mxu3 %vm14217_vm1, %v9035_v2  ;;  %v1375_v57 = vpop.f32.mrf.mxu2 }
 0x243   : > { %v9351_v44 = vpop.permute.xlu1 %2593  ;;  %7131 = vmatmul.msk.f32.gmra.mxu1 %vm14217_vm1, %v8864_v20 }
 0x244   : > { %7194 = vmatmul.msk.f32.gmra.mxu2 %vm14217_vm1, %v1742_v32 }
 0x24a   : > { %7178 = vmatmul.msk.f32.gmra.mxu3 %vm14217_vm1, %v9045_v11  ;;  %v1378_v31 = vpop.f32.mrf.mxu2 }
 0x24b   : > { %v1746_v16 = vpop.permute.xlu1 %1745  ;;  %7132 = vmatmul.msk.f32.gmra.mxu1 %vm14217_vm1, %v8873_v25 }
 0x24c   : > { %7195 = vmatmul.msk.f32.gmra.mxu2 %vm14217_vm1, %v1744_v15  ;;  %v9373_v15 = vpop.permute.xlu0 %2595 }
 0x252   : > { %7179 = vmatmul.msk.f32.gmra.mxu3 %vm14217_vm1, %v9090_v36  ;;  %v1381_v36 = vpop.f32.mrf.mxu2 }
 0x253   : > { %v9363_v2 = vpop.permute.xlu1 %2589  ;;  %7133 = vmatmul.msk.f32.gmra.mxu1 %vm14217_vm1, %v8905_v34 }
 0x254   : > { %7196 = vmatmul.msk.f32.gmra.mxu2 %vm14217_vm1, %v1746_v16  ;;  %v9381_v16 = vpop.permute.xlu2 %2006  ;;  %v9383_v28 = vpop.permute.xlu0 %2591 }
 0x255   : > { %14269 = vst [vmem:[#allocation41_spill] sm:$0xff] %v9381_v16 }
 0x25a   : > { %7180 = vmatmul.msk.f32.gmra.mxu3 %vm14217_vm1, %v9066_v54 }
 0x25b   : > { %v1748_v11 = vpop.permute.xlu1 %1747  ;;  %7134 = vmatmul.msk.f32.gmra.mxu1 %vm14217_vm1, %v8919_v43 }
 0x25c   : > { %7197 = vmatmul.msk.f32.gmra.mxu2 %vm14217_vm1, %v1748_v11  ;;  %v9393_v5 = vpop.permute.xlu0 %2010 }
 0x25d   : > { %14271 = vst [vmem:[#allocation43_spill] sm:$0xff] %v9393_v5 }
 0x262   : > { %7181 = vmatmul.msk.f32.gmra.mxu3 %vm14217_vm1, %v9108_v48  ;;  %v9391_v48 = vpop.permute.xlu2 %2008 }
 0x263   : > { %v9377_v32 = vpop.permute.xlu1 %2587  ;;  %7135 = vmatmul.msk.f32.gmra.mxu1 %vm14217_vm1, %v8945_v59  ;;  %14270 = vst [vmem:[#allocation42_spill] sm:$0xff] %v9391_v48 }
 0x264   : > { %v1752_v5 = vpop.permute.xlu0 %1751 }
 0x266   : > { %v1384_v54 = vpop.f32.mrf.mxu2 }
 0x26a   : > { %7182 = vmatmul.msk.f32.gmra.mxu3 %vm14217_vm1, %v9112_v24  ;;  %v9399_v24 = vshrl.u32 %v626_v53, 7 }
 0x26b   : > { %v9387_v11 = vpop.permute.xlu1 %2585  ;;  %7136 = vmatmul.msk.f32.gmra.mxu1 %vm14217_vm1, %v8989_v29 }
 0x26c   : > { %14272 = vst [vmem:[#allocation44_spill] sm:$0xff] %v9399_v24 }
 0x26e   : > { %v1387_v21 = vpop.f32.mrf.mxu2 }
 0x26f   : > { %1921 = vmatpush.msrb.mxu1 %v1387_v21  ;;  %7627 = vmatpush.msrb.mxu3 %v1387_v21  ;;  %v661_v21 = vand.u32 15, %v9399_v24 }
 0x271   : > { %1922 = vmatpush.msrb.mxu1 %v1384_v54  ;;  %7628 = vmatpush.msrb.mxu3 %v1384_v54  ;;  %v9403_v54 = vand.u32 15, %v644_v23 }
 0x272   : > { %7183 = vmatmul.msk.f32.gmra.mxu3 %vm14217_vm1, %v9120_v18  ;;  %v9405_v18 = vpop.permute.xlu2 %2579 }
 0x273   : > { %v1750_v16 = vpop.permute.xlu1 %1749  ;;  %7137 = vmatmul.msk.f32.gmra.mxu1 %vm14217_vm1, %v8970_v10  ;;  %7629 = vmatpush.msrb.mxu3 %v1381_v36  ;;  %vm695_vm2 = vcmp.eq.s32.totalorder %v661_v21, %v9403_v54 }
 0x274   : > { %7198 = vmatmul.msk.f32.gmra.mxu2 %vm14217_vm1, %v1750_v16  ;;  %1923 = vmatpush.msrb.mxu1 %v1381_v36  ;;  %v9429_v16 = vadd.s32 16, %v9399_v24 }
 0x275   : > { %7630 = vmatpush.msrb.mxu3 %v1378_v31 }
 0x276   : > { %1924 = vmatpush.msrb.mxu1 %v1378_v31  ;;  %v9416_v31 = vadd.s32 8, %v9399_v24  ;;  %14274 = vst [vmem:[#allocation46_spill] sm:$0xff] %v9429_v16  ;;  %v663_v21 = vand.u32 15, %v9429_v16 }
 0x277   : > { %7631 = vmatpush.msrb.mxu3 %v1375_v57 }
 0x278   : > { %1925 = vmatpush.msrb.mxu1 %v1375_v57  ;;  %14273 = vst [vmem:[#allocation45_spill] sm:$0xff] %v9416_v31  ;;  %v662_v57 = vand.u32 15, %v9416_v31  ;;  %vm9457_vm4 = vcmp.eq.s32.totalorder %v663_v21, %v9403_v54 }
 0x279   : > { %7632 = vmatpush.msrb.mxu3 %v1372_v49 }
 0x27a   : > { %1926 = vmatpush.msrb.mxu1 %v1372_v49  ;;  %7184 = vmatmul.msk.f32.gmra.mxu3 %vm14217_vm1, %v9156_v40  ;;  %v14095_v40 = vmov -1e+09   ;;  %vm696_vm3 = vcmp.eq.s32.totalorder %v662_v57, %v9403_v54 }
 0x27b   : > { %v9409_v53 = vpop.permute.xlu1 %2583  ;;  %7138 = vmatmul.msk.f32.gmra.mxu1 %vm14217_vm1, %v8987_v26  ;;  %7633 = vmatpush.msrb.mxu3 %v9338_v22  ;;  %v9423_v49 = vsel %vm695_vm2, 0.0, %v14095_v40 }
 0x27c   : > { %7199 = vmatmul.msk.f32.gmra.mxu2 %vm14217_vm1, %v1752_v5  ;;  %1927 = vmatpush.msrb.mxu1 %v9338_v22 }
 0x27d   : > { %7634 = vmatpush.msrb.mxu3 %v9323_v63 }
 0x27e   : > { %1928 = vmatpush.msrb.mxu1 %v9323_v63  ;;  %v1754_v63 = vpop.permute.xlu2 %1753 }
 0x27f   : > { %7635 = vmatpush.msrb.mxu3 %v9310_v46 }
 0x280   : > { %v1069_v36 = vpop.f32.mrf.mxu1  ;;  %1929 = vmatpush.msrb.mxu1 %v9310_v46  ;;  %v9443_v46 = vshrl.u32 %v644_v23, 4 }
 0x281   : > { %7636 = vmatpush.msrb.mxu3 %v9299_v51  ;;  %v9433_v5 = vadd.f32 %v1069_v36, %v9423_v49 }
 0x282   : > { %1930 = vmatpush.msrb.mxu1 %v9299_v51  ;;  %7185 = vmatmul.msk.f32.gmra.mxu3 %vm14217_vm1, %v9199_v35  ;;  %14275 = vst [vmem:[#allocation47_spill] sm:$0xff] %v9443_v46  ;;  %v14092_v51 = vshrl.u32 %v9429_v16, 4  ;;  %v9452_v35 = vsel %vm696_vm3, 0.0, %v14095_v40 }
 0x283   : > { %v9438_v22 = vpop.permute.xlu1 %2581  ;;  %1117 = vmax.xlane.f32.xlu0 %v9433_v5  ;;  %7637 = vmatpush.msrb.mxu3 %v9285_v38 }
 0x284   : > { %7200 = vmatmul.msk.f32.gmra.mxu2 %vm14217_vm1, %v1754_v63  ;;  %1931 = vmatpush.msrb.mxu1 %v9285_v38  ;;  %vm9464_vm5 = vcmp.ge.s32.totalorder %v9443_v46, %v14092_v51 }
 0x285   : > { %7638 = vmatpush.msrb.mxu3 %v9268_v19  ;;  %vm729_vm6 = vmand %vm9457_vm4, %vm9464_vm5 }
 0x286   : > { %1932 = vmatpush.msrb.mxu1 %v9268_v19  ;;  %v9469_v19 = vadd.s32 24, %v9399_v24 }
 0x287   : > { %7639 = vmatpush.msrb.mxu3 %v9246_v56 }
 0x288   : > { %v1072_v57 = vpop.f32.mrf.mxu1  ;;  %1933 = vmatpush.msrb.mxu1 %v9246_v56  ;;  %14280 = vst [vmem:[#allocation48_spill] sm:$0xff] %v9469_v19  ;;  %v14093_v63 = vshrl.u32 %v9469_v19, 4 }
 0x289   : > { %v9472_v36 = vadd.f32 %v1072_v57, %v9452_v35  ;;  %7640 = vmatpush.msrb.mxu3 %v9230_v42 }
 0x28a   : > { %1934 = vmatpush.msrb.mxu1 %v9230_v42  ;;  %7186 = vmatmul.msk.f32.gmra.mxu3 %vm14217_vm1, %v9178_v14  ;;  %v664_v42 = vand.u32 15, %v9469_v19  ;;  %v9494_v14 = vsel %vm729_vm6, 0.0, %v14095_v40  ;;  %vm714_vm8 = vcmp.ge.s32.totalorder %v9443_v46, %v14093_v63  ;;  %v14291_v63 = vld [vmem:[#allocation31_spill] sm:$0xff] }
 0x28b   : > { %v9478_v56 = vpop.permute.xlu1 %2575  ;;  %1119 = vmax.xlane.f32.xlu1 %v9472_v36  ;;  %7641 = vmatpush.msrb.mxu3 %v9206_v52 }
 0x28c   : > { %1935 = vmatpush.msrb.mxu1 %v9206_v52  ;;  %vm698_vm7 = vcmp.eq.s32.totalorder %v664_v42, %v9403_v54  ;;  %v9503_v52 = vadd.s32 32, %v9399_v24 }
 0x28d   : > { %7642 = vmatpush.msrb.mxu3 %v9184_v30  ;;  %vm730_vm9 = vmand %vm698_vm7, %vm714_vm8 }
 0x28e   : > { %1936 = vmatpush.msrb.mxu1 %v9184_v30  ;;  %14281 = vst [vmem:[#allocation49_spill] sm:$0xff] %v9503_v52  ;;  %v665_v57 = vand.u32 15, %v9503_v52  ;;  %v9519_v23 = vsel %vm730_vm9, 0.0, %v14095_v40 }
 0x28f   : > { %7203 = vmatpush.xpose.msk.msra.mxu3 %vm14217_vm1, %v9325_v33 }
 0x290   : > { %7251 = vmatpush.xpose.msk.msra.mxu1 %vm14217_vm1, %v9373_v15  ;;  %v1075_v21 = vpop.f32.mrf.mxu1  ;;  %v14091_v15 = vshrl.u32 %v9503_v52, 4  ;;  %vm699_vm10 = vcmp.eq.s32.totalorder %v665_v57, %v9403_v54  ;;  %v9561_v57 = vpop.permute.xlu0 %2012 }
 0x291   : > { %v9506_v30 = vadd.f32 %v1075_v21, %v9494_v14  ;;  %14286 = vst [vmem:[#allocation54_spill] sm:$0xff] %v9561_v57 }
 0x292   : > { %vm715_vm11 = vcmp.ge.s32.totalorder %v9443_v46, %v14091_v15 }
 0x293   : > { %7204 = vmatpush.xpose.msk.msra.mxu3 %vm14217_vm1, %v9148_v6  ;;  %v1756_v33 = vpop.permute.xlu1 %1755  ;;  %1121 = vmax.xlane.f32.xlu2 %v9506_v30  ;;  %vm731_vm12 = vmand %vm699_vm10, %vm715_vm11 }
 0x294   : > { %7252 = vmatpush.xpose.msk.msra.mxu1 %vm14217_vm1, %v9351_v44  ;;  %7201 = vmatmul.msk.f32.gmra.mxu2 %vm14217_vm1, %v1756_v33  ;;  %v9528_v44 = vadd.s32 40, %v9399_v24  ;;  %v9545_v21 = vsel %vm731_vm12, 0.0, %v14095_v40  ;;  %v9547_v33 = vpop.f32.mrf.mxu2 }
 0x295   : > { %14284 = vst [vmem:[#allocation52_spill] sm:$0xff] %v9545_v21 }
 0x296   : > { %14282 = vst [vmem:[#allocation50_spill] sm:$0xff] %v9528_v44  ;;  %v666_v42 = vand.u32 15, %v9528_v44 }
 0x297   : > { %7205 = vmatpush.xpose.msk.msra.mxu3 %vm14217_vm1, %v9167_v37 }
 0x298   : > { %7253 = vmatpush.xpose.msk.msra.mxu1 %vm14217_vm1, %v9383_v28  ;;  %v1078_v6 = vpop.f32.mrf.mxu1  ;;  %v14090_v28 = vshrl.u32 %v9528_v44, 4  ;;  %vm700_vm13 = vcmp.eq.s32.totalorder %v666_v42, %v9403_v54  ;;  %v14297_v44 = vld [vmem:[#allocation29_spill] sm:$0xff] }
 0x299   : > { %v9531_v38 = vadd.f32 %v1078_v6, %v9519_v23 }
 0x29a   : > { %vm716_vm14 = vcmp.ge.s32.totalorder %v9443_v46, %v14090_v28  ;;  %v14287_v28 = vld [vmem:[#allocation32_spill] sm:$0xff] }
 0x29b   : > { %7206 = vmatpush.xpose.msk.msra.mxu3 %vm14217_vm1, %v9128_v9  ;;  %v9535_v37 = vpop.permute.xlu1 %2016  ;;  %1123 = vmax.xlane.f32.xlu0 %v9531_v38  ;;  %vm732_vm15 = vmand %vm700_vm13, %vm716_vm14 }
 0x29c   : > { %14283 = vst [vmem:[#allocation51_spill] sm:$0xff] %v9535_v37  ;;  %7254 = vmatpush.xpose.msk.msra.mxu1 %vm14217_vm1, %v9363_v2  ;;  %v9556_v2 = vadd.s32 48, %v9399_v24 }
 0x29e   : > { %14285 = vst [vmem:[#allocation53_spill] sm:$0xff] %v9556_v2  ;;  %v667_v42 = vand.u32 15, %v9556_v2 }
 0x29f   : > { %7207 = vmatpush.xpose.msk.msra.mxu3 %vm14217_vm1, %v9110_v27 }
 0x2a0   : > { %7255 = vmatpush.xpose.msk.msra.mxu1 %vm14217_vm1, %v9377_v32  ;;  %v1081_v9 = vpop.f32.mrf.mxu1  ;;  %v14094_v32 = vshrl.u32 %v9556_v2, 4  ;;  %vm9580_vm2 = vcmp.eq.s32.totalorder %v667_v42, %v9403_v54  ;;  %v2578_v42 = vpop.permute.xlu0 %2577 }
 0x2a1   : > { %v9559_v27 = vadd.f32 %v1081_v9, %v9545_v21  ;;  %v9575_v9 = vsel %vm732_vm15, 0.0, %v14095_v40  ;;  %v14292_v40 = vld [vmem:[#allocation30_spill] sm:$0xff] }
 0x2a2   : > { %vm717_vm3 = vcmp.ge.s32.totalorder %v9443_v46, %v14094_v32 }
 0x2a3   : > { %7208 = vmatpush.xpose.msk.msra.mxu3 %vm14217_vm1, %v9088_v39  ;;  %v9565_v6 = vpop.permute.xlu1 %2569  ;;  %1125 = vmax.xlane.f32.xlu2 %v9559_v27  ;;  %vm733_vm4 = vmand %vm9580_vm2, %vm717_vm3 }
 0x2a4   : > { %7256 = vmatpush.xpose.msk.msra.mxu1 %vm14217_vm1, %v9387_v11  ;;  %v9588_v11 = vadd.s32 56, %v9399_v24 }
 0x2a6   : > { %14290 = vst [vmem:[#allocation32_spill] sm:$0xff] %v9588_v11  ;;  %v14100_v32 = vshrl.u32 %v9588_v11, 4 }
 0x2a7   : > { %7209 = vmatpush.xpose.msk.msra.mxu3 %vm14217_vm1, %v14287_v28  ;;  %v9590_v28 = vpop.f32.mrf.mxu2 }
 0x2a8   : > { %7257 = vmatpush.xpose.msk.msra.mxu1 %vm14217_vm1, %v9409_v53  ;;  %v1084_v39 = vpop.f32.mrf.mxu1  ;;  %vm718_vm6 = vcmp.ge.s32.totalorder %v9443_v46, %v14100_v32  ;;  %v2572_v32 = vpop.permute.xlu0 %2571 }
 0x2a9   : > { %v9593_v51 = vadd.f32 %v1084_v39, %v9575_v9  ;;  %v668_v39 = vand.u32 15, %v9588_v11  ;;  %v14298_v11 = vld [vmem:[#allocation28_spill] sm:$0xff] }
 0x2ab   : > { %7210 = vmatpush.xpose.msk.msra.mxu3 %vm14217_vm1, %v14291_v63  ;;  %v1758_v53 = vpop.permute.xlu1 %1757  ;;  %1127 = vmax.xlane.f32.xlu1 %v9593_v51  ;;  %v14293_v63 = vmov -1e+09   ;;  %vm702_vm5 = vcmp.eq.s32.totalorder %v668_v39, %v9403_v54 }
 0x2ac   : > { %7258 = vmatpush.xpose.msk.msra.mxu1 %vm14217_vm1, %v9438_v22  ;;  %7202 = vmatmul.msk.f32.gmra.mxu2 %vm14217_vm1, %v1758_v53  ;;  %v9608_v2 = vsel %vm733_vm4, 0.0, %v14293_v63  ;;  %v9612_v22 = vpop.permute.xlu2 %2014  ;;  %v9619_v53 = vadd.s32 64, %v9399_v24  ;;  %vm734_vm7 = vmand %vm702_vm5, %vm718_vm6 }
 0x2ad   : > { %14294 = vst [vmem:[#allocation31_spill] sm:$0xff] %v9608_v2 }
 0x2ae   : > { %14295 = vst [vmem:[#allocation30_spill] sm:$0xff] %v9612_v22  ;;  %v669_v39 = vand.u32 15, %v9619_v53 }
 0x2af   : > { %7211 = vmatpush.xpose.msk.msra.mxu3 %vm14217_vm1, %v14292_v40  ;;  %14296 = vst [vmem:[#allocation55_spill] sm:$0xff] %v9619_v53  ;;  %v9626_v52 = vpop.f32.mrf.mxu2 }
 0x2b0   : > { %7259 = vmatpush.xpose.msk.msra.mxu1 %vm14217_vm1, %v9405_v18  ;;  %v1087_v15 = vpop.f32.mrf.mxu1  ;;  %v14103_v18 = vshrl.u32 %v9619_v53, 4  ;;  %vm703_vm8 = vcmp.eq.s32.totalorder %v669_v39, %v9403_v54 }
 0x2b1   : > { %v9622_v40 = vadd.f32 %v1087_v15, %v9608_v2  ;;  %v9635_v15 = vsel %vm734_vm7, 0.0, %v14293_v63 }
 0x2b2   : > { %14299 = vst [vmem:[#allocation29_spill] sm:$0xff] %v9635_v15  ;;  %vm719_vm9 = vcmp.ge.s32.totalorder %v9443_v46, %v14103_v18 }
 0x2b3   : > { %7212 = vmatpush.xpose.msk.msra.mxu3 %vm14217_vm1, %v14297_v44  ;;  %1129 = vmax.xlane.f32.xlu0 %v9622_v40  ;;  %vm735_vm10 = vmand %vm703_vm8, %vm719_vm9 }
 0x2b4   : > { %7260 = vmatpush.xpose.msk.msra.mxu1 %vm14217_vm1, %v2578_v42  ;;  %v9644_v42 = vadd.s32 72, %v9399_v24 }
 0x2b6   : > { %14300 = vst [vmem:[#allocation28_spill] sm:$0xff] %v9644_v42  ;;  %v670_v39 = vand.u32 15, %v9644_v42 }
 0x2b7   : > { %7213 = vmatpush.xpose.msk.msra.mxu3 %vm14217_vm1, %v14298_v11  ;;  %v2574_v11 = vpop.permute.xlu2 %2573  ;;  %v9655_v18 = vpop.f32.mrf.mxu2 }
 0x2b8   : > { %7261 = vmatpush.xpose.msk.msra.mxu1 %vm14217_vm1, %v9478_v56  ;;  %v1090_v44 = vpop.f32.mrf.mxu1  ;;  %v14106_v56 = vshrl.u32 %v9644_v42, 4  ;;  %vm704_vm11 = vcmp.eq.s32.totalorder %v670_v39, %v9403_v54 }
 0x2b9   : > { %v9647_v16 = vadd.f32 %v1090_v44, %v9635_v15  ;;  %v9660_v44 = vsel %vm735_vm10, 0.0, %v14293_v63 }
 0x2ba   : > { %14301 = vst [vmem:[#allocation56_spill] sm:$0xff] %v9660_v44  ;;  %vm720_vm12 = vcmp.ge.s32.totalorder %v9443_v46, %v14106_v56 }
 0x2bb   : > { %7214 = vmatpush.xpose.msk.msra.mxu3 %vm14217_vm1, %v9197_v45  ;;  %1131 = vmax.xlane.f32.xlu2 %v9647_v16  ;;  %v2568_v45 = vpop.permute.xlu0 %2567  ;;  %vm736_vm13 = vmand %vm704_vm11, %vm720_vm12 }
 0x2bc   : > { %7262 = vmatpush.xpose.msk.msra.mxu1 %vm14217_vm1, %v2574_v11  ;;  %v9668_v11 = vadd.s32 80, %v9399_v24  ;;  %v9683_v39 = vsel %vm736_vm13, 0.0, %v14293_v63 }
 0x2bd   : > { %14303 = vst [vmem:[#allocation58_spill] sm:$0xff] %v9683_v39 }
 0x2be   : > { %14302 = vst [vmem:[#allocation57_spill] sm:$0xff] %v9668_v11 }
 0x2bf   : > { %7215 = vmatpush.xpose.msk.msra.mxu3 %vm14217_vm1, %v9216_v0  ;;  %v14107_v0 = vshrl.u32 %v9668_v11, 4 }
 0x2c0   : > { %7263 = vmatpush.xpose.msk.msra.mxu1 %vm14217_vm1, %v2572_v32  ;;  %v1093_v53 = vpop.f32.mrf.mxu1  ;;  %v671_v32 = vand.u32 15, %v9668_v11 }
 0x2c1   : > { %v9671_v19 = vadd.f32 %v1093_v53, %v9660_v44  ;;  %v9685_v53 = vpop.f32.mrf.mxu2  ;;  %vm721_vm15 = vcmp.ge.s32.totalorder %v9443_v46, %v14107_v0 }
 0x2c2   : > { %vm705_vm14 = vcmp.eq.s32.totalorder %v671_v32, %v9403_v54 }
 0x2c3   : > { %7216 = vmatpush.xpose.msk.msra.mxu3 %vm14217_vm1, %v9218_v3  ;;  %1133 = vmax.xlane.f32.xlu0 %v9671_v19  ;;  %vm737_vm2 = vmand %vm705_vm14, %vm721_vm15 }
 0x2c4   : > { %7264 = vmatpush.xpose.msk.msra.mxu1 %vm14217_vm1, %v9565_v6  ;;  %v9693_v6 = vadd.s32 88, %v9399_v24  ;;  %v9705_v0 = vsel %vm737_vm2, 0.0, %v14293_v63 }
 0x2c6   : > { %14304 = vst [vmem:[#allocation59_spill] sm:$0xff] %v9693_v6  ;;  %v672_v32 = vand.u32 15, %v9693_v6 }
 0x2c7   : > { %7217 = vmatpush.xpose.msk.msra.mxu3 %vm14217_vm1, %v9234_v60  ;;  %v2566_v60 = vpop.permute.xlu0 %2565 }
 0x2c8   : > { %7265 = vmatpush.xpose.msk.msra.mxu1 %vm14217_vm1, %v2568_v45  ;;  %v1096_v3 = vpop.f32.mrf.mxu1  ;;  %v14112_v45 = vshrl.u32 %v9693_v6, 4  ;;  %vm706_vm3 = vcmp.eq.s32.totalorder %v672_v32, %v9403_v54 }
 0x2c9   : > { %v9696_v56 = vadd.f32 %v1096_v3, %v9683_v39  ;;  %v9714_v3 = vpop.f32.mrf.mxu2 }
 0x2ca   : > { %vm722_vm4 = vcmp.ge.s32.totalorder %v9443_v46, %v14112_v45 }
 0x2cb   : > { %7218 = vmatpush.xpose.msk.msra.mxu3 %vm14217_vm1, %v9250_v7  ;;  %1135 = vmax.xlane.f32.xlu2 %v9696_v56  ;;  %v9712_v7 = vadd.s32 96, %v9399_v24  ;;  %vm738_vm5 = vmand %vm706_vm3, %vm722_vm4 }
 0x2cc   : > { %7266 = vmatpush.xpose.msk.msra.mxu1 %vm14217_vm1, %v2566_v60  ;;  %v9723_v32 = vsel %vm738_vm5, 0.0, %v14293_v63 }
 0x2cd   : > { %14305 = vst [vmem:[#allocation60_spill] sm:$0xff] %v9712_v7  ;;  %v14114_v42 = vshrl.u32 %v9712_v7, 4  ;;  %v673_v31 = vand.u32 15, %v9712_v7 }
 0x2ce   : > { %14306 = vst [vmem:[#allocation61_spill] sm:$0xff] %v9723_v32 }
 0x2cf   : > { %vm707_vm6 = vcmp.eq.s32.totalorder %v673_v31, %v9403_v54  ;;  %vm723_vm7 = vcmp.ge.s32.totalorder %v9443_v46, %v14114_v42 }
 0x2d0   : > { %v1099_v11 = vpop.f32.mrf.mxu1  ;;  %vm739_vm8 = vmand %vm707_vm6, %vm723_vm7 }
 0x2d1   : > { %v9717_v60 = vadd.f32 %v1099_v11, %v9705_v0  ;;  %v9730_v11 = vadd.s32 104, %v9399_v24  ;;  %v9735_v37 = vpop.f32.mrf.mxu2  ;;  %v9741_v31 = vsel %vm739_vm8, 0.0, %v14293_v63 }
 0x2d2   : > { %14308 = vst [vmem:[#allocation63_spill] sm:$0xff] %v9741_v31 }
 0x2d3   : > { %1137 = vmax.xlane.f32.xlu1 %v9717_v60  ;;  %14307 = vst [vmem:[#allocation62_spill] sm:$0xff] %v9730_v11  ;;  %v14120_v22 = vshrl.u32 %v9730_v11, 4  ;;  %v674_v57 = vand.u32 15, %v9730_v11 }
 0x2d5   : > { %vm708_vm9 = vcmp.eq.s32.totalorder %v674_v57, %v9403_v54  ;;  %vm724_vm10 = vcmp.ge.s32.totalorder %v9443_v46, %v14120_v22 }
 0x2d6   : > { %vm740_vm11 = vmand %vm708_vm9, %vm724_vm10 }
 0x2d7   : > { %v9759_v57 = vsel %vm740_vm11, 0.0, %v14293_v63 }
 0x2d8   : > { %v1102_v6 = vpop.f32.mrf.mxu1  ;;  %14310 = vst [vmem:[#allocation65_spill] sm:$0xff] %v9759_v57 }
 0x2d9   : > { %v9733_v45 = vadd.f32 %v1102_v6, %v9723_v32  ;;  %v9748_v6 = vadd.s32 112, %v9399_v24  ;;  %v9756_v39 = vpop.f32.mrf.mxu2 }
 0x2db   : > { %1139 = vmax.xlane.f32.xlu2 %v9733_v45  ;;  %14309 = vst [vmem:[#allocation64_spill] sm:$0xff] %v9748_v6  ;;  %v14128_v32 = vshrl.u32 %v9748_v6, 4  ;;  %v675_v48 = vand.u32 15, %v9748_v6 }
 0x2dd   : > { %vm709_vm12 = vcmp.eq.s32.totalorder %v675_v48, %v9403_v54  ;;  %vm725_vm13 = vcmp.ge.s32.totalorder %v9443_v46, %v14128_v32  ;;  %v9787_v32 = vpop.permute.xlu1 %2870 }
 0x2de   : > { %vm741_vm14 = vmand %vm709_vm12, %vm725_vm13  ;;  %14313 = vst [vmem:[#allocation68_spill] sm:$0xff] %v9787_v32 }
 0x2df   : > { %v9775_v21 = vsel %vm741_vm14, 0.0, %v14293_v63 }
 0x2e0   : > { %v1105_v7 = vpop.f32.mrf.mxu1  ;;  %14312 = vst [vmem:[#allocation67_spill] sm:$0xff] %v9775_v21 }
 0x2e1   : > { %v9751_v42 = vadd.f32 %v1105_v7, %v9741_v31  ;;  %v9766_v7 = vadd.s32 120, %v9399_v24  ;;  %v9777_v48 = vpop.f32.mrf.mxu2 }
 0x2e3   : > { %1141 = vmax.xlane.f32.xlu0 %v9751_v42  ;;  %14311 = vst [vmem:[#allocation66_spill] sm:$0xff] %v9766_v7  ;;  %v14134_v31 = vshrl.u32 %v9766_v7, 4  ;;  %v676_v44 = vand.u32 15, %v9766_v7 }
 0x2e5   : > { %vm710_vm15 = vcmp.eq.s32.totalorder %v676_v44, %v9403_v54  ;;  %vm726_vm2 = vcmp.ge.s32.totalorder %v9443_v46, %v14134_v31 }
 0x2e6   : > { %vm742_vm3 = vmand %vm710_vm15, %vm726_vm2 }
 0x2e8   : > { %v1108_v11 = vpop.f32.mrf.mxu1 }
 0x2e9   : > { %v9769_v22 = vadd.f32 %v1108_v11, %v9759_v57  ;;  %v9790_v57 = vsel %vm742_vm3, 0.0, %v14293_v63  ;;  %v9793_v54 = vpop.f32.mrf.mxu2 }
 0x2ea   : > { %14314 = vst [vmem:[#allocation69_spill] sm:$0xff] %v9790_v57 }
 0x2eb   : > { %1143 = vmax.xlane.f32.xlu2 %v9769_v22 }
 0x2f0   : > { %v1111_v6 = vpop.f32.mrf.mxu1 }
 0x2f1   : > { %v9784_v11 = vadd.f32 %v1111_v6, %v9775_v21  ;;  %v1838_v63 = vpop.f32.mrf.mxu2 }
 0x2f3   : > { %1145 = vmax.xlane.f32.xlu2 %v9784_v11 }
 0x2f6   : > { %v1118_v24 = vpop.xlane.xlu0 %1117 }
 0x2f7   : > { %v1149_v15 = vsub.f32 %v9433_v5, %v1118_v24 }
 0x2f8   : > { %v1114_v41 = vpop.f32.mrf.mxu1 }
 0x2f9   : > { %v1165_v44 = vmul.f32 1.442695, %v1149_v15  ;;  %v9796_v31 = vadd.f32 %v1114_v41, %v9790_v57 }
 0x2fb   : > { %7703 = vpow2.f32 %v1165_v44  ;;  %1147 = vmax.xlane.f32.xlu0 %v9796_v31  ;;  %v1841_v44 = vpop.f32.mrf.mxu2 }
 0x2fe   : > { %v1120_v6 = vpop.xlane.xlu1 %1119 }
 0x2ff   : > { %v1150_v7 = vsub.f32 %v9472_v36, %v1120_v6 }
 0x301   : > { %v9800_v46 = vpop.eup %7703  ;;  %v1167_v21 = vmul.f32 1.442695, %v1150_v7 }
 0x302   : > { %1197 = vadd.xlane.f32.xlu1 %v9800_v46 }
 0x303   : > { %7705 = vpow2.f32 %v1167_v21  ;;  %v1844_v21 = vpop.f32.mrf.mxu2 }
 0x306   : > { %v1122_v24 = vpop.xlane.xlu2 %1121 }
 0x307   : > { %v1151_v5 = vsub.f32 %v9506_v30, %v1122_v24 }
 0x309   : > { %v9804_v15 = vpop.eup %7705  ;;  %v1169_v41 = vmul.f32 1.442695, %v1151_v5 }
 0x30a   : > { %1199 = vadd.xlane.f32.xlu0 %v9804_v15 }
 0x30b   : > { %7707 = vpow2.f32 %v1169_v41  ;;  %v1847_v12 = vpop.f32.mrf.mxu2 }
 0x30e   : > { %v1124_v57 = vpop.xlane.xlu0 %1123 }
 0x30f   : > { %v1152_v36 = vsub.f32 %v9531_v38, %v1124_v57 }
 0x311   : > { %v9808_v6 = vpop.eup %7707  ;;  %v1171_v7 = vmul.f32 1.442695, %v1152_v36 }
 0x312   : > { %1201 = vadd.xlane.f32.xlu2 %v9808_v6 }
 0x313   : > { %7709 = vpow2.f32 %v1171_v7 }
 0x316   : > { %v1126_v32 = vpop.xlane.xlu2 %1125 }
 0x317   : > { %v1153_v30 = vsub.f32 %v9559_v27, %v1126_v32  ;;  %v1850_v50 = vpop.f32.mrf.mxu2 }
 0x319   : > { %v9812_v24 = vpop.eup %7709  ;;  %v1173_v5 = vmul.f32 1.442695, %v1153_v30 }
 0x31a   : > { %1203 = vadd.xlane.f32.xlu0 %v9812_v24 }
 0x31b   : > { %7711 = vpow2.f32 %v1173_v5 }
 0x31e   : > { %v1128_v41 = vpop.xlane.xlu1 %1127 }
 0x31f   : > { %v1154_v38 = vsub.f32 %v9593_v51, %v1128_v41 }
 0x321   : > { %v9816_v57 = vpop.eup %7711  ;;  %v1175_v36 = vmul.f32 1.442695, %v1154_v38 }
 0x322   : > { %1205 = vadd.xlane.f32.xlu2 %v9816_v57 }
 0x323   : > { %7713 = vpow2.f32 %v1175_v36 }
 0x326   : > { %v1130_v7 = vpop.xlane.xlu0 %1129 }
 0x327   : > { %v1155_v27 = vsub.f32 %v9622_v40, %v1130_v7 }
 0x329   : > { %v9820_v32 = vpop.eup %7713  ;;  %v1177_v30 = vmul.f32 1.442695, %v1155_v27 }
 0x32a   : > { %1207 = vadd.xlane.f32.xlu1 %v9820_v32 }
 0x32b   : > { %7715 = vpow2.f32 %v1177_v30 }
 0x32e   : > { %v1132_v5 = vpop.xlane.xlu2 %1131 }
 0x32f   : > { %v1156_v2 = vsub.f32 %v9647_v16, %v1132_v5  ;;  %v1853_v51 = vpop.f32.mrf.mxu2 }
 0x330   : > { %1856 = vmatpush.msrb.mxu0 %v1853_v51 }
 0x331   : > { %v9824_v41 = vpop.eup %7715  ;;  %v1179_v38 = vmul.f32 1.442695, %v1156_v2 }
 0x332   : > { %1857 = vmatpush.msrb.mxu0 %v1850_v50  ;;  %1209 = vadd.xlane.f32.xlu0 %v9824_v41 }
 0x333   : > { %7717 = vpow2.f32 %v1179_v38 }
 0x334   : > { %1858 = vmatpush.msrb.mxu0 %v1847_v12 }
 0x336   : > { %1859 = vmatpush.msrb.mxu0 %v1844_v21  ;;  %v1134_v40 = vpop.xlane.xlu0 %1133 }
 0x337   : > { %v1157_v36 = vsub.f32 %v9671_v19, %v1134_v40 }
 0x338   : > { %1860 = vmatpush.msrb.mxu0 %v1841_v44 }
 0x339   : > { %v9828_v7 = vpop.eup %7717  ;;  %v1181_v27 = vmul.f32 1.442695, %v1157_v36 }
 0x33a   : > { %1211 = vadd.xlane.f32.xlu2 %v9828_v7  ;;  %1861 = vmatpush.msrb.mxu0 %v1838_v63 }
 0x33b   : > { %7719 = vpow2.f32 %v1181_v27 }
 0x33c   : > { %1862 = vmatpush.msrb.mxu0 %v9793_v54 }
 0x33e   : > { %v1136_v16 = vpop.xlane.xlu2 %1135  ;;  %1863 = vmatpush.msrb.mxu0 %v9777_v48 }
 0x33f   : > { %v1158_v50 = vsub.f32 %v9696_v56, %v1136_v16 }
 0x340   : > { %1864 = vmatpush.msrb.mxu0 %v9756_v39 }
 0x341   : > { %v9835_v12 = vpop.eup %7719  ;;  %v1183_v19 = vmul.f32 1.442695, %v1158_v50 }
 0x342   : > { %1865 = vmatpush.msrb.mxu0 %v9735_v37  ;;  %1213 = vadd.xlane.f32.xlu1 %v9835_v12 }
 0x343   : > { %7721 = vpow2.f32 %v1183_v19 }
 0x344   : > { %1866 = vmatpush.msrb.mxu0 %v9714_v3 }
 0x346   : > { %v1138_v2 = vpop.xlane.xlu1 %1137  ;;  %1867 = vmatpush.msrb.mxu0 %v9685_v53 }
 0x347   : > { %v1159_v63 = vsub.f32 %v9717_v60, %v1138_v2 }
 0x348   : > { %1868 = vmatpush.msrb.mxu0 %v9655_v18 }
 0x349   : > { %v9843_v56 = vpop.eup %7721  ;;  %v1185_v39 = vmul.f32 1.442695, %v1159_v63 }
 0x34a   : > { %1869 = vmatpush.msrb.mxu0 %v9626_v52  ;;  %1215 = vadd.xlane.f32.xlu0 %v9843_v56 }
 0x34b   : > { %7723 = vpow2.f32 %v1185_v39 }
 0x34c   : > { %1870 = vmatpush.msrb.mxu0 %v9590_v28 }
 0x34e   : > { %v1140_v37 = vpop.xlane.xlu2 %1139  ;;  %1871 = vmatpush.msrb.mxu0 %v9547_v33 }
 0x34f   : > { %v1160_v3 = vsub.f32 %v9733_v45, %v1140_v37 }
 0x351   : > { %v9850_v53 = vpop.eup %7723  ;;  %v1187_v60 = vmul.f32 1.442695, %v1160_v3 }
 0x352   : > { %1217 = vadd.xlane.f32.xlu2 %v9850_v53 }
 0x353   : > { %7725 = vpow2.f32 %v1187_v60 }
 0x356   : > { %v1142_v18 = vpop.xlane.xlu0 %1141 }
 0x357   : > { %v1161_v48 = vsub.f32 %v9751_v42, %v1142_v18 }
 0x359   : > { %v9854_v52 = vpop.eup %7725  ;;  %v1189_v54 = vmul.f32 1.442695, %v1161_v48 }
 0x35a   : > { %1219 = vadd.xlane.f32.xlu0 %v9854_v52 }
 0x35b   : > { %7727 = vpow2.f32 %v1189_v54  ;;  %2533 = vrot.lane.b32.xlu1 %v8786_v55, %s14147_s25 }
 0x35e   : > { %v1144_v28 = vpop.xlane.xlu2 %1143 }
 0x361   : > { %v9859_v33 = vpop.eup %7727 }
 0x362   : > { %1221 = vadd.xlane.f32.xlu2 %v9859_v33 }
 0x363   : > { %2325 = vrot.lane.b32.xlu1 %v8795_v58, %s14151_s18 }
 0x366   : > { %v1146_v21 = vpop.xlane.xlu2 %1145 }
 0x367   : > { %v1163_v50 = vsub.f32 %v9784_v11, %v1146_v21 }
 0x369   : > { %v1193_v19 = vmul.f32 1.442695, %v1163_v50 }
 0x36b   : > { %2874 = vrot.lane.b32.xlu1 %v8804_v61, %s14149_s24 }
 0x36e   : > { %2872 = vrot.lane.b32.xlu0 %v8795_v58, %s14149_s24  ;;  %v9870_v42 = vpop.xlane.xlu0 %1147 }
 0x373   : > { %2876 = vrot.lane.b32.xlu1 %v8819_v1, %s14149_s24 }
 0x375   : > { %v1198_v45 = vpop.xlane.xlu1 %1197 }
 0x376   : > { %7729 = vrcp.f32 %v1198_v45  ;;  %2535 = vrot.lane.b32.xlu0 %v8795_v58, %s14147_s25 }
 0x37a   : > { %2323 = vrot.lane.b32.xlu2 %v8786_v55, %s14151_s18 }
 0x37c   : > { %v7730_v44 = vpop.eup %7729 }
 0x37d   : > { %v1200_v30 = vpop.xlane.xlu0 %1199  ;;  %v1245_v5 = vmul.f32 %v7730_v44, %v9800_v46  ;;  %v1162_v46 = vsub.f32 %v9769_v22, %v1144_v28 }
 0x37e   : > { %7731 = vrcp.f32 %v1200_v30  ;;  %2327 = vrot.lane.b32.xlu0 %v8804_v61, %s14151_s18 }
 0x37f   : > { %1937 = vmatmul.f32.vlgmr.msrb.gmra.mxu1 %v1245_v5  ;;  %v1191_v27 = vmul.f32 1.442695, %v1162_v46 }
 0x382   : > { %2537 = vrot.lane.b32.xlu2 %v8804_v61, %s14147_s25 }
 0x384   : > { %v7732_v51 = vpop.eup %7731 }
 0x385   : > { %v1202_v38 = vpop.xlane.xlu2 %1201  ;;  %v1246_v58 = vmul.f32 %v7732_v51, %v9804_v15 }
 0x386   : > { %7733 = vrcp.f32 %v1202_v38 }
 0x387   : > { %1940 = vmatmul.f32.gmra.mxu1 %v1246_v58 }
 0x38a   : > { %2539 = vrot.lane.b32.xlu2 %v8819_v1, %s14147_s25 }
 0x38c   : > { %v7734_v55 = vpop.eup %7733 }
 0x38d   : > { %v1204_v40 = vpop.xlane.xlu0 %1203  ;;  %v1247_v36 = vmul.f32 %v7734_v55, %v9808_v6 }
 0x38e   : > { %7735 = vrcp.f32 %v1204_v40 }
 0x38f   : > { %1943 = vmatmul.f32.gmra.mxu1 %v1247_v36  ;;  %7737 = vpow2.f32 %v1191_v27 }
 0x392   : > { %2541 = vrot.lane.b32.xlu2 %v8837_v8, %s14147_s25 }
 0x394   : > { %v7736_v61 = vpop.eup %7735 }
 0x395   : > { %v1206_v15 = vpop.xlane.xlu2 %1205  ;;  %v1248_v16 = vmul.f32 %v7736_v61, %v9812_v24  ;;  %v9892_v22 = vpop.eup %7737 }
 0x396   : > { %7739 = vrcp.f32 %v1206_v15 }
 0x397   : > { %1946 = vmatmul.f32.gmra.mxu1 %v1248_v16 }
 0x39a   : > { %2543 = vrot.lane.b32.xlu2 %v8828_v4, %s14147_s25 }
 0x39c   : > { %v7740_v6 = vpop.eup %7739 }
 0x39d   : > { %v1208_v2 = vpop.xlane.xlu1 %1207  ;;  %1223 = vadd.xlane.f32.xlu1 %v9892_v22  ;;  %v1249_v63 = vmul.f32 %v7740_v6, %v9816_v57 }
 0x39e   : > { %7741 = vrcp.f32 %v1208_v2 }
 0x39f   : > { %1949 = vmatmul.f32.gmra.mxu1 %v1249_v63  ;;  %7743 = vpow2.f32 %v1193_v19 }
 0x3a2   : > { %2545 = vrot.lane.b32.xlu2 %v8846_v13, %s14147_s25 }
 0x3a4   : > { %v7742_v24 = vpop.eup %7741 }
 0x3a5   : > { %v1210_v11 = vpop.xlane.xlu0 %1209  ;;  %v1250_v39 = vmul.f32 %v7742_v24, %v9820_v32  ;;  %v9899_v37 = vpop.eup %7743 }
 0x3a6   : > { %7745 = vrcp.f32 %v1210_v11 }
 0x3a7   : > { %1952 = vmatmul.f32.gmra.mxu1 %v1250_v39 }
 0x3a8   : > { %1225 = vadd.xlane.f32.xlu0 %v9899_v37 }
 0x3aa   : > { %2547 = vrot.lane.b32.xlu2 %v8855_v17, %s14147_s25 }
 0x3ac   : > { %v7746_v57 = vpop.eup %7745 }
 0x3ad   : > { %v1212_v3 = vpop.xlane.xlu2 %1211  ;;  %v1251_v60 = vmul.f32 %v7746_v57, %v9824_v41  ;;  %v798_v41 = vld [vmem:[%s14255_s4 + $0x10] sm:$0xff] }
 0x3ae   : > { %7747 = vrcp.f32 %v1212_v3  ;;  %2402 = vmatpush.msra.mxu2 %v798_v41 }
 0x3af   : > { %1955 = vmatmul.f32.gmra.mxu1 %v1251_v60 }
 0x3b2   : > { %2549 = vrot.lane.b32.xlu2 %v8864_v20, %s14147_s25 }
 0x3b4   : > { %v7748_v18 = vpop.eup %7747 }
 0x3b5   : > { %v1214_v32 = vpop.xlane.xlu1 %1213  ;;  %v1252_v48 = vmul.f32 %v7748_v18, %v9828_v7 }
 0x3b6   : > { %7749 = vrcp.f32 %v1214_v32  ;;  %2878 = vrot.lane.b32.xlu1 %v8837_v8, %s14149_s24 }
 0x3b7   : > { %1958 = vmatmul.f32.gmra.mxu1 %v1252_v48 }
 0x3ba   : > { %2551 = vrot.lane.b32.xlu2 %v8873_v25, %s14147_s25 }
 0x3bc   : > { %v7750_v54 = vpop.eup %7749  ;;  %2329 = vrot.lane.b32.xlu0 %v8819_v1, %s14151_s18 }
 0x3bd   : > { %v1216_v28 = vpop.xlane.xlu0 %1215  ;;  %v1253_v45 = vmul.f32 %v7750_v54, %v9835_v12 }
 0x3be   : > { %7751 = vrcp.f32 %v1216_v28 }
 0x3bf   : > { %1961 = vmatmul.f32.vlgmr.msrb.gmra.mxu3 %v1253_v45 }
 0x3c2   : > { %2553 = vrot.lane.b32.xlu2 %v8905_v34, %s14147_s25 }
 0x3c4   : > { %v7752_v7 = vpop.eup %7751  ;;  %2331 = vrot.lane.b32.xlu0 %v8837_v8, %s14151_s18  ;;  %v1164_v8 = vsub.f32 %v9796_v31, %v9870_v42 }
 0x3c5   : > { %v1218_v44 = vpop.xlane.xlu2 %1217  ;;  %v1254_v1 = vmul.f32 %v7752_v7, %v9843_v56 }
 0x3c6   : > { %7753 = vrcp.f32 %v1218_v44  ;;  %v1195_v51 = vmul.f32 1.442695, %v1164_v8 }
 0x3c7   : > { %1964 = vmatmul.f32.gmra.mxu3 %v1254_v1 }
 0x3ca   : > { %2555 = vrot.lane.b32.xlu2 %v8919_v43, %s14147_s25 }
 0x3cc   : > { %v7754_v21 = vpop.eup %7753  ;;  %2333 = vrot.lane.b32.xlu0 %v8828_v4, %s14151_s18 }
 0x3cd   : > { %v2534_v12 = vpop.permute.xlu1 %2533  ;;  %v1220_v30 = vpop.xlane.xlu0 %1219  ;;  %v1255_v5 = vmul.f32 %v7754_v21, %v9850_v53 }
 0x3ce   : > { %7755 = vrcp.f32 %v1220_v30  ;;  %7267 = vmatmul.msk.f32.vlgmr.msra.gmra.mxu1 %vm14217_vm1, %v2534_v12 }
 0x3cf   : > { %1967 = vmatmul.f32.gmra.mxu3 %v1255_v5 }
 0x3d2   : > { %2347 = vrot.lane.b32.xlu2 %v8945_v59, %s14151_s18 }
 0x3d4   : > { %v7756_v56 = vpop.eup %7755  ;;  %2335 = vrot.lane.b32.xlu0 %v8846_v13, %s14151_s18 }
 0x3d5   : > { %v1222_v38 = vpop.xlane.xlu2 %1221  ;;  %v1256_v58 = vmul.f32 %v7756_v56, %v9854_v52  ;;  %v2326_v46 = vpop.permute.xlu1 %2325 }
 0x3d6   : > { %7757 = vrcp.f32 %v1222_v38 }
 0x3d7   : > { %1970 = vmatmul.f32.gmra.mxu3 %v1256_v58  ;;  %7759 = vpow2.f32 %v1195_v51 }
 0x3da   : > { %2896 = vrot.lane.b32.xlu2 %v8989_v29, %s14149_s24 }
 0x3dc   : > { %v7758_v53 = vpop.eup %7757  ;;  %2337 = vrot.lane.b32.xlu0 %v8855_v17, %s14151_s18 }
 0x3dd   : > { %v2324_v31 = vpop.permute.xlu2 %2323  ;;  %v1257_v42 = vmul.f32 %v7758_v53, %v9859_v33  ;;  %v9942_v55 = vpop.eup %7759 }
 0x3de   : > { %7235 = vmatmul.msk.f32.vlgmr.msra.gmra.mxu2 %vm14217_vm1, %v2324_v31  ;;  %v9968_v16 = vpop.permute.xlu1 %2874 }
 0x3df   : > { %1973 = vmatmul.f32.gmra.mxu3 %v1257_v42 }
 0x3e0   : > { %1227 = vadd.xlane.f32.xlu1 %v9942_v55  ;;  %v9945_v52 = vpop.permute.xlu0 %2872 }
 0x3e2   : > { %2349 = vrot.lane.b32.xlu2 %v8989_v29, %s14151_s18 }
 0x3e4   : > { %2339 = vrot.lane.b32.xlu0 %v8864_v20, %s14151_s18 }
 0x3e5   : > { %v2538_v40 = vpop.permute.xlu2 %2537 }
 0x3e6   : > { %7236 = vmatmul.msk.f32.gmra.mxu2 %vm14217_vm1, %v2326_v46  ;;  %v9975_v19 = vpop.permute.xlu1 %2876 }
 0x3e8   : > { %v2536_v33 = vpop.permute.xlu0 %2535 }
 0x3e9   : > { %7268 = vmatmul.msk.f32.gmra.mxu1 %vm14217_vm1, %v2536_v33 }
 0x3ea   : > { %2559 = vrot.lane.b32.xlu2 %v8989_v29, %s14147_s25  ;;  %v1535_v29 = vpop.f32.mrf.mxu3 }
 0x3ec   : > { %2341 = vrot.lane.b32.xlu0 %v8873_v25, %s14151_s18 }
 0x3ed   : > { %v2540_v36 = vpop.permute.xlu2 %2539 }
 0x3f0   : > { %v2328_v27 = vpop.permute.xlu0 %2327 }
 0x3f1   : > { %7237 = vmatmul.msk.f32.gmra.mxu2 %vm14217_vm1, %v2328_v27  ;;  %7269 = vmatmul.msk.f32.gmra.mxu1 %vm14217_vm1, %v2538_v40  ;;  %v14316_v27 = vld [vmem:[#allocation35_spill] sm:$0xff] }
 0x3f2   : > { %2898 = vrot.lane.b32.xlu2 %v8970_v10, %s14149_s24  ;;  %v9973_v50 = vpop.f32.mrf.mxu3 }
 0x3f3   : > { %v10040_v51 = vadd.f32 %v9973_v50, %v9452_v35 }
 0x3f4   : > { %2343 = vrot.lane.b32.xlu0 %v8905_v34, %s14151_s18 }
 0x3f5   : > { %v2542_v61 = vpop.permute.xlu2 %2541 }
 0x3f9   : > { %2880 = vrot.lane.b32.xlu1 %v8828_v4, %s14149_s24  ;;  %7270 = vmatmul.msk.f32.gmra.mxu1 %vm14217_vm1, %v2540_v36 }
 0x3fa   : > { %v1541_v4 = vpop.f32.mrf.mxu3 }
 0x3fb   : > { %v9985_v11 = vadd.f32 %v1541_v4, %v9494_v14  ;;  %v14318_v4 = vld [vmem:[#allocation33_spill] sm:$0xff] }
 0x3fc   : > { %2345 = vrot.lane.b32.xlu0 %v8919_v43, %s14151_s18 }
 0x3fd   : > { %v2544_v15 = vpop.permute.xlu2 %2543 }
 0x401   : > { %2882 = vrot.lane.b32.xlu1 %v8846_v13, %s14149_s24  ;;  %7271 = vmatmul.msk.f32.gmra.mxu1 %vm14217_vm1, %v2542_v61 }
 0x402   : > { %v9987_v39 = vpop.f32.mrf.mxu3 }
 0x403   : > { %v10052_v53 = vadd.f32 %v9987_v39, %v9519_v23 }
 0x405   : > { %v2546_v6 = vpop.permute.xlu2 %2545 }
 0x409   : > { %2884 = vrot.lane.b32.xlu1 %v8855_v17, %s14149_s24  ;;  %7272 = vmatmul.msk.f32.gmra.mxu1 %vm14217_vm1, %v2544_v15 }
 0x40a   : > { %v9996_v57 = vpop.f32.mrf.mxu3 }
 0x40d   : > { %v2548_v2 = vpop.permute.xlu2 %2547 }
 0x410   : > { %v1224_v63 = vpop.xlane.xlu1 %1223 }
 0x411   : > { %7761 = vrcp.f32 %v1224_v63  ;;  %2886 = vrot.lane.b32.xlu1 %v8864_v20, %s14149_s24  ;;  %7273 = vmatmul.msk.f32.gmra.mxu1 %vm14217_vm1, %v2546_v6  ;;  %v14319_v63 = vld [vmem:[#allocation34_spill] sm:$0xff] }
 0x415   : > { %v2550_v17 = vpop.permute.xlu2 %2549 }
 0x417   : > { %v7762_v13 = vpop.eup %7761 }
 0x418   : > { %v1258_v24 = vmul.f32 %v7762_v13, %v9892_v22 }
 0x419   : > { %2888 = vrot.lane.b32.xlu1 %v8873_v25, %s14149_s24  ;;  %7274 = vmatmul.msk.f32.gmra.mxu1 %vm14217_vm1, %v2548_v2  ;;  %v10000_v25 = vadd.f32 %v1535_v29, %v9423_v49  ;;  %v14317_v29 = vld [vmem:[#allocation37_spill] sm:$0xff] }
 0x41a   : > { %1976 = vmatmul.f32.gmra.mxu3 %v1258_v24  ;;  %v14320_v24 = vld [vmem:[#allocation36_spill] sm:$0xff] }
 0x41b   : > { %1587 = vmax.xlane.f32.xlu2 %v9985_v11  ;;  %v1226_v20 = vpop.xlane.xlu0 %1225 }
 0x41c   : > { %7763 = vrcp.f32 %v1226_v20 }
 0x41d   : > { %v2552_v60 = vpop.permute.xlu2 %2551 }
 0x421   : > { %2890 = vrot.lane.b32.xlu1 %v8905_v34, %s14149_s24  ;;  %7275 = vmatmul.msk.f32.gmra.mxu1 %vm14217_vm1, %v2550_v17  ;;  %v1550_v34 = vpop.f32.mrf.mxu3 }
 0x422   : > { %v7764_v22 = vpop.eup %7763  ;;  %v10033_v30 = vadd.f32 %v1550_v34, %v9575_v9 }
 0x423   : > { %v1259_v3 = vmul.f32 %v7764_v22, %v9899_v37 }
 0x425   : > { %1979 = vmatmul.f32.gmra.mxu3 %v1259_v3  ;;  %v2554_v18 = vpop.permute.xlu2 %2553  ;;  %v14321_v3 = vld [vmem:[#allocation39_spill] sm:$0xff] }
 0x426   : > { %1583 = vmax.xlane.f32.xlu0 %v10000_v25 }
 0x428   : > { %v10026_v7 = vpop.permute.xlu1 %2878 }
 0x429   : > { %2892 = vrot.lane.b32.xlu1 %v8919_v43, %s14149_s24  ;;  %7276 = vmatmul.msk.f32.gmra.mxu1 %vm14217_vm1, %v2552_v60  ;;  %v1553_v48 = vpop.f32.mrf.mxu3 }
 0x42d   : > { %v2556_v43 = vpop.permute.xlu2 %2555 }
 0x42e   : > { %v2330_v32 = vpop.permute.xlu0 %2329 }
 0x42f   : > { %7238 = vmatmul.msk.f32.gmra.mxu2 %vm14217_vm1, %v2330_v32  ;;  %v14323_v32 = vld [vmem:[#allocation38_spill] sm:$0xff] }
 0x431   : > { %2894 = vrot.lane.b32.xlu1 %v8945_v59, %s14149_s24  ;;  %7277 = vmatmul.msk.f32.gmra.mxu1 %vm14217_vm1, %v2554_v18  ;;  %v10019_v41 = vpop.f32.mrf.mxu3 }
 0x433   : > { %2563 = vrot.lane.b32.xlu2 %v8987_v26, %s14147_s25 }
 0x435   : > { %v2348_v31 = vpop.permute.xlu2 %2347 }
 0x436   : > { %v2332_v37 = vpop.permute.xlu0 %2331 }
 0x437   : > { %7239 = vmatmul.msk.f32.gmra.mxu2 %vm14217_vm1, %v2332_v37  ;;  %v10116_v37 = vpop.f32.mrf.mxu1 }
 0x438   : > { %14324 = vst [vmem:[#allocation35_spill] sm:$0xff] %v10116_v37 }
 0x439   : > { %2557 = vrot.lane.b32.xlu1 %v8945_v59, %s14147_s25  ;;  %7278 = vmatmul.msk.f32.gmra.mxu1 %vm14217_vm1, %v2556_v43  ;;  %v10024_v45 = vpop.f32.mrf.mxu3 }
 0x43a   : > { %2351 = vrot.lane.b32.xlu0 %v8970_v10, %s14151_s18 }
 0x43d   : > { %v10067_v36 = vpop.permute.xlu2 %2896 }
 0x43e   : > { %v2334_v54 = vpop.permute.xlu0 %2333 }
 0x43f   : > { %7240 = vmatmul.msk.f32.gmra.mxu2 %vm14217_vm1, %v2334_v54 }
 0x441   : > { %v10029_v1 = vpop.f32.mrf.mxu3 }
 0x442   : > { %2900 = vrot.lane.b32.xlu0 %v8987_v26, %s14149_s24 }
 0x445   : > { %v2350_v15 = vpop.permute.xlu2 %2349 }
 0x446   : > { %v2336_v28 = vpop.permute.xlu0 %2335 }
 0x447   : > { %7241 = vmatmul.msk.f32.gmra.mxu2 %vm14217_vm1, %v2336_v28 }
 0x449   : > { %v1565_v56 = vpop.f32.mrf.mxu3 }
 0x44a   : > { %v10043_v38 = vadd.f32 %v1565_v56, %v9705_v0 }
 0x44d   : > { %v2560_v54 = vpop.permute.xlu2 %2559 }
 0x44e   : > { %v2338_v59 = vpop.permute.xlu0 %2337 }
 0x44f   : > { %7242 = vmatmul.msk.f32.gmra.mxu2 %vm14217_vm1, %v2338_v59  ;;  %v14327_v59 = vld [vmem:[#allocation52_spill] sm:$0xff] }
 0x451   : > { %v10060_v46 = vpop.f32.mrf.mxu3 }
 0x453   : > { %v1228_v44 = vpop.xlane.xlu1 %1227 }
 0x454   : > { %7765 = vrcp.f32 %v1228_v44  ;;  %v10126_v44 = vadd.f32 %v9996_v57, %v14327_v59 }
 0x455   : > { %v10143_v56 = vpop.permute.xlu2 %2898 }
 0x456   : > { %v2340_v21 = vpop.permute.xlu0 %2339 }
 0x457   : > { %7243 = vmatmul.msk.f32.gmra.mxu2 %vm14217_vm1, %v2340_v21 }
 0x45a   : > { %v7766_v12 = vpop.eup %7765 }
 0x45b   : > { %v1260_v5 = vmul.f32 %v7766_v12, %v9942_v55  ;;  %v14328_v12 = vld [vmem:[#allocation40_spill] sm:$0xff] }
 0x45c   : > { %1593 = vmax.xlane.f32.xlu2 %v10033_v30 }
 0x45d   : > { %1982 = vmatmul.f32.gmra.mxu3 %v1260_v5 }
 0x45e   : > { %v2342_v8 = vpop.permute.xlu0 %2341 }
 0x45f   : > { %7244 = vmatmul.msk.f32.gmra.mxu2 %vm14217_vm1, %v2342_v8  ;;  %v10138_v8 = vpop.f32.mrf.mxu1 }
 0x460   : > { %14330 = vst [vmem:[#allocation33_spill] sm:$0xff] %v10138_v8 }
 0x463   : > { %1585 = vmax.xlane.f32.xlu1 %v10040_v51 }
 0x464   : > { %1603 = vmax.xlane.f32.xlu2 %v10043_v38 }
 0x465   : > { %7219 = vmatmul.msk.f32.vlgmr.msra.gmra.mxu3 %vm14217_vm1, %v9297_v47  ;;  %v14315_v47 = vld [vmem:[#allocation31_spill] sm:$0xff] }
 0x466   : > { %v2344_v58 = vpop.permute.xlu0 %2343  ;;  %v10063_v40 = vadd.f32 %v1553_v48, %v14315_v47  ;;  %v14326_v48 = vld [vmem:[#allocation29_spill] sm:$0xff] }
 0x467   : > { %7245 = vmatmul.msk.f32.gmra.mxu2 %vm14217_vm1, %v2344_v58  ;;  %v10122_v43 = vadd.f32 %v10019_v41, %v14326_v48  ;;  %v14329_v41 = vld [vmem:[#allocation56_spill] sm:$0xff]  ;;  %v14332_v58 = vld [vmem:[#allocation41_spill] sm:$0xff] }
 0x468   : > { %v10136_v5 = vadd.f32 %v10024_v45, %v14329_v41 }
 0x46b   : > { %v10054_v42 = vpop.permute.xlu1 %2880 }
 0x46c   : > { %1589 = vmax.xlane.f32.xlu0 %v10052_v53 }
 0x46d   : > { %7220 = vmatmul.msk.f32.gmra.mxu3 %vm14217_vm1, %v9277_v62  ;;  %v10073_v62 = vpop.f32.mrf.mxu3 }
 0x46e   : > { %v2346_v55 = vpop.permute.xlu0 %2345 }
 0x46f   : > { %7246 = vmatmul.msk.f32.gmra.mxu2 %vm14217_vm1, %v2346_v55 }
 0x473   : > { %v10065_v33 = vpop.permute.xlu1 %2882 }
 0x474   : > { %1595 = vmax.xlane.f32.xlu0 %v10063_v40 }
 0x475   : > { %7221 = vmatmul.msk.f32.gmra.mxu3 %vm14217_vm1, %v14316_v27  ;;  %v10084_v6 = vpop.f32.mrf.mxu3  ;;  %v10152_v27 = vpop.f32.mrf.mxu1 }
 0x476   : > { %14334 = vst [vmem:[#allocation36_spill] sm:$0xff] %v10152_v27 }
 0x477   : > { %7247 = vmatmul.msk.f32.gmra.mxu2 %vm14217_vm1, %v2348_v31  ;;  %v14333_v31 = vld [vmem:[#allocation58_spill] sm:$0xff] }
 0x478   : > { %v10150_v55 = vadd.f32 %v10029_v1, %v14333_v31 }
 0x47b   : > { %v10075_v61 = vpop.permute.xlu1 %2884 }
 0x47c   : > { %2561 = vrot.lane.b32.xlu1 %v8970_v10, %s14147_s25 }
 0x47d   : > { %7222 = vmatmul.msk.f32.gmra.mxu3 %vm14217_vm1, %v14317_v29  ;;  %v10094_v10 = vpop.f32.mrf.mxu3  ;;  %v14335_v29 = vld [vmem:[#allocation42_spill] sm:$0xff]  ;;  %v10164_v1 = vpop.f32.mrf.mxu1 }
 0x47e   : > { %14338 = vst [vmem:[#allocation38_spill] sm:$0xff] %v10164_v1 }
 0x47f   : > { %7248 = vmatmul.msk.f32.gmra.mxu2 %vm14217_vm1, %v2350_v15 }
 0x483   : > { %v10082_v50 = vpop.permute.xlu1 %2886 }
 0x484   : > { %2353 = vrot.lane.b32.xlu1 %v8987_v26, %s14151_s18 }
 0x485   : > { %7223 = vmatmul.msk.f32.gmra.mxu3 %vm14217_vm1, %v14318_v4  ;;  %v10100_v39 = vpop.f32.mrf.mxu3  ;;  %v799_v4 = vld [vmem:[%s14255_s4 + $0x18] sm:$0xff] }
 0x486   : > { %2949 = vmatpush.msrb.mxu3 %v799_v4 }
 0x48b   : > { %v10090_v2 = vpop.permute.xlu1 %2888 }
 0x48d   : > { %7224 = vmatmul.msk.f32.gmra.mxu3 %vm14217_vm1, %v14319_v63  ;;  %v10107_v60 = vpop.f32.mrf.mxu3  ;;  %v14337_v63 = vld [vmem:[#allocation43_spill] sm:$0xff] }
 0x48e   : > { %14322 = vst [vmem:[#allocation31_spill] sm:$0xff] %v10107_v60  ;;  %v1588_v45 = vpop.xlane.xlu2 %1587 }
 0x493   : > { %v10096_v13 = vpop.permute.xlu1 %2890 }
 0x495   : > { %7225 = vmatmul.msk.f32.gmra.mxu3 %vm14217_vm1, %v14320_v24 }
 0x496   : > { %v2564_v24 = vpop.permute.xlu2 %2563 }
 0x499   : > { %v1584_v17 = vpop.xlane.xlu0 %1583 }
 0x49a   : > { %v1615_v26 = vsub.f32 %v10000_v25, %v1584_v17  ;;  %v10118_v25 = vpop.f32.mrf.mxu3 }
 0x49b   : > { %v10103_v20 = vpop.permute.xlu1 %2892  ;;  %14325 = vst [vmem:[#allocation37_spill] sm:$0xff] %v10118_v25 }
 0x49c   : > { %v1631_v22 = vmul.f32 1.442695, %v1615_v26  ;;  %v14340_v26 = vld [vmem:[#allocation54_spill] sm:$0xff] }
 0x49d   : > { %7226 = vmatmul.msk.f32.gmra.mxu3 %vm14217_vm1, %v14321_v3 }
 0x49e   : > { %7767 = vpow2.f32 %v1631_v22 }
 0x4a2   : > { %v10140_v57 = vpop.f32.mrf.mxu3 }
 0x4a3   : > { %v10109_v34 = vpop.permute.xlu1 %2894  ;;  %14331 = vst [vmem:[#allocation34_spill] sm:$0xff] %v10140_v57 }
 0x4a4   : > { %v10111_v18 = vpop.eup %7767 }
 0x4a5   : > { %7227 = vmatmul.msk.f32.gmra.mxu3 %vm14217_vm1, %v14323_v32  ;;  %1663 = vadd.xlane.f32.xlu0 %v10111_v18 }
 0x4aa   : > { %v10157_v15 = vpop.f32.mrf.mxu3 }
 0x4ab   : > { %v2558_v28 = vpop.permute.xlu1 %2557  ;;  %14336 = vst [vmem:[#allocation39_spill] sm:$0xff] %v10157_v15 }
 0x4ac   : > { %7279 = vmatmul.msk.f32.gmra.mxu1 %vm14217_vm1, %v2558_v28  ;;  %v2352_v21 = vpop.permute.xlu0 %2351 }
 0x4ad   : > { %7228 = vmatmul.msk.f32.gmra.mxu3 %vm14217_vm1, %v14328_v12  ;;  %1597 = vmax.xlane.f32.xlu0 %v10122_v43 }
 0x4ae   : > { %7249 = vmatmul.msk.f32.gmra.mxu2 %vm14217_vm1, %v2352_v21  ;;  %1591 = vmax.xlane.f32.xlu1 %v10126_v44  ;;  %v14343_v21 = vld [vmem:[#allocation30_spill] sm:$0xff] }
 0x4b2   : > { %v10166_v17 = vpop.f32.mrf.mxu3 }
 0x4b3   : > { %14339 = vst [vmem:[#allocation29_spill] sm:$0xff] %v10166_v17 }
 0x4b4   : > { %7280 = vmatmul.msk.f32.gmra.mxu1 %vm14217_vm1, %v2560_v54  ;;  %v10173_v54 = vpop.f32.mrf.mxu1  ;;  %v10180_v4 = vpop.permute.xlu0 %2900 }
 0x4b5   : > { %7229 = vmatmul.msk.f32.gmra.mxu3 %vm14217_vm1, %v14332_v58  ;;  %1599 = vmax.xlane.f32.xlu0 %v10136_v5  ;;  %14342 = vst [vmem:[#allocation40_spill] sm:$0xff] %v10173_v54 }
 0x4ba   : > { %v10170_v3 = vpop.f32.mrf.mxu3 }
 0x4bb   : > { %14341 = vst [vmem:[#allocation52_spill] sm:$0xff] %v10170_v3 }
 0x4bc   : > { %v10184_v3 = vpop.f32.mrf.mxu1 }
 0x4bd   : > { %7230 = vmatmul.msk.f32.gmra.mxu3 %vm14217_vm1, %v14335_v29  ;;  %1601 = vmax.xlane.f32.xlu0 %v10150_v55  ;;  %14345 = vst [vmem:[#allocation58_spill] sm:$0xff] %v10184_v3 }
 0x4c2   : > { %v10178_v29 = vpop.f32.mrf.mxu3 }
 0x4c3   : > { %14344 = vst [vmem:[#allocation41_spill] sm:$0xff] %v10178_v29 }
 0x4c5   : > { %7231 = vmatmul.msk.f32.gmra.mxu3 %vm14217_vm1, %v14337_v63 }
 0x4cd   : > { %7232 = vmatmul.msk.f32.gmra.mxu3 %vm14217_vm1, %v14340_v26 }
 0x4cf   : > { %v1594_v22 = vpop.xlane.xlu2 %1593 }
 0x4d0   : > { %v1620_v32 = vsub.f32 %v10033_v30, %v1594_v22  ;;  %v1617_v30 = vsub.f32 %v9985_v11, %v1588_v45  ;;  %v14346_v22 = vld [vmem:[#allocation51_spill] sm:$0xff]  ;;  %v10201_v45 = vpop.f32.mrf.mxu1 }
 0x4d1   : > { %14349 = vst [vmem:[#allocation43_spill] sm:$0xff] %v10201_v45 }
 0x4d2   : > { %v1641_v28 = vmul.f32 1.442695, %v1620_v32  ;;  %v1635_v32 = vmul.f32 1.442695, %v1617_v30 }
 0x4d4   : > { %7769 = vpow2.f32 %v1641_v28 }
 0x4d5   : > { %7233 = vmatmul.msk.f32.gmra.mxu3 %vm14217_vm1, %v14343_v21 }
 0x4d6   : > { %v1586_v12 = vpop.xlane.xlu1 %1585 }
 0x4d7   : > { %v1616_v58 = vsub.f32 %v10040_v51, %v1586_v12  ;;  %v14348_v12 = vld [vmem:[#allocation65_spill] sm:$0xff] }
 0x4d9   : > { %v1633_v63 = vmul.f32 1.442695, %v1616_v58  ;;  %v10196_v58 = vadd.f32 %v10084_v6, %v14348_v12  ;;  %v10210_v6 = vpop.f32.mrf.mxu2 }
 0x4da   : > { %v10182_v26 = vpop.eup %7769 }
 0x4db   : > { %7771 = vpow2.f32 %v1633_v63  ;;  %1673 = vadd.xlane.f32.xlu2 %v10182_v26  ;;  %v14350_v63 = vld [vmem:[#allocation68_spill] sm:$0xff] }
 0x4dc   : > { %7773 = vpow2.f32 %v1635_v32  ;;  %v10214_v32 = vpop.f32.mrf.mxu1 }
 0x4dd   : > { %7234 = vmatmul.msk.f32.gmra.mxu3 %vm14217_vm1, %v14346_v22  ;;  %14351 = vst [vmem:[#allocation54_spill] sm:$0xff] %v10214_v32 }
 0x4df   : > { %v1590_v28 = vpop.xlane.xlu0 %1589 }
 0x4e0   : > { %v10190_v51 = vpop.f32.mrf.mxu3  ;;  %v1618_v11 = vsub.f32 %v10052_v53, %v1590_v28 }
 0x4e1   : > { %14347 = vst [vmem:[#allocation42_spill] sm:$0xff] %v10190_v51  ;;  %v10192_v21 = vpop.eup %7771 }
 0x4e2   : > { %1665 = vadd.xlane.f32.xlu1 %v10192_v21  ;;  %v1637_v30 = vmul.f32 1.442695, %v1618_v11  ;;  %v10207_v51 = vpop.eup %7773 }
 0x4e3   : > { %1609 = vmax.xlane.f32.xlu2 %v10196_v58 }
 0x4e4   : > { %7775 = vpow2.f32 %v1637_v30  ;;  %v10225_v30 = vpop.f32.mrf.mxu2  ;;  %v10227_v17 = vpop.f32.mrf.mxu1 }
 0x4e5   : > { %7283 = vmatmul.msk.f32.vlgmr.msrb.gmra.mxu3 %vm14217_vm1, %v14350_v63 }
 0x4e7   : > { %v1596_v28 = vpop.xlane.xlu0 %1595 }
 0x4e8   : > { %v10205_v22 = vpop.f32.mrf.mxu3  ;;  %v1621_v29 = vsub.f32 %v10063_v40, %v1596_v28 }
 0x4ea   : > { %1667 = vadd.xlane.f32.xlu1 %v10207_v51  ;;  %v10219_v11 = vpop.eup %7775  ;;  %v1643_v15 = vmul.f32 1.442695, %v1621_v29 }
 0x4ec   : > { %7777 = vpow2.f32 %v1643_v15  ;;  %v10242_v40 = vpop.f32.mrf.mxu1 }
 0x4ed   : > { %7284 = vmatmul.msk.f32.gmra.mxu3 %vm14217_vm1, %v9945_v52 }
 0x4ee   : > { %v2562_v53 = vpop.permute.xlu1 %2561 }
 0x4ef   : > { %7281 = vmatmul.msk.f32.gmra.mxu1 %vm14217_vm1, %v2562_v53  ;;  %v14352_v53 = vld [vmem:[#allocation61_spill] sm:$0xff] }
 0x4f0   : > { %v10217_v63 = vpop.f32.mrf.mxu3  ;;  %v10233_v57 = vadd.f32 %v10060_v46, %v14352_v53  ;;  %v3234_v46 = vld [vmem:[%s14053_s8 + $0x18] sm:$0xff] }
 0x4f1   : > { %3309 = vmatpush.msrb.mxu1 %v3234_v46 }
 0x4f2   : > { %1669 = vadd.xlane.f32.xlu1 %v10219_v11  ;;  %v10246_v28 = vpop.eup %7777 }
 0x4f4   : > { %v10262_v60 = vpop.f32.mrf.mxu1 }
 0x4f5   : > { %7285 = vmatmul.msk.f32.gmra.mxu3 %vm14217_vm1, %v9968_v16  ;;  %v10240_v16 = vpop.f32.mrf.mxu2 }
 0x4f6   : > { %v2354_v52 = vpop.permute.xlu1 %2353 }
 0x4f7   : > { %7250 = vmatmul.msk.f32.gmra.mxu2 %vm14217_vm1, %v2354_v52  ;;  %7282 = vmatmul.msk.f32.gmra.mxu1 %vm14217_vm1, %v2564_v24 }
 0x4f8   : > { %v10235_v25 = vpop.f32.mrf.mxu3 }
 0x4fa   : > { %1605 = vmax.xlane.f32.xlu1 %v10233_v57 }
 0x4fc   : > { %v10271_v45 = vpop.f32.mrf.mxu1 }
 0x4fd   : > { %7286 = vmatmul.msk.f32.gmra.mxu3 %vm14217_vm1, %v9975_v19  ;;  %v10254_v15 = vpop.f32.mrf.mxu2  ;;  %v14353_v19 = vld [vmem:[#allocation67_spill] sm:$0xff] }
 0x4fe   : > { %v10258_v24 = vadd.f32 %v10094_v10, %v14353_v19 }
 0x500   : > { %v10244_v29 = vpop.f32.mrf.mxu3 }
 0x502   : > { %1675 = vadd.xlane.f32.xlu1 %v10246_v28 }
 0x504   : > { %v10279_v54 = vpop.f32.mrf.mxu1 }
 0x505   : > { %7287 = vmatmul.msk.f32.gmra.mxu3 %vm14217_vm1, %v10026_v7  ;;  %v10267_v7 = vpop.f32.mrf.mxu2 }
 0x508   : > { %v10260_v52 = vpop.f32.mrf.mxu3 }
 0x50a   : > { %1611 = vmax.xlane.f32.xlu1 %v10258_v24 }
 0x50d   : > { %7288 = vmatmul.msk.f32.gmra.mxu3 %vm14217_vm1, %v10054_v42  ;;  %v10277_v3 = vpop.f32.mrf.mxu2 }
 0x510   : > { %v10269_v32 = vpop.f32.mrf.mxu3 }
 0x515   : > { %7289 = vmatmul.msk.f32.gmra.mxu3 %vm14217_vm1, %v10065_v33  ;;  %v3233_v33 = vld [vmem:[%s14053_s8 + $0x10] sm:$0xff] }
 0x516   : > { %3310 = vmatpush.msrb.mxu1 %v3233_v33  ;;  %v10302_v33 = vpop.f32.mrf.mxu1 }
 0x518   : > { %v10275_v10 = vpop.f32.mrf.mxu3  ;;  %v1664_v46 = vpop.xlane.xlu0 %1663 }
 0x519   : > { %14354 = vst [vmem:[#allocation30_spill] sm:$0xff] %v10275_v10  ;;  %7779 = vrcp.f32 %v1664_v46  ;;  %v3232_v46 = vld [vmem:[%s14053_s8 + $0x8] sm:$0xff]  ;;  %v10296_v10 = vpop.f32.mrf.mxu2 }
 0x51a   : > { %3311 = vmatpush.msrb.mxu1 %v3232_v46 }
 0x51d   : > { %7290 = vmatmul.msk.f32.gmra.mxu3 %vm14217_vm1, %v10075_v61  ;;  %v3231_v61 = vld [vmem:[%s14053_s8] sm:$0xff] }
 0x51e   : > { %3312 = vmatpush.msrb.mxu1 %v3231_v61  ;;  %v8408_v61 = vld [vmem:[%s8679_s2 + $0x8] sm:$0xff] }
 0x51f   : > { %v7780_v42 = vpop.eup %7779 }
 0x520   : > { %v10283_v1 = vpop.f32.mrf.mxu3  ;;  %v1598_v27 = vpop.xlane.xlu0 %1597  ;;  %v1711_v8 = vmul.f32 %v7780_v42, %v10111_v18  ;;  %v8407_v42 = vld [vmem:[%s8679_s2] sm:$0xff] }
 0x521   : > { %v1592_v37 = vpop.xlane.xlu1 %1591  ;;  %7315 = vmatmul.msk.f32.vlgmr.msrb.gmra.mxu1 %vm14188_vm0, %v8407_v42  ;;  %v10319_v42 = vpop.f32.mrf.mxu1 }
 0x522   : > { %v1619_v19 = vsub.f32 %v10126_v44, %v1592_v37  ;;  %1872 = vmatmul.f32.vlgmr.msrb.gmra.mxu0 %v1711_v8 }
 0x524   : > { %v1639_v18 = vmul.f32 1.442695, %v1619_v19  ;;  %v1622_v19 = vsub.f32 %v10122_v43, %v1598_v27 }
 0x525   : > { %7291 = vmatmul.msk.f32.gmra.mxu3 %vm14217_vm1, %v10082_v50  ;;  %v10312_v50 = vpop.f32.mrf.mxu2 }
 0x526   : > { %7781 = vpow2.f32 %v1639_v18 }
 0x528   : > { %v10304_v37 = vpop.f32.mrf.mxu3  ;;  %v1600_v44 = vpop.xlane.xlu0 %1599 }
 0x529   : > { %14355 = vst [vmem:[#allocation51_spill] sm:$0xff] %v10304_v37  ;;  %v1623_v8 = vsub.f32 %v10136_v5, %v1600_v44  ;;  %7316 = vmatmul.msk.f32.gmra.mxu1 %vm14188_vm0, %v8408_v61  ;;  %v14357_v37 = vld [vmem:[#allocation63_spill] sm:$0xff] }
 0x52a   : > { %v10326_v41 = vadd.f32 %v10073_v62, %v14357_v37 }
 0x52b   : > { %v1647_v46 = vmul.f32 1.442695, %v1623_v8  ;;  %v1604_v8 = vpop.xlane.xlu2 %1603 }
 0x52c   : > { %v10307_v53 = vpop.eup %7781  ;;  %v1625_v27 = vsub.f32 %v10043_v38, %v1604_v8  ;;  %v8410_v8 = vld [vmem:[%s8679_s2 + $0x18] sm:$0xff] }
 0x52d   : > { %7783 = vpow2.f32 %v1647_v46  ;;  %7292 = vmatmul.msk.f32.gmra.mxu3 %vm14217_vm1, %v10090_v2  ;;  %1671 = vadd.xlane.f32.xlu0 %v10307_v53  ;;  %v1645_v46 = vmul.f32 1.442695, %v1622_v19  ;;  %v10335_v19 = vpop.f32.mrf.mxu2 }
 0x52e   : > { %v1651_v61 = vmul.f32 1.442695, %v1625_v27 }
 0x530   : > { %v10317_v18 = vpop.f32.mrf.mxu3  ;;  %v1602_v5 = vpop.xlane.xlu0 %1601 }
 0x531   : > { %14356 = vst [vmem:[#allocation65_spill] sm:$0xff] %v10317_v18  ;;  %v1624_v44 = vsub.f32 %v10150_v55, %v1602_v5  ;;  %v8409_v55 = vld [vmem:[%s8679_s2 + $0x10] sm:$0xff]  ;;  %v10341_v5 = vadd.f32 %v10227_v17, %v9423_v49 }
 0x532   : > { %7317 = vmatmul.msk.f32.gmra.mxu1 %vm14188_vm0, %v8409_v55  ;;  %v14360_v55 = vld [vmem:[#allocation69_spill] sm:$0xff] }
 0x533   : > { %v10322_v2 = vpop.eup %7783  ;;  %v1649_v43 = vmul.f32 1.442695, %v1624_v44  ;;  %v2699_v44 = vpop.f32.mrf.mxu1 }
 0x534   : > { %1679 = vadd.xlane.f32.xlu2 %v10322_v2  ;;  %v10384_v18 = vadd.f32 %v2699_v44, %v14326_v48  ;;  %v10402_v44 = vadd.f32 %v10205_v22, %v9423_v49  ;;  %v10416_v49 = vadd.f32 %v10279_v54, %v14327_v59  ;;  %v10420_v22 = vadd.f32 %v10217_v63, %v9452_v35 }
 0x535   : > { %7785 = vpow2.f32 %v1649_v43  ;;  %7293 = vmatmul.msk.f32.gmra.mxu3 %vm14217_vm1, %v10096_v13  ;;  %1607 = vmax.xlane.f32.xlu0 %v10326_v41  ;;  %v10360_v43 = vpop.f32.mrf.mxu2  ;;  %v10433_v63 = vadd.f32 %v10302_v33, %v9575_v9 }
 0x536   : > { %7787 = vpow2.f32 %v1645_v46  ;;  %v10358_v46 = vadd.f32 %v10242_v40, %v9452_v35  ;;  %v8411_v40 = vld [vmem:[%s8679_s2 + $0x20] sm:$0xff]  ;;  %14362 = vst [vmem:[#allocation70_spill] sm:$0xff] %v10384_v18 }
 0x537   : > { %7789 = vpow2.f32 %v1651_v61  ;;  %v10366_v61 = vadd.f32 %v10100_v39, %v14360_v55  ;;  %v10381_v39 = vadd.f32 %v10262_v60, %v9494_v14  ;;  %v10398_v60 = vadd.f32 %v10271_v45, %v9519_v23  ;;  %14363 = vst [vmem:[#allocation71_spill] sm:$0xff] %v10402_v44 }
 0x538   : > { %v10337_v62 = vpop.f32.mrf.mxu3  ;;  %14359 = vst [vmem:[#allocation63_spill] sm:$0xff] %v10358_v46 }
 0x539   : > { %14364 = vst [vmem:[#allocation72_spill] sm:$0xff] %v10416_v49 }
 0x53a   : > { %7318 = vmatmul.msk.f32.gmra.mxu1 %vm14188_vm0, %v8410_v8  ;;  %14365 = vst [vmem:[#allocation73_spill] sm:$0xff] %v10420_v22 }
 0x53b   : > { %v10343_v38 = vpop.eup %7785 }
 0x53c   : > { %v10345_v13 = vpop.eup %7787  ;;  %2726 = vmax.xlane.f32.xlu2 %v10341_v5  ;;  %1681 = vadd.xlane.f32.xlu1 %v10343_v38 }
 0x53d   : > { %7294 = vmatmul.msk.f32.gmra.mxu3 %vm14217_vm1, %v10103_v20  ;;  %1677 = vadd.xlane.f32.xlu0 %v10345_v13  ;;  %v10362_v27 = vpop.eup %7789  ;;  %v10370_v20 = vpop.f32.mrf.mxu1 }
 0x540   : > { %v10354_v17 = vpop.f32.mrf.mxu3 }
 0x541   : > { %14358 = vst [vmem:[#allocation68_spill] sm:$0xff] %v10354_v17 }
 0x542   : > { %7319 = vmatmul.msk.f32.gmra.mxu1 %vm14188_vm0, %v8411_v40 }
 0x544   : > { %2728 = vmax.xlane.f32.xlu2 %v10358_v46  ;;  %1683 = vadd.xlane.f32.xlu1 %v10362_v27  ;;  %v10386_v46 = vpop.f32.mrf.mxu2 }
 0x545   : > { %7295 = vmatmul.msk.f32.gmra.mxu3 %vm14217_vm1, %v10109_v34  ;;  %1613 = vmax.xlane.f32.xlu0 %v10366_v61  ;;  %v8412_v34 = vld [vmem:[%s8679_s2 + $0x28] sm:$0xff]  ;;  %v2705_v40 = vpop.f32.mrf.mxu1 }
 0x548   : > { %v10377_v8 = vpop.f32.mrf.mxu3 }
 0x549   : > { %14361 = vst [vmem:[#allocation69_spill] sm:$0xff] %v10377_v8 }
 0x54a   : > { %7320 = vmatmul.msk.f32.gmra.mxu1 %vm14188_vm0, %v8412_v34  ;;  %v8413_v34 = vld [vmem:[%s8679_s2 + $0x30] sm:$0xff] }
 0x54c   : > { %2730 = vmax.xlane.f32.xlu2 %v10381_v39 }
 0x54d   : > { %7296 = vmatmul.msk.f32.gmra.mxu3 %vm14217_vm1, %v10067_v36  ;;  %2740 = vmax.xlane.f32.xlu0 %v10384_v18  ;;  %v10408_v36 = vpop.f32.mrf.mxu2  ;;  %v2708_v18 = vpop.f32.mrf.mxu1 }
 0x550   : > { %v10394_v8 = vpop.f32.mrf.mxu3 }
 0x552   : > { %7321 = vmatmul.msk.f32.gmra.mxu1 %vm14188_vm0, %v8413_v34  ;;  %v8414_v34 = vld [vmem:[%s8679_s2 + $0x38] sm:$0xff] }
 0x554   : > { %2732 = vmax.xlane.f32.xlu2 %v10398_v60 }
 0x555   : > { %v1666_v17 = vpop.xlane.xlu1 %1665  ;;  %7297 = vmatmul.msk.f32.gmra.mxu3 %vm14217_vm1, %v10143_v56  ;;  %2179 = vmax.xlane.f32.xlu0 %v10402_v44  ;;  %v2440_v54 = vpop.f32.mrf.mxu2 }
 0x556   : > { %7791 = vrcp.f32 %v1666_v17 }
 0x558   : > { %v10412_v45 = vpop.f32.mrf.mxu3 }
 0x55a   : > { %7322 = vmatmul.msk.f32.gmra.mxu1 %vm14188_vm0, %v8414_v34  ;;  %v10453_v34 = vadd.f32 %v10235_v25, %v9494_v14  ;;  %v10464_v14 = vadd.f32 %v2705_v40, %v14333_v31 }
 0x55c   : > { %v7792_v56 = vpop.eup %7791  ;;  %2734 = vmax.xlane.f32.xlu2 %v10416_v49  ;;  %v10436_v49 = vadd.f32 %v2708_v18, %v9705_v0  ;;  %v10449_v18 = vadd.f32 %v10319_v42, %v14315_v47 }
 0x55d   : > { %v1668_v44 = vpop.xlane.xlu1 %1667  ;;  %7298 = vmatmul.msk.f32.gmra.mxu3 %vm14217_vm1, %v10180_v4  ;;  %2181 = vmax.xlane.f32.xlu0 %v10420_v22  ;;  %v1712_v17 = vmul.f32 %v7792_v56, %v10192_v21  ;;  %v10438_v4 = vpop.f32.mrf.mxu1  ;;  %v8415_v56 = vld [vmem:[%s8679_s2 + $0x40] sm:$0xff] }
 0x55e   : > { %7793 = vrcp.f32 %v1668_v44  ;;  %14367 = vst [vmem:[#allocation75_spill] sm:$0xff] %v10436_v49 }
 0x55f   : > { %1875 = vmatmul.f32.gmra.mxu0 %v1712_v17  ;;  %v2443_v17 = vpop.f32.mrf.mxu2 }
 0x560   : > { %v10429_v35 = vpop.f32.mrf.mxu3 }
 0x561   : > { %14366 = vst [vmem:[#allocation74_spill] sm:$0xff] %v10429_v35 }
 0x562   : > { %7323 = vmatmul.msk.f32.gmra.mxu1 %vm14188_vm0, %v8415_v56 }
 0x564   : > { %v7794_v22 = vpop.eup %7793  ;;  %2736 = vmax.xlane.f32.xlu2 %v10433_v63 }
 0x565   : > { %v1670_v21 = vpop.xlane.xlu1 %1669  ;;  %2746 = vmax.xlane.f32.xlu0 %v10436_v49  ;;  %v1713_v44 = vmul.f32 %v7794_v22, %v10207_v51  ;;  %v2714_v35 = vpop.f32.mrf.mxu1 }
 0x566   : > { %7795 = vrcp.f32 %v1670_v21  ;;  %v10480_v40 = vadd.f32 %v2714_v35, %v14357_v37 }
 0x567   : > { %1878 = vmatmul.f32.gmra.mxu0 %v1713_v44  ;;  %v8416_v44 = vld [vmem:[%s8679_s2 + $0x48] sm:$0xff]  ;;  %v2446_v25 = vpop.f32.mrf.mxu2 }
 0x568   : > { %v10445_v33 = vpop.f32.mrf.mxu3 }
 0x569   : > { %14368 = vst [vmem:[#allocation76_spill] sm:$0xff] %v10445_v33  ;;  %v10468_v33 = vadd.f32 %v10244_v29, %v9519_v23  ;;  %v10484_v29 = vadd.f32 %v10260_v52, %v14327_v59  ;;  %v10496_v59 = vadd.f32 %v10283_v1, %v14326_v48  ;;  %v10500_v52 = vadd.f32 %v10269_v32, %v9575_v9  ;;  %v8420_v32 = vld [vmem:[%s8679_s2 + $0x68] sm:$0xff] }
 0x56a   : > { %7324 = vmatmul.msk.f32.gmra.mxu1 %vm14188_vm0, %v8416_v44 }
 0x56c   : > { %v7796_v49 = vpop.eup %7795  ;;  %2738 = vmax.xlane.f32.xlu2 %v10449_v18 }
 0x56d   : > { %v1606_v51 = vpop.xlane.xlu1 %1605  ;;  %2183 = vmax.xlane.f32.xlu0 %v10453_v34  ;;  %v1714_v22 = vmul.f32 %v7796_v49, %v10219_v11  ;;  %v8417_v11 = vld [vmem:[%s8679_s2 + $0x50] sm:$0xff] }
 0x56e   : > { %v1626_v21 = vsub.f32 %v10233_v57, %v1606_v51  ;;  %v2717_v57 = vpop.f32.mrf.mxu1 }
 0x56f   : > { %1881 = vmatmul.f32.gmra.mxu0 %v1714_v22  ;;  %v10516_v1 = vadd.f32 %v2717_v57, %v14348_v12 }
 0x570   : > { %v1653_v42 = vmul.f32 1.442695, %v1626_v21  ;;  %v10461_v56 = vpop.f32.mrf.mxu3  ;;  %v8418_v21 = vld [vmem:[%s8679_s2 + $0x58] sm:$0xff] }
 0x572   : > { %7797 = vpow2.f32 %v1653_v42  ;;  %7325 = vmatmul.msk.f32.gmra.mxu1 %vm14188_vm0, %v8417_v11 }
 0x574   : > { %2744 = vmax.xlane.f32.xlu2 %v10464_v14 }
 0x575   : > { %2185 = vmax.xlane.f32.xlu0 %v10468_v33  ;;  %v1676_v44 = vpop.xlane.xlu1 %1675 }
 0x576   : > { %v10487_v22 = vpop.f32.mrf.mxu1 }
 0x578   : > { %v10474_v49 = vpop.eup %7797  ;;  %v10476_v51 = vpop.f32.mrf.mxu3 }
 0x579   : > { %1685 = vadd.xlane.f32.xlu1 %v10474_v49 }
 0x57a   : > { %v2449_v23 = vpop.f32.mrf.mxu2  ;;  %7326 = vmatmul.msk.f32.gmra.mxu1 %vm14188_vm0, %v8418_v21 }
 0x57b   : > { %2452 = vmatpush.msra.mxu0 %v2449_v23 }
 0x57c   : > { %2750 = vmax.xlane.f32.xlu2 %v10480_v40 }
 0x57d   : > { %2453 = vmatpush.msra.mxu0 %v2446_v25  ;;  %2187 = vmax.xlane.f32.xlu0 %v10484_v29 }
 0x57f   : > { %2454 = vmatpush.msra.mxu0 %v2443_v17  ;;  %v8419_v17 = vld [vmem:[%s8679_s2 + $0x60] sm:$0xff] }
 0x580   : > { %v10492_v35 = vpop.f32.mrf.mxu3 }
 0x581   : > { %2455 = vmatpush.msra.mxu0 %v2440_v54  ;;  %v2723_v54 = vpop.f32.mrf.mxu1 }
 0x582   : > { %7327 = vmatmul.msk.f32.gmra.mxu1 %vm14188_vm0, %v8419_v17  ;;  %v10513_v9 = vadd.f32 %v2723_v54, %v14360_v55 }
 0x583   : > { %2456 = vmatpush.msra.mxu0 %v10408_v36 }
 0x584   : > { %2193 = vmax.xlane.f32.xlu2 %v10496_v59 }
 0x585   : > { %2457 = vmatpush.msra.mxu0 %v10386_v46  ;;  %2189 = vmax.xlane.f32.xlu0 %v10500_v52  ;;  %v1674_v46 = vpop.xlane.xlu2 %1673 }
 0x587   : > { %2458 = vmatpush.msra.mxu0 %v10360_v43  ;;  %v8422_v43 = vld [vmem:[%s8679_s2 + $0x78] sm:$0xff] }
 0x588   : > { %v10509_v48 = vpop.f32.mrf.mxu3 }
 0x589   : > { %2459 = vmatpush.msra.mxu0 %v10335_v19 }
 0x58a   : > { %7328 = vmatmul.msk.f32.gmra.mxu1 %vm14188_vm0, %v8420_v32 }
 0x58b   : > { %2460 = vmatpush.msra.mxu0 %v10312_v50  ;;  %v8421_v50 = vld [vmem:[%s8679_s2 + $0x70] sm:$0xff] }
 0x58c   : > { %2756 = vmax.xlane.f32.xlu2 %v10513_v9 }
 0x58d   : > { %2461 = vmatpush.msra.mxu0 %v10296_v10  ;;  %2752 = vmax.xlane.f32.xlu0 %v10516_v1 }
 0x58f   : > { %2462 = vmatpush.msra.mxu0 %v10277_v3  ;;  %v1610_v3 = vpop.xlane.xlu2 %1609 }
 0x590   : > { %v10525_v19 = vpop.f32.mrf.mxu3  ;;  %v1628_v21 = vsub.f32 %v10196_v58, %v1610_v3 }
 0x591   : > { %2463 = vmatpush.msra.mxu0 %v10267_v7 }
 0x592   : > { %7329 = vmatmul.msk.f32.gmra.mxu1 %vm14188_vm0, %v8421_v50 }
 0x593   : > { %2464 = vmatpush.msra.mxu0 %v10254_v15 }
 0x595   : > { %2465 = vmatpush.msra.mxu0 %v10240_v16 }
 0x597   : > { %2466 = vmatpush.msra.mxu0 %v10225_v30 }
 0x598   : > { %v10533_v10 = vpop.f32.mrf.mxu3 }
 0x599   : > { %2467 = vmatpush.msra.mxu0 %v10210_v6 }
 0x59a   : > { %7330 = vmatmul.msk.f32.gmra.mxu1 %vm14188_vm0, %v8422_v43 }
 0x59e   : > { %v10540_v15 = vpop.f32.mrf.mxu1 }
 0x5a0   : > { %v10538_v36 = vpop.f32.mrf.mxu3  ;;  %v1672_v7 = vpop.xlane.xlu0 %1671 }
 0x5a1   : > { %7799 = vrcp.f32 %v1672_v7  ;;  %v1612_v7 = vpop.xlane.xlu1 %1611 }
 0x5a2   : > { %7801 = vrcp.f32 %v1674_v46  ;;  %v1629_v3 = vsub.f32 %v10258_v24, %v1612_v7 }
 0x5a6   : > { %v10547_v54 = vpop.f32.mrf.mxu1 }
 0x5a7   : > { %v7800_v16 = vpop.eup %7799  ;;  %v1680_v42 = vpop.xlane.xlu2 %1679 }
 0x5a8   : > { %v10542_v25 = vpop.f32.mrf.mxu3  ;;  %v1608_v30 = vpop.xlane.xlu0 %1607  ;;  %v1715_v57 = vmul.f32 %v7800_v16, %v10307_v53  ;;  %v1657_v53 = vmul.f32 1.442695, %v1628_v21 }
 0x5a9   : > { %v1627_v6 = vsub.f32 %v10326_v41, %v1608_v30  ;;  %v7802_v23 = vpop.eup %7801  ;;  %v1659_v30 = vmul.f32 1.442695, %v1629_v3 }
 0x5aa   : > { %1884 = vmatmul.f32.gmra.mxu0 %v1715_v57  ;;  %v1716_v43 = vmul.f32 %v7802_v23, %v10182_v26 }
 0x5ab   : > { %v1655_v11 = vmul.f32 1.442695, %v1627_v6 }
 0x5ad   : > { %7803 = vpow2.f32 %v1655_v11 }
 0x5ae   : > { %7805 = vrcp.f32 %v1676_v44 }
 0x5af   : > { %v2727_v17 = vpop.xlane.xlu2 %2726  ;;  %v10562_v57 = vpop.f32.mrf.mxu1 }
 0x5b0   : > { %v2758_v32 = vsub.f32 %v10341_v5, %v2727_v17  ;;  %v10550_v46 = vpop.f32.mrf.mxu3  ;;  %v1678_v50 = vpop.xlane.xlu0 %1677 }
 0x5b2   : > { %v2774_v41 = vmul.f32 1.442695, %v2758_v32  ;;  %1887 = vmatmul.f32.gmra.mxu0 %v1716_v43  ;;  %v14369_v43 = vld [vmem:[#allocation56_spill] sm:$0xff] }
 0x5b3   : > { %v10553_v16 = vpop.eup %7803 }
 0x5b4   : > { %7807 = vpow2.f32 %v2774_v41  ;;  %1687 = vadd.xlane.f32.xlu1 %v10553_v16  ;;  %v7806_v58 = vpop.eup %7805 }
 0x5b5   : > { %7809 = vpow2.f32 %v1657_v53  ;;  %v1717_v26 = vmul.f32 %v7806_v58, %v10246_v28  ;;  %v14370_v53 = vld [vmem:[#allocation51_spill] sm:$0xff]  ;;  %v1682_v58 = vpop.xlane.xlu1 %1681 }
 0x5b6   : > { %7811 = vrcp.f32 %v1678_v50  ;;  %v10577_v7 = vadd.f32 %v14370_v53, %v14369_v43 }
 0x5b7   : > { %v10557_v5 = vpop.xlane.xlu2 %2728  ;;  %7813 = vpow2.f32 %v1659_v30 }
 0x5b8   : > { %v10559_v44 = vpop.f32.mrf.mxu3  ;;  %v1614_v11 = vpop.xlane.xlu0 %1613  ;;  %7815 = vrcp.f32 %v1680_v42 }
 0x5b9   : > { %v1630_v21 = vsub.f32 %v10366_v61, %v1614_v11  ;;  %v10582_v61 = vpop.f32.mrf.mxu1 }
 0x5ba   : > { %v10564_v6 = vpop.eup %7807  ;;  %1890 = vmatmul.f32.gmra.mxu0 %v1717_v26  ;;  %14371 = vst [vmem:[#allocation56_spill] sm:$0xff] %v10582_v61 }
 0x5bb   : > { %v10566_v23 = vpop.eup %7809  ;;  %2806 = vadd.xlane.f32.xlu0 %v10564_v6  ;;  %v1661_v41 = vmul.f32 1.442695, %v1630_v21 }
 0x5bc   : > { %1689 = vadd.xlane.f32.xlu1 %v10566_v23  ;;  %v7812_v24 = vpop.eup %7811 }
 0x5bd   : > { %v1718_v50 = vmul.f32 %v7812_v24, %v10345_v13  ;;  %v10579_v26 = vpop.eup %7813 }
 0x5bf   : > { %v2731_v17 = vpop.xlane.xlu2 %2730 }
 0x5c0   : > { %v2760_v28 = vsub.f32 %v10381_v39, %v2731_v17  ;;  %v10572_v32 = vpop.f32.mrf.mxu3  ;;  %v7816_v39 = vpop.eup %7815 }
 0x5c1   : > { %v1719_v11 = vmul.f32 %v7816_v39, %v10322_v2  ;;  %v10593_v53 = vpop.f32.mrf.mxu1  ;;  %v10606_v39 = vadd.f32 %v10370_v20, %v14369_v43  ;;  %v14372_v20 = vld [vmem:[#allocation61_spill] sm:$0xff]  ;;  %v14373_v43 = vld [vmem:[#allocation68_spill] sm:$0xff] }
 0x5c2   : > { %v2778_v3 = vmul.f32 1.442695, %v2760_v28  ;;  %1893 = vmatmul.f32.gmra.mxu0 %v1718_v50  ;;  %v1684_v28 = vpop.xlane.xlu1 %1683 }
 0x5c3   : > { %2195 = vmax.xlane.f32.xlu0 %v10577_v7 }
 0x5c4   : > { %7817 = vpow2.f32 %v2778_v3  ;;  %1691 = vadd.xlane.f32.xlu1 %v10579_v26 }
 0x5c5   : > { %7819 = vpow2.f32 %v1661_v41 }
 0x5c6   : > { %7821 = vrcp.f32 %v1682_v58  ;;  %v10600_v58 = vadd.f32 %v10337_v62, %v9705_v0 }
 0x5c7   : > { %v2733_v13 = vpop.xlane.xlu2 %2732 }
 0x5c8   : > { %v2761_v42 = vsub.f32 %v10398_v60, %v2733_v13  ;;  %v2987_v30 = vpop.f32.mrf.mxu3 }
 0x5ca   : > { %v10587_v24 = vpop.eup %7817  ;;  %v2780_v21 = vmul.f32 1.442695, %v2761_v42  ;;  %1896 = vmatmul.f32.gmra.mxu0 %v1719_v11  ;;  %v10611_v42 = vpop.xlane.xlu0 %2740 }
 0x5cb   : > { %v10589_v17 = vpop.eup %7819  ;;  %2810 = vadd.xlane.f32.xlu2 %v10587_v24  ;;  %v10613_v11 = vpop.f32.mrf.mxu1 }
 0x5cc   : > { %7823 = vpow2.f32 %v2780_v21  ;;  %1693 = vadd.xlane.f32.xlu1 %v10589_v17  ;;  %v7822_v50 = vpop.eup %7821 }
 0x5cd   : > { %7825 = vrcp.f32 %v1684_v28  ;;  %v1720_v2 = vmul.f32 %v7822_v50, %v10343_v38  ;;  %v10619_v28 = vadd.f32 %v14373_v43, %v14372_v20  ;;  %v10623_v50 = vadd.f32 %v10438_v4, %v14372_v20  ;;  %v14374_v4 = vld [vmem:[#allocation30_spill] sm:$0xff]  ;;  %v14375_v20 = vld [vmem:[#allocation63_spill] sm:$0xff] }
 0x5cf   : > { %v10595_v60 = vpop.xlane.xlu2 %2734 }
 0x5d0   : > { %v2990_v41 = vpop.f32.mrf.mxu3 }
 0x5d2   : > { %v10602_v3 = vpop.eup %7823  ;;  %1899 = vmatmul.f32.gmra.mxu0 %v1720_v2 }
 0x5d3   : > { %2199 = vmax.xlane.f32.xlu2 %v10600_v58  ;;  %2812 = vadd.xlane.f32.xlu0 %v10602_v3  ;;  %v7826_v13 = vpop.eup %7825 }
 0x5d4   : > { %2742 = vmax.xlane.f32.xlu1 %v10606_v39  ;;  %v1721_v21 = vmul.f32 %v7826_v13, %v10362_v27 }
 0x5d7   : > { %v2737_v38 = vpop.xlane.xlu2 %2736 }
 0x5d8   : > { %v2763_v0 = vsub.f32 %v10433_v63, %v2737_v38  ;;  %v2993_v62 = vpop.f32.mrf.mxu3  ;;  %v10627_v63 = vpop.xlane.xlu0 %2179 }
 0x5d9   : > { %v10630_v38 = vpop.f32.mrf.mxu1 }
 0x5da   : > { %v2784_v2 = vmul.f32 1.442695, %v2763_v0  ;;  %1902 = vmatmul.f32.gmra.mxu0 %v1721_v21  ;;  %v10636_v0 = vadd.f32 %v14374_v4, %v14315_v47 }
 0x5db   : > { %2201 = vmax.xlane.f32.xlu0 %v10619_v28 }
 0x5dc   : > { %7827 = vpow2.f32 %v2784_v2  ;;  %2748 = vmax.xlane.f32.xlu1 %v10623_v50 }
 0x5df   : > { %v2739_v61 = vpop.xlane.xlu2 %2738 }
 0x5e0   : > { %v2764_v27 = vsub.f32 %v10449_v18, %v2739_v61  ;;  %v2996_v13 = vpop.f32.mrf.mxu3  ;;  %v2759_v18 = vsub.f32 %v14375_v20, %v10557_v5  ;;  %v10644_v61 = vadd.f32 %v10394_v8, %v14348_v12 }
 0x5e1   : > { %2999 = vmatpush.msrb.mxu2 %v2996_v13  ;;  %v2182_v13 = vpop.xlane.xlu0 %2181  ;;  %v10655_v5 = vpop.f32.mrf.mxu1 }
 0x5e2   : > { %v10632_v43 = vpop.eup %7827  ;;  %v2786_v21 = vmul.f32 1.442695, %v2764_v27  ;;  %14376 = vst [vmem:[#allocation51_spill] sm:$0xff] %v10644_v61  ;;  %v2776_v2 = vmul.f32 1.442695, %v2759_v18 }
 0x5e3   : > { %3000 = vmatpush.msrb.mxu2 %v2993_v62  ;;  %2816 = vadd.xlane.f32.xlu2 %v10632_v43  ;;  %v14377_v62 = vld [vmem:[#allocation67_spill] sm:$0xff] }
 0x5e4   : > { %7829 = vpow2.f32 %v2786_v21  ;;  %2191 = vmax.xlane.f32.xlu1 %v10636_v0  ;;  %v10651_v27 = vadd.f32 %v10487_v22, %v14377_v62 }
 0x5e5   : > { %3001 = vmatpush.msrb.mxu2 %v2990_v41  ;;  %7831 = vpow2.f32 %v2776_v2 }
 0x5e7   : > { %3002 = vmatpush.msrb.mxu2 %v2987_v30  ;;  %v2745_v4 = vpop.xlane.xlu2 %2744 }
 0x5e8   : > { %v2767_v8 = vsub.f32 %v10464_v14, %v2745_v4  ;;  %v14378_v14 = vld [vmem:[#allocation73_spill] sm:$0xff] }
 0x5e9   : > { %3003 = vmatpush.msrb.mxu2 %v10572_v32  ;;  %v2747_v41 = vpop.xlane.xlu0 %2746 }
 0x5ea   : > { %v10647_v47 = vpop.eup %7829  ;;  %v2792_v22 = vmul.f32 1.442695, %v2767_v8 }
 0x5eb   : > { %3004 = vmatpush.msrb.mxu2 %v10559_v44  ;;  %2205 = vmax.xlane.f32.xlu2 %v10644_v61  ;;  %v10665_v44 = vadd.f32 %v10412_v45, %v14377_v62  ;;  %v10667_v32 = vpop.eup %7831  ;;  %v10703_v62 = vld [vmem:[%s14054_s9] ss:$0 sm:$0xff] }
 0x5ec   : > { %2818 = vadd.xlane.f32.xlu0 %v10647_v47  ;;  %v1686_v12 = vpop.xlane.xlu1 %1685  ;;  %2754 = vmax.xlane.f32.xlu1 %v10651_v27  ;;  %v3315_v4 = vadd.f32 %v10703_v62, %v10540_v15 }
 0x5ed   : > { %3005 = vmatpush.msrb.mxu2 %v10550_v46  ;;  %7833 = vrcp.f32 %v1686_v12  ;;  %v2212_v46 = vsub.f32 %v14378_v14, %v2182_v13 }
 0x5ee   : > { %7835 = vpow2.f32 %v2792_v22  ;;  %v10710_v12 = vmax.f32 %v3315_v4, 0.0 }
 0x5ef   : > { %3006 = vmatpush.msrb.mxu2 %v10542_v25  ;;  %v10675_v25 = vpop.f32.mrf.mxu1  ;;  %v2229_v45 = vmul.f32 1.442695, %v2212_v46 }
 0x5f1   : > { %3007 = vmatpush.msrb.mxu2 %v10538_v36  ;;  %7837 = vpow2.f32 %v2229_v45 }
 0x5f3   : > { %3008 = vmatpush.msrb.mxu2 %v10533_v10  ;;  %v7834_v30 = vpop.eup %7833  ;;  %v14379_v10 = vld [vmem:[#allocation65_spill] sm:$0xff] }
 0x5f4   : > { %2207 = vmax.xlane.f32.xlu0 %v10665_v44  ;;  %2808 = vadd.xlane.f32.xlu1 %v10667_v32  ;;  %v1722_v36 = vmul.f32 %v7834_v30, %v10474_v49  ;;  %v10681_v21 = vadd.f32 %v14379_v10, %v14333_v31  ;;  %v10683_v20 = vpop.eup %7835  ;;  %v14380_v49 = vld [vmem:[#allocation75_spill] sm:$0xff] }
 0x5f5   : > { %3009 = vmatpush.msrb.mxu2 %v10525_v19  ;;  %v2768_v19 = vsub.f32 %v14380_v49, %v2747_v41 }
 0x5f6   : > { %1905 = vmatmul.f32.gmra.mxu0 %v1722_v36 }
 0x5f7   : > { %3010 = vmatpush.msrb.mxu2 %v10509_v48  ;;  %v10690_v48 = vpop.xlane.xlu0 %2183  ;;  %v10693_v18 = vpop.f32.mrf.mxu1  ;;  %v2794_v31 = vmul.f32 1.442695, %v2768_v19 }
 0x5f8   : > { %v10695_v2 = vpop.eup %7837 }
 0x5f9   : > { %3011 = vmatpush.msrb.mxu2 %v10492_v35  ;;  %v14381_v35 = vld [vmem:[#allocation76_spill] sm:$0xff]  ;;  %7839 = vpow2.f32 %v2794_v31 }
 0x5fb   : > { %3012 = vmatpush.msrb.mxu2 %v10476_v51 }
 0x5fc   : > { %2824 = vadd.xlane.f32.xlu0 %v10683_v20  ;;  %2197 = vmax.xlane.f32.xlu1 %v10681_v21 }
 0x5fd   : > { %3013 = vmatpush.msrb.mxu2 %v10461_v56 }
 0x5ff   : > { %3014 = vmatpush.msrb.mxu2 %v14381_v35  ;;  %v10698_v51 = vpop.xlane.xlu0 %2185  ;;  %v3344_v56 = vpop.f32.mrf.mxu1  ;;  %v14384_v35 = vld [vmem:[#allocation72_spill] sm:$0xff] }
 0x600   : > { %v10705_v13 = vpop.eup %7839  ;;  %v3345_v30 = vadd.f32 %v10703_v62, %v3344_v56  ;;  %v2762_v31 = vsub.f32 %v14384_v35, %v10595_v60 }
 0x602   : > { %v10719_v14 = vmax.f32 %v3345_v30, 0.0  ;;  %v2782_v30 = vmul.f32 1.442695, %v2762_v31 }
 0x604   : > { %2261 = vadd.xlane.f32.xlu0 %v10695_v2  ;;  %14382 = vst [vmem:[#allocation61_spill] sm:$0xff] %v10719_v14 }
 0x607   : > { %v2188_v8 = vpop.xlane.xlu0 %2187  ;;  %v10712_v22 = vpop.f32.mrf.mxu1 }
 0x60c   : > { %2826 = vadd.xlane.f32.xlu0 %v10705_v13 }
 0x60f   : > { %v10717_v41 = vpop.xlane.xlu0 %2189  ;;  %v3350_v46 = vpop.f32.mrf.mxu1 }
 0x610   : > { %v3351_v15 = vadd.f32 %v10703_v62, %v3350_v46 }
 0x612   : > { %v10724_v36 = vmax.f32 %v3351_v15, 0.0 }
 0x614   : > { %14383 = vst [vmem:[#allocation68_spill] sm:$0xff] %v10724_v36 }
 0x615   : > { %3699 = vrot.lane.b32.xlu1 %v10710_v12, %s8505_s29 }
 0x617   : > { %v2753_v45 = vpop.xlane.xlu0 %2752 }
 0x620   : > { %3414 = vrot.lane.b32.xlu0 %v10719_v14, %s8506_s30 }
 0x627   : > { %v1688_v10 = vpop.xlane.xlu1 %1687 }
 0x628   : > { %7841 = vrcp.f32 %v1688_v10  ;;  %3418 = vrot.lane.b32.xlu0 %v10724_v36, %s8506_s30 }
 0x62e   : > { %v7842_v49 = vpop.eup %7841  ;;  %v2807_v19 = vpop.xlane.xlu0 %2806 }
 0x62f   : > { %7843 = vrcp.f32 %v2807_v19  ;;  %v1690_v56 = vpop.xlane.xlu1 %1689  ;;  %v1723_v4 = vmul.f32 %v7842_v49, %v10553_v16  ;;  %v2215_v19 = vsub.f32 %v10484_v29, %v2188_v8  ;;  %v14386_v29 = vld [vmem:[#allocation71_spill] sm:$0xff] }
 0x630   : > { %7845 = vrcp.f32 %v1690_v56  ;;  %v2211_v8 = vsub.f32 %v14386_v29, %v10627_v63 }
 0x631   : > { %1908 = vmatmul.f32.gmra.mxu0 %v1723_v4  ;;  %7847 = vpow2.f32 %v2782_v30  ;;  %v2235_v31 = vmul.f32 1.442695, %v2215_v19 }
 0x635   : > { %v7844_v46 = vpop.eup %7843 }
 0x636   : > { %v7846_v15 = vpop.eup %7845  ;;  %v2854_v61 = vmul.f32 %v7844_v46, %v10564_v6  ;;  %v14385_v6 = vld [vmem:[#allocation69_spill] sm:$0xff] }
 0x637   : > { %v1692_v10 = vpop.xlane.xlu1 %1691  ;;  %v1724_v14 = vmul.f32 %v7846_v15, %v10566_v23  ;;  %v10733_v36 = vpop.eup %7847  ;;  %v10740_v35 = vadd.f32 %v14385_v6, %v14357_v37  ;;  %v3318_v6 = vadd.f32 %v10703_v62, %v10547_v54 }
 0x638   : > { %7849 = vrcp.f32 %v1692_v10  ;;  %3015 = vmatmul.f32.vlgmr.msrb.gmra.mxu2 %v2854_v61  ;;  %v10748_v37 = vpop.xlane.xlu2 %2750  ;;  %v10750_v15 = vpop.f32.mrf.mxu1  ;;  %v2227_v10 = vmul.f32 1.442695, %v2211_v8 }
 0x639   : > { %1911 = vmatmul.f32.gmra.mxu0 %v1724_v14 }
 0x63e   : > { %v7850_v60 = vpop.eup %7849 }
 0x63f   : > { %2814 = vadd.xlane.f32.xlu1 %v10733_v36  ;;  %v1694_v16 = vpop.xlane.xlu1 %1693  ;;  %v1725_v49 = vmul.f32 %v7850_v60, %v10579_v26  ;;  %v2771_v26 = vsub.f32 %v10516_v1, %v2753_v45 }
 0x640   : > { %7851 = vrcp.f32 %v1694_v16  ;;  %v2194_v16 = vpop.xlane.xlu2 %2193 }
 0x641   : > { %1914 = vmatmul.f32.gmra.mxu0 %v1725_v49  ;;  %7853 = vpow2.f32 %v2235_v31  ;;  %v2800_v30 = vmul.f32 1.442695, %v2771_v26  ;;  %v10763_v49 = vpop.f32.mrf.mxu1  ;;  %v10785_v26 = vpop.xlane.xlu0 %2195 }
 0x646   : > { %v7852_v23 = vpop.eup %7851 }
 0x647   : > { %2203 = vmax.xlane.f32.xlu1 %v10740_v35  ;;  %v2743_v61 = vpop.xlane.xlu1 %2742  ;;  %v1726_v14 = vmul.f32 %v7852_v23, %v10589_v17  ;;  %v10752_v60 = vpop.eup %7853  ;;  %v10771_v23 = vmax.f32 %v3318_v6, 0.0 }
 0x648   : > { %v2766_v56 = vsub.f32 %v10606_v39, %v2743_v61  ;;  %v10779_v61 = vpop.xlane.xlu2 %2756 }
 0x649   : > { %1917 = vmatmul.f32.gmra.mxu0 %v1726_v14  ;;  %v3359_v14 = vpop.f32.mrf.mxu1 }
 0x64a   : > { %v2790_v4 = vmul.f32 1.442695, %v2766_v56  ;;  %v3360_v54 = vadd.f32 %v10703_v62, %v3359_v14  ;;  %v14387_v14 = vld [vmem:[#allocation70_spill] sm:$0xff] }
 0x64c   : > { %7855 = vpow2.f32 %v2790_v4  ;;  %v10783_v4 = vmax.f32 %v3360_v54, 0.0  ;;  %v2765_v54 = vsub.f32 %v14387_v14, %v10611_v42 }
 0x64d   : > { %7857 = vpow2.f32 %v2800_v30 }
 0x64e   : > { %7859 = vpow2.f32 %v2227_v10  ;;  %v2813_v10 = vpop.xlane.xlu0 %2812 }
 0x64f   : > { %v2749_v46 = vpop.xlane.xlu1 %2748 }
 0x650   : > { %v2769_v1 = vsub.f32 %v10623_v50, %v2749_v46  ;;  %v2811_v29 = vpop.xlane.xlu2 %2810  ;;  %v3348_v46 = vadd.f32 %v10703_v62, %v10712_v22 }
 0x652   : > { %v10754_v17 = vpop.eup %7855  ;;  %2267 = vadd.xlane.f32.xlu0 %v10752_v60  ;;  %v2796_v63 = vmul.f32 1.442695, %v2769_v1 }
 0x653   : > { %2822 = vadd.xlane.f32.xlu2 %v10754_v17  ;;  %v10761_v45 = vpop.eup %7857 }
 0x654   : > { %v10765_v19 = vpop.eup %7859  ;;  %7861 = vpow2.f32 %v2796_v63  ;;  %v10792_v63 = vmax.f32 %v3348_v46, 0.0 }
 0x656   : > { %v10800_v22 = vpop.xlane.xlu0 %2201 }
 0x657   : > { %v10759_v39 = vpop.xlane.xlu1 %2191 }
 0x65a   : > { %2832 = vadd.xlane.f32.xlu0 %v10761_v45  ;;  %v10777_v31 = vpop.eup %7861 }
 0x65b   : > { %2259 = vadd.xlane.f32.xlu2 %v10765_v19 }
 0x65f   : > { %v10773_v50 = vpop.xlane.xlu1 %2754  ;;  %v2819_v42 = vpop.xlane.xlu0 %2818 }
 0x660   : > { %3701 = vrot.lane.b32.xlu1 %v10771_v23, %s8505_s29 }
 0x663   : > { %2828 = vadd.xlane.f32.xlu2 %v10777_v31 }
 0x667   : > { %v2809_v56 = vpop.xlane.xlu1 %2808 }
 0x668   : > { %7863 = vrcp.f32 %v2809_v56 }
 0x669   : > { %7865 = vrcp.f32 %v2811_v29 }
 0x66a   : > { %7867 = vrcp.f32 %v2813_v10 }
 0x66e   : > { %v7864_v8 = vpop.eup %7863  ;;  %3424 = vrot.lane.b32.xlu0 %v10783_v4, %s8506_s30 }
 0x66f   : > { %v2855_v30 = vmul.f32 %v7864_v8, %v10667_v32  ;;  %v7866_v1 = vpop.eup %7865  ;;  %v2788_v32 = vmul.f32 1.442695, %v2765_v54  ;;  %v2216_v54 = vsub.f32 %v10500_v52, %v10717_v41 }
 0x670   : > { %v2856_v6 = vmul.f32 %v7866_v1, %v10587_v24  ;;  %v7868_v56 = vpop.eup %7867  ;;  %v2213_v24 = vsub.f32 %v10453_v34, %v10690_v48  ;;  %v14388_v1 = vld [vmem:[#allocation74_spill] sm:$0xff] }
 0x671   : > { %3018 = vmatmul.f32.gmra.mxu2 %v2855_v30  ;;  %v2857_v29 = vmul.f32 %v7868_v56, %v10602_v3  ;;  %7869 = vpow2.f32 %v2788_v32  ;;  %v2218_v30 = vsub.f32 %v10496_v59, %v2194_v16  ;;  %v2770_v3 = vsub.f32 %v10480_v40, %v10748_v37  ;;  %v10817_v16 = vpop.xlane.xlu0 %2207 }
 0x672   : > { %v2231_v10 = vmul.f32 1.442695, %v2213_v24  ;;  %v2214_v59 = vsub.f32 %v10468_v33, %v10698_v51  ;;  %v2237_v40 = vmul.f32 1.442695, %v2216_v54  ;;  %v10831_v51 = vpop.xlane.xlu1 %2197  ;;  %v3339_v32 = vadd.f32 %v10703_v62, %v10675_v25  ;;  %v10846_v24 = vpop.xlane.xlu2 %2199 }
 0x673   : > { %v2241_v46 = vmul.f32 1.442695, %v2218_v30  ;;  %v2798_v48 = vmul.f32 1.442695, %v2770_v3  ;;  %v3354_v3 = vadd.f32 %v10703_v62, %v10750_v15 }
 0x674   : > { %v10841_v52 = vmax.f32 %v3339_v32, 0.0  ;;  %v3357_v32 = vadd.f32 %v10703_v62, %v10763_v49 }
 0x675   : > { %7871 = vpow2.f32 %v2241_v46  ;;  %v3333_v46 = vadd.f32 %v10703_v62, %v10630_v38 }
 0x676   : > { %7873 = vpow2.f32 %v2231_v10  ;;  %14390 = vst [vmem:[#allocation63_spill] sm:$0xff] %v10841_v52 }
 0x677   : > { %v10802_v8 = vpop.eup %7869  ;;  %7875 = vpow2.f32 %v2798_v48  ;;  %v10852_v10 = vmax.f32 %v3333_v46, 0.0  ;;  %v3327_v48 = vadd.f32 %v10703_v62, %v10593_v53  ;;  %v10877_v46 = vmax.f32 %v3357_v32, 0.0 }
 0x679   : > { %3021 = vmatmul.f32.gmra.mxu2 %v2856_v6  ;;  %v10810_v6 = vadd.f32 %v14388_v1, %v14360_v55  ;;  %v2233_v55 = vmul.f32 1.442695, %v2214_v59  ;;  %v10827_v37 = vpop.xlane.xlu0 %2824  ;;  %14391 = vst [vmem:[#allocation67_spill] sm:$0xff] %v10852_v10  ;;  %v10864_v38 = vmax.f32 %v3327_v48, 0.0 }
 0x67a   : > { %v2817_v1 = vpop.xlane.xlu2 %2816 }
 0x67b   : > { %3416 = vrot.lane.b32.xlu2 %v10792_v63, %s8506_s30  ;;  %14389 = vst [vmem:[#allocation30_spill] sm:$0xff] %v10810_v6  ;;  %v10819_v34 = vpop.eup %7871  ;;  %7877 = vpow2.f32 %v2233_v55  ;;  %v10862_v55 = vmax.f32 %v3354_v3, 0.0 }
 0x67c   : > { %v10822_v14 = vpop.eup %7873  ;;  %7879 = vpow2.f32 %v2237_v40 }
 0x67d   : > { %v10829_v33 = vpop.eup %7875 }
 0x681   : > { %3024 = vmatmul.f32.gmra.mxu2 %v2857_v29  ;;  %v10834_v56 = vpop.eup %7877  ;;  %v2262_v41 = vpop.xlane.xlu0 %2261 }
 0x682   : > { %v10839_v29 = vpop.eup %7879  ;;  %v10875_v53 = vpop.xlane.xlu2 %2205 }
 0x687   : > { %v10843_v30 = vpop.permute.xlu1 %3699 }
 0x689   : > { %v10856_v59 = vpop.xlane.xlu0 %2826 }
 0x68a   : > { %2820 = vadd.xlane.f32.xlu1 %v10802_v8 }
 0x692   : > { %2209 = vmax.xlane.f32.xlu1 %v10810_v6  ;;  %v10869_v15 = vpop.permute.xlu0 %3414 }
 0x698   : > { %2273 = vadd.xlane.f32.xlu0 %v10819_v34 }
 0x69a   : > { %2263 = vadd.xlane.f32.xlu1 %v10822_v14  ;;  %v10882_v49 = vpop.permute.xlu0 %3418 }
 0x6a2   : > { %2830 = vadd.xlane.f32.xlu1 %v10829_v33 }
 0x6a4   : > { %2265 = vadd.xlane.f32.xlu2 %v10834_v56 }
 0x6aa   : > { %2269 = vadd.xlane.f32.xlu1 %v10839_v29 }
 0x6ac   : > { %3410 = vrot.lane.b32.xlu0 %v10841_v52, %s8506_s30 }
 0x6b2   : > { %v2815_v25 = vpop.xlane.xlu1 %2814 }
 0x6b3   : > { %7881 = vrcp.f32 %v2815_v25 }
 0x6b4   : > { %3406 = vrot.lane.b32.xlu0 %v10852_v10, %s8506_s30  ;;  %7883 = vrcp.f32 %v2817_v1 }
 0x6b5   : > { %7885 = vrcp.f32 %v2819_v42  ;;  %v2772_v42 = vsub.f32 %v10651_v27, %v10773_v50 }
 0x6b9   : > { %v7882_v54 = vpop.eup %7881 }
 0x6ba   : > { %v2858_v40 = vmul.f32 %v7882_v54, %v10733_v36  ;;  %v7884_v25 = vpop.eup %7883 }
 0x6bb   : > { %v2859_v36 = vmul.f32 %v7884_v25, %v10632_v43  ;;  %v7886_v3 = vpop.eup %7885  ;;  %v2222_v43 = vsub.f32 %v10619_v28, %v10800_v22  ;;  %v2802_v25 = vmul.f32 1.442695, %v2772_v42 }
 0x6bc   : > { %3402 = vrot.lane.b32.xlu0 %v10864_v38, %s8506_s30  ;;  %3420 = vrot.lane.b32.xlu2 %v10862_v55, %s8506_s30  ;;  %v2860_v48 = vmul.f32 %v7886_v3, %v10647_v47 }
 0x6bd   : > { %3027 = vmatmul.f32.gmra.mxu2 %v2858_v40  ;;  %v2249_v3 = vmul.f32 1.442695, %v2222_v43  ;;  %v3342_v43 = vadd.f32 %v10703_v62, %v10693_v18 }
 0x6c3   : > { %3422 = vrot.lane.b32.xlu1 %v10877_v46, %s8506_s30 }
 0x6c5   : > { %3030 = vmatmul.f32.gmra.mxu2 %v2859_v36  ;;  %v10885_v40 = vpop.xlane.xlu0 %2267 }
 0x6c6   : > { %v2823_v1 = vpop.xlane.xlu2 %2822 }
 0x6cd   : > { %3033 = vmatmul.f32.gmra.mxu2 %v2860_v48  ;;  %v10892_v36 = vpop.xlane.xlu0 %2832  ;;  %v2773_v48 = vsub.f32 %v10513_v9, %v10779_v61  ;;  %v2219_v9 = vsub.f32 %v10577_v7, %v10785_v26  ;;  %v10912_v61 = vpop.xlane.xlu1 %2203  ;;  %v3321_v7 = vadd.f32 %v10703_v62, %v10562_v57 }
 0x6ce   : > { %v2260_v54 = vpop.xlane.xlu2 %2259 }
 0x6cf   : > { %7887 = vrcp.f32 %v2260_v54 }
 0x6d0   : > { %7889 = vrcp.f32 %v2262_v41  ;;  %v2217_v41 = vsub.f32 %v10636_v0, %v10759_v39  ;;  %v2243_v0 = vmul.f32 1.442695, %v2219_v9 }
 0x6d1   : > { %7891 = vpow2.f32 %v2802_v25  ;;  %v10931_v25 = vmax.f32 %v3342_v43, 0.0 }
 0x6d2   : > { %7893 = vpow2.f32 %v2249_v3  ;;  %v2239_v50 = vmul.f32 1.442695, %v2217_v41  ;;  %v3336_v41 = vadd.f32 %v10703_v62, %v10655_v5 }
 0x6d5   : > { %v7888_v32 = vpop.eup %7887  ;;  %v10920_v26 = vpop.permute.xlu1 %3701 }
 0x6d6   : > { %v2307_v6 = vmul.f32 %v7888_v32, %v10765_v19  ;;  %v7890_v47 = vpop.eup %7889  ;;  %v2804_v19 = vmul.f32 1.442695, %v2773_v48  ;;  %v10923_v32 = vmax.f32 %v3321_v7, 0.0  ;;  %v2225_v7 = vsub.f32 %v10665_v44, %v10817_v16 }
 0x6d7   : > { %v2308_v27 = vmul.f32 %v7890_v47, %v10695_v2  ;;  %v10900_v22 = vpop.eup %7891  ;;  %v2829_v47 = vpop.xlane.xlu2 %2828  ;;  %v2220_v44 = vsub.f32 %v10681_v21, %v10831_v51  ;;  %v2221_v16 = vsub.f32 %v10600_v58, %v10846_v24 }
 0x6d8   : > { %2468 = vmatmul.f32.vlgmr.msra.gmra.mxu0 %v2307_v6  ;;  %v10902_v6 = vpop.eup %7893  ;;  %7895 = vpow2.f32 %v2804_v19 }
 0x6d9   : > { %7897 = vpow2.f32 %v2239_v50 }
 0x6da   : > { %7899 = vpow2.f32 %v2243_v0 }
 0x6de   : > { %v10908_v2 = vpop.eup %7895 }
 0x6df   : > { %v10910_v39 = vpop.eup %7897 }
 0x6e0   : > { %2471 = vmatmul.f32.gmra.mxu0 %v2308_v27  ;;  %v3425_v28 = vpop.permute.xlu0 %3424  ;;  %v10916_v54 = vpop.eup %7899  ;;  %v10940_v27 = vmax.f32 %v3336_v41, 0.0  ;;  %v2245_v41 = vmul.f32 1.442695, %v2220_v44 }
 0x6e1   : > { %7331 = vmatpush.xpose.msk.msra.mxu3 %vm14217_vm1, %v3425_v28 }
 0x6e2   : > { %14392 = vst [vmem:[#allocation73_spill] sm:$0xff] %v10940_v27 }
 0x6e5   : > { %2834 = vadd.xlane.f32.xlu2 %v10900_v22 }
 0x6e6   : > { %2281 = vadd.xlane.f32.xlu0 %v10902_v6 }
 0x6ed   : > { %2271 = vadd.xlane.f32.xlu2 %v10910_v39  ;;  %2836 = vadd.xlane.f32.xlu1 %v10908_v2 }
 0x6f5   : > { %2275 = vadd.xlane.f32.xlu1 %v10916_v54 }
 0x6fa   : > { %3398 = vrot.lane.b32.xlu0 %v10923_v32, %s8506_s30 }
 0x6fd   : > { %v2821_v42 = vpop.xlane.xlu1 %2820 }
 0x6fe   : > { %7901 = vrcp.f32 %v2821_v42 }
 0x6ff   : > { %7903 = vrcp.f32 %v2823_v1 }
 0x700   : > { %7905 = vrcp.f32 %v10827_v37 }
 0x702   : > { %3394 = vrot.lane.b32.xlu0 %v10710_v12, %s8506_s30 }
 0x704   : > { %v7902_v57 = vpop.eup %7901 }
 0x705   : > { %v10933_v3 = vpop.xlane.xlu1 %2209  ;;  %3412 = vrot.lane.b32.xlu2 %v10931_v25, %s8506_s30  ;;  %v2861_v48 = vmul.f32 %v7902_v57, %v10802_v8  ;;  %v7904_v18 = vpop.eup %7903 }
 0x706   : > { %v2862_v1 = vmul.f32 %v7904_v18, %v10754_v17  ;;  %v3417_v8 = vpop.permute.xlu2 %3416  ;;  %v7906_v50 = vpop.eup %7905 }
 0x707   : > { %3036 = vmatmul.f32.gmra.mxu2 %v2861_v48  ;;  %v2863_v37 = vmul.f32 %v7906_v50, %v10683_v20 }
 0x70d   : > { %v2264_v19 = vpop.xlane.xlu1 %2263  ;;  %3408 = vrot.lane.b32.xlu2 %v10940_v27, %s8506_s30 }
 0x70e   : > { %7907 = vrcp.f32 %v2264_v19  ;;  %3703 = vrot.lane.b32.xlu1 %v10923_v32, %s8505_s29 }
 0x70f   : > { %3039 = vmatmul.f32.gmra.mxu2 %v2862_v1  ;;  %7909 = vrcp.f32 %v10856_v59  ;;  %v2255_v59 = vmul.f32 1.442695, %v2225_v7  ;;  %v14394_v1 = vld [vmem:[#allocation56_spill] sm:$0xff] }
 0x710   : > { %v3324_v50 = vadd.f32 %v10703_v62, %v14394_v1 }
 0x714   : > { %v7908_v5 = vpop.eup %7907 }
 0x715   : > { %v2309_v28 = vmul.f32 %v7908_v5, %v10822_v14  ;;  %v2831_v0 = vpop.xlane.xlu1 %2830  ;;  %v7910_v17 = vpop.eup %7909 }
 0x716   : > { %v2864_v42 = vmul.f32 %v7910_v17, %v10705_v13 }
 0x717   : > { %v2266_v9 = vpop.xlane.xlu2 %2265  ;;  %2474 = vmatmul.f32.gmra.mxu0 %v2309_v28  ;;  %3042 = vmatmul.f32.gmra.mxu2 %v2863_v37 }
 0x718   : > { %7911 = vrcp.f32 %v2266_v9 }
 0x719   : > { %7913 = vrcp.f32 %v2829_v47 }
 0x71a   : > { %7915 = vrcp.f32 %v10885_v40 }
 0x71b   : > { %7917 = vrcp.f32 %v2831_v0  ;;  %v2274_v0 = vpop.xlane.xlu0 %2273 }
 0x71c   : > { %7919 = vpow2.f32 %v2255_v59 }
 0x71d   : > { %v2270_v57 = vpop.xlane.xlu1 %2269 }
 0x71e   : > { %v7912_v43 = vpop.eup %7911  ;;  %7921 = vrcp.f32 %v2270_v57  ;;  %v2223_v57 = vsub.f32 %v10740_v35, %v10912_v61  ;;  %v11032_v61 = vpop.f32.mrf.mxu0 }
 0x71f   : > { %3045 = vmatmul.f32.gmra.mxu2 %v2864_v42  ;;  %v2310_v14 = vmul.f32 %v7912_v43, %v10834_v56  ;;  %v7914_v20 = vpop.eup %7913  ;;  %7923 = vrcp.f32 %v10892_v36 }
 0x720   : > { %v7916_v48 = vpop.eup %7915  ;;  %v2865_v47 = vmul.f32 %v7914_v20, %v10777_v31  ;;  %v2247_v31 = vmul.f32 1.442695, %v2221_v16  ;;  %7925 = vpow2.f32 %v2245_v41  ;;  %v2251_v44 = vmul.f32 1.442695, %v2223_v57 }
 0x721   : > { %2477 = vmatmul.f32.gmra.mxu0 %v2310_v14  ;;  %v2311_v13 = vmul.f32 %v7916_v48, %v10752_v60  ;;  %v7918_v56 = vpop.eup %7917 }
 0x722   : > { %v10962_v40 = vpop.eup %7919  ;;  %v2866_v19 = vmul.f32 %v7918_v56, %v10829_v33  ;;  %7927 = vpow2.f32 %v2247_v31  ;;  %v3421_v33 = vpop.permute.xlu2 %3420 }
 0x723   : > { %v3411_v59 = vpop.permute.xlu0 %3410 }
 0x724   : > { %v7922_v18 = vpop.eup %7921 }
 0x725   : > { %v2312_v21 = vmul.f32 %v7922_v18, %v10839_v29  ;;  %v7924_v58 = vpop.eup %7923  ;;  %v14393_v29 = vld [vmem:[#allocation68_spill] sm:$0xff] }
 0x726   : > { %v10968_v60 = vpop.eup %7925  ;;  %v2867_v24 = vmul.f32 %v7924_v58, %v10761_v45  ;;  %v3330_v45 = vadd.f32 %v10703_v62, %v10613_v11  ;;  %v3236_v11 = vld [vmem:[%s14055_s10] sm:$0xff]  ;;  %v11053_v18 = vpop.f32.mrf.mxu0 }
 0x727   : > { %3048 = vmatmul.f32.gmra.mxu2 %v2865_v47 }
 0x728   : > { %v10973_v36 = vpop.eup %7927  ;;  %v10990_v5 = vmax.f32 %v3330_v45, 0.0  ;;  %3778 = vmatpush.msra.mxu2 %v3236_v11 }
 0x729   : > { %2480 = vmatmul.f32.gmra.mxu0 %v2311_v13 }
 0x72a   : > { %14395 = vst [vmem:[#allocation65_spill] sm:$0xff] %v10990_v5 }
 0x72b   : > { %v3407_v13 = vpop.permute.xlu0 %3406 }
 0x72c   : > { %2287 = vadd.xlane.f32.xlu0 %v10962_v40 }
 0x72f   : > { %3051 = vmatmul.f32.gmra.mxu2 %v2866_v19  ;;  %v11063_v19 = vpop.f32.mrf.mxu0 }
 0x731   : > { %2483 = vmatmul.f32.gmra.mxu0 %v2312_v21 }
 0x735   : > { %v3423_v51 = vpop.permute.xlu1 %3422 }
 0x736   : > { %2277 = vadd.xlane.f32.xlu2 %v10968_v60  ;;  %7332 = vmatpush.xpose.msk.msra.mxu3 %vm14217_vm1, %v3423_v51 }
 0x737   : > { %3054 = vmatmul.f32.gmra.mxu2 %v2867_v24  ;;  %v11073_v24 = vpop.f32.mrf.mxu0 }
 0x738   : > { %2279 = vadd.xlane.f32.xlu1 %v10973_v36 }
 0x73a   : > { %7333 = vmatpush.xpose.msk.msra.mxu3 %vm14217_vm1, %v3421_v33 }
 0x73e   : > { %7334 = vmatpush.xpose.msk.msra.mxu3 %vm14217_vm1, %v10882_v49  ;;  %v10994_v49 = vmax.f32 %v3324_v50, 0.0 }
 0x740   : > { %3888 = vrot.lane.b32.xlu0 %v10877_v46, %s8508_s23 }
 0x742   : > { %7335 = vmatpush.xpose.msk.msra.mxu3 %vm14217_vm1, %v3417_v8  ;;  %v14396_v8 = vld [vmem:[#allocation61_spill] sm:$0xff] }
 0x746   : > { %7336 = vmatpush.xpose.msk.msra.mxu3 %vm14217_vm1, %v10869_v15 }
 0x748   : > { %3884 = vrot.lane.b32.xlu0 %v14393_v29, %s8508_s23 }
 0x74e   : > { %3404 = vrot.lane.b32.xlu2 %v10990_v5, %s8506_s30 }
 0x750   : > { %3880 = vrot.lane.b32.xlu0 %v14396_v8, %s8508_s23 }
 0x751   : > { %3705 = vrot.lane.b32.xlu1 %v10994_v49, %s8505_s29 }
 0x756   : > { %3400 = vrot.lane.b32.xlu2 %v10994_v49, %s8506_s30 }
 0x758   : > { %3876 = vrot.lane.b32.xlu0 %v10841_v52, %s8508_s23  ;;  %v2835_v62 = vpop.xlane.xlu2 %2834 }
 0x759   : > { %7929 = vrcp.f32 %v2835_v62  ;;  %3707 = vrot.lane.b32.xlu1 %v10864_v38, %s8505_s29  ;;  %v11083_v62 = vpop.f32.mrf.mxu0 }
 0x75f   : > { %v7930_v15 = vpop.eup %7929 }
 0x760   : > { %3872 = vrot.lane.b32.xlu0 %v10852_v10, %s8508_s23  ;;  %v2272_v28 = vpop.xlane.xlu2 %2271  ;;  %v2837_v37 = vpop.xlane.xlu1 %2836  ;;  %v2868_v9 = vmul.f32 %v7930_v15, %v10900_v22  ;;  %v14398_v15 = vld [vmem:[#allocation30_spill] sm:$0xff] }
 0x761   : > { %7931 = vrcp.f32 %v2272_v28 }
 0x762   : > { %7933 = vrcp.f32 %v2837_v37  ;;  %3057 = vmatmul.f32.gmra.mxu2 %v2868_v9 }
 0x763   : > { %7935 = vrcp.f32 %v2274_v0 }
 0x767   : > { %v7932_v17 = vpop.eup %7931 }
 0x768   : > { %v7934_v7 = vpop.eup %7933  ;;  %3868 = vrot.lane.b32.xlu0 %v10864_v38, %s8508_s23  ;;  %v3413_v42 = vpop.permute.xlu2 %3412  ;;  %v2313_v43 = vmul.f32 %v7932_v17, %v10910_v39 }
 0x769   : > { %7337 = vmatpush.xpose.msk.msra.mxu3 %vm14217_vm1, %v3413_v42  ;;  %v2869_v14 = vmul.f32 %v7934_v7, %v10908_v2  ;;  %v2276_v22 = vpop.xlane.xlu1 %2275  ;;  %v7936_v20 = vpop.eup %7935  ;;  %v14397_v2 = vld [vmem:[#allocation51_spill] sm:$0xff] }
 0x76a   : > { %2486 = vmatmul.f32.gmra.mxu0 %v2313_v43  ;;  %7937 = vrcp.f32 %v2276_v22  ;;  %v2314_v39 = vmul.f32 %v7936_v20, %v10819_v34  ;;  %v2224_v47 = vsub.f32 %v14397_v2, %v10875_v53  ;;  %v11097_v7 = vpop.f32.mrf.mxu0  ;;  %v804_v2 = vld [vmem:[%s14051_s6 + $0x18] sm:$0xff] }
 0x76b   : > { %3060 = vmatmul.f32.gmra.mxu2 %v2869_v14  ;;  %7939 = vpow2.f32 %v2251_v44  ;;  %3178 = vmatpush.msrb.mxu0 %v804_v2  ;;  %v803_v44 = vld [vmem:[%s14051_s6 + $0x10] sm:$0xff] }
 0x76c   : > { %v2253_v35 = vmul.f32 1.442695, %v2224_v47 }
 0x76d   : > { %7338 = vmatpush.xpose.msk.msra.mxu3 %vm14217_vm1, %v3411_v59  ;;  %3179 = vmatpush.msrb.mxu0 %v803_v44 }
 0x76e   : > { %7941 = vpow2.f32 %v2253_v35 }
 0x770   : > { %3864 = vrot.lane.b32.xlu0 %v10923_v32, %s8508_s23  ;;  %v3409_v48 = vpop.permute.xlu2 %3408  ;;  %v7938_v16 = vpop.eup %7937 }
 0x771   : > { %7339 = vmatpush.xpose.msk.msra.mxu3 %vm14217_vm1, %v3409_v48  ;;  %v2315_v34 = vmul.f32 %v7938_v16, %v10916_v54  ;;  %v3403_v54 = vpop.permute.xlu0 %3402  ;;  %v802_v16 = vld [vmem:[%s14051_s6 + $0x8] sm:$0xff] }
 0x772   : > { %2489 = vmatmul.f32.gmra.mxu0 %v2314_v39  ;;  %v11112_v14 = vpop.f32.mrf.mxu0 }
 0x773   : > { %7363 = vmatmul.msk.f32.vlgmr.msra.gmra.mxu2 %vm14217_vm1, %v10843_v30  ;;  %v11036_v30 = vpop.eup %7939  ;;  %3180 = vmatpush.msrb.mxu0 %v802_v16 }
 0x774   : > { %v11041_v56 = vpop.eup %7941 }
 0x775   : > { %7340 = vmatpush.xpose.msk.msra.mxu3 %vm14217_vm1, %v3407_v13 }
 0x778   : > { %3860 = vrot.lane.b32.xlu0 %v10710_v12, %s8508_s23 }
 0x77a   : > { %2492 = vmatmul.f32.gmra.mxu0 %v2315_v34  ;;  %v11129_v48 = vpop.f32.mrf.mxu0  ;;  %v801_v34 = vld [vmem:[%s14051_s6] sm:$0xff] }
 0x77b   : > { %7364 = vmatmul.msk.f32.gmra.mxu2 %vm14217_vm1, %v10920_v26  ;;  %v2282_v26 = vpop.xlane.xlu0 %2281  ;;  %3181 = vmatpush.msrb.mxu0 %v801_v34 }
 0x77f   : > { %2283 = vadd.xlane.f32.xlu2 %v11036_v30 }
 0x780   : > { %3729 = vrot.lane.b32.xlu0 %v10783_v4, %s8505_s29  ;;  %v3704_v53 = vpop.permute.xlu1 %3703 }
 0x782   : > { %v11145_v13 = vpop.f32.mrf.mxu0 }
 0x783   : > { %7365 = vmatmul.msk.f32.gmra.mxu2 %vm14217_vm1, %v3704_v53  ;;  %2285 = vadd.xlane.f32.xlu1 %v11041_v56  ;;  %v3399_v41 = vpop.permute.xlu0 %3398 }
 0x788   : > { %3834 = vrot.lane.b32.xlu0 %v10994_v49, %s8507_s1 }
 0x78b   : > { %v11061_v31 = vpop.permute.xlu0 %3394 }
 0x790   : > { %3840 = vrot.lane.b32.xlu0 %v10852_v10, %s8507_s1 }
 0x797   : > { %3396 = vrot.lane.b32.xlu2 %v10771_v23, %s8506_s30 }
 0x798   : > { %4486 = vrot.lane.b32.xlu0 %v10783_v4, %s8509_s21 }
 0x79c   : > { %3709 = vrot.lane.b32.xlu1 %v10990_v5, %s8505_s29 }
 0x79f   : > { %3890 = vrot.lane.b32.xlu2 %v10783_v4, %s8508_s23  ;;  %v11069_v58 = vpop.xlane.xlu0 %2287 }
 0x7a0   : > { %4482 = vrot.lane.b32.xlu0 %v10862_v55, %s8509_s21 }
 0x7a4   : > { %3711 = vrot.lane.b32.xlu1 %v10852_v10, %s8505_s29 }
 0x7a8   : > { %4478 = vrot.lane.b32.xlu0 %v10792_v63, %s8509_s21 }
 0x7a9   : > { %v2278_v21 = vpop.xlane.xlu2 %2277 }
 0x7aa   : > { %7943 = vrcp.f32 %v2278_v21 }
 0x7ab   : > { %v2280_v51 = vpop.xlane.xlu1 %2279 }
 0x7ac   : > { %3713 = vrot.lane.b32.xlu1 %v10940_v27, %s8505_s29  ;;  %7945 = vrcp.f32 %v2280_v51 }
 0x7ad   : > { %7947 = vrcp.f32 %v2282_v26 }
 0x7b0   : > { %v7944_v33 = vpop.eup %7943  ;;  %4474 = vrot.lane.b32.xlu0 %v10931_v25, %s8509_s21 }
 0x7b1   : > { %v3405_v45 = vpop.permute.xlu2 %3404  ;;  %v2316_v1 = vmul.f32 %v7944_v33, %v10968_v60  ;;  %v2226_v60 = vsub.f32 %v14398_v15, %v10933_v3 }
 0x7b2   : > { %v11078_v50 = vpop.permute.xlu0 %3888  ;;  %7341 = vmatpush.xpose.msk.msra.mxu3 %vm14217_vm1, %v3405_v45  ;;  %v7946_v11 = vpop.eup %7945 }
 0x7b3   : > { %2495 = vmatmul.f32.gmra.mxu0 %v2316_v1  ;;  %v2317_v37 = vmul.f32 %v7946_v11, %v10973_v36  ;;  %v2257_v0 = vmul.f32 1.442695, %v2226_v60  ;;  %v7948_v17 = vpop.eup %7947 }
 0x7b4   : > { %3715 = vrot.lane.b32.xlu1 %v10841_v52, %s8505_s29  ;;  %v2318_v3 = vmul.f32 %v7948_v17, %v10902_v6  ;;  %v11116_v6 = vpop.f32.mrf.mxu2 }
 0x7b5   : > { %7949 = vpow2.f32 %v2257_v0 }
 0x7b6   : > { %7342 = vmatpush.xpose.msk.msra.mxu3 %vm14217_vm1, %v3403_v54  ;;  %v11167_v54 = vpop.f32.mrf.mxu0 }
 0x7b8   : > { %4470 = vrot.lane.b32.xlu0 %v10940_v27, %s8509_s21 }
 0x7b9   : > { %v3401_v28 = vpop.permute.xlu2 %3400 }
 0x7ba   : > { %v11091_v9 = vpop.permute.xlu0 %3884  ;;  %7343 = vmatpush.xpose.msk.msra.mxu3 %vm14217_vm1, %v3401_v28 }
 0x7bb   : > { %2498 = vmatmul.f32.gmra.mxu0 %v2317_v37  ;;  %v11107_v43 = vpop.eup %7949 }
 0x7bc   : > { %3717 = vrot.lane.b32.xlu1 %v10931_v25, %s8505_s29  ;;  %v11125_v57 = vpop.f32.mrf.mxu2 }
 0x7be   : > { %7344 = vmatpush.xpose.msk.msra.mxu3 %vm14217_vm1, %v3399_v41  ;;  %v11181_v33 = vpop.f32.mrf.mxu0 }
 0x7c0   : > { %4466 = vrot.lane.b32.xlu0 %v10990_v5, %s8509_s21 }
 0x7c2   : > { %v11102_v36 = vpop.permute.xlu0 %3880 }
 0x7c3   : > { %v3706_v42 = vpop.permute.xlu1 %3705  ;;  %2501 = vmatmul.f32.gmra.mxu0 %v2318_v3 }
 0x7c4   : > { %3719 = vrot.lane.b32.xlu1 %v14396_v8, %s8505_s29  ;;  %7366 = vmatmul.msk.f32.gmra.mxu2 %vm14217_vm1, %v3706_v42  ;;  %v11140_v47 = vpop.f32.mrf.mxu2 }
 0x7c6   : > { %v11194_v37 = vpop.f32.mrf.mxu0 }
 0x7c8   : > { %3856 = vrot.lane.b32.xlu0 %v10877_v46, %s8507_s1  ;;  %2289 = vadd.xlane.f32.xlu2 %v11107_v43 }
 0x7ca   : > { %v11114_v59 = vpop.permute.xlu0 %3876 }
 0x7cb   : > { %v3708_v22 = vpop.permute.xlu1 %3707 }
 0x7cc   : > { %3721 = vrot.lane.b32.xlu1 %v10792_v63, %s8505_s29  ;;  %7367 = vmatmul.msk.f32.gmra.mxu2 %vm14217_vm1, %v3708_v22  ;;  %v11161_v53 = vpop.f32.mrf.mxu2 }
 0x7ce   : > { %v11211_v42 = vpop.f32.mrf.mxu0 }
 0x7d0   : > { %4460 = vrot.lane.b32.xlu0 %v10923_v32, %s8509_s21 }
 0x7d2   : > { %v11123_v20 = vpop.permute.xlu0 %3872 }
 0x7d4   : > { %3723 = vrot.lane.b32.xlu1 %v14393_v29, %s8505_s29  ;;  %v11173_v41 = vpop.f32.mrf.mxu2 }
 0x7d8   : > { %3858 = vrot.lane.b32.xlu0 %v10783_v4, %s8507_s1 }
 0x7da   : > { %v11133_v39 = vpop.permute.xlu0 %3868 }
 0x7dc   : > { %3725 = vrot.lane.b32.xlu1 %v10862_v55, %s8505_s29  ;;  %v11189_v11 = vpop.f32.mrf.mxu2 }
 0x7e0   : > { %4165 = vrot.lane.b32.xlu0 %v10710_v12, %s8511_s20  ;;  %3886 = vrot.lane.b32.xlu2 %v10862_v55, %s8508_s23 }
 0x7e2   : > { %v11154_v35 = vpop.permute.xlu0 %3864 }
 0x7e4   : > { %3727 = vrot.lane.b32.xlu1 %v10877_v46, %s8505_s29  ;;  %s14401_s29 = smov 112  }
 0x7e8   : > { %4458 = vrot.lane.b32.xlu0 %v10771_v23, %s8509_s21  ;;  %3882 = vrot.lane.b32.xlu2 %v10792_v63, %s8508_s23 }
 0x7ea   : > { %v11169_v26 = vpop.permute.xlu0 %3860 }
 0x7ec   : > { %3830 = vrot.lane.b32.xlu1 %v10771_v23, %s8507_s1 }
 0x7f0   : > { %4456 = vrot.lane.b32.xlu0 %v10710_v12, %s8509_s21  ;;  %3878 = vrot.lane.b32.xlu2 %v10931_v25, %s8508_s23 }
 0x7f2   : > { %v11179_v21 = vpop.permute.xlu0 %3729  ;;  %v2284_v51 = vpop.xlane.xlu2 %2283 }
 0x7f3   : > { %7951 = vrcp.f32 %v2284_v51 }
 0x7f4   : > { %3836 = vrot.lane.b32.xlu1 %v10864_v38, %s8507_s1 }
 0x7f6   : > { %v2286_v45 = vpop.xlane.xlu1 %2285 }
 0x7f7   : > { %7953 = vrcp.f32 %v2286_v45 }
 0x7f8   : > { %4167 = vrot.lane.b32.xlu0 %v10771_v23, %s8511_s20  ;;  %3874 = vrot.lane.b32.xlu2 %v10940_v27, %s8508_s23  ;;  %7955 = vrcp.f32 %v11069_v58 }
 0x7f9   : > { %v7952_v1 = vpop.eup %7951 }
 0x7fa   : > { %v11191_v15 = vpop.permute.xlu0 %3834  ;;  %v3397_v60 = vpop.permute.xlu2 %3396  ;;  %v2319_v28 = vmul.f32 %v7952_v1, %v11036_v30 }
 0x7fb   : > { %14399 = vst [vmem:[#allocation75_spill] sm:$0xff] %v11191_v15  ;;  %7345 = vmatpush.xpose.msk.msra.mxu3 %vm14217_vm1, %v3397_v60 }
 0x7fc   : > { %3842 = vrot.lane.b32.xlu1 %v10940_v27, %s8507_s1  ;;  %2504 = vmatmul.f32.gmra.mxu0 %v2319_v28 }
 0x7fd   : > { %v7954_v0 = vpop.eup %7953 }
 0x7fe   : > { %v2320_v3 = vmul.f32 %v7954_v0, %v11041_v56  ;;  %v7956_v22 = vpop.eup %7955 }
 0x7ff   : > { %7346 = vmatpush.xpose.msk.msra.mxu3 %vm14217_vm1, %v11061_v31  ;;  %v11214_v31 = vpop.f32.mrf.mxu2  ;;  %v2321_v58 = vmul.f32 %v7956_v22, %v10962_v40 }
 0x800   : > { %4173 = vrot.lane.b32.xlu0 %v10864_v38, %s8511_s20  ;;  %3870 = vrot.lane.b32.xlu2 %v10990_v5, %s8508_s23 }
 0x802   : > { %v11206_v30 = vpop.permute.xlu0 %3840  ;;  %v3891_v17 = vpop.permute.xlu2 %3890  ;;  %7347 = vmatmul.msk.f32.vlgmr.msra.gmra.mxu3 %vm14217_vm1, %v10710_v12 }
 0x803   : > { %14400 = vst [vmem:[#allocation76_spill] sm:$0xff] %v11206_v30  ;;  %7379 = vmatpush.xpose.msk.msra.mxu0 %vm14217_vm1, %v3891_v17 }
 0x804   : > { %4484 = vrot.lane.b32.xlu1 %v10877_v46, %s8509_s21  ;;  %2507 = vmatmul.f32.gmra.mxu0 %v2320_v3 }
 0x807   : > { %7380 = vmatpush.xpose.msk.msra.mxu0 %vm14217_vm1, %v11078_v50  ;;  %v11229_v2 = vpop.f32.mrf.mxu2  ;;  %v11233_v50 = vpop.f32.mrf.mxu0 }
 0x808   : > { %4430 = vrot.lane.b32.xlu0 %v10994_v49, %s14401_s29  ;;  %3866 = vrot.lane.b32.xlu2 %v10994_v49, %s8508_s23  ;;  %14402 = vst [vmem:[#allocation72_spill] sm:$0xff] %v11233_v50 }
 0x80a   : > { %v11224_v56 = vpop.permute.xlu0 %4486  ;;  %7348 = vmatmul.msk.f32.gmra.mxu3 %vm14217_vm1, %v10771_v23 }
 0x80c   : > { %4480 = vrot.lane.b32.xlu1 %v14393_v29, %s8509_s21  ;;  %2510 = vmatmul.f32.gmra.mxu0 %v2321_v58 }
 0x80e   : > { %v3710_v44 = vpop.permute.xlu1 %3709 }
 0x80f   : > { %7368 = vmatmul.msk.f32.gmra.mxu2 %vm14217_vm1, %v3710_v44  ;;  %v11246_v40 = vpop.f32.mrf.mxu2  ;;  %v11248_v51 = vpop.f32.mrf.mxu0 }
 0x810   : > { %4175 = vrot.lane.b32.xlu0 %v10990_v5, %s8511_s20  ;;  %3862 = vrot.lane.b32.xlu2 %v10771_v23, %s8508_s23  ;;  %14403 = vst [vmem:[#allocation69_spill] sm:$0xff] %v11248_v51 }
 0x812   : > { %v11240_v16 = vpop.permute.xlu0 %4482  ;;  %7349 = vmatmul.msk.f32.gmra.mxu3 %vm14217_vm1, %v10923_v32 }
 0x814   : > { %4476 = vrot.lane.b32.xlu1 %v14396_v8, %s8509_s21 }
 0x816   : > { %v3712_v34 = vpop.permute.xlu1 %3711 }
 0x817   : > { %7369 = vmatmul.msk.f32.gmra.mxu2 %vm14217_vm1, %v3712_v34  ;;  %v11260_v60 = vpop.f32.mrf.mxu2  ;;  %v11264_v28 = vpop.f32.mrf.mxu0  ;;  %v3237_v34 = vld [vmem:[%s14055_s10 + $0x8] sm:$0xff] }
 0x818   : > { %3828 = vrot.lane.b32.xlu2 %v10710_v12, %s8507_s1  ;;  %14404 = vst [vmem:[#allocation71_spill] sm:$0xff] %v11264_v28  ;;  %4244 = vmatpush.msra.mxu1 %v3237_v34  ;;  %v14406_v28 = vld [vmem:[#allocation35_spill] sm:$0xff] }
 0x81a   : > { %v11253_v45 = vpop.permute.xlu0 %4478  ;;  %7350 = vmatmul.msk.f32.gmra.mxu3 %vm14217_vm1, %v10994_v49 }
 0x81c   : > { %4472 = vrot.lane.b32.xlu1 %v10841_v52, %s8509_s21 }
 0x81e   : > { %v3714_v1 = vpop.permute.xlu1 %3713 }
 0x81f   : > { %7370 = vmatmul.msk.f32.gmra.mxu2 %vm14217_vm1, %v3714_v1  ;;  %v2469_v3 = vpop.f32.mrf.mxu0  ;;  %v11275_v22 = vpop.f32.mrf.mxu2 }
 0x820   : > { %3832 = vrot.lane.b32.xlu2 %v10923_v32, %s8507_s1 }
 0x822   : > { %v11266_v0 = vpop.permute.xlu0 %4474  ;;  %7351 = vmatmul.msk.f32.gmra.mxu3 %vm14217_vm1, %v10864_v38 }
 0x824   : > { %4468 = vrot.lane.b32.xlu1 %v10852_v10, %s8509_s21 }
 0x826   : > { %v3716_v17 = vpop.permute.xlu1 %3715 }
 0x827   : > { %7371 = vmatmul.msk.f32.gmra.mxu2 %vm14217_vm1, %v3716_v17  ;;  %v2472_v17 = vpop.f32.mrf.mxu0  ;;  %v11293_v30 = vpop.f32.mrf.mxu2 }
 0x828   : > { %3838 = vrot.lane.b32.xlu2 %v10990_v5, %s8507_s1 }
 0x82a   : > { %v11277_v58 = vpop.permute.xlu0 %4470  ;;  %7352 = vmatmul.msk.f32.gmra.mxu3 %vm14217_vm1, %v10990_v5 }
 0x82c   : > { %4464 = vrot.lane.b32.xlu1 %v10864_v38, %s8509_s21 }
 0x82e   : > { %v3718_v44 = vpop.permute.xlu1 %3717 }
 0x82f   : > { %7372 = vmatmul.msk.f32.gmra.mxu2 %vm14217_vm1, %v3718_v44  ;;  %v2475_v5 = vpop.f32.mrf.mxu0  ;;  %v11308_v51 = vpop.f32.mrf.mxu2 }
 0x830   : > { %3844 = vrot.lane.b32.xlu2 %v10841_v52, %s8507_s1  ;;  %14407 = vst [vmem:[#allocation74_spill] sm:$0xff] %v11308_v51 }
 0x832   : > { %v11289_v1 = vpop.permute.xlu0 %4466  ;;  %7353 = vmatmul.msk.f32.gmra.mxu3 %vm14217_vm1, %v10852_v10  ;;  %v1939_v10 = vadd.f32 %v14406_v28, %v11032_v61  ;;  %v11321_v61 = vld [vmem:[%s14409_s5] ss:$0 sm:$0xff] }
 0x834   : > { %4462 = vrot.lane.b32.xlu1 %v10994_v49, %s8509_s21  ;;  %v2517_v50 = vadd.f32 %v2469_v3, %v1939_v10  ;;  %s14728_s21 = sld [smem:[#allocation101_spill]] }
 0x836   : > { %v3720_v44 = vpop.permute.xlu1 %3719 }
 0x837   : > { %7373 = vmatmul.msk.f32.gmra.mxu2 %vm14217_vm1, %v3720_v44  ;;  %v2478_v3 = vpop.f32.mrf.mxu0  ;;  %v11331_v51 = vpop.f32.mrf.mxu2 }
 0x838   : > { %3846 = vrot.lane.b32.xlu2 %v10931_v25, %s8507_s1 }
 0x83a   : > { %v11300_v15 = vpop.permute.xlu0 %3856  ;;  %7354 = vmatmul.msk.f32.gmra.mxu3 %vm14217_vm1, %v10940_v27  ;;  %s8461_s22 = scalar_lea.hbm %s14728_s21, 256 }
 0x83b   : > { %14405 = vst [vmem:[#allocation70_spill] sm:$0xff] %v11300_v15  ;;  %v2290_v34 = vpop.xlane.xlu2 %2289 }
 0x83c   : > { %7957 = vrcp.f32 %v2290_v34  ;;  %4169 = vrot.lane.b32.xlu1 %v10923_v32, %s8511_s20  ;;  %v3064_v34 = vadd.f32 %v11116_v6, %v2517_v50 }
 0x83e   : > { %v3722_v44 = vpop.permute.xlu1 %3721  ;;  %v3083_v6 = vadd.f32 %v11321_v61, %v3064_v34 }
 0x83f   : > { %7374 = vmatmul.msk.f32.gmra.mxu2 %vm14217_vm1, %v3722_v44  ;;  %v14410_v44 = vld [vmem:[#allocation33_spill] sm:$0xff] }
 0x840   : > { %3848 = vrot.lane.b32.xlu2 %v14396_v8, %s8507_s1 }
 0x842   : > { %v7958_v15 = vpop.eup %7957  ;;  %v11313_v27 = vpop.permute.xlu0 %4460  ;;  %7355 = vmatmul.msk.f32.gmra.mxu3 %vm14217_vm1, %v10841_v52 }
 0x843   : > { %14408 = vst [vmem:[#allocation68_spill] sm:$0xff] %v11313_v27  ;;  %v3887_v28 = vpop.permute.xlu2 %3886  ;;  %v2322_v10 = vmul.f32 %v7958_v15, %v11107_v43  ;;  %v1942_v27 = vadd.f32 %v14410_v44, %v11053_v18  ;;  %v3099_v18 = vmax.f32 %v3083_v6, 0.0  ;;  %v11350_v44 = vpop.f32.mrf.mxu2 }
 0x844   : > { %4171 = vrot.lane.b32.xlu1 %v10994_v49, %s8511_s20  ;;  %7381 = vmatpush.xpose.msk.msra.mxu0 %vm14217_vm1, %v3887_v28 }
 0x845   : > { %2513 = vmatmul.f32.gmra.mxu0 %v2322_v10  ;;  %v2518_v50 = vadd.f32 %v2472_v17, %v1942_v27 }
 0x846   : > { %v3724_v52 = vpop.permute.xlu1 %3723 }
 0x847   : > { %7375 = vmatmul.msk.f32.gmra.mxu2 %vm14217_vm1, %v3724_v52  ;;  %v3065_v15 = vadd.f32 %v11125_v57, %v2518_v50  ;;  %v14411_v52 = vld [vmem:[#allocation36_spill] sm:$0xff]  ;;  %v14412_v50 = vld [vmem:[#allocation38_spill] sm:$0xff] }
 0x848   : > { %3850 = vrot.lane.b32.xlu2 %v10792_v63, %s8507_s1  ;;  %7382 = vmatpush.xpose.msk.msra.mxu0 %vm14217_vm1, %v11091_v9  ;;  %v1945_v27 = vadd.f32 %v14411_v52, %v11063_v19  ;;  %v2481_v9 = vpop.f32.mrf.mxu0 }
 0x849   : > { %v3084_v28 = vadd.f32 %v11321_v61, %v3065_v15 }
 0x84a   : > { %v11337_v43 = vpop.permute.xlu0 %3858  ;;  %7356 = vmatmul.msk.f32.gmra.mxu3 %vm14217_vm1, %v10931_v25  ;;  %v2519_v10 = vadd.f32 %v2475_v5, %v1945_v27 }
 0x84b   : > { %v3883_v34 = vpop.permute.xlu2 %3882  ;;  %v3100_v19 = vmax.f32 %v3084_v28, 0.0  ;;  %v14413_v28 = vld [vmem:[#allocation40_spill] sm:$0xff] }
 0x84c   : > { %4428 = vrot.lane.b32.xlu1 %v10923_v32, %s14401_s29  ;;  %7383 = vmatpush.xpose.msk.msra.mxu0 %vm14217_vm1, %v3883_v34  ;;  %v3066_v6 = vadd.f32 %v11140_v47, %v2519_v10  ;;  %v11370_v47 = vpop.f32.mrf.mxu2  ;;  %v1951_v10 = vadd.f32 %v14413_v28, %v11083_v62 }
 0x84d   : > { %7299 = vmatmul.msk.f32.vlgmr.msrb.gmra.mxu0 %vm14188_vm0, %v3099_v18  ;;  %v1948_v18 = vadd.f32 %v14412_v50, %v11073_v24 }
 0x84e   : > { %v3726_v17 = vpop.permute.xlu1 %3725 }
 0x84f   : > { %7376 = vmatmul.msk.f32.gmra.mxu2 %vm14217_vm1, %v3726_v17  ;;  %v2520_v34 = vadd.f32 %v2478_v3, %v1948_v18 }
 0x850   : > { %3852 = vrot.lane.b32.xlu2 %v14393_v29, %s8507_s1  ;;  %7384 = vmatpush.xpose.msk.msra.mxu0 %vm14217_vm1, %v11102_v36  ;;  %v3085_v36 = vadd.f32 %v11321_v61, %v3066_v6  ;;  %v2484_v52 = vpop.f32.mrf.mxu0 }
 0x851   : > { %v3067_v17 = vadd.f32 %v11161_v53, %v2520_v34 }
 0x852   : > { %v4166_v57 = vpop.permute.xlu0 %4165  ;;  %7357 = vmatmul.msk.f32.gmra.mxu3 %vm14217_vm1, %v14396_v8  ;;  %v3101_v24 = vmax.f32 %v3085_v36, 0.0 }
 0x853   : > { %7411 = vmatmul.msk.f32.vlgmr.msra.gmra.mxu1 %vm14217_vm1, %v4166_v57  ;;  %v3879_v5 = vpop.permute.xlu2 %3878 }
 0x854   : > { %7385 = vmatpush.xpose.msk.msra.mxu0 %vm14217_vm1, %v3879_v5 }
 0x855   : > { %7300 = vmatmul.msk.f32.gmra.mxu0 %vm14188_vm0, %v3100_v19  ;;  %v2521_v19 = vadd.f32 %v2481_v9, %v1951_v10  ;;  %v11395_v9 = vpop.f32.mrf.mxu2 }
 0x856   : > { %v3728_v15 = vpop.permute.xlu1 %3727 }
 0x857   : > { %7377 = vmatmul.msk.f32.gmra.mxu2 %vm14217_vm1, %v3728_v15  ;;  %v3068_v5 = vadd.f32 %v11173_v41, %v2521_v19 }
 0x858   : > { %3854 = vrot.lane.b32.xlu2 %v10862_v55, %s8507_s1  ;;  %7386 = vmatpush.xpose.msk.msra.mxu0 %vm14217_vm1, %v11114_v59  ;;  %v3086_v59 = vadd.f32 %v11321_v61, %v3067_v17  ;;  %v2487_v6 = vpop.f32.mrf.mxu0  ;;  %s14543_s1 = smov 72  }
 0x85a   : > { %v11372_v27 = vpop.permute.xlu0 %4458  ;;  %7358 = vmatmul.msk.f32.gmra.mxu3 %vm14217_vm1, %v10792_v63  ;;  %v3102_v62 = vmax.f32 %v3086_v59, 0.0 }
 0x85b   : > { %v3875_v3 = vpop.permute.xlu2 %3874 }
 0x85c   : > { %7387 = vmatpush.xpose.msk.msra.mxu0 %vm14217_vm1, %v3875_v3 }
 0x85d   : > { %7301 = vmatmul.msk.f32.gmra.mxu0 %vm14188_vm0, %v3101_v24  ;;  %v11416_v28 = vpop.f32.mrf.mxu2 }
 0x85e   : > { %v11381_v57 = vpop.permute.xlu1 %3830 }
 0x85f   : > { %7378 = vmatmul.msk.f32.gmra.mxu2 %vm14217_vm1, %v11179_v21  ;;  %v14414_v21 = vld [vmem:[#allocation58_spill] sm:$0xff] }
 0x860   : > { %4424 = vrot.lane.b32.xlu2 %v10710_v12, %s14401_s29  ;;  %7388 = vmatpush.xpose.msk.msra.mxu0 %vm14217_vm1, %v11123_v20  ;;  %v1954_v18 = vadd.f32 %v14414_v21, %v11097_v7  ;;  %v3087_v20 = vadd.f32 %v11321_v61, %v3068_v5  ;;  %v2490_v41 = vpop.f32.mrf.mxu0  ;;  %v14416_v5 = vld [vmem:[#allocation54_spill] sm:$0xff] }
 0x862   : > { %v11390_v53 = vpop.permute.xlu0 %4456  ;;  %7359 = vmatmul.msk.f32.gmra.mxu3 %vm14217_vm1, %v14393_v29  ;;  %v2522_v36 = vadd.f32 %v2484_v52, %v1954_v18  ;;  %v3103_v24 = vmax.f32 %v3087_v20, 0.0  ;;  %v14415_v52 = vld [vmem:[#allocation43_spill] sm:$0xff] }
 0x863   : > { %v3871_v50 = vpop.permute.xlu2 %3870  ;;  %v1957_v3 = vadd.f32 %v14415_v52, %v11112_v14 }
 0x864   : > { %7389 = vmatpush.xpose.msk.msra.mxu0 %vm14217_vm1, %v3871_v50  ;;  %v3069_v7 = vadd.f32 %v11189_v11, %v2522_v36  ;;  %v1960_v50 = vadd.f32 %v14416_v5, %v11129_v48  ;;  %v14417_v36 = vld [vmem:[#allocation31_spill] sm:$0xff] }
 0x865   : > { %7302 = vmatmul.msk.f32.gmra.mxu0 %vm14188_vm0, %v3102_v62  ;;  %v2523_v59 = vadd.f32 %v2487_v6, %v1957_v3 }
 0x866   : > { %v11401_v15 = vpop.permute.xlu1 %3836  ;;  %v3088_v10 = vadd.f32 %v11321_v61, %v3069_v7  ;;  %v2524_v18 = vadd.f32 %v2490_v41, %v1960_v50  ;;  %v14424_v50 = vmov -1e+09  }
 0x867   : > { %v3070_v14 = vadd.f32 %v11214_v31, %v2523_v59 }
 0x868   : > { %4426 = vrot.lane.b32.xlu2 %v10771_v23, %s14401_s29  ;;  %7390 = vmatpush.xpose.msk.msra.mxu0 %vm14217_vm1, %v11133_v39  ;;  %v3104_v11 = vmax.f32 %v3088_v10, 0.0  ;;  %v2493_v62 = vpop.f32.mrf.mxu0  ;;  %v3071_v48 = vadd.f32 %v11229_v2, %v2524_v18 }
 0x869   : > { %v3089_v21 = vadd.f32 %v11321_v61, %v3070_v14 }
 0x86a   : > { %v4168_v34 = vpop.permute.xlu0 %4167  ;;  %7360 = vmatmul.msk.f32.gmra.mxu3 %vm14217_vm1, %v10862_v55 }
 0x86b   : > { %7412 = vmatmul.msk.f32.gmra.mxu1 %vm14217_vm1, %v4168_v34  ;;  %v3867_v17 = vpop.permute.xlu2 %3866  ;;  %v3105_v31 = vmax.f32 %v3089_v21, 0.0  ;;  %v1963_v34 = vadd.f32 %v14417_v36, %v11145_v13  ;;  %v14419_v13 = vld [vmem:[#allocation37_spill] sm:$0xff]  ;;  %v14425_v21 = vld [vmem:[#allocation34_spill] sm:$0xff] }
 0x86c   : > { %7391 = vmatpush.xpose.msk.msra.mxu0 %vm14217_vm1, %v3867_v17  ;;  %v14418_v17 = vld [vmem:[#allocation45_spill] sm:$0xff]  ;;  %v1966_v3 = vadd.f32 %v14419_v13, %v11167_v54  ;;  %v1969_v18 = vadd.f32 %v14425_v21, %v11181_v33  ;;  %v14427_v33 = vmov 0 }
 0x86d   : > { %7303 = vmatmul.msk.f32.gmra.mxu0 %vm14188_vm0, %v3103_v24  ;;  %v2525_v24 = vadd.f32 %v2493_v62, %v1963_v34  ;;  %v646_v52 = vshrl.u32 %v14418_v17, 4  ;;  %v14420_v62 = vld [vmem:[#allocation47_spill] sm:$0xff] }
 0x86e   : > { %v11418_v39 = vpop.permute.xlu1 %3842  ;;  %v14430_v17 = vld [vmem:[#allocation39_spill] sm:$0xff] }
 0x86f   : > { %v3072_v2 = vadd.f32 %v11246_v40, %v2525_v24  ;;  %vm11459_vm4 = vcmp.eq.s32.totalorder %v646_v52, %v14420_v62  ;;  %v1972_v52 = vadd.f32 %v14430_v17, %v11194_v37  ;;  %v14433_v37 = vmov 0 }
 0x870   : > { %4432 = vrot.lane.b32.xlu2 %v10864_v38, %s14401_s29  ;;  %7392 = vmatpush.xpose.msk.msra.mxu0 %vm14217_vm1, %v11154_v35  ;;  %v11433_v35 = vpop.f32.mrf.mxu2  ;;  %v2496_v20 = vpop.f32.mrf.mxu0 }
 0x871   : > { %v3091_v14 = vadd.f32 %v11321_v61, %v3072_v2 }
 0x872   : > { %7361 = vmatmul.msk.f32.gmra.mxu3 %vm14217_vm1, %v10877_v46 }
 0x873   : > { %v3863_v19 = vpop.permute.xlu2 %3862  ;;  %v3107_v54 = vmax.f32 %v3091_v14, 0.0 }
 0x874   : > { %7393 = vmatpush.xpose.msk.msra.mxu0 %vm14217_vm1, %v3863_v19  ;;  %v2526_v19 = vadd.f32 %v2496_v20, %v1966_v3 }
 0x875   : > { %7304 = vmatmul.msk.f32.gmra.mxu0 %vm14188_vm0, %v3104_v11 }
 0x876   : > { %v4485_v6 = vpop.permute.xlu1 %4484  ;;  %v3073_v5 = vadd.f32 %v11260_v60, %v2526_v19  ;;  %v14431_v19 = vld [vmem:[#allocation48_spill] sm:$0xff] }
 0x878   : > { %7394 = vmatpush.xpose.msk.msra.mxu0 %vm14217_vm1, %v11169_v26  ;;  %v3090_v26 = vadd.f32 %v11321_v61, %v3071_v48  ;;  %v11447_v7 = vpop.f32.mrf.mxu2  ;;  %v2499_v59 = vpop.f32.mrf.mxu0  ;;  %v3092_v60 = vadd.f32 %v11321_v61, %v3073_v5  ;;  %v14436_v5 = vld [vmem:[#allocation46_spill] sm:$0xff] }
 0x879   : > { %v2527_v34 = vadd.f32 %v2499_v59, %v1969_v18  ;;  %v14437_v21 = vshrl.u32 %v14436_v5, 4  ;;  %v14438_v18 = vmov 0 }
 0x87a   : > { %7362 = vmatmul.msk.f32.gmra.mxu3 %vm14217_vm1, %v10783_v4  ;;  %v3108_v24 = vmax.f32 %v3092_v60, 0.0  ;;  %v14442_v60 = vld [vmem:[#allocation29_spill] sm:$0xff] }
 0x87b   : > { %v11501_v3 = vpop.permute.xlu2 %3828  ;;  %vm11518_vm7 = vcmp.eq.s32.totalorder %v14437_v21, %v14420_v62  ;;  %v14450_v21 = vld [vmem:[#allocation72_spill] sm:$0xff] }
 0x87c   : > { %7427 = vmatpush.xpose.msk.msrb.mxu0 %vm14217_vm1, %v11224_v56  ;;  %v3106_v56 = vmax.f32 %v3090_v26, 0.0  ;;  %v14439_v18 = vsel %vm11518_vm7, 4294967295, %v14438_v18 }
 0x87d   : > { %7305 = vmatmul.msk.f32.gmra.mxu0 %vm14188_vm0, %v3105_v31  ;;  %v14426_v31 = vld [vmem:[#allocation44_spill] sm:$0xff]  ;;  %14440 = vst [vmem:[#allocation30_spill] sm:$0xff] %v14439_v18 }
 0x87e   : > { %v4481_v41 = vpop.permute.xlu1 %4480  ;;  %v645_v48 = vshrl.u32 %v14426_v31, 4 }
 0x880   : > { %7428 = vmatpush.xpose.msk.msrb.mxu0 %vm14217_vm1, %v4485_v6  ;;  %v11463_v40 = vpop.f32.mrf.mxu2  ;;  %v11471_v6 = vsel %vm11459_vm4, 0.0, %v14424_v50  ;;  %vm11484_vm5 = vcmp.eq.s32.totalorder %v645_v48, %v14420_v62 }
 0x881   : > { %v14428_v33 = vsel %vm11484_vm5, 4294967295, %v14427_v33  ;;  %v11496_v2 = vsel %vm11484_vm5, 0.0, %v14424_v50 }
 0x882   : > { %14429 = vst [vmem:[#allocation61_spill] sm:$0xff] %v14428_v33 }
 0x884   : > { %7429 = vmatpush.xpose.msk.msrb.mxu0 %vm14217_vm1, %v11240_v16  ;;  %v14421_v16 = vmov 0 }
 0x885   : > { %7306 = vmatmul.msk.f32.gmra.mxu0 %vm14188_vm0, %v3106_v56  ;;  %v3507_v10 = vpop.f32.mrf.mxu3  ;;  %v14422_v16 = vsel %vm11459_vm4, 4294967295, %v14421_v16  ;;  %v3074_v56 = vadd.f32 %v11275_v22, %v2527_v34  ;;  %v1975_v34 = vadd.f32 %v14442_v60, %v11211_v42  ;;  %v14443_v42 = vld [vmem:[#allocation49_spill] sm:$0xff] }
 0x886   : > { %v4477_v11 = vpop.permute.xlu1 %4476  ;;  %14423 = vst [vmem:[#allocation56_spill] sm:$0xff] %v14422_v16  ;;  %v11506_v22 = vadd.f32 %v3507_v10, %v11496_v2 }
 0x887   : > { %v3093_v59 = vadd.f32 %v11321_v61, %v3074_v56 }
 0x888   : > { %7430 = vmatpush.xpose.msk.msrb.mxu0 %vm14217_vm1, %v4481_v41  ;;  %v2502_v41 = vpop.f32.mrf.mxu0 }
 0x889   : > { %v3109_v31 = vmax.f32 %v3093_v59, 0.0  ;;  %v14444_v59 = vshrl.u32 %v14443_v42, 4 }
 0x88b   : > { %vm11555_vm8 = vcmp.eq.s32.totalorder %v14444_v59, %v14420_v62  ;;  %v14454_v59 = vmov 0 }
 0x88c   : > { %7431 = vmatpush.xpose.msk.msrb.mxu0 %vm14217_vm1, %v11253_v45  ;;  %v11568_v5 = vsel %vm11555_vm8, 0.0, %v14424_v50 }
 0x88d   : > { %7307 = vmatmul.msk.f32.gmra.mxu0 %vm14188_vm0, %v3107_v54  ;;  %v3510_v20 = vpop.f32.mrf.mxu3  ;;  %v14432_v54 = vshrl.u32 %v14431_v19, 4  ;;  %v14448_v19 = vld [vmem:[#allocation74_spill] sm:$0xff]  ;;  %14449 = vst [vmem:[#allocation36_spill] sm:$0xff] %v11568_v5 }
 0x88e   : > { %v11478_v36 = vadd.f32 %v3510_v20, %v11471_v6  ;;  %v4473_v45 = vpop.permute.xlu1 %4472 }
 0x88f   : > { %vm11511_vm6 = vcmp.eq.s32.totalorder %v14432_v54, %v14420_v62 }
 0x890   : > { %7432 = vmatpush.xpose.msk.msrb.mxu0 %vm14217_vm1, %v4477_v11  ;;  %3557 = vmax.xlane.f32.xlu1 %v11478_v36  ;;  %v2528_v11 = vadd.f32 %v2502_v41, %v1972_v52  ;;  %v2505_v14 = vpop.f32.mrf.mxu0  ;;  %v14434_v37 = vsel %vm11511_vm6, 4294967295, %v14433_v37  ;;  %v11531_v20 = vsel %vm11511_vm6, 0.0, %v14424_v50  ;;  %v11549_v52 = vpop.permute.xlu2 %3832 }
 0x891   : > { %14435 = vst [vmem:[#allocation51_spill] sm:$0xff] %v14434_v37  ;;  %v2529_v56 = vadd.f32 %v2505_v14, %v1975_v34 }
 0x892   : > { %v11490_v26 = vpop.f32.mrf.mxu2  ;;  %v3075_v48 = vadd.f32 %v11293_v30, %v2528_v11  ;;  %14441 = vst [vmem:[#allocation35_spill] sm:$0xff] %v11531_v20  ;;  %v14445_v11 = vmov 0 }
 0x893   : > { %v14446_v11 = vsel %vm11555_vm8, 4294967295, %v14445_v11  ;;  %v3076_v54 = vadd.f32 %v14448_v19, %v2529_v56  ;;  %v14452_v56 = vld [vmem:[#allocation50_spill] sm:$0xff] }
 0x894   : > { %7433 = vmatpush.xpose.msk.msrb.mxu0 %vm14217_vm1, %v11266_v0  ;;  %14447 = vst [vmem:[#allocation33_spill] sm:$0xff] %v14446_v11  ;;  %v14453_v42 = vshrl.u32 %v14452_v56, 4 }
 0x895   : > { %7308 = vmatmul.msk.f32.gmra.mxu0 %vm14188_vm0, %v3108_v24  ;;  %v3513_v13 = vpop.f32.mrf.mxu3  ;;  %v3094_v24 = vadd.f32 %v11321_v61, %v3075_v48 }
 0x896   : > { %v4469_v0 = vpop.permute.xlu1 %4468  ;;  %vm11581_vm9 = vcmp.eq.s32.totalorder %v14453_v42, %v14420_v62 }
 0x897   : > { %v14455_v59 = vsel %vm11581_vm9, 4294967295, %v14454_v59 }
 0x898   : > { %7434 = vmatpush.xpose.msk.msrb.mxu0 %vm14217_vm1, %v4473_v45  ;;  %v11536_v45 = vsel %vm11518_vm7, 0.0, %v14424_v50  ;;  %14456 = vst [vmem:[#allocation38_spill] sm:$0xff] %v14455_v59  ;;  %v4174_v59 = vpop.permute.xlu0 %4173 }
 0x899   : > { %3555 = vmax.xlane.f32.xlu2 %v11506_v22  ;;  %v11547_v17 = vadd.f32 %v3513_v13, %v11536_v45  ;;  %v3110_v13 = vmax.f32 %v3094_v24, 0.0 }
 0x89a   : > { %v11525_v10 = vpop.f32.mrf.mxu2 }
 0x89c   : > { %7435 = vmatpush.xpose.msk.msrb.mxu0 %vm14217_vm1, %v11277_v58 }
 0x89d   : > { %7309 = vmatmul.msk.f32.gmra.mxu0 %vm14188_vm0, %v3109_v31  ;;  %v3516_v58 = vpop.f32.mrf.mxu3  ;;  %v14451_v31 = vld [vmem:[#allocation52_spill] sm:$0xff] }
 0x89e   : > { %v11542_v41 = vadd.f32 %v3516_v58, %v11531_v20  ;;  %v4465_v30 = vpop.permute.xlu1 %4464  ;;  %v1978_v48 = vadd.f32 %v14451_v31, %v14450_v21  ;;  %v3095_v58 = vadd.f32 %v11321_v61, %v3076_v54  ;;  %v14458_v31 = vld [vmem:[#allocation69_spill] sm:$0xff] }
 0x8a0   : > { %7436 = vmatpush.xpose.msk.msrb.mxu0 %vm14217_vm1, %v4469_v0  ;;  %3561 = vmax.xlane.f32.xlu0 %v11542_v41  ;;  %v2508_v0 = vpop.f32.mrf.mxu0 }
 0x8a1   : > { %3559 = vmax.xlane.f32.xlu2 %v11547_v17  ;;  %v2530_v24 = vadd.f32 %v2508_v0, %v1978_v48  ;;  %v11595_v0 = vsel %vm11581_vm9, 0.0, %v14424_v50  ;;  %v14459_v48 = vld [vmem:[#allocation41_spill] sm:$0xff] }
 0x8a2   : > { %v11562_v14 = vpop.f32.mrf.mxu2  ;;  %14457 = vst [vmem:[#allocation40_spill] sm:$0xff] %v11595_v0 }
 0x8a3   : > { %v3077_v21 = vadd.f32 %v11331_v51, %v2530_v24 }
 0x8a4   : > { %7437 = vmatpush.xpose.msk.msrb.mxu0 %vm14217_vm1, %v11289_v1 }
 0x8a5   : > { %7310 = vmatmul.msk.f32.gmra.mxu0 %vm14188_vm0, %v3110_v13  ;;  %v3519_v60 = vpop.f32.mrf.mxu3  ;;  %v11586_v13 = vpop.permute.xlu2 %3838  ;;  %v3096_v51 = vadd.f32 %v11321_v61, %v3077_v21 }
 0x8a6   : > { %v11574_v34 = vadd.f32 %v3519_v60, %v11568_v5  ;;  %v4463_v1 = vpop.permute.xlu1 %4462  ;;  %v1981_v60 = vadd.f32 %v14459_v48, %v14458_v31 }
 0x8a7   : > { %v3112_v31 = vmax.f32 %v3096_v51, 0.0 }
 0x8a8   : > { %7438 = vmatpush.xpose.msk.msrb.mxu0 %vm14217_vm1, %v4465_v30  ;;  %v3111_v30 = vmax.f32 %v3095_v58, 0.0  ;;  %v2511_v54 = vpop.f32.mrf.mxu0 }
 0x8a9   : > { %3563 = vmax.xlane.f32.xlu2 %v11574_v34  ;;  %v2531_v24 = vadd.f32 %v2511_v54, %v1981_v60 }
 0x8aa   : > { %v11589_v19 = vpop.f32.mrf.mxu2 }
 0x8ab   : > { %v3078_v48 = vadd.f32 %v11350_v44, %v2531_v24  ;;  %v14462_v44 = vld [vmem:[#allocation67_spill] sm:$0xff] }
 0x8ac   : > { %7439 = vmatpush.xpose.msk.msrb.mxu0 %vm14217_vm1, %v4463_v1  ;;  %v14460_v1 = vld [vmem:[#allocation68_spill] sm:$0xff]  ;;  %v14463_v24 = vld [vmem:[#allocation71_spill] sm:$0xff] }
 0x8ad   : > { %7311 = vmatmul.msk.f32.gmra.mxu0 %vm14188_vm0, %v3111_v30  ;;  %v3522_v56 = vpop.f32.mrf.mxu3  ;;  %v3097_v54 = vadd.f32 %v11321_v61, %v3078_v48  ;;  %v14465_v48 = vld [vmem:[#allocation65_spill] sm:$0xff] }
 0x8ae   : > { %v11601_v42 = vadd.f32 %v3522_v56, %v11595_v0  ;;  %v4170_v58 = vpop.permute.xlu1 %4169  ;;  %v11611_v56 = vpop.permute.xlu2 %3844 }
 0x8af   : > { %7413 = vmatmul.msk.f32.gmra.mxu1 %vm14217_vm1, %v4170_v58  ;;  %v3113_v60 = vmax.f32 %v3097_v54, 0.0  ;;  %v11620_v58 = vpop.permute.xlu0 %4430 }
 0x8b0   : > { %7440 = vmatpush.xpose.msk.msrb.mxu0 %vm14217_vm1, %v14460_v1  ;;  %3565 = vmax.xlane.f32.xlu1 %v11601_v42  ;;  %v14461_v1 = vld [vmem:[#allocation73_spill] sm:$0xff] }
 0x8b2   : > { %v3807_v30 = vpop.f32.mrf.mxu2 }
 0x8b4   : > { %7441 = vmatpush.xpose.msk.msrb.mxu0 %vm14217_vm1, %v11372_v27  ;;  %4179 = vrot.lane.b32.xlu0 %v14461_v1, %s8511_s20 }
 0x8b5   : > { %7312 = vmatmul.msk.f32.gmra.mxu0 %vm14188_vm0, %v3112_v31  ;;  %v3525_v54 = vpop.f32.mrf.mxu3 }
 0x8b6   : > { %v4172_v21 = vpop.permute.xlu1 %4171  ;;  %v11625_v51 = vpop.permute.xlu2 %3846 }
 0x8b7   : > { %7414 = vmatmul.msk.f32.gmra.mxu1 %vm14217_vm1, %v4172_v21  ;;  %v4176_v16 = vpop.permute.xlu0 %4175 }
 0x8b8   : > { %7442 = vmatpush.xpose.msk.msrb.mxu0 %vm14217_vm1, %v11390_v53  ;;  %v14464_v53 = vld [vmem:[#allocation42_spill] sm:$0xff] }
 0x8b9   : > { %v1984_v31 = vadd.f32 %v14464_v53, %v14463_v24 }
 0x8ba   : > { %v3810_v27 = vpop.f32.mrf.mxu2 }
 0x8bc   : > { %4436 = vrot.lane.b32.xlu0 %v14462_v44, %s14401_s29 }
 0x8bd   : > { %7313 = vmatmul.msk.f32.gmra.mxu0 %vm14188_vm0, %v3113_v60  ;;  %v3528_v53 = vpop.f32.mrf.mxu3 }
 0x8be   : > { %v11635_v60 = vpop.permute.xlu2 %3848 }
 0x8bf   : > { %7415 = vmatmul.msk.f32.gmra.mxu1 %vm14217_vm1, %v4174_v59 }
 0x8c1   : > { %4434 = vrot.lane.b32.xlu2 %v14465_v48, %s14401_s29 }
 0x8c2   : > { %v2514_v21 = vpop.f32.mrf.mxu0  ;;  %v3813_v11 = vpop.f32.mrf.mxu2 }
 0x8c3   : > { %v2532_v37 = vadd.f32 %v2514_v21, %v1984_v31 }
 0x8c5   : > { %v3079_v18 = vadd.f32 %v11370_v47, %v2532_v37  ;;  %v3531_v47 = vpop.f32.mrf.mxu3 }
 0x8c6   : > { %v11640_v0 = vpop.permute.xlu2 %3850 }
 0x8c7   : > { %v3098_v33 = vadd.f32 %v11321_v61, %v3079_v18  ;;  %7416 = vmatmul.msk.f32.gmra.mxu1 %vm14217_vm1, %v4176_v16  ;;  %v14468_v18 = vmov 0 }
 0x8c9   : > { %v3114_v59 = vmax.f32 %v3098_v33, 0.0  ;;  %4177 = vrot.lane.b32.xlu1 %v14462_v44, %s8511_s20  ;;  %v14466_v33 = vld [vmem:[#allocation28_spill] sm:$0xff] }
 0x8ca   : > { %v3816_v24 = vpop.f32.mrf.mxu2  ;;  %v14467_v37 = vshrl.u32 %v14466_v33, 4 }
 0x8cb   : > { %7314 = vmatmul.msk.f32.gmra.mxu0 %vm14188_vm0, %v3114_v59  ;;  %v14472_v59 = vld [vmem:[#allocation53_spill] sm:$0xff] }
 0x8cc   : > { %vm11651_vm10 = vcmp.eq.s32.totalorder %v14467_v37, %v14420_v62  ;;  %v14473_v5 = vshrl.u32 %v14472_v59, 4  ;;  %v14482_v59 = vld [vmem:[#allocation75_spill] sm:$0xff] }
 0x8cd   : > { %v14469_v18 = vsel %vm11651_vm10, 4294967295, %v14468_v18  ;;  %v11658_v21 = vsel %vm11651_vm10, 0.0, %v14424_v50 }
 0x8ce   : > { %v11646_v16 = vpop.permute.xlu2 %3852  ;;  %14470 = vst [vmem:[#allocation58_spill] sm:$0xff] %v14469_v18  ;;  %vm11663_vm11 = vcmp.eq.s32.totalorder %v14473_v5, %v14420_v62 }
 0x8cf   : > { %14471 = vst [vmem:[#allocation43_spill] sm:$0xff] %v11658_v21  ;;  %v11675_v37 = vsel %vm11663_vm11, 0.0, %v14424_v50 }
 0x8d0   : > { %v11681_v5 = vadd.f32 %v3525_v54, %v11675_v37 }
 0x8d2   : > { %v3819_v31 = vpop.f32.mrf.mxu2 }
 0x8d3   : > { %7395 = vmatmul.msk.f32.vlgmr.msra.gmra.mxu0 %vm14217_vm1, %v11501_v3  ;;  %v3534_v3 = vpop.f32.mrf.mxu3 }
 0x8d4   : > { %v11670_v33 = vadd.f32 %v3534_v3, %v11658_v21  ;;  %v14479_v3 = vmov 0 }
 0x8d6   : > { %v11677_v18 = vpop.permute.xlu2 %3854 }
 0x8da   : > { %v3822_v61 = vpop.f32.mrf.mxu2 }
 0x8db   : > { %7396 = vmatmul.msk.f32.gmra.mxu0 %vm14217_vm1, %v11381_v57  ;;  %v14474_v57 = vmov 0 }
 0x8dc   : > { %v14475_v57 = vsel %vm11663_vm11, 4294967295, %v14474_v57 }
 0x8dd   : > { %14476 = vst [vmem:[#allocation54_spill] sm:$0xff] %v14475_v57 }
 0x8e2   : > { %v3825_v20 = vpop.f32.mrf.mxu2 }
 0x8e3   : > { %7397 = vmatmul.msk.f32.gmra.mxu0 %vm14217_vm1, %v11549_v52  ;;  %4359 = vmatpush.msrb.mxu2 %v3825_v20  ;;  %v14477_v20 = vld [vmem:[#allocation32_spill] sm:$0xff] }
 0x8e4   : > { %v14478_v52 = vshrl.u32 %v14477_v20, 4 }
 0x8e5   : > { %4360 = vmatpush.msrb.mxu2 %v3822_v61  ;;  %v14483_v61 = vld [vmem:[#allocation55_spill] sm:$0xff] }
 0x8e6   : > { %3573 = vmax.xlane.f32.xlu0 %v11670_v33  ;;  %vm11687_vm12 = vcmp.eq.s32.totalorder %v14478_v52, %v14420_v62  ;;  %v14484_v20 = vshrl.u32 %v14483_v61, 4  ;;  %v14485_v52 = vmov 0 }
 0x8e7   : > { %4361 = vmatpush.msrb.mxu2 %v3819_v31  ;;  %v14480_v3 = vsel %vm11687_vm12, 4294967295, %v14479_v3  ;;  %v11696_v54 = vsel %vm11687_vm12, 0.0, %v14424_v50 }
 0x8e8   : > { %14481 = vst [vmem:[#allocation31_spill] sm:$0xff] %v14480_v3  ;;  %v11701_v31 = vadd.f32 %v3528_v53, %v11696_v54  ;;  %vm11707_vm13 = vcmp.eq.s32.totalorder %v14484_v20, %v14420_v62 }
 0x8e9   : > { %4362 = vmatpush.msrb.mxu2 %v3816_v24  ;;  %v11698_v24 = vpop.permute.xlu2 %4424  ;;  %v14486_v52 = vsel %vm11707_vm13, 4294967295, %v14485_v52 }
 0x8ea   : > { %3567 = vmax.xlane.f32.xlu2 %v11681_v5  ;;  %14487 = vst [vmem:[#allocation45_spill] sm:$0xff] %v14486_v52 }
 0x8eb   : > { %7398 = vmatmul.msk.f32.gmra.mxu0 %vm14217_vm1, %v14482_v59  ;;  %4363 = vmatpush.msrb.mxu2 %v3813_v11  ;;  %v11718_v11 = vsel %vm11707_vm13, 0.0, %v14424_v50 }
 0x8ed   : > { %4364 = vmatpush.msrb.mxu2 %v3810_v27 }
 0x8ef   : > { %4365 = vmatpush.msrb.mxu2 %v3807_v30  ;;  %v11725_v30 = vadd.f32 %v3531_v47, %v11718_v11 }
 0x8f1   : > { %4366 = vmatpush.msrb.mxu2 %v11589_v19  ;;  %v11721_v19 = vpop.f32.mrf.mxu0  ;;  %v11727_v27 = vpop.permute.xlu2 %4426 }
 0x8f2   : > { %14488 = vst [vmem:[#allocation37_spill] sm:$0xff] %v11721_v19 }
 0x8f3   : > { %3569 = vmax.xlane.f32.xlu1 %v11701_v31  ;;  %7399 = vmatmul.msk.f32.gmra.mxu0 %vm14217_vm1, %v11401_v15 }
 0x8f4   : > { %4367 = vmatpush.msrb.mxu2 %v11562_v14 }
 0x8f6   : > { %4368 = vmatpush.msrb.mxu2 %v11525_v10  ;;  %v14491_v10 = vld [vmem:[#allocation76_spill] sm:$0xff] }
 0x8f8   : > { %4369 = vmatpush.msrb.mxu2 %v11490_v26  ;;  %v14490_v26 = vld [vmem:[#allocation63_spill] sm:$0xff] }
 0x8f9   : > { %v11736_v15 = vpop.f32.mrf.mxu0 }
 0x8fa   : > { %4370 = vmatpush.msrb.mxu2 %v11463_v40  ;;  %14489 = vst [vmem:[#allocation47_spill] sm:$0xff] %v11736_v15  ;;  %v11743_v40 = vpop.permute.xlu2 %4432 }
 0x8fb   : > { %3571 = vmax.xlane.f32.xlu1 %v11725_v30  ;;  %7400 = vmatmul.msk.f32.gmra.mxu0 %vm14217_vm1, %v11586_v13  ;;  %v11750_v13 = vpop.permute.xlu1 %4428 }
 0x8fc   : > { %4371 = vmatpush.msrb.mxu2 %v11447_v7 }
 0x8fe   : > { %4372 = vmatpush.msrb.mxu2 %v11433_v35 }
 0x900   : > { %4373 = vmatpush.msrb.mxu2 %v11416_v28 }
 0x901   : > { %v11745_v14 = vpop.f32.mrf.mxu0 }
 0x902   : > { %4374 = vmatpush.msrb.mxu2 %v11395_v9  ;;  %4181 = vrot.lane.b32.xlu2 %v14490_v26, %s8511_s20  ;;  %14492 = vst [vmem:[#allocation34_spill] sm:$0xff] %v11745_v14 }
 0x903   : > { %7401 = vmatmul.msk.f32.gmra.mxu0 %vm14217_vm1, %v14491_v10 }
 0x909   : > { %v11756_v9 = vpop.f32.mrf.mxu0 }
 0x90a   : > { %14493 = vst [vmem:[#allocation44_spill] sm:$0xff] %v11756_v9 }
 0x90b   : > { %7402 = vmatmul.msk.f32.gmra.mxu0 %vm14217_vm1, %v11418_v39  ;;  %v3558_v39 = vpop.xlane.xlu1 %3557 }
 0x90c   : > { %v3556_v35 = vpop.xlane.xlu2 %3555 }
 0x90d   : > { %v3587_v28 = vsub.f32 %v11506_v22, %v3556_v35  ;;  %v3588_v22 = vsub.f32 %v11478_v36, %v3558_v39  ;;  %v3537_v39 = vpop.f32.mrf.mxu3 }
 0x90f   : > { %v3603_v7 = vmul.f32 1.442695, %v3587_v28  ;;  %v3605_v59 = vmul.f32 1.442695, %v3588_v22  ;;  %v14499_v22 = vmov 0 }
 0x911   : > { %7959 = vpow2.f32 %v3603_v7  ;;  %v11764_v47 = vpop.f32.mrf.mxu0 }
 0x912   : > { %14494 = vst [vmem:[#allocation39_spill] sm:$0xff] %v11764_v47  ;;  %7961 = vpow2.f32 %v3605_v59 }
 0x913   : > { %7403 = vmatmul.msk.f32.gmra.mxu0 %vm14217_vm1, %v11611_v56  ;;  %v3562_v35 = vpop.xlane.xlu0 %3561 }
 0x914   : > { %4438 = vrot.lane.b32.xlu1 %v14461_v1, %s14401_s29  ;;  %v3560_v61 = vpop.xlane.xlu2 %3559  ;;  %v3590_v36 = vsub.f32 %v11542_v41, %v3562_v35  ;;  %v14497_v41 = vld [vmem:[#allocation57_spill] sm:$0xff] }
 0x915   : > { %v3589_v56 = vsub.f32 %v11547_v17, %v3560_v61 }
 0x917   : > { %v11758_v53 = vpop.eup %7959  ;;  %v3607_v20 = vmul.f32 1.442695, %v3589_v56 }
 0x918   : > { %3635 = vadd.xlane.f32.xlu0 %v11758_v53  ;;  %v11771_v28 = vpop.eup %7961 }
 0x919   : > { %v11769_v10 = vpop.f32.mrf.mxu0  ;;  %7963 = vpow2.f32 %v3607_v20  ;;  %v14505_v20 = vmov 0 }
 0x91a   : > { %14495 = vst [vmem:[#allocation48_spill] sm:$0xff] %v11769_v10 }
 0x91b   : > { %7404 = vmatmul.msk.f32.gmra.mxu0 %vm14217_vm1, %v11625_v51  ;;  %v3609_v51 = vmul.f32 1.442695, %v3590_v36 }
 0x91d   : > { %7965 = vpow2.f32 %v3609_v51 }
 0x921   : > { %v11781_v17 = vpop.f32.mrf.mxu0 }
 0x922   : > { %14496 = vst [vmem:[#allocation46_spill] sm:$0xff] %v11781_v17 }
 0x923   : > { %7405 = vmatmul.msk.f32.gmra.mxu0 %vm14217_vm1, %v11635_v60  ;;  %v11779_v60 = vpop.eup %7963  ;;  %v3566_v7 = vpop.xlane.xlu1 %3565 }
 0x924   : > { %v11800_v61 = vpop.eup %7965 }
 0x929   : > { %v11816_v51 = vpop.f32.mrf.mxu0 }
 0x92a   : > { %14508 = vst [vmem:[#allocation72_spill] sm:$0xff] %v11816_v51 }
 0x92b   : > { %3637 = vadd.xlane.f32.xlu2 %v11771_v28  ;;  %7406 = vmatmul.msk.f32.gmra.mxu0 %vm14217_vm1, %v11640_v0  ;;  %v14498_v0 = vshrl.u32 %v14497_v41, 4 }
 0x92c   : > { %4183 = vrot.lane.b32.xlu0 %v10931_v25, %s8511_s20 }
 0x92d   : > { %vm11791_vm14 = vcmp.eq.s32.totalorder %v14498_v0, %v14420_v62  ;;  %v3540_v0 = vpop.f32.mrf.mxu3 }
 0x92e   : > { %v14500_v22 = vsel %vm11791_vm14, 4294967295, %v14499_v22  ;;  %v11798_v59 = vsel %vm11791_vm14, 0.0, %v14424_v50 }
 0x92f   : > { %14501 = vst [vmem:[#allocation29_spill] sm:$0xff] %v14500_v22  ;;  %v11813_v36 = vadd.f32 %v3537_v39, %v11798_v59 }
 0x930   : > { %14502 = vst [vmem:[#allocation49_spill] sm:$0xff] %v11798_v59 }
 0x931   : > { %v11831_v39 = vpop.f32.mrf.mxu0 }
 0x932   : > { %14511 = vst [vmem:[#allocation50_spill] sm:$0xff] %v11831_v39 }
 0x933   : > { %3639 = vadd.xlane.f32.xlu2 %v11779_v60  ;;  %7407 = vmatmul.msk.f32.gmra.mxu0 %vm14217_vm1, %v11646_v16  ;;  %v14503_v16 = vld [vmem:[#allocation59_spill] sm:$0xff] }
 0x934   : > { %4440 = vrot.lane.b32.xlu0 %v14490_v26, %s14401_s29  ;;  %v14504_v56 = vshrl.u32 %v14503_v16, 4 }
 0x936   : > { %vm11805_vm15 = vcmp.eq.s32.totalorder %v14504_v56, %v14420_v62  ;;  %v14510_v56 = vld [vmem:[#allocation70_spill] sm:$0xff] }
 0x937   : > { %v14506_v20 = vsel %vm11805_vm15, 4294967295, %v14505_v20  ;;  %v11821_v41 = vsel %vm11805_vm15, 0.0, %v14424_v50 }
 0x938   : > { %14507 = vst [vmem:[#allocation74_spill] sm:$0xff] %v14506_v20  ;;  %v11825_v16 = vadd.f32 %v3540_v0, %v11821_v41 }
 0x939   : > { %14509 = vst [vmem:[#allocation52_spill] sm:$0xff] %v11821_v41  ;;  %v11836_v17 = vpop.f32.mrf.mxu0 }
 0x93a   : > { %14512 = vst [vmem:[#allocation69_spill] sm:$0xff] %v11836_v17 }
 0x93b   : > { %v4178_v35 = vpop.permute.xlu1 %4177  ;;  %7408 = vmatmul.msk.f32.gmra.mxu0 %vm14217_vm1, %v11677_v18  ;;  %3641 = vadd.xlane.f32.xlu2 %v11800_v61  ;;  %v4180_v18 = vpop.permute.xlu0 %4179 }
 0x93c   : > { %7417 = vmatmul.msk.f32.gmra.mxu1 %vm14217_vm1, %v4178_v35  ;;  %v3564_v35 = vpop.xlane.xlu2 %3563 }
 0x93d   : > { %v3591_v51 = vsub.f32 %v11574_v34, %v3564_v35 }
 0x93e   : > { %3575 = vmax.xlane.f32.xlu1 %v11813_v36 }
 0x93f   : > { %v3611_v0 = vmul.f32 1.442695, %v3591_v51 }
 0x941   : > { %7967 = vpow2.f32 %v3611_v0 }
 0x943   : > { %7409 = vmatmul.msk.f32.gmra.mxu0 %vm14217_vm1, %v14510_v56  ;;  %3577 = vmax.xlane.f32.xlu2 %v11825_v16  ;;  %v3592_v56 = vsub.f32 %v11601_v42, %v3566_v7  ;;  %v14517_v42 = vld [vmem:[#allocation60_spill] sm:$0xff] }
 0x944   : > { %7418 = vmatmul.msk.f32.gmra.mxu1 %vm14217_vm1, %v4180_v18  ;;  %v4435_v10 = vpop.permute.xlu2 %4434  ;;  %v11842_v18 = vpop.f32.mrf.mxu0  ;;  %v14518_v7 = vshrl.u32 %v14517_v42, 4 }
 0x945   : > { %14513 = vst [vmem:[#allocation41_spill] sm:$0xff] %v11842_v18  ;;  %v3613_v35 = vmul.f32 1.442695, %v3592_v56 }
 0x946   : > { %vm11873_vm2 = vcmp.eq.s32.totalorder %v14518_v7, %v14420_v62 }
 0x947   : > { %7969 = vpow2.f32 %v3613_v35  ;;  %v14523_v35 = vld [vmem:[#allocation62_spill] sm:$0xff] }
 0x94b   : > { %7410 = vmatmul.msk.f32.gmra.mxu0 %vm14217_vm1, %v11337_v43  ;;  %v11848_v43 = vpop.eup %7967 }
 0x94d   : > { %v11882_v56 = vpop.eup %7969 }
 0x953   : > { %7443 = vmatmul.msk.f32.vlgmr.msrb.gmra.mxu0 %vm14217_vm1, %v11698_v24  ;;  %v11853_v24 = vpop.f32.mrf.mxu0 }
 0x954   : > { %14514 = vst [vmem:[#allocation68_spill] sm:$0xff] %v11853_v24  ;;  %v3543_v24 = vpop.f32.mrf.mxu3 }
 0x957   : > { %4185 = vrot.lane.b32.xlu1 %v14396_v8, %s8511_s20 }
 0x95b   : > { %7444 = vmatmul.msk.f32.gmra.mxu0 %vm14217_vm1, %v11727_v27  ;;  %4442 = vrot.lane.b32.xlu2 %v10931_v25, %s14401_s29  ;;  %v11858_v27 = vpop.f32.mrf.mxu0 }
 0x95c   : > { %14515 = vst [vmem:[#allocation73_spill] sm:$0xff] %v11858_v27  ;;  %v14525_v27 = vmov 0 }
 0x95d   : > { %v3568_v34 = vpop.xlane.xlu2 %3567 }
 0x95e   : > { %3643 = vadd.xlane.f32.xlu0 %v11848_v43  ;;  %v3593_v9 = vsub.f32 %v11681_v5, %v3568_v34 }
 0x960   : > { %v3615_v14 = vmul.f32 1.442695, %v3593_v9 }
 0x963   : > { %7445 = vmatmul.msk.f32.gmra.mxu0 %vm14217_vm1, %v11750_v13  ;;  %v11865_v0 = vpop.f32.mrf.mxu0 }
 0x964   : > { %14516 = vst [vmem:[#allocation67_spill] sm:$0xff] %v11865_v0  ;;  %v14524_v0 = vshrl.u32 %v14523_v35, 4 }
 0x965   : > { %v4182_v51 = vpop.permute.xlu2 %4181 }
 0x966   : > { %7419 = vmatmul.msk.f32.gmra.mxu1 %vm14217_vm1, %v4182_v51  ;;  %v3570_v13 = vpop.xlane.xlu1 %3569  ;;  %v14519_v51 = vmov 0  ;;  %vm11887_vm3 = vcmp.eq.s32.totalorder %v14524_v0, %v14420_v62  ;;  %v3546_v0 = vpop.f32.mrf.mxu3 }
 0x967   : > { %v14520_v51 = vsel %vm11873_vm2, 4294967295, %v14519_v51  ;;  %v14526_v27 = vsel %vm11887_vm3, 4294967295, %v14525_v27  ;;  %v11903_v35 = vsel %vm11887_vm3, 0.0, %v14424_v50 }
 0x968   : > { %14521 = vst [vmem:[#allocation71_spill] sm:$0xff] %v14520_v51  ;;  %v11907_v17 = vadd.f32 %v3546_v0, %v11903_v35 }
 0x969   : > { %14527 = vst [vmem:[#allocation65_spill] sm:$0xff] %v14526_v27 }
 0x96a   : > { %14529 = vst [vmem:[#allocation53_spill] sm:$0xff] %v11903_v35 }
 0x96b   : > { %7446 = vmatmul.msk.f32.gmra.mxu0 %vm14217_vm1, %v11620_v58  ;;  %v4437_v58 = vpop.permute.xlu0 %4436  ;;  %v11895_v7 = vpop.f32.mrf.mxu0 }
 0x96c   : > { %14528 = vst [vmem:[#allocation28_spill] sm:$0xff] %v11895_v7 }
 0x96e   : > { %v3572_v42 = vpop.xlane.xlu1 %3571 }
 0x972   : > { %4187 = vrot.lane.b32.xlu0 %v10792_v63, %s8511_s20 }
 0x973   : > { %7447 = vmatmul.msk.f32.gmra.mxu0 %vm14217_vm1, %v11743_v40  ;;  %v11880_v40 = vsel %vm11873_vm2, 0.0, %v14424_v50  ;;  %v11897_v18 = vpop.xlane.xlu0 %3573  ;;  %v11910_v39 = vpop.f32.mrf.mxu0 }
 0x974   : > { %14522 = vst [vmem:[#allocation42_spill] sm:$0xff] %v11880_v40 }
 0x975   : > { %14530 = vst [vmem:[#allocation32_spill] sm:$0xff] %v11910_v39 }
 0x97a   : > { %4444 = vrot.lane.b32.xlu0 %v14396_v8, %s14401_s29 }
 0x97b   : > { %7448 = vmatmul.msk.f32.gmra.mxu0 %vm14217_vm1, %v4435_v10  ;;  %v11893_v10 = vadd.f32 %v3543_v24, %v11880_v40  ;;  %v11924_v34 = vpop.f32.mrf.mxu0 }
 0x981   : > { %3645 = vadd.xlane.f32.xlu1 %v11882_v56 }
 0x983   : > { %7449 = vmatmul.msk.f32.gmra.mxu0 %vm14217_vm1, %v4437_v58 }
 0x984   : > { %3579 = vmax.xlane.f32.xlu2 %v11893_v10 }
 0x986   : > { %v4439_v24 = vpop.permute.xlu1 %4438 }
 0x989   : > { %3581 = vmax.xlane.f32.xlu1 %v11907_v17 }
 0x98b   : > { %7450 = vmatmul.msk.f32.gmra.mxu0 %vm14217_vm1, %v4439_v24  ;;  %v3636_v7 = vpop.xlane.xlu0 %3635 }
 0x98c   : > { %7971 = vrcp.f32 %v3636_v7 }
 0x98d   : > { %7973 = vpow2.f32 %v3615_v14 }
 0x992   : > { %v7972_v58 = vpop.eup %7971 }
 0x993   : > { %v3683_v47 = vmul.f32 %v7972_v58, %v11758_v53  ;;  %v11920_v7 = vpop.eup %7973 }
 0x995   : > { %4375 = vmatmul.f32.vlgmr.msrb.gmra.mxu2 %v3683_v47 }
 0x99c   : > { %4189 = vrot.lane.b32.xlu2 %v14393_v29, %s8511_s20 }
 0x99e   : > { %v3638_v0 = vpop.xlane.xlu2 %3637  ;;  %v4184_v15 = vpop.permute.xlu0 %4183 }
 0x99f   : > { %7975 = vrcp.f32 %v3638_v0  ;;  %7420 = vmatmul.msk.f32.gmra.mxu1 %vm14217_vm1, %v4184_v15  ;;  %v3594_v0 = vsub.f32 %v11701_v31, %v3570_v13 }
 0x9a2   : > { %4446 = vrot.lane.b32.xlu1 %v10792_v63, %s14401_s29 }
 0x9a4   : > { %3647 = vadd.xlane.f32.xlu0 %v11920_v7 }
 0x9a5   : > { %v7976_v53 = vpop.eup %7975 }
 0x9a6   : > { %v3640_v5 = vpop.xlane.xlu2 %3639  ;;  %v4441_v47 = vpop.permute.xlu0 %4440  ;;  %v3684_v9 = vmul.f32 %v7976_v53, %v11771_v28  ;;  %v3617_v28 = vmul.f32 1.442695, %v3594_v0  ;;  %v3595_v53 = vsub.f32 %v11725_v30, %v3572_v42 }
 0x9a7   : > { %7977 = vrcp.f32 %v3640_v5  ;;  %7451 = vmatmul.msk.f32.gmra.mxu0 %vm14217_vm1, %v4441_v47  ;;  %v11935_v47 = vpop.f32.mrf.mxu0  ;;  %v3549_v42 = vpop.f32.mrf.mxu3 }
 0x9a8   : > { %4378 = vmatmul.f32.gmra.mxu2 %v3684_v9 }
 0x9ad   : > { %v7978_v14 = vpop.eup %7977 }
 0x9ae   : > { %v3642_v15 = vpop.xlane.xlu2 %3641  ;;  %v3685_v24 = vmul.f32 %v7978_v14, %v11779_v60  ;;  %v3619_v60 = vmul.f32 1.442695, %v3595_v53  ;;  %v14537_v53 = vld [vmem:[#allocation66_spill] sm:$0xff] }
 0x9af   : > { %7979 = vrcp.f32 %v3642_v15 }
 0x9b0   : > { %4381 = vmatmul.f32.gmra.mxu2 %v3685_v24  ;;  %7981 = vpow2.f32 %v3617_v28 }
 0x9b1   : > { %v3576_v31 = vpop.xlane.xlu1 %3575  ;;  %7983 = vpow2.f32 %v3619_v60  ;;  %v14539_v60 = vmov 0 }
 0x9b5   : > { %v7980_v58 = vpop.eup %7979 }
 0x9b6   : > { %v11929_v39 = vpop.xlane.xlu2 %3577  ;;  %v3686_v19 = vmul.f32 %v7980_v58, %v11800_v61  ;;  %v11940_v13 = vpop.eup %7981  ;;  %v14531_v61 = vld [vmem:[#allocation64_spill] sm:$0xff] }
 0x9b7   : > { %v14532_v9 = vshrl.u32 %v14531_v61, 4  ;;  %v11959_v24 = vpop.eup %7983 }
 0x9b8   : > { %4191 = vrot.lane.b32.xlu0 %v10862_v55, %s8511_s20  ;;  %4384 = vmatmul.f32.gmra.mxu2 %v3686_v19  ;;  %v14533_v19 = vmov 0 }
 0x9b9   : > { %vm11945_vm0 = vcmp.eq.s32.totalorder %v14532_v9, %v14420_v62 }
 0x9ba   : > { %v14534_v19 = vsel %vm11945_vm0, 4294967295, %v14533_v19  ;;  %v11953_v30 = vsel %vm11945_vm0, 0.0, %v14424_v50 }
 0x9bb   : > { %14535 = vst [vmem:[#allocation75_spill] sm:$0xff] %v14534_v19  ;;  %v11956_v15 = vadd.f32 %v3549_v42, %v11953_v30  ;;  %v3552_v42 = vpop.f32.mrf.mxu3 }
 0x9bc   : > { %14536 = vst [vmem:[#allocation55_spill] sm:$0xff] %v11953_v30 }
 0x9be   : > { %v4443_v5 = vpop.permute.xlu2 %4442 }
 0x9bf   : > { %7452 = vmatmul.msk.f32.gmra.mxu0 %vm14217_vm1, %v4443_v5  ;;  %v14538_v5 = vshrl.u32 %v14537_v53, 4  ;;  %v3596_v53 = vsub.f32 %v11670_v33, %v11897_v18  ;;  %v3597_v18 = vsub.f32 %v11813_v36, %v3576_v31  ;;  %v3598_v36 = vsub.f32 %v11825_v16, %v11929_v39 }
 0x9c0   : > { %4448 = vrot.lane.b32.xlu0 %v14393_v29, %s14401_s29 }
 0x9c1   : > { %vm11967_vm3 = vcmp.eq.s32.totalorder %v14538_v5, %v14420_v62 }
 0x9c2   : > { %v14540_v60 = vsel %vm11967_vm3, 4294967295, %v14539_v60  ;;  %v11974_v9 = vsel %vm11967_vm3, 0.0, %v14424_v50  ;;  %vm14578_vm3 = vcmask 261120  }
 0x9c3   : > { %14541 = vst [vmem:[#allocation63_spill] sm:$0xff] %v14540_v60  ;;  %v11982_v62 = vadd.f32 %v3552_v42, %v11974_v9 }
 0x9c4   : > { %14542 = vst [vmem:[#allocation76_spill] sm:$0xff] %v11974_v9 }
 0x9c5   : > { %3649 = vadd.xlane.f32.xlu2 %v11940_v13 }
 0x9c9   : > { %v4186_v14 = vpop.permute.xlu1 %4185 }
 0x9ca   : > { %7421 = vmatmul.msk.f32.gmra.mxu1 %vm14217_vm1, %v4186_v14  ;;  %v11985_v14 = vpop.f32.mrf.mxu0 }
 0x9cc   : > { %3583 = vmax.xlane.f32.xlu1 %v11956_v15 }
 0x9cd   : > { %3651 = vadd.xlane.f32.xlu2 %v11959_v24 }
 0x9d1   : > { %v3644_v58 = vpop.xlane.xlu0 %3643 }
 0x9d2   : > { %7985 = vrcp.f32 %v3644_v58 }
 0x9d8   : > { %v7986_v0 = vpop.eup %7985 }
 0x9d9   : > { %v3687_v28 = vmul.f32 %v7986_v0, %v11848_v43 }
 0x9db   : > { %4387 = vmatmul.f32.gmra.mxu2 %v3687_v28 }
 0x9e4   : > { %v4188_v61 = vpop.permute.xlu0 %4187 }
 0x9e5   : > { %4450 = vrot.lane.b32.xlu1 %v10862_v55, %s14401_s29  ;;  %4193 = vrot.lane.b32.xlu2 %v10877_v46, %s8511_s20 }
 0x9e6   : > { %7422 = vmatmul.msk.f32.gmra.mxu1 %vm14217_vm1, %v4188_v61  ;;  %v3621_v61 = vmul.f32 1.442695, %v3596_v53 }
 0x9ea   : > { %3585 = vmax.xlane.f32.xlu0 %v11982_v62 }
 0x9ec   : > { %v4445_v43 = vpop.permute.xlu0 %4444 }
 0x9ed   : > { %5033 = vrot.lane.b32.xlu1 %v10783_v4, %s14543_s1  ;;  %7453 = vmatmul.msk.f32.gmra.mxu0 %vm14217_vm1, %v4445_v43 }
 0x9f4   : > { %v3646_v50 = vpop.xlane.xlu1 %3645 }
 0x9f5   : > { %7987 = vrcp.f32 %v3646_v50  ;;  %4452 = vrot.lane.b32.xlu1 %v10877_v46, %s14401_s29  ;;  %v12011_v50 = vpop.f32.mrf.mxu0 }
 0x9f6   : > { %7989 = vpow2.f32 %v3621_v61 }
 0x9f7   : > { %v11992_v58 = vpop.xlane.xlu2 %3579 }
 0x9fb   : > { %v7988_v0 = vpop.eup %7987 }
 0x9fc   : > { %v3688_v28 = vmul.f32 %v7988_v0, %v11882_v56  ;;  %v12004_v42 = vpop.xlane.xlu1 %3581  ;;  %v12006_v56 = vpop.eup %7989  ;;  %v3623_v0 = vmul.f32 1.442695, %v3597_v18 }
 0x9fd   : > { %5031 = vrot.lane.b32.xlu1 %v10877_v46, %s14543_s1 }
 0x9fe   : > { %4195 = vrot.lane.b32.xlu0 %v10783_v4, %s8511_s20  ;;  %4390 = vmatmul.f32.gmra.mxu2 %v3688_v28  ;;  %s14544_s20 = smov 48  }
 0x9ff   : > { %v4190_v5 = vpop.permute.xlu2 %4189 }
 0xa00   : > { %7423 = vmatmul.msk.f32.gmra.mxu1 %vm14217_vm1, %v4190_v5 }
 0xa06   : > { %5029 = vrot.lane.b32.xlu0 %v10862_v55, %s14543_s1 }
 0xa0e   : > { %4454 = vrot.lane.b32.xlu0 %v10783_v4, %s14401_s29  ;;  %3653 = vadd.xlane.f32.xlu2 %v12006_v56  ;;  %s14546_s29 = smov 104  }
 0xa14   : > { %v4447_v43 = vpop.permute.xlu1 %4446 }
 0xa15   : > { %7454 = vmatmul.msk.f32.gmra.mxu0 %vm14217_vm1, %v4447_v43  ;;  %v3625_v43 = vmul.f32 1.442695, %v3598_v36 }
 0xa16   : > { %5027 = vrot.lane.b32.xlu0 %v14393_v29, %s14543_s1 }
 0xa17   : > { %v3648_v33 = vpop.xlane.xlu0 %3647 }
 0xa18   : > { %7991 = vrcp.f32 %v3648_v33 }
 0xa19   : > { %7993 = vpow2.f32 %v3623_v0 }
 0xa1a   : > { %7995 = vpow2.f32 %v3625_v43  ;;  %v3599_v43 = vsub.f32 %v11893_v10, %v11992_v58  ;;  %v3238_v58 = vld [vmem:[%s14055_s10 + $0x10] sm:$0xff] }
 0xa1b   : > { %4840 = vmatpush.msrb.mxu1 %v3238_v58 }
 0xa1e   : > { %v7992_v28 = vpop.eup %7991 }
 0xa1f   : > { %v3689_v53 = vmul.f32 %v7992_v28, %v11920_v7  ;;  %v12018_v5 = vpop.eup %7993  ;;  %v12028_v7 = vpop.f32.mrf.mxu0 }
 0xa20   : > { %v12033_v18 = vpop.eup %7995 }
 0xa21   : > { %4393 = vmatmul.f32.gmra.mxu2 %v3689_v53 }
 0xa26   : > { %4761 = vrot.lane.b32.xlu2 %v10710_v12, %s14544_s20 }
 0xa27   : > { %3655 = vadd.xlane.f32.xlu1 %v12018_v5 }
 0xa2a   : > { %v4192_v61 = vpop.permute.xlu0 %4191 }
 0xa2b   : > { %7424 = vmatmul.msk.f32.gmra.mxu1 %vm14217_vm1, %v4192_v61 }
 0xa2e   : > { %5025 = vrot.lane.b32.xlu2 %v10792_v63, %s14543_s1 }
 0xa32   : > { %v4449_v31 = vpop.permute.xlu0 %4448 }
 0xa33   : > { %7455 = vmatmul.msk.f32.gmra.mxu0 %vm14217_vm1, %v4449_v31  ;;  %v12049_v31 = vpop.f32.mrf.mxu0 }
 0xa36   : > { %5023 = vrot.lane.b32.xlu2 %v14396_v8, %s14543_s1 }
 0xa38   : > { %v3650_v33 = vpop.xlane.xlu2 %3649 }
 0xa39   : > { %7997 = vrcp.f32 %v3650_v33 }
 0xa3e   : > { %5308 = vrot.lane.b32.xlu2 %v10710_v12, %s14545_s19 }
 0xa3f   : > { %v7998_v0 = vpop.eup %7997  ;;  %v3584_v36 = vpop.xlane.xlu1 %3583 }
 0xa40   : > { %4763 = vrot.lane.b32.xlu1 %v10771_v23, %s14544_s20  ;;  %3657 = vadd.xlane.f32.xlu0 %v12033_v18  ;;  %v3652_v16 = vpop.xlane.xlu2 %3651  ;;  %v3690_v39 = vmul.f32 %v7998_v0, %v11940_v13  ;;  %v3601_v27 = vsub.f32 %v11956_v15, %v3584_v36 }
 0xa41   : > { %7999 = vrcp.f32 %v3652_v16 }
 0xa42   : > { %4396 = vmatmul.f32.gmra.mxu2 %v3690_v39  ;;  %v12062_v39 = vpop.f32.mrf.mxu0  ;;  %v3631_v19 = vmul.f32 1.442695, %v3601_v27 }
 0xa47   : > { %v8000_v28 = vpop.eup %7999 }
 0xa48   : > { %5021 = vrot.lane.b32.xlu1 %v10931_v25, %s14543_s1  ;;  %v4194_v53 = vpop.permute.xlu2 %4193  ;;  %v3691_v61 = vmul.f32 %v8000_v28, %v11959_v24  ;;  %v3627_v24 = vmul.f32 1.442695, %v3599_v43  ;;  %v12072_v28 = vpop.f32.mrf.mxu1 }
 0xa49   : > { %7425 = vmatmul.msk.f32.gmra.mxu1 %vm14217_vm1, %v4194_v53  ;;  %v3600_v53 = vsub.f32 %v11907_v17, %v12004_v42  ;;  %v3239_v17 = vld [vmem:[%s14055_s10 + $0x18] sm:$0xff] }
 0xa4a   : > { %4399 = vmatmul.f32.gmra.mxu2 %v3691_v61  ;;  %8001 = vpow2.f32 %v3627_v24  ;;  %5387 = vmatpush.msra.mxu0 %v3239_v17 }
 0xa4b   : > { %v3629_v43 = vmul.f32 1.442695, %v3600_v53  ;;  %v12093_v53 = vpop.f32.mrf.mxu0 }
 0xa4d   : > { %8003 = vpow2.f32 %v3629_v43 }
 0xa50   : > { %5019 = vrot.lane.b32.xlu1 %v14490_v26, %s14543_s1  ;;  %v12059_v0 = vpop.eup %8001  ;;  %v12080_v24 = vpop.f32.mrf.mxu1 }
 0xa53   : > { %v12086_v42 = vpop.eup %8003 }
 0xa54   : > { %4765 = vrot.lane.b32.xlu0 %v10923_v32, %s14544_s20 }
 0xa57   : > { %v4451_v13 = vpop.permute.xlu1 %4450 }
 0xa58   : > { %5310 = vrot.lane.b32.xlu1 %v10771_v23, %s14545_s19  ;;  %7456 = vmatmul.msk.f32.gmra.mxu0 %vm14217_vm1, %v4451_v13 }
 0xa5d   : > { %v12064_v10 = vpop.xlane.xlu0 %3585 }
 0xa5f   : > { %v5034_v33 = vpop.permute.xlu1 %5033 }
 0xa60   : > { %5017 = vrot.lane.b32.xlu1 %v14461_v1, %s14543_s1  ;;  %7475 = vmatpush.xpose.msk.msra.mxu2 %vm14217_vm1, %v5034_v33 }
 0xa67   : > { %v4453_v16 = vpop.permute.xlu1 %4452  ;;  %3659 = vadd.xlane.f32.xlu2 %v12059_v0 }
 0xa68   : > { %4767 = vrot.lane.b32.xlu1 %v10994_v49, %s14544_s20  ;;  %7457 = vmatmul.msk.f32.gmra.mxu0 %vm14217_vm1, %v4453_v16  ;;  %v12088_v16 = vpop.f32.mrf.mxu1 }
 0xa6f   : > { %v5032_v61 = vpop.permute.xlu1 %5031 }
 0xa70   : > { %5312 = vrot.lane.b32.xlu1 %v10923_v32, %s14545_s19  ;;  %7476 = vmatpush.xpose.msk.msra.mxu2 %vm14217_vm1, %v5032_v61  ;;  %v4196_v13 = vpop.permute.xlu0 %4195  ;;  %v12098_v43 = vpop.f32.mrf.mxu1 }
 0xa71   : > { %7426 = vmatmul.msk.f32.gmra.mxu1 %vm14217_vm1, %v4196_v13 }
 0xa78   : > { %v5030_v33 = vpop.permute.xlu0 %5029 }
 0xa79   : > { %7477 = vmatpush.xpose.msk.msra.mxu2 %vm14217_vm1, %v5030_v33 }
 0xa7e   : > { %3661 = vadd.xlane.f32.xlu0 %v12086_v42 }
 0xa7f   : > { %5015 = vrot.lane.b32.xlu2 %v14462_v44, %s14543_s1 }
 0xa80   : > { %v4455_v58 = vpop.permute.xlu0 %4454 }
 0xa81   : > { %v3654_v61 = vpop.xlane.xlu2 %3653  ;;  %7458 = vmatmul.msk.f32.gmra.mxu0 %vm14217_vm1, %v4455_v58 }
 0xa82   : > { %8005 = vrcp.f32 %v3654_v61  ;;  %v12106_v61 = vpop.f32.mrf.mxu1 }
 0xa83   : > { %8007 = vpow2.f32 %v3631_v19  ;;  %v12121_v19 = vpop.f32.mrf.mxu0 }
 0xa87   : > { %5013 = vrot.lane.b32.xlu2 %v14465_v48, %s14543_s1 }
 0xa88   : > { %v8006_v13 = vpop.eup %8005  ;;  %v5028_v33 = vpop.permute.xlu0 %5027 }
 0xa89   : > { %v4762_v17 = vpop.permute.xlu2 %4761  ;;  %7478 = vmatpush.xpose.msk.msra.mxu2 %vm14217_vm1, %v5028_v33  ;;  %v3692_v60 = vmul.f32 %v8006_v13, %v12006_v56  ;;  %v12113_v56 = vpop.eup %8007 }
 0xa8a   : > { %7459 = vmatmul.msk.f32.vlgmr.msrb.gmra.mxu1 %vm14217_vm1, %v4762_v17 }
 0xa8b   : > { %4402 = vmatmul.f32.gmra.mxu2 %v3692_v60  ;;  %v12119_v60 = vpop.f32.mrf.mxu1 }
 0xa8f   : > { %5011 = vrot.lane.b32.xlu2 %v10864_v38, %s14543_s1 }
 0xa91   : > { %v5026_v58 = vpop.permute.xlu2 %5025 }
 0xa92   : > { %4769 = vrot.lane.b32.xlu0 %v10864_v38, %s14544_s20  ;;  %7479 = vmatpush.xpose.msk.msra.mxu2 %vm14217_vm1, %v5026_v58 }
 0xa93   : > { %v12127_v17 = vpop.f32.mrf.mxu1 }
 0xa97   : > { %5314 = vrot.lane.b32.xlu2 %v10994_v49, %s14545_s19 }
 0xa99   : > { %v5024_v15 = vpop.permute.xlu2 %5023 }
 0xa9a   : > { %3663 = vadd.xlane.f32.xlu1 %v12113_v56  ;;  %v3656_v27 = vpop.xlane.xlu1 %3655  ;;  %5009 = vrot.lane.b32.xlu0 %v10994_v49, %s14543_s1 }
 0xa9b   : > { %8009 = vrcp.f32 %v3656_v27  ;;  %7480 = vmatpush.xpose.msk.msra.mxu2 %vm14217_vm1, %v5024_v15  ;;  %v12131_v58 = vpop.f32.mrf.mxu1  ;;  %v3602_v15 = vsub.f32 %v11982_v62, %v12064_v10 }
 0xaa1   : > { %v8010_v36 = vpop.eup %8009  ;;  %v5309_v13 = vpop.permute.xlu2 %5308 }
 0xaa2   : > { %5007 = vrot.lane.b32.xlu0 %v10923_v32, %s14543_s1  ;;  %7507 = vmatmul.msk.f32.vlgmr.msra.gmra.mxu0 %vm14217_vm1, %v5309_v13  ;;  %v3693_v33 = vmul.f32 %v8010_v36, %v12018_v5  ;;  %v3633_v36 = vmul.f32 1.442695, %v3602_v15 }
 0xaa3   : > { %v12140_v13 = vpop.f32.mrf.mxu1 }
 0xaa4   : > { %4405 = vmatmul.f32.gmra.mxu2 %v3693_v33 }
 0xaaa   : > { %5316 = vrot.lane.b32.xlu0 %v10864_v38, %s14545_s19 }
 0xaab   : > { %v4273_v10 = vpop.f32.mrf.mxu1 }
 0xab2   : > { %v4764_v27 = vpop.permute.xlu1 %4763  ;;  %5005 = vrot.lane.b32.xlu0 %v10771_v23, %s14543_s1 }
 0xab3   : > { %4771 = vrot.lane.b32.xlu1 %v14465_v48, %s14544_s20  ;;  %7460 = vmatmul.msk.f32.gmra.mxu1 %vm14217_vm1, %v4764_v27  ;;  %v3658_v5 = vpop.xlane.xlu0 %3657 }
 0xab4   : > { %8011 = vrcp.f32 %v3658_v5  ;;  %v4276_v5 = vpop.f32.mrf.mxu1 }
 0xab5   : > { %8013 = vpow2.f32 %v3633_v36 }
 0xaba   : > { %v8012_v33 = vpop.eup %8011  ;;  %v5022_v51 = vpop.permute.xlu1 %5021  ;;  %5003 = vrot.lane.b32.xlu0 %v10710_v12, %s14543_s1  ;;  %s581_s1 = sand.u32 1, %s8495_s28  }
 0xabb   : > { %4773 = vrot.lane.b32.xlu1 %v14462_v44, %s14544_s20  ;;  %7481 = vmatpush.xpose.msk.msra.mxu2 %vm14217_vm1, %v5022_v51  ;;  %v3694_v62 = vmul.f32 %v8012_v33, %v12033_v18  ;;  %v12148_v27 = vpop.eup %8013  ;;  %v12159_v18 = vpop.f32.mrf.mxu0 }
 0xabd   : > { %4408 = vmatmul.f32.gmra.mxu2 %v3694_v62 }
 0xac0   : > { %3665 = vadd.xlane.f32.xlu2 %v12148_v27 }
 0xac2   : > { %v5020_v15 = vpop.permute.xlu1 %5019  ;;  %4971 = vrot.lane.b32.xlu0 %v10710_v12, %s14546_s29  ;;  %v4279_v12 = vpop.f32.mrf.mxu1 }
 0xac3   : > { %5318 = vrot.lane.b32.xlu1 %v14465_v48, %s14545_s19  ;;  %7482 = vmatpush.xpose.msk.msra.mxu2 %vm14217_vm1, %v5020_v15 }
 0xac6   : > { %v4766_v36 = vpop.permute.xlu0 %4765 }
 0xac7   : > { %7461 = vmatmul.msk.f32.gmra.mxu1 %vm14217_vm1, %v4766_v36 }
 0xaca   : > { %v5311_v51 = vpop.permute.xlu1 %5310  ;;  %4973 = vrot.lane.b32.xlu0 %v10771_v23, %s14546_s29  ;;  %v4282_v62 = vpop.f32.mrf.mxu1 }
 0xacb   : > { %5320 = vrot.lane.b32.xlu1 %v14462_v44, %s14545_s19  ;;  %7508 = vmatmul.msk.f32.gmra.mxu0 %vm14217_vm1, %v5311_v51 }
 0xad2   : > { %v5018_v33 = vpop.permute.xlu1 %5017  ;;  %5322 = vrot.lane.b32.xlu0 %v14461_v1, %s14545_s19  ;;  %v4285_v36 = vpop.f32.mrf.mxu1 }
 0xad3   : > { %4777 = vrot.lane.b32.xlu1 %v14490_v26, %s14544_s20  ;;  %7483 = vmatpush.xpose.msk.msra.mxu2 %vm14217_vm1, %v5018_v33 }
 0xad8   : > { %4775 = vrot.lane.b32.xlu2 %v14461_v1, %s14544_s20 }
 0xada   : > { %v4768_v23 = vpop.permute.xlu1 %4767  ;;  %4779 = vrot.lane.b32.xlu0 %v10931_v25, %s14544_s20  ;;  %v3660_v15 = vpop.xlane.xlu2 %3659 }
 0xadb   : > { %8015 = vrcp.f32 %v3660_v15  ;;  %4975 = vrot.lane.b32.xlu1 %v10923_v32, %s14546_s29  ;;  %7462 = vmatmul.msk.f32.gmra.mxu1 %vm14217_vm1, %v4768_v23  ;;  %v12184_v32 = vpop.f32.mrf.mxu0  ;;  %v4288_v23 = vpop.f32.mrf.mxu1 }
 0xae0   : > { %5324 = vrot.lane.b32.xlu2 %v14490_v26, %s14545_s19 }
 0xae1   : > { %v8016_v51 = vpop.eup %8015 }
 0xae2   : > { %v5313_v33 = vpop.permute.xlu1 %5312  ;;  %4781 = vrot.lane.b32.xlu0 %v14396_v8, %s14544_s20  ;;  %v5016_v20 = vpop.permute.xlu2 %5015  ;;  %v3695_v22 = vmul.f32 %v8016_v51, %v12059_v0 }
 0xae3   : > { %4977 = vrot.lane.b32.xlu1 %v10994_v49, %s14546_s29  ;;  %7484 = vmatpush.xpose.msk.msra.mxu2 %vm14217_vm1, %v5016_v20 }
 0xae4   : > { %7509 = vmatmul.msk.f32.gmra.mxu0 %vm14217_vm1, %v5313_v33  ;;  %4411 = vmatmul.f32.gmra.mxu2 %v3695_v22  ;;  %v12200_v33 = vpop.f32.mrf.mxu0 }
 0xae8   : > { %5326 = vrot.lane.b32.xlu2 %v10931_v25, %s14545_s19 }
 0xaea   : > { %v5014_v15 = vpop.permute.xlu2 %5013 }
 0xaeb   : > { %4979 = vrot.lane.b32.xlu1 %v10864_v38, %s14546_s29  ;;  %7485 = vmatpush.xpose.msk.msra.mxu2 %vm14217_vm1, %v5014_v15 }
 0xaee   : > { %v4291_v0 = vpop.f32.mrf.mxu1 }
 0xaef   : > { %4294 = vmatpush.msrb.mxu3 %v4291_v0 }
 0xaf0   : > { %4783 = vrot.lane.b32.xlu2 %v10792_v63, %s14544_s20 }
 0xaf1   : > { %4295 = vmatpush.msrb.mxu3 %v4288_v23  ;;  %v3662_v49 = vpop.xlane.xlu0 %3661 }
 0xaf2   : > { %8017 = vrcp.f32 %v3662_v49  ;;  %v5012_v20 = vpop.permute.xlu2 %5011 }
 0xaf3   : > { %5328 = vrot.lane.b32.xlu1 %v14396_v8, %s14545_s19  ;;  %4296 = vmatpush.msrb.mxu3 %v4285_v36 }
 0xaf4   : > { %7486 = vmatpush.xpose.msk.msra.mxu2 %vm14217_vm1, %v5012_v20 }
 0xaf5   : > { %4297 = vmatpush.msrb.mxu3 %v4282_v62 }
 0xaf7   : > { %4298 = vmatpush.msrb.mxu3 %v4279_v12 }
 0xaf8   : > { %v8018_v38 = vpop.eup %8017  ;;  %4981 = vrot.lane.b32.xlu2 %v14465_v48, %s14546_s29 }
 0xaf9   : > { %4299 = vmatpush.msrb.mxu3 %v4276_v5  ;;  %v3696_v22 = vmul.f32 %v8018_v38, %v12086_v42  ;;  %v12217_v42 = vadd.f32 %v11924_v34, %v11496_v2 }
 0xafa   : > { %v5315_v51 = vpop.permute.xlu2 %5314 }
 0xafb   : > { %4300 = vmatpush.msrb.mxu3 %v4273_v10  ;;  %4414 = vmatmul.f32.gmra.mxu2 %v3696_v22 }
 0xafc   : > { %7510 = vmatmul.msk.f32.gmra.mxu0 %vm14217_vm1, %v5315_v51 }
 0xafd   : > { %4301 = vmatpush.msrb.mxu3 %v12140_v13 }
 0xaff   : > { %4302 = vmatpush.msrb.mxu3 %v12131_v58  ;;  %v12231_v58 = vpop.f32.mrf.mxu0 }
 0xb00   : > { %4785 = vrot.lane.b32.xlu2 %v14393_v29, %s14544_s20 }
 0xb01   : > { %4303 = vmatpush.msrb.mxu3 %v12127_v17 }
 0xb03   : > { %4304 = vmatpush.msrb.mxu3 %v12119_v60 }
 0xb04   : > { %v4770_v48 = vpop.permute.xlu0 %4769 }
 0xb05   : > { %4305 = vmatpush.msrb.mxu3 %v12106_v61  ;;  %7463 = vmatmul.msk.f32.gmra.mxu1 %vm14217_vm1, %v4770_v48 }
 0xb07   : > { %4306 = vmatpush.msrb.mxu3 %v12098_v43  ;;  %v12243_v13 = vpop.f32.mrf.mxu0 }
 0xb08   : > { %5330 = vrot.lane.b32.xlu2 %v10792_v63, %s14545_s19 }
 0xb09   : > { %4307 = vmatpush.msrb.mxu3 %v12088_v16 }
 0xb0b   : > { %4308 = vmatpush.msrb.mxu3 %v12080_v24  ;;  %v12229_v24 = vadd.f32 %v11935_v47, %v11471_v6 }
 0xb0c   : > { %4021 = vmax.xlane.f32.xlu0 %v12217_v42  ;;  %v5010_v60 = vpop.permute.xlu0 %5009 }
 0xb0d   : > { %v3664_v17 = vpop.xlane.xlu1 %3663  ;;  %4309 = vmatpush.msrb.mxu3 %v12072_v28  ;;  %7487 = vmatpush.xpose.msk.msra.mxu2 %vm14217_vm1, %v5010_v60 }
 0xb0e   : > { %8019 = vrcp.f32 %v3664_v17  ;;  %v14547_v17 = vld [vmem:[#allocation35_spill] sm:$0xff] }
 0xb0f   : > { %v12252_v62 = vpop.f32.mrf.mxu0 }
 0xb10   : > { %4983 = vrot.lane.b32.xlu2 %v14462_v44, %s14546_s29 }
 0xb14   : > { %v8020_v43 = vpop.eup %8019  ;;  %v5008_v16 = vpop.permute.xlu0 %5007 }
 0xb15   : > { %7488 = vmatpush.xpose.msk.msra.mxu2 %vm14217_vm1, %v5008_v16  ;;  %v3697_v34 = vmul.f32 %v8020_v43, %v12113_v56  ;;  %v12274_v43 = vadd.f32 %v12011_v50, %v14547_v17 }
 0xb17   : > { %4417 = vmatmul.f32.gmra.mxu2 %v3697_v34 }
 0xb1c   : > { %v5317_v61 = vpop.permute.xlu0 %5316 }
 0xb1d   : > { %4023 = vmax.xlane.f32.xlu1 %v12229_v24  ;;  %7511 = vmatmul.msk.f32.gmra.mxu0 %vm14217_vm1, %v5317_v61 }
 0xb20   : > { %4787 = vrot.lane.b32.xlu0 %v10862_v55, %s14544_s20 }
 0xb24   : > { %v5006_v44 = vpop.permute.xlu0 %5005 }
 0xb25   : > { %v4772_v28 = vpop.permute.xlu1 %4771  ;;  %7489 = vmatpush.xpose.msk.msra.mxu2 %vm14217_vm1, %v5006_v44 }
 0xb26   : > { %7464 = vmatmul.msk.f32.gmra.mxu1 %vm14217_vm1, %v4772_v28 }
 0xb28   : > { %4985 = vrot.lane.b32.xlu0 %v14461_v1, %s14546_s29  ;;  %v12250_v1 = vadd.f32 %v11985_v14, %v11536_v45  ;;  %v12260_v14 = vpop.f32.mrf.mxu0 }
 0xb2c   : > { %v5004_v47 = vpop.permute.xlu0 %5003 }
 0xb2d   : > { %v4774_v56 = vpop.permute.xlu1 %4773  ;;  %7490 = vmatpush.xpose.msk.msra.mxu2 %vm14217_vm1, %v5004_v47 }
 0xb2e   : > { %7465 = vmatmul.msk.f32.gmra.mxu1 %vm14217_vm1, %v4774_v56 }
 0xb30   : > { %v12267_v48 = vpop.f32.mrf.mxu0 }
 0xb33   : > { %v3666_v10 = vpop.xlane.xlu2 %3665 }
 0xb34   : > { %8021 = vrcp.f32 %v3666_v10  ;;  %v4972_v5 = vpop.permute.xlu0 %4971 }
 0xb35   : > { %v5319_v12 = vpop.permute.xlu1 %5318 }
 0xb36   : > { %5332 = vrot.lane.b32.xlu1 %v14393_v29, %s14545_s19  ;;  %7512 = vmatmul.msk.f32.gmra.mxu0 %vm14217_vm1, %v5319_v12  ;;  %v14548_v12 = vld [vmem:[#allocation36_spill] sm:$0xff] }
 0xb38   : > { %v12281_v61 = vpop.f32.mrf.mxu0 }
 0xb39   : > { %4025 = vmax.xlane.f32.xlu2 %v12250_v1 }
 0xb3a   : > { %v8022_v36 = vpop.eup %8021 }
 0xb3b   : > { %v4776_v23 = vpop.permute.xlu2 %4775  ;;  %v3698_v15 = vmul.f32 %v8022_v36, %v12148_v27 }
 0xb3c   : > { %7466 = vmatmul.msk.f32.gmra.mxu1 %vm14217_vm1, %v4776_v23  ;;  %v4974_v0 = vpop.permute.xlu0 %4973 }
 0xb3d   : > { %v5321_v49 = vpop.permute.xlu1 %5320  ;;  %4420 = vmatmul.f32.gmra.mxu2 %v3698_v15 }
 0xb3e   : > { %4789 = vrot.lane.b32.xlu1 %v10877_v46, %s14544_s20  ;;  %7513 = vmatmul.msk.f32.gmra.mxu0 %vm14217_vm1, %v5321_v49 }
 0xb40   : > { %v12290_v28 = vpop.f32.mrf.mxu0 }
 0xb43   : > { %v5325_v20 = vpop.permute.xlu2 %5324 }
 0xb44   : > { %v5323_v38 = vpop.permute.xlu0 %5322 }
 0xb45   : > { %v4778_v22 = vpop.permute.xlu1 %4777  ;;  %7491 = vmatmul.msk.f32.vlgmr.msra.gmra.mxu2 %vm14217_vm1, %v4972_v5 }
 0xb46   : > { %4987 = vrot.lane.b32.xlu1 %v14490_v26, %s14546_s29  ;;  %7467 = vmatmul.msk.f32.gmra.mxu1 %vm14217_vm1, %v4778_v22 }
 0xb47   : > { %7514 = vmatmul.msk.f32.gmra.mxu0 %vm14217_vm1, %v5323_v38 }
 0xb48   : > { %v12297_v5 = vpop.f32.mrf.mxu0 }
 0xb4b   : > { %v5327_v27 = vpop.permute.xlu2 %5326 }
 0xb4c   : > { %v4780_v51 = vpop.permute.xlu0 %4779 }
 0xb4d   : > { %v4976_v60 = vpop.permute.xlu1 %4975  ;;  %7492 = vmatmul.msk.f32.gmra.mxu2 %vm14217_vm1, %v4974_v0 }
 0xb4e   : > { %7468 = vmatmul.msk.f32.gmra.mxu1 %vm14217_vm1, %v4780_v51  ;;  %v12337_v51 = vadd.f32 %v12093_v53, %v11696_v54  ;;  %v12351_v53 = vpop.f32.mrf.mxu2 }
 0xb4f   : > { %7515 = vmatmul.msk.f32.gmra.mxu0 %vm14217_vm1, %v5325_v20  ;;  %14551 = vst [vmem:[#allocation59_spill] sm:$0xff] %v12351_v53 }
 0xb50   : > { %v12309_v23 = vpop.f32.mrf.mxu0 }
 0xb51   : > { %5334 = vrot.lane.b32.xlu2 %v10862_v55, %s14545_s19 }
 0xb52   : > { %4027 = vmax.xlane.f32.xlu0 %v12274_v43 }
 0xb53   : > { %v4784_v26 = vpop.permute.xlu2 %4783 }
 0xb54   : > { %v4782_v16 = vpop.permute.xlu0 %4781 }
 0xb55   : > { %v4978_v34 = vpop.permute.xlu1 %4977  ;;  %7493 = vmatmul.msk.f32.gmra.mxu2 %vm14217_vm1, %v4976_v60 }
 0xb56   : > { %7469 = vmatmul.msk.f32.gmra.mxu1 %vm14217_vm1, %v4782_v16 }
 0xb57   : > { %7516 = vmatmul.msk.f32.gmra.mxu0 %vm14217_vm1, %v5327_v27 }
 0xb58   : > { %v12311_v15 = vpop.f32.mrf.mxu0 }
 0xb59   : > { %4791 = vrot.lane.b32.xlu2 %v10783_v4, %s14544_s20  ;;  %s13595_s20 = sshll.u32 %s581_s1, 7 }
 0xb5b   : > { %v4982_v50 = vpop.permute.xlu2 %4981 }
 0xb5d   : > { %v4980_v44 = vpop.permute.xlu1 %4979  ;;  %7494 = vmatmul.msk.f32.gmra.mxu2 %vm14217_vm1, %v4978_v34 }
 0xb5e   : > { %7470 = vmatmul.msk.f32.gmra.mxu1 %vm14217_vm1, %v4784_v26  ;;  %v12346_v26 = vadd.f32 %v12121_v19, %v11718_v11 }
 0xb60   : > { %v12320_v22 = vpop.f32.mrf.mxu0 }
 0xb61   : > { %4989 = vrot.lane.b32.xlu2 %v10931_v25, %s14546_s29  ;;  %v12302_v25 = vadd.f32 %v12028_v7, %v14548_v12  ;;  %v14549_v7 = vld [vmem:[#allocation40_spill] sm:$0xff] }
 0xb62   : > { %v12316_v38 = vadd.f32 %v12049_v31, %v14549_v7 }
 0xb63   : > { %v4786_v47 = vpop.permute.xlu2 %4785 }
 0xb65   : > { %v5329_v56 = vpop.permute.xlu1 %5328  ;;  %7495 = vmatmul.msk.f32.gmra.mxu2 %vm14217_vm1, %v4980_v44 }
 0xb66   : > { %5336 = vrot.lane.b32.xlu0 %v10877_v46, %s14545_s19  ;;  %7471 = vmatmul.msk.f32.gmra.mxu1 %vm14217_vm1, %v4786_v47 }
 0xb67   : > { %7517 = vmatmul.msk.f32.gmra.mxu0 %vm14217_vm1, %v5329_v56  ;;  %v12357_v56 = vpop.f32.mrf.mxu2 }
 0xb68   : > { %v12329_v31 = vpop.f32.mrf.mxu0  ;;  %14553 = vst [vmem:[#allocation60_spill] sm:$0xff] %v12357_v56 }
 0xb6b   : > { %v5331_v10 = vpop.permute.xlu2 %5330 }
 0xb6d   : > { %7496 = vmatmul.msk.f32.gmra.mxu2 %vm14217_vm1, %v4982_v50 }
 0xb6e   : > { %5338 = vrot.lane.b32.xlu0 %v10783_v4, %s14545_s19  ;;  %s13619_s19 = scalar_lea.vmem [#allocation2], %s13595_s20 }
 0xb6f   : > { %7518 = vmatmul.msk.f32.gmra.mxu0 %vm14217_vm1, %v5331_v10  ;;  %s7005_s24 = sshll.u32 %s13619_s19, 4  ;;  %s7006_s24 = int_to_ptr.vmem [resolvable:$true] %s7005_s24 }
 0xb70   : > { %4029 = vmax.xlane.f32.xlu1 %v12302_v25  ;;  %v12341_v60 = vpop.f32.mrf.mxu0 }
 0xb73   : > { %v4984_v36 = vpop.permute.xlu2 %4983 }
 0xb75   : > { %7497 = vmatmul.msk.f32.gmra.mxu2 %vm14217_vm1, %v4984_v36 }
 0xb7f   : > { %v4022_v0 = vpop.xlane.xlu0 %4021 }
 0xb80   : > { %v4053_v49 = vsub.f32 %v12217_v42, %v4022_v0 }
 0xb82   : > { %v4069_v20 = vmul.f32 1.442695, %v4053_v49 }
 0xb84   : > { %8023 = vpow2.f32 %v4069_v20 }
 0xb89   : > { %4991 = vrot.lane.b32.xlu1 %v14396_v8, %s14546_s29  ;;  %v12333_v8 = vadd.f32 %v12062_v39, %v11675_v37  ;;  %v12349_v39 = vpop.f32.mrf.mxu0 }
 0xb8a   : > { %4031 = vmax.xlane.f32.xlu2 %v12316_v38  ;;  %v12323_v27 = vpop.eup %8023  ;;  %14550 = vst [vmem:[#allocation57_spill] sm:$0xff] %v12349_v39 }
 0xb90   : > { %v4024_v16 = vpop.xlane.xlu1 %4023 }
 0xb91   : > { %4993 = vrot.lane.b32.xlu1 %v10792_v63, %s14546_s29  ;;  %v12354_v50 = vpop.f32.mrf.mxu0  ;;  %v4054_v44 = vsub.f32 %v12229_v24, %v4024_v16 }
 0xb92   : > { %4101 = vadd.xlane.f32.xlu2 %v12323_v27  ;;  %v4788_v42 = vpop.permute.xlu0 %4787  ;;  %14552 = vst [vmem:[#allocation70_spill] sm:$0xff] %v12354_v50 }
 0xb93   : > { %7472 = vmatmul.msk.f32.gmra.mxu1 %vm14217_vm1, %v4788_v42  ;;  %v4071_v36 = vmul.f32 1.442695, %v4054_v44  ;;  %v12368_v42 = vpop.f32.mrf.mxu2 }
 0xb94   : > { %14555 = vst [vmem:[#allocation64_spill] sm:$0xff] %v12368_v42 }
 0xb98   : > { %4033 = vmax.xlane.f32.xlu0 %v12333_v8 }
 0xb99   : > { %v12363_v49 = vpop.f32.mrf.mxu0 }
 0xb9a   : > { %4035 = vmax.xlane.f32.xlu2 %v12337_v51  ;;  %v4986_v63 = vpop.permute.xlu0 %4985  ;;  %14554 = vst [vmem:[#allocation62_spill] sm:$0xff] %v12363_v49 }
 0xb9b   : > { %7498 = vmatmul.msk.f32.gmra.mxu2 %vm14217_vm1, %v4986_v63 }
 0xba0   : > { %4037 = vmax.xlane.f32.xlu0 %v12346_v26 }
 0xba8   : > { %v5333_v34 = vpop.permute.xlu1 %5332 }
 0xba9   : > { %7519 = vmatmul.msk.f32.gmra.mxu0 %vm14217_vm1, %v5333_v34 }
 0xbac   : > { %v4026_v47 = vpop.xlane.xlu2 %4025 }
 0xbad   : > { %v4055_v19 = vsub.f32 %v12250_v1, %v4026_v47  ;;  %v12370_v1 = vpop.f32.mrf.mxu1  ;;  %v12382_v47 = vpop.f32.mrf.mxu2 }
 0xbae   : > { %14557 = vst [vmem:[#allocation35_spill] sm:$0xff] %v12382_v47 }
 0xbaf   : > { %v4073_v10 = vmul.f32 1.442695, %v4055_v19 }
 0xbb0   : > { %v4790_v0 = vpop.permute.xlu1 %4789 }
 0xbb1   : > { %8025 = vpow2.f32 %v4073_v10  ;;  %7473 = vmatmul.msk.f32.gmra.mxu1 %vm14217_vm1, %v4790_v0 }
 0xbb2   : > { %4995 = vrot.lane.b32.xlu2 %v14393_v29, %s14546_s29  ;;  %8027 = vpow2.f32 %v4071_v36  ;;  %v12377_v29 = vpop.f32.mrf.mxu0 }
 0xbb3   : > { %14556 = vst [vmem:[#allocation66_spill] sm:$0xff] %v12377_v29 }
 0xbb4   : > { %v5335_v20 = vpop.permute.xlu2 %5334 }
 0xbb5   : > { %7520 = vmatmul.msk.f32.gmra.mxu0 %vm14217_vm1, %v5335_v20  ;;  %v12380_v44 = vpop.f32.mrf.mxu1  ;;  %v12390_v42 = vpop.f32.mrf.mxu2 }
 0xbb6   : > { %14559 = vst [vmem:[#allocation40_spill] sm:$0xff] %v12390_v42  ;;  %v12428_v42 = vadd.f32 %v12200_v33, %v11821_v41 }
 0xbb7   : > { %v12366_v24 = vpop.eup %8025 }
 0xbb8   : > { %v4988_v63 = vpop.permute.xlu1 %4987  ;;  %4105 = vadd.xlane.f32.xlu0 %v12366_v24  ;;  %v12374_v16 = vpop.eup %8027 }
 0xbb9   : > { %7499 = vmatmul.msk.f32.gmra.mxu2 %vm14217_vm1, %v4988_v63 }
 0xbba   : > { %v12384_v19 = vpop.f32.mrf.mxu0 }
 0xbbb   : > { %4103 = vadd.xlane.f32.xlu1 %v12374_v16  ;;  %14558 = vst [vmem:[#allocation36_spill] sm:$0xff] %v12384_v19 }
 0xbbc   : > { %v4792_v34 = vpop.permute.xlu2 %4791 }
 0xbbd   : > { %7474 = vmatmul.msk.f32.gmra.mxu1 %vm14217_vm1, %v4792_v34  ;;  %v12388_v20 = vpop.f32.mrf.mxu1  ;;  %v12400_v53 = vpop.f32.mrf.mxu2 }
 0xbbe   : > { %14561 = vst [vmem:[#allocation78_spill] sm:$0xff] %v12400_v53 }
 0xbc2   : > { %v12392_v56 = vpop.f32.mrf.mxu0 }
 0xbc3   : > { %14560 = vst [vmem:[#allocation77_spill] sm:$0xff] %v12392_v56 }
 0xbc4   : > { %v4990_v10 = vpop.permute.xlu2 %4989 }
 0xbc5   : > { %7500 = vmatmul.msk.f32.gmra.mxu2 %vm14217_vm1, %v4990_v10  ;;  %v4028_v36 = vpop.xlane.xlu0 %4027  ;;  %v12398_v47 = vpop.f32.mrf.mxu1  ;;  %v12409_v10 = vadd.f32 %v12184_v32, %v11798_v59 }
 0xbc6   : > { %v4056_v0 = vsub.f32 %v12274_v43, %v4028_v36 }
 0xbc8   : > { %v4075_v63 = vmul.f32 1.442695, %v4056_v0  ;;  %v12415_v0 = vadd.f32 %v12159_v18, %v11658_v21 }
 0xbca   : > { %8029 = vpow2.f32 %v4075_v63  ;;  %v12403_v43 = vpop.f32.mrf.mxu0  ;;  %v12417_v63 = vpop.f32.mrf.mxu2 }
 0xbcb   : > { %14562 = vst [vmem:[#allocation79_spill] sm:$0xff] %v12403_v43 }
 0xbcc   : > { %4997 = vrot.lane.b32.xlu0 %v10862_v55, %s14546_s29  ;;  %14563 = vst [vmem:[#allocation80_spill] sm:$0xff] %v12417_v63 }
 0xbcd   : > { %v12411_v36 = vpop.f32.mrf.mxu1 }
 0xbd0   : > { %v12396_v34 = vpop.eup %8029 }
 0xbd1   : > { %4107 = vadd.xlane.f32.xlu1 %v12396_v34 }
 0xbd2   : > { %v12430_v52 = vpop.f32.mrf.mxu2 }
 0xbd3   : > { %14565 = vst [vmem:[#allocation82_spill] sm:$0xff] %v12430_v52 }
 0xbd4   : > { %4999 = vrot.lane.b32.xlu0 %v10877_v46, %s14546_s29  ;;  %v12422_v46 = vpop.f32.mrf.mxu0 }
 0xbd5   : > { %14564 = vst [vmem:[#allocation81_spill] sm:$0xff] %v12422_v46  ;;  %v12424_v53 = vpop.f32.mrf.mxu1 }
 0xbd8   : > { %v5337_v55 = vpop.permute.xlu0 %5336 }
 0xbd9   : > { %4041 = vmax.xlane.f32.xlu1 %v12409_v10  ;;  %7521 = vmatmul.msk.f32.gmra.mxu0 %vm14217_vm1, %v5337_v55 }
 0xbda   : > { %v12438_v63 = vpop.f32.mrf.mxu2 }
 0xbdb   : > { %4039 = vmax.xlane.f32.xlu2 %v12415_v0  ;;  %14567 = vst [vmem:[#allocation84_spill] sm:$0xff] %v12438_v63 }
 0xbdc   : > { %v12434_v18 = vpop.f32.mrf.mxu0 }
 0xbdd   : > { %14566 = vst [vmem:[#allocation83_spill] sm:$0xff] %v12434_v18  ;;  %v12436_v55 = vpop.f32.mrf.mxu1 }
 0xbe0   : > { %v5339_v32 = vpop.permute.xlu0 %5338 }
 0xbe1   : > { %7522 = vmatmul.msk.f32.gmra.mxu0 %vm14217_vm1, %v5339_v32 }
 0xbe2   : > { %v12447_v33 = vpop.f32.mrf.mxu2 }
 0xbe3   : > { %4043 = vmax.xlane.f32.xlu2 %v12428_v42  ;;  %v4030_v57 = vpop.xlane.xlu1 %4029  ;;  %14568 = vst [vmem:[#allocation85_spill] sm:$0xff] %v12447_v33 }
 0xbe4   : > { %v12440_v3 = vpop.f32.mrf.mxu0  ;;  %v4057_v43 = vsub.f32 %v12302_v25, %v4030_v57 }
 0xbe5   : > { %v12443_v56 = vpop.f32.mrf.mxu1 }
 0xbe6   : > { %v4077_v32 = vmul.f32 1.442695, %v4057_v43 }
 0xbe8   : > { %8031 = vpow2.f32 %v4077_v32 }
 0xbea   : > { %v12453_v29 = vpop.f32.mrf.mxu2 }
 0xbeb   : > { %14569 = vst [vmem:[#allocation86_spill] sm:$0xff] %v12453_v29 }
 0xbec   : > { %v12449_v52 = vpop.f32.mrf.mxu0 }
 0xbed   : > { %v12451_v19 = vpop.f32.mrf.mxu1 }
 0xbee   : > { %v12458_v57 = vpop.eup %8031 }
 0xbf2   : > { %5001 = vrot.lane.b32.xlu1 %v10783_v4, %s14546_s29  ;;  %v12462_v33 = vpop.f32.mrf.mxu2  ;;  %s7626_s29 = sshll.u32 %s8635_s0, 7  ;;  %s6993_s0 = scalar_lea.sflag [#allocation3], %s581_s1 }
 0xbf3   : > { %14570 = vst [vmem:[#allocation87_spill] sm:$0xff] %v12462_v33  ;;  %s7004_s27 = scalar_lea.hbm %s14728_s21, %s7626_s29 }
 0xbf4   : > { %v12455_v49 = vpop.f32.mrf.mxu0  ;;  %s7007_s25 = sshll.u32 %s7004_s27, 4  ;;  %s7008_s25 = int_to_ptr.hbm [resolvable:$true] %s7007_s25 }
 0xbf5   : > { %v12466_v29 = vpop.f32.mrf.mxu1  ;;  %s8455_s18 = sshra.s32 %s7008_s25, 4  ;;  %s8456_s18 = int_to_ptr.hbm [resolvable:$true] %s8455_s18 }
 0xbf6   : > { %s8457_s30 = scalar_lea.hbm %s8456_s18, 128  ;;  %p8462_p0 = scmp.lt.s32.totalorder %s8456_s18, %s14728_s21 }
 0xbf7   : > { %p8458_p11 = scmp.ne.s32.totalorder %s8456_s18, %s8457_s30  ;;  %p8463_p1 = scmp.lt.s32.totalorder %s8461_s22, %s8457_s30 }
 0xbf9   : > { %p8459_p12 = pnand %p8458_p11, %p8652_p5  ;;  %p8464_p2 = por %p8463_p1, %p8462_p0 }
 0xbfa   : > { %v12472_v59 = vpop.f32.mrf.mxu2 }
 0xbfb   : > { %v4992_v63 = vpop.permute.xlu1 %4991  ;;  %14572 = vst [vmem:[#allocation89_spill] sm:$0xff] %v12472_v59  ;;  %p8460_p13 = pneg %p8459_p12 }
 0xbfc   : > { %7501 = vmatmul.msk.f32.gmra.mxu2 %vm14217_vm1, %v4992_v63  ;;  %v12464_v41 = vpop.f32.mrf.mxu0 }
 0xbfd   : > { %v4032_v25 = vpop.xlane.xlu2 %4031  ;;  %v12478_v21 = vpop.f32.mrf.mxu1  ;;  %p8465_p3 = pnand %p8464_p2, %p8460_p13 }
 0xbfe   : > { %v4058_v4 = vsub.f32 %v12316_v38, %v4032_v25  ;;  %4109 = vadd.xlane.f32.xlu0 %v12458_v57 }
 0xc00   : > { %v4079_v43 = vmul.f32 1.442695, %v4058_v4 }
 0xc02   : > { %8033 = vpow2.f32 %v4079_v43  ;;  %v12481_v18 = vpop.f32.mrf.mxu2 }
 0xc03   : > { %v4994_v32 = vpop.permute.xlu1 %4993  ;;  %14573 = vst [vmem:[#allocation90_spill] sm:$0xff] %v12481_v18 }
 0xc04   : > { %7502 = vmatmul.msk.f32.gmra.mxu2 %vm14217_vm1, %v4994_v32  ;;  %v12476_v39 = vpop.f32.mrf.mxu0 }
 0xc05   : > { %v4102_v50 = vpop.xlane.xlu2 %4101 }
 0xc06   : > { %8035 = vrcp.f32 %v4102_v50 }
 0xc08   : > { %v12469_v63 = vpop.eup %8033 }
 0xc09   : > { %14571 = vst [vmem:[#allocation88_spill] sm:$0xff] %v12469_v63  ;;  %4111 = vadd.xlane.f32.xlu2 %v12469_v63 }
 0xc0b   : > { %v4034_v38 = vpop.xlane.xlu0 %4033 }
 0xc0c   : > { %v8036_v25 = vpop.eup %8035  ;;  %v4059_v4 = vsub.f32 %v12333_v8, %v4034_v38 }
 0xc0d   : > { %v4149_v43 = vmul.f32 %v8036_v25, %v12323_v27  ;;  %v4036_v33 = vpop.xlane.xlu2 %4035 }
 0xc0e   : > { %v4081_v32 = vmul.f32 1.442695, %v4059_v4  ;;  %v4060_v50 = vsub.f32 %v12337_v51, %v4036_v33  ;;  %v12490_v51 = vpop.f32.mrf.mxu0  ;;  %v4875_v33 = vpop.f32.mrf.mxu1  ;;  %v12510_v4 = vadd.f32 %v12281_v61, %v11471_v6 }
 0xc0f   : > { %4310 = vmatmul.f32.vlgmr.msrb.gmra.mxu3 %v4149_v43 }
 0xc10   : > { %8037 = vpow2.f32 %v4081_v32  ;;  %v4083_v46 = vmul.f32 1.442695, %v4060_v50  ;;  %v12524_v50 = vadd.f32 %v12290_v28, %v11536_v45 }
 0xc12   : > { %8039 = vpow2.f32 %v4083_v46  ;;  %v12495_v46 = vadd.f32 %v12231_v58, %v11880_v40  ;;  %14576 = vst [vmem:[#allocation93_spill] sm:$0xff] %v12524_v50 }
 0xc13   : > { %v4038_v63 = vpop.xlane.xlu0 %4037 }
 0xc14   : > { %v4061_v59 = vsub.f32 %v12346_v26, %v4038_v63  ;;  %v12497_v26 = vpop.f32.mrf.mxu2 }
 0xc15   : > { %v4996_v8 = vpop.permute.xlu2 %4995  ;;  %14574 = vst [vmem:[#allocation91_spill] sm:$0xff] %v12497_v26 }
 0xc16   : > { %v12484_v38 = vpop.eup %8037  ;;  %v4085_v27 = vmul.f32 1.442695, %v4061_v59  ;;  %7503 = vmatmul.msk.f32.gmra.mxu2 %vm14217_vm1, %v4996_v8  ;;  %v12502_v59 = vadd.f32 %v12243_v13, %v11903_v35  ;;  %v12512_v58 = vpop.f32.mrf.mxu0  ;;  %v12519_v13 = vadd.f32 %v12252_v62, %v11953_v30  ;;  %v12536_v62 = vadd.f32 %v12297_v5, %v14547_v17 }
 0xc17   : > { %4113 = vadd.xlane.f32.xlu2 %v12484_v38  ;;  %v4878_v43 = vpop.f32.mrf.mxu1  ;;  %v12549_v5 = vadd.f32 %v12309_v23, %v14548_v12 }
 0xc18   : > { %v12488_v25 = vpop.eup %8039  ;;  %8041 = vpow2.f32 %v4085_v27  ;;  %v12531_v27 = vadd.f32 %v12260_v14, %v11974_v9  ;;  %14577 = vst [vmem:[#allocation94_spill] sm:$0xff] %v12536_v62  ;;  %v12543_v14 = vadd.f32 %v12267_v48, %v11496_v2 }
 0xc19   : > { %4115 = vadd.xlane.f32.xlu0 %v12488_v25 }
 0xc1c   : > { %4045 = vmax.xlane.f32.xlu1 %v12495_v46  ;;  %v12514_v32 = vpop.f32.mrf.mxu2 }
 0xc1d   : > { %14575 = vst [vmem:[#allocation92_spill] sm:$0xff] %v12514_v32 }
 0xc1e   : > { %v12505_v63 = vpop.eup %8041  ;;  %v12526_v61 = vpop.f32.mrf.mxu0 }
 0xc1f   : > { %4047 = vmax.xlane.f32.xlu2 %v12502_v59  ;;  %v4881_v8 = vpop.f32.mrf.mxu1 }
 0xc21   : > { %4117 = vadd.xlane.f32.xlu0 %v12505_v63 }
 0xc24   : > { %4619 = vmax.xlane.f32.xlu1 %v12510_v4  ;;  %v5116_v32 = vpop.f32.mrf.mxu2 }
 0xc26   : > { %v12538_v30 = vpop.f32.mrf.mxu0 }
 0xc27   : > { %4049 = vmax.xlane.f32.xlu2 %v12519_v13 }
 0xc2b   : > { %v4106_v28 = vpop.xlane.xlu0 %4105 }
 0xc2c   : > { %4621 = vmax.xlane.f32.xlu1 %v12524_v50  ;;  %v5119_v9 = vpop.f32.mrf.mxu2 }
 0xc2e   : > { %v4104_v26 = vpop.xlane.xlu1 %4103  ;;  %v4884_v18 = vpop.f32.mrf.mxu1 }
 0xc2f   : > { %8043 = vrcp.f32 %v4104_v26  ;;  %4051 = vmax.xlane.f32.xlu2 %v12531_v27  ;;  %v12555_v48 = vpop.f32.mrf.mxu0 }
 0xc30   : > { %8045 = vrcp.f32 %v4106_v28 }
 0xc34   : > { %4623 = vmax.xlane.f32.xlu1 %v12536_v62  ;;  %v12553_v62 = vadd.f32 %v5116_v32, %v11496_v2  ;;  %v5122_v23 = vpop.f32.mrf.mxu2 }
 0xc35   : > { %v8044_v35 = vpop.eup %8043 }
 0xc36   : > { %v4150_v26 = vmul.f32 %v8044_v35, %v12374_v16  ;;  %v8046_v50 = vpop.eup %8045 }
 0xc37   : > { %4617 = vmax.xlane.f32.xlu2 %v12543_v14  ;;  %v4151_v16 = vmul.f32 %v8046_v50, %v12366_v24  ;;  %v12569_v24 = vpop.f32.mrf.mxu0 }
 0xc38   : > { %4313 = vmatmul.f32.gmra.mxu3 %v4150_v26  ;;  %v5697_v26 = vld [vmem:[%s14060_s15 + $0x60] sm:$0xff] }
 0xc3a   : > { %v4887_v40 = vpop.f32.mrf.mxu1 }
 0xc3b   : > { %4890 = vmatpush.msra.mxu3 %v4887_v40  ;;  %v12562_v40 = vadd.f32 %v12311_v15, %v14549_v7  ;;  %v12577_v15 = vadd.f32 %v12320_v22, %v11675_v37 }
 0xc3c   : > { %4625 = vmax.xlane.f32.xlu1 %v12549_v5 }
 0xc3d   : > { %4891 = vmatpush.msra.mxu3 %v4884_v18  ;;  %v12566_v18 = vadd.f32 %v5119_v9, %v11471_v6  ;;  %v5125_v9 = vpop.f32.mrf.mxu2 }
 0xc3e   : > { %v4998_v35 = vpop.permute.xlu0 %4997 }
 0xc3f   : > { %4892 = vmatpush.msra.mxu3 %v4881_v8  ;;  %5164 = vmax.xlane.f32.xlu2 %v12553_v62  ;;  %v5428_v22 = vpop.f32.mrf.mxu0 }
 0xc40   : > { %7504 = vmatmul.msk.f32.gmra.mxu2 %vm14217_vm1, %v4998_v35  ;;  %4316 = vmatmul.f32.gmra.mxu3 %v4151_v16 }
 0xc41   : > { %4893 = vmatpush.msra.mxu3 %v4878_v43 }
 0xc43   : > { %4894 = vmatpush.msra.mxu3 %v4875_v33 }
 0xc44   : > { %4627 = vmax.xlane.f32.xlu1 %v12562_v40  ;;  %v4108_v2 = vpop.xlane.xlu1 %4107 }
 0xc45   : > { %8047 = vrcp.f32 %v4108_v2  ;;  %4895 = vmatpush.msra.mxu3 %v12478_v21  ;;  %v5700_v21 = vld [vmem:[%s14060_s15 + $0x78] sm:$0xff] }
 0xc46   : > { %v5000_v32 = vpop.permute.xlu0 %4999  ;;  %7539 = vmatpush.xpose.msk.msrb.mxu2 %vm14578_vm3, %v5700_v21  ;;  %v6038_v21 = vld [vmem:[%s14061_s16] sm:$0xff] }
 0xc47   : > { %4896 = vmatpush.msra.mxu3 %v12466_v29  ;;  %5166 = vmax.xlane.f32.xlu2 %v12566_v18 }
 0xc48   : > { %7505 = vmatmul.msk.f32.gmra.mxu2 %vm14217_vm1, %v5000_v32  ;;  %vm14579_vm1 = vmmov %vm14578_vm3  ;;  %v5693_v32 = vld [vmem:[%s14060_s15 + $0x40] sm:$0xff] }
 0xc49   : > { %4897 = vmatpush.msra.mxu3 %v12451_v19  ;;  %v12587_v19 = vadd.f32 %v5122_v23, %v11536_v45  ;;  %vm14589_vm0 = vmmov %vm14579_vm1 }
 0xc4b   : > { %v8048_v6 = vpop.eup %8047  ;;  %4898 = vmatpush.msra.mxu3 %v12443_v56 }
 0xc4c   : > { %4629 = vmax.xlane.f32.xlu1 %v12577_v15  ;;  %v4152_v29 = vmul.f32 %v8048_v6, %v12396_v34  ;;  %v4042_v43 = vpop.xlane.xlu1 %4041  ;;  %v12596_v34 = vadd.f32 %v12329_v31, %v11696_v54  ;;  %v5128_v31 = vpop.f32.mrf.mxu2  ;;  %v6039_v6 = vld [vmem:[%s14061_s16 + $0x8] sm:$0xff] }
 0xc4d   : > { %4899 = vmatpush.msra.mxu3 %v12436_v55  ;;  %v4063_v45 = vsub.f32 %v12409_v10, %v4042_v43 }
 0xc4e   : > { %v4040_v33 = vpop.xlane.xlu2 %4039  ;;  %4319 = vmatmul.f32.gmra.mxu3 %v4152_v29 }
 0xc4f   : > { %v4062_v56 = vsub.f32 %v12415_v0, %v4040_v33  ;;  %4900 = vmatpush.msra.mxu3 %v12424_v53  ;;  %5168 = vmax.xlane.f32.xlu2 %v12587_v19  ;;  %v5699_v0 = vld [vmem:[%s14060_s15 + $0x70] sm:$0xff]  ;;  %v12606_v53 = vadd.f32 %v5125_v9, %v14547_v17  ;;  %v4089_v55 = vmul.f32 1.442695, %v4063_v45 }
 0xc50   : > { %7540 = vmatpush.xpose.msk.msrb.mxu2 %vm14578_vm3, %v5699_v0 }
 0xc51   : > { %v4087_v50 = vmul.f32 1.442695, %v4062_v56  ;;  %4901 = vmatpush.msra.mxu3 %v12411_v36  ;;  %v5692_v56 = vld [vmem:[%s14060_s15 + $0x38] sm:$0xff] }
 0xc53   : > { %8049 = vpow2.f32 %v4087_v50  ;;  %4902 = vmatpush.msra.mxu3 %v12398_v47 }
 0xc54   : > { %4631 = vmax.xlane.f32.xlu1 %v12596_v34  ;;  %8051 = vpow2.f32 %v4089_v55 }
 0xc55   : > { %4903 = vmatpush.msra.mxu3 %v12388_v20  ;;  %v5698_v20 = vld [vmem:[%s14060_s15 + $0x68] sm:$0xff] }
 0xc56   : > { %v5431_v36 = vpop.f32.mrf.mxu0  ;;  %v4044_v47 = vpop.xlane.xlu2 %4043  ;;  %7541 = vmatpush.xpose.msk.msrb.mxu2 %vm14578_vm3, %v5698_v20  ;;  %vm14580_vm3 = vcmask 64512   ;;  %v5690_v20 = vld [vmem:[%s14060_s15 + $0x28] sm:$0xff] }
 0xc57   : > { %4904 = vmatpush.msra.mxu3 %v12380_v44  ;;  %5170 = vmax.xlane.f32.xlu2 %v12606_v53  ;;  %v4064_v17 = vsub.f32 %v12428_v42, %v4044_v47  ;;  %v12621_v44 = vadd.f32 %v5128_v31, %v14548_v12  ;;  %v14588_v47 = vld [vmem:[#allocation13_spill] sm:$0xff] }
 0xc59   : > { %v12611_v10 = vpop.eup %8049  ;;  %4905 = vmatpush.msra.mxu3 %v12370_v1  ;;  %v4091_v28 = vmul.f32 1.442695, %v4064_v17  ;;  %v5131_v1 = vpop.f32.mrf.mxu2 }
 0xc5a   : > { %4119 = vadd.xlane.f32.xlu0 %v12611_v10  ;;  %v12627_v42 = vpop.eup %8051  ;;  %7542 = vmatpush.xpose.msk.msrb.mxu2 %vm14579_vm1, %v5697_v26  ;;  %v12632_v35 = vadd.f32 %v5131_v1, %v14549_v7  ;;  %v5696_v7 = vld [vmem:[%s14060_s15 + $0x58] sm:$0xff]  ;;  %v5689_v1 = vld [vmem:[%s14060_s15 + $0x20] sm:$0xff] }
 0xc5b   : > { %8053 = vpow2.f32 %v4091_v28 }
 0xc5e   : > { %v5434_v8 = vpop.f32.mrf.mxu0  ;;  %7543 = vmatpush.xpose.msk.msrb.mxu2 %vm14579_vm1, %v5696_v7 }
 0xc5f   : > { %5437 = vmatpush.msra.mxu1 %v5434_v8  ;;  %5172 = vmax.xlane.f32.xlu2 %v12621_v44 }
 0xc61   : > { %5438 = vmatpush.msra.mxu1 %v5431_v36  ;;  %v12638_v16 = vpop.eup %8053  ;;  %v5134_v23 = vpop.f32.mrf.mxu2  ;;  %v5691_v36 = vld [vmem:[%s14060_s15 + $0x30] sm:$0xff] }
 0xc62   : > { %4121 = vadd.xlane.f32.xlu0 %v12627_v42  ;;  %v12648_v2 = vadd.f32 %v5134_v23, %v11675_v37  ;;  %v5695_v37 = vld [vmem:[%s14060_s15 + $0x50] sm:$0xff] }
 0xc63   : > { %5439 = vmatpush.msra.mxu1 %v5428_v22  ;;  %v14586_v22 = vld [vmem:[#allocation12_spill] sm:$0xff] }
 0xc64   : > { %v5002_v12 = vpop.permute.xlu1 %5001 }
 0xc65   : > { %7506 = vmatmul.msk.f32.gmra.mxu2 %vm14580_vm3, %v5002_v12  ;;  %5440 = vmatpush.msra.mxu1 %v12569_v24  ;;  %vm14581_vm3 = vmmov %vm14579_vm1  ;;  %v14591_v12 = vld [vmem:[#allocation14_spill] sm:$0xff] }
 0xc66   : > { %7544 = vmatpush.xpose.msk.msrb.mxu2 %vm14581_vm3, %v5695_v37  ;;  %vm14585_vm3 = vmmov %vm14579_vm1 }
 0xc67   : > { %5441 = vmatpush.msra.mxu1 %v12555_v48  ;;  %5174 = vmax.xlane.f32.xlu2 %v12632_v35  ;;  %v14584_v48 = vld [vmem:[#allocation88_spill] sm:$0xff] }
 0xc69   : > { %5442 = vmatpush.msra.mxu1 %v12538_v30 }
 0xc6a   : > { %4123 = vadd.xlane.f32.xlu0 %v12638_v16 }
 0xc6b   : > { %5443 = vmatpush.msra.mxu1 %v12526_v61  ;;  %v12657_v61 = vadd.f32 %v12341_v60, %v11718_v11  ;;  %v14582_v60 = vld [vmem:[#allocation83_spill] sm:$0xff] }
 0xc6d   : > { %5444 = vmatpush.msra.mxu1 %v12512_v58 }
 0xc6f   : > { %5445 = vmatpush.msra.mxu1 %v12490_v51  ;;  %5176 = vmax.xlane.f32.xlu2 %v12648_v2 }
 0xc71   : > { %5446 = vmatpush.msra.mxu1 %v12476_v39  ;;  %v4110_v30 = vpop.xlane.xlu0 %4109 }
 0xc72   : > { %8055 = vrcp.f32 %v4110_v30 }
 0xc73   : > { %5447 = vmatpush.msra.mxu1 %v12464_v41 }
 0xc75   : > { %5448 = vmatpush.msra.mxu1 %v12455_v49  ;;  %v14583_v49 = vld [vmem:[#allocation81_spill] sm:$0xff] }
 0xc77   : > { %5449 = vmatpush.msra.mxu1 %v12449_v52  ;;  %4633 = vmax.xlane.f32.xlu2 %v12657_v61  ;;  %v5694_v52 = vld [vmem:[%s14060_s15 + $0x48] sm:$0xff] }
 0xc78   : > { %v8056_v51 = vpop.eup %8055  ;;  %7545 = vmatpush.xpose.msk.msrb.mxu2 %vm14579_vm1, %v5694_v52 }
 0xc79   : > { %5450 = vmatpush.msra.mxu1 %v12440_v3  ;;  %v4153_v41 = vmul.f32 %v8056_v51, %v12458_v57  ;;  %v6041_v3 = vld [vmem:[%s14061_s16 + $0x18] sm:$0xff]  ;;  %v6040_v57 = vld [vmem:[%s14061_s16 + $0x10] sm:$0xff] }
 0xc7a   : > { %6058 = vmatpush.msrb.mxu0 %v6041_v3  ;;  %v5669_v3 = vld [vmem:[%s14059_s14] sm:$0xff] }
 0xc7b   : > { %4322 = vmatmul.f32.gmra.mxu3 %v4153_v41  ;;  %5451 = vmatpush.msra.mxu1 %v14582_v60  ;;  %v14594_v60 = vld [vmem:[#allocation15_spill] sm:$0xff] }
 0xc7c   : > { %v4112_v39 = vpop.xlane.xlu2 %4111  ;;  %6059 = vmatpush.msrb.mxu0 %v6040_v57  ;;  %7546 = vmatpush.xpose.msk.msrb.mxu2 %vm14585_vm3, %v5693_v32  ;;  %vm14587_vm3 = vmmov %vm14579_vm1 }
 0xc7d   : > { %8057 = vrcp.f32 %v4112_v39  ;;  %5452 = vmatpush.msra.mxu1 %v14583_v49  ;;  %v5686_v39 = vld [vmem:[%s14060_s15 + $0x8] sm:$0xff] }
 0xc7e   : > { %6060 = vmatpush.msrb.mxu0 %v6039_v6 }
 0xc80   : > { %6061 = vmatpush.msrb.mxu0 %v6038_v21  ;;  %7547 = vmatpush.xpose.msk.msrb.mxu2 %vm14587_vm3, %v5692_v56  ;;  %vm14590_vm3 = vmmov %vm14589_vm0 }
 0xc81   : > { %7571 = vmatmul.msk.f32.vlgmr.msrb.gmra.mxu0 %vm14579_vm1, %v14586_v22 }
 0xc83   : > { %v8058_v58 = vpop.eup %8057 }
 0xc84   : > { %v4154_v24 = vmul.f32 %v8058_v58, %v14584_v48  ;;  %7548 = vmatpush.xpose.msk.msrb.mxu2 %vm14589_vm0, %v5691_v36  ;;  %v14603_v36 = vld [vmem:[#allocation18_spill] sm:$0xff] }
 0xc86   : > { %4325 = vmatmul.f32.gmra.mxu3 %v4154_v24  ;;  %v14597_v24 = vld [vmem:[#allocation16_spill] sm:$0xff] }
 0xc88   : > { %7549 = vmatpush.xpose.msk.msrb.mxu2 %vm14590_vm3, %v5690_v20  ;;  %vm14593_vm3 = vmmov %vm14589_vm0 }
 0xc89   : > { %7572 = vmatmul.msk.f32.gmra.mxu0 %vm14579_vm1, %v14588_v47  ;;  %vm14592_vm1 = vmmov %vm14589_vm0 }
 0xc8a   : > { %v4114_v9 = vpop.xlane.xlu2 %4113 }
 0xc8b   : > { %8059 = vrcp.f32 %v4114_v9 }
 0xc8c   : > { %v4116_v29 = vpop.xlane.xlu0 %4115  ;;  %7550 = vmatpush.xpose.msk.msrb.mxu2 %vm14592_vm1, %v5689_v1  ;;  %vm14595_vm1 = vmmov %vm14589_vm0 }
 0xc8d   : > { %8061 = vrcp.f32 %v4116_v29  ;;  %v14600_v29 = vld [vmem:[#allocation17_spill] sm:$0xff] }
 0xc8f   : > { %v4046_v33 = vpop.xlane.xlu1 %4045 }
 0xc90   : > { %v4065_v43 = vsub.f32 %v12495_v46, %v4046_v33  ;;  %v14601_v33 = vld [vmem:[#allocation93_spill] sm:$0xff] }
 0xc91   : > { %v8060_v50 = vpop.eup %8059  ;;  %7573 = vmatmul.msk.f32.gmra.mxu0 %vm14589_vm0, %v14591_v12 }
 0xc92   : > { %v4093_v45 = vmul.f32 1.442695, %v4065_v43  ;;  %v4048_v0 = vpop.xlane.xlu2 %4047  ;;  %v4155_v31 = vmul.f32 %v8060_v50, %v12484_v38  ;;  %v5670_v43 = vld [vmem:[%s14059_s14 + $0x8] sm:$0xff] }
 0xc93   : > { %v4066_v55 = vsub.f32 %v12502_v59, %v4048_v0  ;;  %v8062_v17 = vpop.eup %8061 }
 0xc94   : > { %8063 = vpow2.f32 %v4093_v45  ;;  %4328 = vmatmul.f32.gmra.mxu3 %v4155_v31  ;;  %v4118_v46 = vpop.xlane.xlu0 %4117  ;;  %v4156_v59 = vmul.f32 %v8062_v17, %v12488_v25  ;;  %v5688_v25 = vld [vmem:[%s14060_s15 + $0x18] sm:$0xff]  ;;  %v14605_v17 = vld [vmem:[#allocation94_spill] sm:$0xff] }
 0xc95   : > { %v4095_v38 = vmul.f32 1.442695, %v4066_v55  ;;  %8065 = vrcp.f32 %v4118_v46  ;;  %7551 = vmatpush.xpose.msk.msrb.mxu2 %vm14593_vm3, %v5688_v25  ;;  %vm14596_vm3 = vmmov %vm14589_vm0  ;;  %v5671_v46 = vld [vmem:[%s14059_s14 + $0x10] sm:$0xff] }
 0xc97   : > { %8067 = vpow2.f32 %v4095_v38 }
 0xc99   : > { %7574 = vmatmul.msk.f32.gmra.mxu0 %vm14589_vm0, %v14594_v60  ;;  %v14609_v60 = vld [vmem:[#allocation20_spill] sm:$0xff] }
 0xc9a   : > { %v12710_v8 = vpop.eup %8063  ;;  %v4050_v28 = vpop.xlane.xlu2 %4049 }
 0xc9b   : > { %4125 = vadd.xlane.f32.xlu0 %v12710_v8  ;;  %v4067_v26 = vsub.f32 %v12519_v13, %v4050_v28  ;;  %v8066_v23 = vpop.eup %8065  ;;  %v5687_v13 = vld [vmem:[%s14060_s15 + $0x10] sm:$0xff] }
 0xc9c   : > { %4331 = vmatmul.f32.gmra.mxu3 %v4156_v59  ;;  %v4157_v51 = vmul.f32 %v8066_v23, %v12505_v63  ;;  %7552 = vmatpush.xpose.msk.msrb.mxu2 %vm14595_vm1, %v5687_v13  ;;  %v4620_v63 = vpop.xlane.xlu1 %4619  ;;  %vm14598_vm1 = vmmov %vm14589_vm0  ;;  %v5672_v23 = vld [vmem:[%s14059_s14 + $0x18] sm:$0xff] }
 0xc9d   : > { %v4097_v7 = vmul.f32 1.442695, %v4067_v26  ;;  %v12725_v30 = vpop.eup %8067  ;;  %v14606_v26 = vld [vmem:[#allocation19_spill] sm:$0xff] }
 0xc9f   : > { %8069 = vpow2.f32 %v4097_v7 }
 0xca0   : > { %7553 = vmatpush.xpose.msk.msrb.mxu2 %vm14596_vm3, %v5686_v39  ;;  %vm14599_vm3 = vmmov %vm14589_vm0 }
 0xca1   : > { %7575 = vmatmul.msk.f32.gmra.mxu0 %vm14589_vm0, %v14597_v24 }
 0xca2   : > { %v4052_v37 = vpop.xlane.xlu2 %4051 }
 0xca3   : > { %4127 = vadd.xlane.f32.xlu0 %v12725_v30  ;;  %v4068_v41 = vsub.f32 %v12531_v27, %v4052_v37  ;;  %v5685_v27 = vld [vmem:[%s14060_s15] sm:$0xff] }
 0xca4   : > { %4334 = vmatmul.f32.gmra.mxu3 %v4157_v51  ;;  %7554 = vmatpush.xpose.msk.msrb.mxu2 %vm14598_vm1, %v5685_v27  ;;  %v4622_v6 = vpop.xlane.xlu1 %4621  ;;  %vm14602_vm1 = vmmov %vm14589_vm0 }
 0xca5   : > { %v4099_v49 = vmul.f32 1.442695, %v4068_v41  ;;  %v12740_v52 = vpop.eup %8069  ;;  %v4651_v56 = vsub.f32 %v14601_v33, %v4622_v6  ;;  %v14613_v6 = vld [vmem:[#allocation49_spill] sm:$0xff] }
 0xca7   : > { %8071 = vpow2.f32 %v4099_v49  ;;  %7555 = vmatmul.msk.f32.vlgmr.msrb.gmra.mxu2 %vm14599_vm3, %v5669_v3  ;;  %v4669_v45 = vmul.f32 1.442695, %v4651_v56  ;;  %vm14604_vm3 = vmmov %vm14589_vm0 }
 0xca9   : > { %7576 = vmatmul.msk.f32.gmra.mxu0 %vm14589_vm0, %v14600_v29 }
 0xcaa   : > { %v4618_v58 = vpop.xlane.xlu2 %4617 }
 0xcab   : > { %4129 = vadd.xlane.f32.xlu0 %v12740_v52  ;;  %v4649_v48 = vsub.f32 %v12543_v14, %v4618_v58  ;;  %v4650_v14 = vsub.f32 %v12510_v4, %v4620_v63  ;;  %v14612_v58 = vld [vmem:[#allocation57_spill] sm:$0xff] }
 0xcac   : > { %v4624_v31 = vpop.xlane.xlu1 %4623 }
 0xcad   : > { %v4665_v57 = vmul.f32 1.442695, %v4649_v48  ;;  %v12754_v32 = vpop.eup %8071  ;;  %v4667_v50 = vmul.f32 1.442695, %v4650_v14  ;;  %v4652_v20 = vsub.f32 %v14605_v17, %v4624_v31  ;;  %v14617_v31 = vld [vmem:[#allocation52_spill] sm:$0xff]  ;;  %v14619_v17 = vld [vmem:[#allocation22_spill] sm:$0xff] }
 0xcaf   : > { %8073 = vpow2.f32 %v4665_v57  ;;  %7556 = vmatmul.msk.f32.gmra.mxu2 %vm14602_vm1, %v5670_v43  ;;  %v4671_v59 = vmul.f32 1.442695, %v4652_v20  ;;  %vm14607_vm1 = vmmov %vm14589_vm0 }
 0xcb1   : > { %7577 = vmatmul.msk.f32.gmra.mxu0 %vm14604_vm3, %v14603_v36  ;;  %vm14608_vm3 = vmmov %vm14589_vm0  ;;  %v14618_v36 = vld [vmem:[#allocation62_spill] sm:$0xff] }
 0xcb2   : > { %v5165_v21 = vpop.xlane.xlu2 %5164 }
 0xcb3   : > { %v5196_v9 = vsub.f32 %v12553_v62, %v5165_v21  ;;  %4131 = vadd.xlane.f32.xlu0 %v12754_v32  ;;  %v14614_v21 = vld [vmem:[#allocation70_spill] sm:$0xff] }
 0xcb4   : > { %v4626_v25 = vpop.xlane.xlu1 %4625 }
 0xcb5   : > { %v5212_v22 = vmul.f32 1.442695, %v5196_v9  ;;  %v12766_v62 = vpop.eup %8073  ;;  %v12821_v9 = vadd.f32 %v14614_v21, %v14613_v6 }
 0xcb7   : > { %8075 = vpow2.f32 %v5212_v22  ;;  %7557 = vmatmul.msk.f32.gmra.mxu2 %vm14589_vm0, %v5671_v46  ;;  %v14615_v22 = vld [vmem:[#allocation21_spill] sm:$0xff] }
 0xcb8   : > { %8077 = vpow2.f32 %v4667_v50  ;;  %v5674_v50 = vld [vmem:[%s14059_s14 + $0x28] sm:$0xff] }
 0xcb9   : > { %8079 = vpow2.f32 %v4669_v45  ;;  %7578 = vmatmul.msk.f32.gmra.mxu0 %vm14607_vm1, %v14606_v26  ;;  %vm14610_vm1 = vmmov %vm14589_vm0 }
 0xcba   : > { %v5167_v0 = vpop.xlane.xlu2 %5166 }
 0xcbb   : > { %v5197_v4 = vsub.f32 %v12566_v18, %v5167_v0  ;;  %4697 = vadd.xlane.f32.xlu0 %v12766_v62  ;;  %v5137_v18 = vpop.f32.mrf.mxu2 }
 0xcbc   : > { %v12796_v7 = vadd.f32 %v5137_v18, %v11696_v54  ;;  %v5673_v54 = vld [vmem:[%s14059_s14 + $0x20] sm:$0xff]  ;;  %v4628_v24 = vpop.xlane.xlu1 %4627 }
 0xcbd   : > { %v12772_v55 = vpop.eup %8075  ;;  %v5214_v47 = vmul.f32 1.442695, %v5197_v4  ;;  %v4654_v33 = vsub.f32 %v12562_v40, %v4628_v24 }
 0xcbe   : > { %5244 = vadd.xlane.f32.xlu1 %v12772_v55  ;;  %v12780_v38 = vpop.eup %8077 }
 0xcbf   : > { %8081 = vpow2.f32 %v5214_v47  ;;  %v12783_v1 = vpop.eup %8079  ;;  %7558 = vmatmul.msk.f32.gmra.mxu2 %vm14608_vm3, %v5672_v23  ;;  %vm14616_vm3 = vmmov %vm14589_vm0  ;;  %v4675_v40 = vmul.f32 1.442695, %v4654_v33  ;;  %v12843_v47 = vadd.f32 %v14618_v36, %v14617_v31 }
 0xcc0   : > { %8083 = vpow2.f32 %v4671_v59 }
 0xcc1   : > { %7579 = vmatmul.msk.f32.gmra.mxu0 %vm14589_vm0, %v14609_v60 }
 0xcc2   : > { %v5169_v28 = vpop.xlane.xlu2 %5168 }
 0xcc3   : > { %4699 = vadd.xlane.f32.xlu0 %v12780_v38  ;;  %v5140_v37 = vpop.f32.mrf.mxu2  ;;  %v5198_v41 = vsub.f32 %v12587_v19, %v5169_v28  ;;  %v14611_v19 = vld [vmem:[#allocation43_spill] sm:$0xff]  ;;  %v5675_v28 = vld [vmem:[%s14059_s14 + $0x30] sm:$0xff] }
 0xcc4   : > { %v12800_v13 = vadd.f32 %v5140_v37, %v11718_v11  ;;  %v12816_v27 = vadd.f32 %v14612_v58, %v14611_v19  ;;  %v4630_v46 = vpop.xlane.xlu1 %4629  ;;  %v14623_v58 = vld [vmem:[#allocation24_spill] sm:$0xff] }
 0xcc5   : > { %v12787_v12 = vpop.eup %8081  ;;  %v5216_v49 = vmul.f32 1.442695, %v5198_v41  ;;  %v4655_v26 = vsub.f32 %v12577_v15, %v4630_v46  ;;  %v14622_v41 = vld [vmem:[#allocation23_spill] sm:$0xff]  ;;  %v14633_v46 = vld [vmem:[#allocation26_spill] sm:$0xff] }
 0xcc6   : > { %4701 = vadd.xlane.f32.xlu1 %v12783_v1  ;;  %5246 = vadd.xlane.f32.xlu2 %v12787_v12  ;;  %v12805_v39 = vpop.eup %8083 }
 0xcc7   : > { %7559 = vmatmul.msk.f32.gmra.mxu2 %vm14610_vm1, %v5673_v54  ;;  %vm14620_vm1 = vmmov %vm14589_vm0  ;;  %v4677_v37 = vmul.f32 1.442695, %v4655_v26 }
 0xcc9   : > { %7580 = vmatmul.msk.f32.gmra.mxu0 %vm14616_vm3, %v14615_v22  ;;  %vm14621_vm3 = vmmov %vm14589_vm0  ;;  %v14628_v22 = vld [vmem:[#allocation36_spill] sm:$0xff] }
 0xcca   : > { %v5171_v51 = vpop.xlane.xlu2 %5170 }
 0xccb   : > { %5178 = vmax.xlane.f32.xlu0 %v12796_v7  ;;  %v5199_v11 = vsub.f32 %v12606_v53, %v5171_v51  ;;  %v5143_v48 = vpop.f32.mrf.mxu2  ;;  %v4653_v53 = vsub.f32 %v12549_v5, %v4626_v25 }
 0xccc   : > { %v12824_v14 = vadd.f32 %v5143_v48, %v14611_v19 }
 0xccd   : > { %v4120_v63 = vpop.xlane.xlu0 %4119  ;;  %v5218_v3 = vmul.f32 1.442695, %v5199_v11  ;;  %v4673_v45 = vmul.f32 1.442695, %v4653_v53  ;;  %v4632_v53 = vpop.xlane.xlu1 %4631 }
 0xcce   : > { %8085 = vrcp.f32 %v4120_v63  ;;  %5180 = vmax.xlane.f32.xlu1 %v12800_v13  ;;  %4703 = vadd.xlane.f32.xlu2 %v12805_v39 }
 0xccf   : > { %8087 = vpow2.f32 %v5216_v49  ;;  %7560 = vmatmul.msk.f32.gmra.mxu2 %vm14589_vm0, %v5674_v50  ;;  %v14629_v50 = vld [vmem:[#allocation25_spill] sm:$0xff] }
 0xcd1   : > { %7581 = vmatmul.msk.f32.gmra.mxu0 %vm14620_vm1, %v14619_v17  ;;  %vm14624_vm1 = vmmov %vm14589_vm0 }
 0xcd2   : > { %v5173_v29 = vpop.xlane.xlu2 %5172 }
 0xcd3   : > { %4635 = vmax.xlane.f32.xlu0 %v12816_v27  ;;  %v5200_v5 = vsub.f32 %v12621_v44, %v5173_v29  ;;  %v5146_v59 = vpop.f32.mrf.mxu2 }
 0xcd4   : > { %v8086_v57 = vpop.eup %8085  ;;  %v12870_v63 = vadd.f32 %v5146_v59, %v14613_v6 }
 0xcd5   : > { %v4122_v56 = vpop.xlane.xlu0 %4121  ;;  %v4158_v43 = vmul.f32 %v8086_v57, %v12611_v10  ;;  %v12838_v0 = vpop.eup %8087  ;;  %v5220_v10 = vmul.f32 1.442695, %v5200_v5  ;;  %v14626_v57 = vld [vmem:[#allocation66_spill] sm:$0xff] }
 0xcd6   : > { %8089 = vrcp.f32 %v4122_v56  ;;  %4637 = vmax.xlane.f32.xlu1 %v12821_v9  ;;  %5182 = vmax.xlane.f32.xlu2 %v12824_v14 }
 0xcd7   : > { %8091 = vpow2.f32 %v5218_v3  ;;  %4337 = vmatmul.f32.gmra.mxu3 %v4158_v43  ;;  %7561 = vmatmul.msk.f32.gmra.mxu2 %vm14621_vm3, %v5675_v28  ;;  %v14625_v3 = vld [vmem:[#allocation42_spill] sm:$0xff]  ;;  %v4656_v43 = vsub.f32 %v12596_v34, %v4632_v53  ;;  %vm14630_vm3 = vmmov %vm14589_vm0 }
 0xcd8   : > { %8093 = vpow2.f32 %v4673_v45  ;;  %v12886_v6 = vadd.f32 %v14626_v57, %v14625_v3 }
 0xcd9   : > { %8095 = vpow2.f32 %v4675_v40  ;;  %7582 = vmatmul.msk.f32.gmra.mxu0 %vm14589_vm0, %v14622_v41  ;;  %v4679_v45 = vmul.f32 1.442695, %v4656_v43  ;;  %v5676_v40 = vld [vmem:[%s14059_s14 + $0x38] sm:$0xff]  ;;  %v14637_v41 = vld [vmem:[#allocation76_spill] sm:$0xff] }
 0xcda   : > { %v5175_v23 = vpop.xlane.xlu2 %5174 }
 0xcdb   : > { %5248 = vadd.xlane.f32.xlu0 %v12838_v0  ;;  %v5149_v54 = vpop.f32.mrf.mxu2  ;;  %v5201_v19 = vsub.f32 %v12632_v35, %v5175_v23  ;;  %v14627_v35 = vld [vmem:[#allocation53_spill] sm:$0xff] }
 0xcdc   : > { %v8090_v4 = vpop.eup %8089  ;;  %v12874_v49 = vadd.f32 %v5149_v54, %v14617_v31  ;;  %v12891_v33 = vadd.f32 %v14628_v22, %v14627_v35  ;;  %v14632_v31 = vld [vmem:[#allocation77_spill] sm:$0xff] }
 0xcdd   : > { %v12847_v44 = vpop.eup %8091  ;;  %v4124_v20 = vpop.xlane.xlu0 %4123  ;;  %v4159_v18 = vmul.f32 %v8090_v4, %v12627_v42  ;;  %v5222_v24 = vmul.f32 1.442695, %v5201_v19  ;;  %v14631_v4 = vld [vmem:[#allocation55_spill] sm:$0xff] }
 0xcde   : > { %8097 = vrcp.f32 %v4124_v20  ;;  %4639 = vmax.xlane.f32.xlu2 %v12843_v47  ;;  %5250 = vadd.xlane.f32.xlu1 %v12847_v44  ;;  %v12857_v25 = vpop.eup %8093  ;;  %v12911_v36 = vadd.f32 %v14632_v31, %v14631_v4 }
 0xcdf   : > { %8099 = vpow2.f32 %v5220_v10  ;;  %4340 = vmatmul.f32.gmra.mxu3 %v4159_v18  ;;  %v12859_v42 = vpop.eup %8095  ;;  %7562 = vmatmul.msk.f32.gmra.mxu2 %vm14589_vm0, %v5676_v40  ;;  %v14635_v18 = vld [vmem:[#allocation27_spill] sm:$0xff] }
 0xce0   : > { %8101 = vpow2.f32 %v4677_v37 }
 0xce1   : > { %7583 = vmatmul.msk.f32.gmra.mxu0 %vm14624_vm1, %v14623_v58  ;;  %8103 = vpow2.f32 %v5222_v24  ;;  %vm14634_vm1 = vmmov %vm14589_vm0 }
 0xce2   : > { %v5177_v11 = vpop.xlane.xlu2 %5176 }
 0xce3   : > { %4705 = vadd.xlane.f32.xlu0 %v12857_v25  ;;  %v5202_v48 = vsub.f32 %v12648_v2, %v5177_v11  ;;  %v5152_v21 = vpop.f32.mrf.mxu2 }
 0xce4   : > { %v8098_v51 = vpop.eup %8097  ;;  %v12894_v56 = vadd.f32 %v5152_v21, %v14625_v3 }
 0xce5   : > { %v12864_v60 = vpop.eup %8099  ;;  %v4160_v15 = vmul.f32 %v8098_v51, %v12638_v16  ;;  %v5224_v29 = vmul.f32 1.442695, %v5202_v48 }
 0xce6   : > { %4707 = vadd.xlane.f32.xlu1 %v12859_v42  ;;  %5252 = vadd.xlane.f32.xlu2 %v12864_v60  ;;  %v12879_v16 = vpop.eup %8101 }
 0xce7   : > { %4343 = vmatmul.f32.gmra.mxu3 %v4160_v15  ;;  %8105 = vpow2.f32 %v5224_v29  ;;  %v12906_v34 = vpop.eup %8103  ;;  %v14638_v15 = vld [vmem:[#allocation79_spill] sm:$0xff] }
 0xce8   : > { %8107 = vpow2.f32 %v4679_v45  ;;  %v12939_v54 = vadd.f32 %v14638_v15, %v14637_v41 }
 0xce9   : > { %7584 = vmatmul.msk.f32.gmra.mxu0 %vm14630_vm3, %v14629_v50  ;;  %vm14636_vm3 = vmmov %vm14589_vm0 }
 0xcea   : > { %v4634_v2 = vpop.xlane.xlu2 %4633 }
 0xceb   : > { %5184 = vmax.xlane.f32.xlu0 %v12870_v63  ;;  %v4657_v5 = vsub.f32 %v12657_v61, %v4634_v2  ;;  %v5155_v17 = vpop.f32.mrf.mxu2 }
 0xcec   : > { %v12928_v59 = vadd.f32 %v5155_v17, %v14627_v35 }
 0xced   : > { %v4681_v10 = vmul.f32 1.442695, %v4657_v5  ;;  %v12915_v61 = vpop.eup %8105 }
 0xcee   : > { %5186 = vmax.xlane.f32.xlu1 %v12874_v49  ;;  %4709 = vadd.xlane.f32.xlu2 %v12879_v16  ;;  %v12919_v20 = vpop.eup %8107 }
 0xcef   : > { %8109 = vpow2.f32 %v4681_v10 }
 0xcf1   : > { %7585 = vmatmul.msk.f32.gmra.mxu0 %vm14634_vm1, %v14633_v46  ;;  %vm14639_vm1 = vmmov %vm14589_vm0 }
 0xcf3   : > { %4641 = vmax.xlane.f32.xlu0 %v12886_v6  ;;  %v5158_v26 = vpop.f32.mrf.mxu2 }
 0xcf4   : > { %v12934_v37 = vadd.f32 %v5158_v26, %v14631_v4  ;;  %v5677_v4 = vld [vmem:[%s14059_s14 + $0x40] sm:$0xff] }
 0xcf5   : > { %v12924_v28 = vpop.eup %8109  ;;  %7563 = vmatmul.msk.f32.gmra.mxu2 %vm14589_vm0, %v5677_v4 }
 0xcf6   : > { %4643 = vmax.xlane.f32.xlu1 %v12891_v33  ;;  %5188 = vmax.xlane.f32.xlu2 %v12894_v56 }
 0xcf9   : > { %7586 = vmatmul.msk.f32.gmra.mxu0 %vm14636_vm3, %v14635_v18  ;;  %vm14640_vm3 = vmmov %vm14589_vm0 }
 0xcfb   : > { %5254 = vadd.xlane.f32.xlu0 %v12906_v34  ;;  %v5161_v11 = vpop.f32.mrf.mxu2 }
 0xcfc   : > { %v12945_v58 = vadd.f32 %v5161_v11, %v14637_v41 }
 0xcfe   : > { %4645 = vmax.xlane.f32.xlu2 %v12911_v36  ;;  %5256 = vadd.xlane.f32.xlu1 %v12915_v61  ;;  %v12930_v23 = vpop.f32.mrf.mxu0 }
 0xd03   : > { %4711 = vadd.xlane.f32.xlu0 %v12919_v20 }
 0xd06   : > { %4713 = vadd.xlane.f32.xlu1 %v12924_v28  ;;  %v12941_v19 = vpop.f32.mrf.mxu0 }
 0xd0b   : > { %5190 = vmax.xlane.f32.xlu0 %v12928_v59 }
 0xd0e   : > { %5192 = vmax.xlane.f32.xlu1 %v12934_v37  ;;  %v4126_v51 = vpop.xlane.xlu0 %4125  ;;  %v12949_v57 = vpop.f32.mrf.mxu0 }
 0xd0f   : > { %8111 = vrcp.f32 %v4126_v51  ;;  %v5678_v51 = vld [vmem:[%s14059_s14 + $0x48] sm:$0xff] }
 0xd10   : > { %7564 = vmatmul.msk.f32.gmra.mxu2 %vm14639_vm1, %v5678_v51  ;;  %vm14641_vm1 = vmmov %vm14589_vm0 }
 0xd13   : > { %4647 = vmax.xlane.f32.xlu0 %v12939_v54 }
 0xd15   : > { %v8112_v48 = vpop.eup %8111 }
 0xd16   : > { %5194 = vmax.xlane.f32.xlu1 %v12945_v58  ;;  %v4128_v24 = vpop.xlane.xlu0 %4127  ;;  %v4161_v3 = vmul.f32 %v8112_v48, %v12710_v8  ;;  %v12952_v35 = vpop.f32.mrf.mxu0 }
 0xd17   : > { %8113 = vrcp.f32 %v4128_v24 }
 0xd18   : > { %4346 = vmatmul.f32.gmra.mxu3 %v4161_v3 }
 0xd1d   : > { %v8114_v21 = vpop.eup %8113 }
 0xd1e   : > { %v4130_v53 = vpop.xlane.xlu0 %4129  ;;  %v4162_v29 = vmul.f32 %v8114_v21, %v12725_v30  ;;  %v12955_v50 = vpop.f32.mrf.mxu0 }
 0xd1f   : > { %8115 = vrcp.f32 %v4130_v53 }
 0xd20   : > { %4349 = vmatmul.f32.gmra.mxu3 %v4162_v29 }
 0xd25   : > { %v8116_v22 = vpop.eup %8115 }
 0xd26   : > { %v4132_v43 = vpop.xlane.xlu0 %4131  ;;  %v4163_v2 = vmul.f32 %v8116_v22, %v12740_v52  ;;  %v12958_v30 = vpop.f32.mrf.mxu0 }
 0xd27   : > { %8117 = vrcp.f32 %v4132_v43 }
 0xd28   : > { %4352 = vmatmul.f32.gmra.mxu3 %v4163_v2 }
 0xd2d   : > { %v8118_v8 = vpop.eup %8117 }
 0xd2e   : > { %v4698_v5 = vpop.xlane.xlu0 %4697  ;;  %v4164_v45 = vmul.f32 %v8118_v8, %v12754_v32  ;;  %v12966_v26 = vpop.f32.mrf.mxu0 }
 0xd2f   : > { %8119 = vrcp.f32 %v4698_v5 }
 0xd30   : > { %4355 = vmatmul.f32.gmra.mxu3 %v4164_v45 }
 0xd31   : > { %v5245_v40 = vpop.xlane.xlu1 %5244 }
 0xd32   : > { %8121 = vrcp.f32 %v5245_v40 }
 0xd35   : > { %v8120_v10 = vpop.eup %8119 }
 0xd36   : > { %v4745_v52 = vmul.f32 %v8120_v10, %v12766_v62  ;;  %v4700_v31 = vpop.xlane.xlu0 %4699  ;;  %v12978_v22 = vpop.f32.mrf.mxu0 }
 0xd37   : > { %8123 = vrcp.f32 %v4700_v31 }
 0xd38   : > { %v8122_v46 = vpop.eup %8121  ;;  %4906 = vmatmul.f32.vlgmr.msra.gmra.mxu3 %v4745_v52 }
 0xd39   : > { %v5292_v32 = vmul.f32 %v8122_v46, %v12772_v55  ;;  %v4702_v17 = vpop.xlane.xlu1 %4701  ;;  %v5247_v18 = vpop.xlane.xlu2 %5246 }
 0xd3a   : > { %8125 = vrcp.f32 %v5247_v18  ;;  %v12974_v55 = vpop.f32.mrf.mxu2 }
 0xd3b   : > { %5453 = vmatmul.f32.vlgmr.msra.gmra.mxu1 %v5292_v32  ;;  %8127 = vrcp.f32 %v4702_v17  ;;  %v5680_v32 = vld [vmem:[%s14059_s14 + $0x58] sm:$0xff] }
 0xd3d   : > { %v8124_v41 = vpop.eup %8123 }
 0xd3e   : > { %v5179_v62 = vpop.xlane.xlu0 %5178  ;;  %v4746_v15 = vmul.f32 %v8124_v41, %v12780_v38  ;;  %v12992_v52 = vpop.f32.mrf.mxu0 }
 0xd3f   : > { %v5203_v11 = vsub.f32 %v12796_v7, %v5179_v62  ;;  %v5679_v7 = vld [vmem:[%s14059_s14 + $0x50] sm:$0xff] }
 0xd40   : > { %4909 = vmatmul.f32.gmra.mxu3 %v4746_v15  ;;  %v8126_v48 = vpop.eup %8125  ;;  %7565 = vmatmul.msk.f32.gmra.mxu2 %vm14640_vm3, %v5679_v7  ;;  %vm14645_vm3 = vmmov %vm14589_vm0 }
 0xd41   : > { %v5226_v24 = vmul.f32 1.442695, %v5203_v11  ;;  %v5181_v3 = vpop.xlane.xlu1 %5180  ;;  %v4704_v21 = vpop.xlane.xlu2 %4703  ;;  %v5293_v29 = vmul.f32 %v8126_v48, %v12787_v12 }
 0xd42   : > { %v5204_v53 = vsub.f32 %v12800_v13, %v5181_v3  ;;  %v8128_v43 = vpop.eup %8127  ;;  %v12990_v4 = vpop.f32.mrf.mxu2 }
 0xd43   : > { %8129 = vpow2.f32 %v5226_v24  ;;  %5456 = vmatmul.f32.gmra.mxu1 %v5293_v29  ;;  %v4747_v8 = vmul.f32 %v8128_v43, %v12783_v1  ;;  %v5681_v24 = vld [vmem:[%s14059_s14 + $0x60] sm:$0xff] }
 0xd44   : > { %v5228_v38 = vmul.f32 1.442695, %v5204_v53  ;;  %8131 = vrcp.f32 %v4704_v21  ;;  %v5862_v21 = vmax.f32 %v12974_v55, 0.0  ;;  %v5682_v55 = vld [vmem:[%s14059_s14 + $0x68] sm:$0xff] }
 0xd46   : > { %8133 = vpow2.f32 %v5228_v38  ;;  %v4636_v2 = vpop.xlane.xlu0 %4635  ;;  %v13007_v15 = vpop.f32.mrf.mxu0 }
 0xd47   : > { %v4658_v13 = vsub.f32 %v12816_v27, %v4636_v2 }
 0xd48   : > { %4912 = vmatmul.f32.gmra.mxu3 %v4747_v8  ;;  %7566 = vmatmul.msk.f32.gmra.mxu2 %vm14589_vm0, %v5680_v32 }
 0xd49   : > { %v12986_v12 = vpop.eup %8129  ;;  %v4683_v5 = vmul.f32 1.442695, %v4658_v13  ;;  %v4638_v45 = vpop.xlane.xlu1 %4637  ;;  %v13027_v13 = vsel %vm11484_vm5, %v5862_v21, -1e+09  ;;  %vm14643_vm5 = vmmov %vm14589_vm0 }
 0xd4a   : > { %v5183_v40 = vpop.xlane.xlu2 %5182  ;;  %5258 = vadd.xlane.f32.xlu2 %v12986_v12  ;;  %v8132_v31 = vpop.eup %8131  ;;  %v4659_v1 = vsub.f32 %v12821_v9, %v4638_v45 }
 0xd4b   : > { %v5205_v10 = vsub.f32 %v12824_v14, %v5183_v40  ;;  %8135 = vpow2.f32 %v4683_v5  ;;  %v4748_v17 = vmul.f32 %v8132_v31, %v12805_v39  ;;  %v13009_v48 = vpop.f32.mrf.mxu2  ;;  %v5863_v31 = vmax.f32 %v12990_v4, 0.0 }
 0xd4c   : > { %v12995_v46 = vpop.eup %8133  ;;  %v4685_v18 = vmul.f32 1.442695, %v4659_v1 }
 0xd4d   : > { %v5230_v27 = vmul.f32 1.442695, %v5205_v10  ;;  %5260 = vadd.xlane.f32.xlu0 %v12995_v46 }
 0xd4e   : > { %v5249_v14 = vpop.xlane.xlu0 %5248  ;;  %v13023_v7 = vpop.f32.mrf.mxu0 }
 0xd4f   : > { %8137 = vpow2.f32 %v5230_v27 }
 0xd50   : > { %8139 = vrcp.f32 %v5249_v14  ;;  %4915 = vmatmul.f32.gmra.mxu3 %v4748_v17  ;;  %7567 = vmatmul.msk.f32.gmra.mxu2 %vm14641_vm1, %v5681_v24  ;;  %v5864_v24 = vmax.f32 %v13009_v48, 0.0  ;;  %vm14682_vm1 = vmmov %vm14589_vm0 }
 0xd51   : > { %v13003_v51 = vpop.eup %8135  ;;  %v5251_v9 = vpop.xlane.xlu1 %5250  ;;  %8141 = vpow2.f32 %v4685_v18 }
 0xd52   : > { %v4640_v41 = vpop.xlane.xlu2 %4639  ;;  %4715 = vadd.xlane.f32.xlu2 %v13003_v51  ;;  %8143 = vrcp.f32 %v5251_v9 }
 0xd53   : > { %v4660_v62 = vsub.f32 %v12843_v47, %v4640_v41  ;;  %v13037_v10 = vpop.f32.mrf.mxu2 }
 0xd55   : > { %v4687_v11 = vmul.f32 1.442695, %v4660_v62  ;;  %v13011_v39 = vpop.eup %8137  ;;  %v13048_v62 = vsel %vm11459_vm4, %v5863_v31, -1e+09  ;;  %vm14649_vm4 = vmmov %vm14589_vm0 }
 0xd56   : > { %v8140_v3 = vpop.eup %8139  ;;  %5262 = vadd.xlane.f32.xlu0 %v13011_v39  ;;  %v4706_v47 = vpop.xlane.xlu0 %4705 }
 0xd57   : > { %8145 = vpow2.f32 %v4687_v11  ;;  %v5294_v53 = vmul.f32 %v8140_v3, %v12838_v0  ;;  %v13020_v29 = vpop.eup %8141  ;;  %v13044_v9 = vpop.f32.mrf.mxu0 }
 0xd58   : > { %8147 = vrcp.f32 %v4706_v47  ;;  %v8144_v2 = vpop.eup %8143  ;;  %7568 = vmatmul.msk.f32.gmra.mxu2 %vm14643_vm5, %v5682_v55  ;;  %v13065_v55 = vpop.f32.mrf.mxu3  ;;  %vm14685_vm5 = vmmov %vm14589_vm0 }
 0xd59   : > { %5459 = vmatmul.f32.gmra.mxu1 %v5294_v53  ;;  %v4708_v43 = vpop.xlane.xlu1 %4707  ;;  %v5295_v27 = vmul.f32 %v8144_v2, %v12847_v44  ;;  %v5683_v44 = vld [vmem:[%s14059_s14 + $0x70] sm:$0xff] }
 0xd5a   : > { %v5253_v38 = vpop.xlane.xlu2 %5252  ;;  %4717 = vadd.xlane.f32.xlu2 %v13020_v29  ;;  %8149 = vrcp.f32 %v4708_v43 }
 0xd5b   : > { %8151 = vrcp.f32 %v5253_v38  ;;  %v5826_v21 = vpop.f32.mrf.mxu2 }
 0xd5d   : > { %v13032_v5 = vpop.eup %8145 }
 0xd5e   : > { %v8148_v0 = vpop.eup %8147  ;;  %4719 = vadd.xlane.f32.xlu1 %v13032_v5  ;;  %5894 = vmax.xlane.f32.xlu0 %v13027_v13  ;;  %v5185_v45 = vpop.xlane.xlu0 %5184 }
 0xd5f   : > { %v4749_v40 = vmul.f32 %v8148_v0, %v12857_v25  ;;  %v5206_v1 = vsub.f32 %v12870_v63, %v5185_v45  ;;  %v13070_v0 = vsel %vm11518_vm7, %v5864_v24, -1e+09  ;;  %vm14662_vm7 = vmmov %vm14589_vm0 }
 0xd60   : > { %v8150_v25 = vpop.eup %8149  ;;  %7569 = vmatmul.msk.f32.gmra.mxu2 %vm14645_vm3, %v5683_v44  ;;  %vm14687_vm3 = vmmov %vm14589_vm0 }
 0xd61   : > { %4918 = vmatmul.f32.gmra.mxu3 %v4749_v40  ;;  %v5232_v32 = vmul.f32 1.442695, %v5206_v1  ;;  %5462 = vmatmul.f32.gmra.mxu1 %v5295_v27  ;;  %v5187_v14 = vpop.xlane.xlu1 %5186  ;;  %v8152_v4 = vpop.eup %8151  ;;  %v5865_v1 = vmax.f32 %v13037_v10, 0.0 }
 0xd62   : > { %v4710_v17 = vpop.xlane.xlu2 %4709  ;;  %v5207_v18 = vsub.f32 %v12874_v49, %v5187_v14  ;;  %v4750_v49 = vmul.f32 %v8150_v25, %v12859_v42  ;;  %v5296_v47 = vmul.f32 %v8152_v4, %v12864_v60  ;;  %v13063_v42 = vpop.f32.mrf.mxu0 }
 0xd63   : > { %8153 = vpow2.f32 %v5232_v32  ;;  %v13088_v41 = vsel %vm11511_vm6, %v5865_v1, -1e+09 }
 0xd64   : > { %8155 = vrcp.f32 %v4710_v17  ;;  %v5234_v63 = vmul.f32 1.442695, %v5207_v18  ;;  %v13081_v17 = vpop.f32.mrf.mxu2 }
 0xd66   : > { %5896 = vmax.xlane.f32.xlu0 %v13048_v62  ;;  %v4642_v11 = vpop.xlane.xlu0 %4641  ;;  %8157 = vpow2.f32 %v5234_v63 }
 0xd67   : > { %v4661_v3 = vsub.f32 %v12886_v6, %v4642_v11  ;;  %v5866_v11 = vmax.f32 %v5826_v21, 0.0 }
 0xd69   : > { %4921 = vmatmul.f32.gmra.mxu3 %v4750_v49  ;;  %v13059_v53 = vpop.eup %8153  ;;  %v4689_v43 = vmul.f32 1.442695, %v4661_v3  ;;  %5465 = vmatmul.f32.gmra.mxu1 %v5296_v47  ;;  %v4644_v38 = vpop.xlane.xlu1 %4643 }
 0xd6a   : > { %v5189_v2 = vpop.xlane.xlu2 %5188  ;;  %v4662_v8 = vsub.f32 %v12891_v33, %v4644_v38  ;;  %5264 = vadd.xlane.f32.xlu2 %v13059_v53  ;;  %v8156_v48 = vpop.eup %8155  ;;  %v13100_v38 = vsel %vm11555_vm8, %v5866_v11, -1e+09 }
 0xd6b   : > { %8159 = vpow2.f32 %v4689_v43  ;;  %v5208_v60 = vsub.f32 %v12894_v56, %v5189_v2  ;;  %v4751_v33 = vmul.f32 %v8156_v48, %v12879_v16  ;;  %v6102_v18 = vpop.f32.mrf.mxu0  ;;  %v13083_v16 = vpop.f32.mrf.mxu3 }
 0xd6c   : > { %v4691_v45 = vmul.f32 1.442695, %v4662_v8  ;;  %v13075_v27 = vpop.eup %8157  ;;  %v5832_v2 = vpop.f32.mrf.mxu2 }
 0xd6d   : > { %v5236_v31 = vmul.f32 1.442695, %v5208_v60 }
 0xd6e   : > { %5898 = vmax.xlane.f32.xlu0 %v13070_v0  ;;  %v5255_v40 = vpop.xlane.xlu0 %5254 }
 0xd6f   : > { %8161 = vrcp.f32 %v5255_v40 }
 0xd70   : > { %8163 = vpow2.f32 %v4691_v45  ;;  %v13113_v45 = vld [vmem:[%s14062_s17] ss:$0 sm:$0xff] }
 0xd71   : > { %4924 = vmatmul.f32.gmra.mxu3 %v4751_v33  ;;  %v13077_v32 = vpop.eup %8159  ;;  %v5257_v56 = vpop.xlane.xlu1 %5256  ;;  %8165 = vpow2.f32 %v5236_v31  ;;  %v5868_v31 = vmax.f32 %v5832_v2, 0.0  ;;  %v6103_v11 = vadd.f32 %v13113_v45, %v6102_v18  ;;  %v6100_v43 = vadd.f32 %v13113_v45, %v13063_v42 }
 0xd72   : > { %v4646_v14 = vpop.xlane.xlu2 %4645  ;;  %5266 = vadd.xlane.f32.xlu2 %v13075_v27  ;;  %4721 = vadd.xlane.f32.xlu1 %v13077_v32  ;;  %8167 = vrcp.f32 %v5257_v56  ;;  %v6097_v2 = vadd.f32 %v13113_v45, %v13044_v9  ;;  %v6088_v9 = vadd.f32 %v13113_v45, %v12992_v52 }
 0xd73   : > { %v4663_v10 = vsub.f32 %v12911_v36, %v4646_v14  ;;  %v6105_v47 = vpop.f32.mrf.mxu0  ;;  %v13105_v48 = vpop.f32.mrf.mxu3 }
 0xd75   : > { %v8162_v4 = vpop.eup %8161  ;;  %v4693_v63 = vmul.f32 1.442695, %v4663_v10 }
 0xd76   : > { %5900 = vmax.xlane.f32.xlu0 %v13088_v41  ;;  %v4712_v44 = vpop.xlane.xlu0 %4711  ;;  %v5297_v49 = vmul.f32 %v8162_v4, %v12906_v34  ;;  %v13092_v24 = vpop.eup %8163  ;;  %v5684_v34 = vld [vmem:[%s14059_s14 + $0x78] sm:$0xff] }
 0xd77   : > { %8169 = vrcp.f32 %v4712_v44  ;;  %v13094_v3 = vpop.eup %8165  ;;  %7570 = vmatmul.msk.f32.gmra.mxu2 %vm14649_vm4, %v5684_v34  ;;  %v13123_v44 = vsel %vm11663_vm11, %v5868_v31, -1e+09  ;;  %vm14671_vm11 = vmmov %vm14589_vm0 }
 0xd78   : > { %5468 = vmatmul.f32.gmra.mxu1 %v5297_v49  ;;  %8171 = vpow2.f32 %v4693_v63  ;;  %v8168_v21 = vpop.eup %8167  ;;  %vm14688_vm4 = vmmov %vm14589_vm0 }
 0xd79   : > { %v4714_v36 = vpop.xlane.xlu1 %4713  ;;  %v5298_v33 = vmul.f32 %v8168_v21, %v12915_v61  ;;  %v6106_v61 = vadd.f32 %v13113_v45, %v6105_v47 }
 0xd7a   : > { %5268 = vadd.xlane.f32.xlu2 %v13094_v3  ;;  %4723 = vadd.xlane.f32.xlu1 %v13092_v24  ;;  %8173 = vrcp.f32 %v4714_v36 }
 0xd7b   : > { %v13127_v63 = vpop.f32.mrf.mxu3 }
 0xd7d   : > { %v8170_v8 = vpop.eup %8169 }
 0xd7e   : > { %5902 = vmax.xlane.f32.xlu0 %v13100_v38  ;;  %v5191_v60 = vpop.xlane.xlu0 %5190  ;;  %v4752_v6 = vmul.f32 %v8170_v8, %v12919_v20  ;;  %v13117_v1 = vpop.eup %8171  ;;  %v6091_v8 = vadd.f32 %v13113_v45, %v13007_v15  ;;  %v5867_v15 = vmax.f32 %v13081_v17, 0.0  ;;  %v6073_v17 = vadd.f32 %v13113_v45, %v12952_v35 }
 0xd7f   : > { %v5209_v40 = vsub.f32 %v12928_v59, %v5191_v60  ;;  %v6108_v20 = vpop.f32.mrf.mxu0 }
 0xd80   : > { %4927 = vmatmul.f32.gmra.mxu3 %v4752_v6  ;;  %5471 = vmatmul.f32.gmra.mxu1 %v5298_v33  ;;  %v8174_v25 = vpop.eup %8173  ;;  %v6109_v59 = vadd.f32 %v13113_v45, %v6108_v20  ;;  %v6079_v33 = vadd.f32 %v13113_v45, %v12958_v30  ;;  %v6070_v30 = vadd.f32 %v13113_v45, %v12949_v57 }
 0xd81   : > { %v5238_v56 = vmul.f32 1.442695, %v5209_v40  ;;  %v5193_v14 = vpop.xlane.xlu1 %5192  ;;  %v4753_v36 = vmul.f32 %v8174_v25, %v12924_v28  ;;  %v6094_v28 = vadd.f32 %v13113_v45, %v13023_v7  ;;  %v6085_v7 = vadd.f32 %v13113_v45, %v12978_v22 }
 0xd82   : > { %v5210_v10 = vsub.f32 %v12934_v37, %v5193_v14  ;;  %4725 = vadd.xlane.f32.xlu1 %v13117_v1  ;;  %6111 = vmatpush.msrb.mxu1 %v6109_v59  ;;  %v6076_v22 = vadd.f32 %v13113_v45, %v12955_v50  ;;  %v5835_v14 = vpop.f32.mrf.mxu2  ;;  %v6067_v20 = vadd.f32 %v13113_v45, %v12941_v19 }
 0xd83   : > { %8175 = vpow2.f32 %v5238_v56  ;;  %v13168_v56 = vsel %vm11581_vm9, %v5867_v15, -1e+09  ;;  %v5869_v50 = vmax.f32 %v5835_v14, 0.0  ;;  %v6064_v25 = vadd.f32 %v13113_v45, %v12930_v23  ;;  %vm14666_vm9 = vmmov %vm14589_vm0 }
 0xd84   : > { %v5240_v49 = vmul.f32 1.442695, %v5210_v10  ;;  %6112 = vmatpush.msrb.mxu1 %v6106_v61 }
 0xd85   : > { %v13186_v4 = vsel %vm11687_vm12, %v5869_v50, -1e+09  ;;  %vm14672_vm12 = vmmov %vm14589_vm0 }
 0xd86   : > { %5906 = vmax.xlane.f32.xlu0 %v13123_v44  ;;  %v4648_v37 = vpop.xlane.xlu0 %4647  ;;  %6113 = vmatpush.msrb.mxu1 %v6103_v11  ;;  %8177 = vpow2.f32 %v5240_v49 }
 0xd87   : > { %v4664_v21 = vsub.f32 %v12939_v54, %v4648_v37  ;;  %v13143_v54 = vpop.f32.mrf.mxu3 }
 0xd88   : > { %4930 = vmatmul.f32.gmra.mxu3 %v4753_v36  ;;  %6114 = vmatpush.msrb.mxu1 %v6100_v43 }
 0xd89   : > { %v13135_v47 = vpop.eup %8175  ;;  %v4695_v18 = vmul.f32 1.442695, %v4664_v21  ;;  %v5195_v34 = vpop.xlane.xlu1 %5194 }
 0xd8a   : > { %5270 = vadd.xlane.f32.xlu2 %v13135_v47  ;;  %v5211_v42 = vsub.f32 %v12945_v58, %v5195_v34  ;;  %6115 = vmatpush.msrb.mxu1 %v6097_v2  ;;  %v6082_v58 = vadd.f32 %v13113_v45, %v12966_v26  ;;  %v5838_v36 = vpop.f32.mrf.mxu2 }
 0xd8b   : > { %8179 = vpow2.f32 %v4695_v18 }
 0xd8c   : > { %v5242_v60 = vmul.f32 1.442695, %v5211_v42  ;;  %6116 = vmatpush.msrb.mxu1 %v6094_v28  ;;  %v13149_v6 = vpop.eup %8177 }
 0xd8e   : > { %6117 = vmatpush.msrb.mxu1 %v6091_v8  ;;  %8181 = vpow2.f32 %v5242_v60 }
 0xd8f   : > { %v13160_v52 = vpop.f32.mrf.mxu3 }
 0xd90   : > { %6118 = vmatpush.msrb.mxu1 %v6088_v9 }
 0xd91   : > { %v13151_v40 = vpop.eup %8179 }
 0xd92   : > { %5272 = vadd.xlane.f32.xlu2 %v13149_v6  ;;  %4727 = vadd.xlane.f32.xlu1 %v13151_v40 }
 0xd93   : > { %6119 = vmatpush.msrb.mxu1 %v6085_v7  ;;  %v5841_v8 = vpop.f32.mrf.mxu2 }
 0xd94   : > { %v13170_v26 = vpop.eup %8181 }
 0xd95   : > { %6120 = vmatpush.msrb.mxu1 %v6082_v58 }
 0xd97   : > { %6121 = vmatpush.msrb.mxu1 %v6079_v33  ;;  %v13178_v10 = vpop.f32.mrf.mxu3 }
 0xd99   : > { %6122 = vmatpush.msrb.mxu1 %v6076_v22 }
 0xd9a   : > { %5904 = vmax.xlane.f32.xlu2 %v13168_v56  ;;  %5274 = vadd.xlane.f32.xlu1 %v13170_v26 }
 0xd9b   : > { %6123 = vmatpush.msrb.mxu1 %v6073_v17 }
 0xd9d   : > { %6124 = vmatpush.msrb.mxu1 %v6070_v30 }
 0xd9f   : > { %6125 = vmatpush.msrb.mxu1 %v6067_v20  ;;  %v13189_v57 = vpop.f32.mrf.mxu3 }
 0xda1   : > { %6126 = vmatpush.msrb.mxu1 %v6064_v25  ;;  %v5870_v25 = vmax.f32 %v5838_v36, 0.0 }
 0xda2   : > { %5908 = vmax.xlane.f32.xlu2 %v13186_v4 }
 0xda7   : > { %v13191_v61 = vpop.f32.mrf.mxu3 }
 0xdaf   : > { %v13193_v59 = vpop.f32.mrf.mxu3 }
 0xdb7   : > { %v13195_v49 = vpop.f32.mrf.mxu3 }
 0xdbd   : > { %v5259_v19 = vpop.xlane.xlu2 %5258 }
 0xdbe   : > { %8183 = vrcp.f32 %v5259_v19 }
 0xdbf   : > { %v13198_v18 = vpop.f32.mrf.mxu3 }
 0xdc0   : > { %v5261_v11 = vpop.xlane.xlu0 %5260 }
 0xdc1   : > { %8185 = vrcp.f32 %v5261_v11 }
 0xdc3   : > { %v5844_v17 = vpop.f32.mrf.mxu2 }
 0xdc4   : > { %v8184_v23 = vpop.eup %8183 }
 0xdc5   : > { %v4716_v45 = vpop.xlane.xlu2 %4715  ;;  %v5299_v37 = vmul.f32 %v8184_v23, %v12986_v12 }
 0xdc6   : > { %8187 = vrcp.f32 %v4716_v45 }
 0xdc7   : > { %5474 = vmatmul.f32.gmra.mxu1 %v5299_v37  ;;  %v8186_v21 = vpop.eup %8185  ;;  %v13203_v33 = vpop.f32.mrf.mxu3 }
 0xdc8   : > { %v5300_v42 = vmul.f32 %v8186_v21, %v12995_v46 }
 0xdc9   : > { %v5263_v43 = vpop.xlane.xlu0 %5262 }
 0xdca   : > { %8189 = vrcp.f32 %v5263_v43  ;;  %v5871_v43 = vmax.f32 %v5841_v8, 0.0 }
 0xdcb   : > { %v13221_v45 = vpop.f32.mrf.mxu2 }
 0xdcc   : > { %v8188_v2 = vpop.eup %8187 }
 0xdcd   : > { %v4718_v34 = vpop.xlane.xlu2 %4717  ;;  %v4754_v28 = vmul.f32 %v8188_v2, %v13003_v51 }
 0xdce   : > { %8191 = vrcp.f32 %v4718_v34 }
 0xdcf   : > { %4933 = vmatmul.f32.gmra.mxu3 %v4754_v28  ;;  %5477 = vmatmul.f32.gmra.mxu1 %v5300_v42  ;;  %v13231_v42 = vsel %vm11651_vm10, %v5871_v43, -1e+09 }
 0xdd0   : > { %v8190_v60 = vpop.eup %8189 }
 0xdd1   : > { %v4720_v9 = vpop.xlane.xlu1 %4719  ;;  %v5895_v12 = vpop.xlane.xlu0 %5894  ;;  %v5301_v51 = vmul.f32 %v8190_v60, %v13011_v39 }
 0xdd2   : > { %v5926_v7 = vsub.f32 %v13027_v13, %v5895_v12  ;;  %8193 = vrcp.f32 %v4720_v9 }
 0xdd4   : > { %v8192_v58 = vpop.eup %8191  ;;  %v5942_v15 = vmul.f32 1.442695, %v5926_v7 }
 0xdd5   : > { %v4755_v22 = vmul.f32 %v8192_v58, %v13020_v29  ;;  %v13212_v29 = vpop.f32.mrf.mxu3  ;;  %v5872_v58 = vmax.f32 %v5844_v17, 0.0 }
 0xdd6   : > { %8195 = vpow2.f32 %v5942_v15 }
 0xdd7   : > { %4936 = vmatmul.f32.gmra.mxu3 %v4755_v22  ;;  %5480 = vmatmul.f32.gmra.mxu1 %v5301_v51  ;;  %v5850_v22 = vpop.f32.mrf.mxu2  ;;  %v13245_v17 = vsel %vm11791_vm14, %v5872_v58, -1e+09  ;;  %vm14676_vm14 = vmmov %vm14589_vm0 }
 0xdd8   : > { %v8194_v31 = vpop.eup %8193 }
 0xdd9   : > { %v5897_v46 = vpop.xlane.xlu0 %5896  ;;  %v4756_v20 = vmul.f32 %v8194_v31, %v13032_v5 }
 0xdda   : > { %v5927_v14 = vsub.f32 %v13048_v62, %v5897_v46  ;;  %v13217_v62 = vsel %vm11707_vm13, %v5870_v25, -1e+09  ;;  %v3244_v46 = vld [vmem:[%s14057_s12 + $0x18] sm:$0xff]  ;;  %vm14674_vm13 = vmmov %vm14589_vm0 }
 0xddb   : > { %5616 = vmatpush.msrb.mxu3 %v3244_v46 }
 0xddc   : > { %v13208_v30 = vpop.eup %8195  ;;  %v5944_v13 = vmul.f32 1.442695, %v5927_v14 }
 0xddd   : > { %5974 = vadd.xlane.f32.xlu1 %v13208_v30  ;;  %v5265_v50 = vpop.xlane.xlu2 %5264  ;;  %v13226_v21 = vpop.f32.mrf.mxu3 }
 0xdde   : > { %8197 = vpow2.f32 %v5944_v13  ;;  %v3242_v13 = vld [vmem:[%s14057_s12 + $0x8] sm:$0xff] }
 0xddf   : > { %8199 = vrcp.f32 %v5265_v50  ;;  %4939 = vmatmul.f32.gmra.mxu3 %v4756_v20 }
 0xde1   : > { %v5899_v39 = vpop.xlane.xlu0 %5898 }
 0xde2   : > { %v5928_v35 = vsub.f32 %v13070_v0, %v5899_v39 }
 0xde4   : > { %v13219_v11 = vpop.eup %8197  ;;  %v5946_v23 = vmul.f32 1.442695, %v5928_v35  ;;  %v5873_v35 = vmax.f32 %v13221_v45, 0.0 }
 0xde5   : > { %v8200_v37 = vpop.eup %8199  ;;  %5910 = vmax.xlane.f32.xlu1 %v13217_v62  ;;  %5976 = vadd.xlane.f32.xlu0 %v13219_v11  ;;  %v5267_v5 = vpop.xlane.xlu2 %5266 }
 0xde6   : > { %v4722_v36 = vpop.xlane.xlu1 %4721  ;;  %8201 = vpow2.f32 %v5946_v23  ;;  %v5302_v0 = vmul.f32 %v8200_v37, %v13059_v53  ;;  %v3241_v37 = vld [vmem:[%s14057_s12] sm:$0xff] }
 0xde7   : > { %8203 = vrcp.f32 %v5267_v5 }
 0xde8   : > { %8205 = vrcp.f32 %v4722_v36  ;;  %5483 = vmatmul.f32.gmra.mxu1 %v5302_v0  ;;  %v13265_v36 = vpop.f32.mrf.mxu2  ;;  %v13270_v0 = vsel %vm11805_vm15, %v5873_v35, -1e+09  ;;  %vm14678_vm15 = vmmov %vm14589_vm0 }
 0xde9   : > { %v5901_v2 = vpop.xlane.xlu0 %5900 }
 0xdea   : > { %v5929_v34 = vsub.f32 %v13088_v41, %v5901_v2 }
 0xdec   : > { %v13233_v9 = vpop.eup %8201  ;;  %v5948_v12 = vmul.f32 1.442695, %v5929_v34 }
 0xded   : > { %v8204_v60 = vpop.eup %8203  ;;  %5912 = vmax.xlane.f32.xlu0 %v13231_v42  ;;  %5978 = vadd.xlane.f32.xlu2 %v13233_v9  ;;  %v5269_v53 = vpop.xlane.xlu2 %5268 }
 0xdee   : > { %v4724_v8 = vpop.xlane.xlu1 %4723  ;;  %v8206_v7 = vpop.eup %8205  ;;  %8207 = vpow2.f32 %v5948_v12  ;;  %v5303_v15 = vmul.f32 %v8204_v60, %v13075_v27  ;;  %v3243_v27 = vld [vmem:[%s14057_s12 + $0x10] sm:$0xff]  ;;  %v5874_v12 = vmax.f32 %v5850_v22, 0.0 }
 0xdef   : > { %8209 = vrcp.f32 %v5269_v53  ;;  %v4757_v41 = vmul.f32 %v8206_v7, %v13077_v32  ;;  %v13250_v32 = vpop.f32.mrf.mxu3  ;;  %5617 = vmatpush.msrb.mxu3 %v3243_v27 }
 0xdf0   : > { %8211 = vrcp.f32 %v4724_v8  ;;  %5486 = vmatmul.f32.gmra.mxu1 %v5303_v15  ;;  %v13279_v8 = vsel %vm11873_vm2, %v5874_v12, -1e+09  ;;  %v5856_v7 = vpop.f32.mrf.mxu2  ;;  %vm14680_vm2 = vmmov %vm14589_vm0 }
 0xdf1   : > { %4942 = vmatmul.f32.gmra.mxu3 %v4757_v41  ;;  %v5903_v51 = vpop.xlane.xlu0 %5902 }
 0xdf2   : > { %v5930_v31 = vsub.f32 %v13100_v38, %v5903_v51  ;;  %5618 = vmatpush.msrb.mxu3 %v3242_v13  ;;  %v5876_v51 = vmax.f32 %v5856_v7, 0.0  ;;  %v14659_v13 = vld [vmem:[#allocation75_spill] sm:$0xff] }
 0xdf3   : > { %vm14660_vm6 = vnez %v14659_v13 }
 0xdf4   : > { %v13255_v50 = vpop.eup %8207  ;;  %v5950_v20 = vmul.f32 1.442695, %v5930_v31  ;;  %5619 = vmatpush.msrb.mxu3 %v3241_v37  ;;  %v14658_v31 = vld [vmem:[#allocation59_spill] sm:$0xff] }
 0xdf5   : > { %v8210_v38 = vpop.eup %8209  ;;  %5914 = vmax.xlane.f32.xlu2 %v13245_v17  ;;  %5980 = vadd.xlane.f32.xlu1 %v13255_v50  ;;  %v4377_v14 = vadd.f32 %v14658_v31, %v13065_v55  ;;  %v13297_v55 = vld [vmem:[%s14056_s11] ss:$0 sm:$0xff]  ;;  %v14664_v31 = vld [vmem:[#allocation65_spill] sm:$0xff] }
 0xdf6   : > { %v4726_v25 = vpop.xlane.xlu1 %4725  ;;  %v8212_v39 = vpop.eup %8211  ;;  %8213 = vpow2.f32 %v5950_v20  ;;  %v5304_v19 = vmul.f32 %v8210_v38, %v13094_v3  ;;  %v13290_v20 = vsel %vm14660_vm6, %v5876_v51, -1e+09  ;;  %vm14665_vm8 = vnez %v14664_v31  ;;  %vm14691_vm6 = vmmov %vm14589_vm0 }
 0xdf7   : > { %8215 = vrcp.f32 %v4726_v25  ;;  %v4758_v23 = vmul.f32 %v8212_v39, %v13092_v24  ;;  %v4907_v34 = vpop.f32.mrf.mxu3 }
 0xdf8   : > { %5489 = vmatmul.f32.gmra.mxu1 %v5304_v19  ;;  %v4955_v27 = vadd.f32 %v4907_v34, %v4377_v14 }
 0xdf9   : > { %4945 = vmatmul.f32.gmra.mxu3 %v4758_v23  ;;  %v5907_v5 = vpop.xlane.xlu0 %5906 }
 0xdfa   : > { %v5932_v43 = vsub.f32 %v13123_v44, %v5907_v5  ;;  %v5454_v44 = vpop.f32.mrf.mxu1  ;;  %v5859_v13 = vpop.f32.mrf.mxu2 }
 0xdfb   : > { %v5502_v23 = vadd.f32 %v5454_v44, %v4955_v27 }
 0xdfc   : > { %v13272_v3 = vpop.eup %8213  ;;  %v5954_v2 = vmul.f32 1.442695, %v5932_v43  ;;  %v14661_v43 = vld [vmem:[#allocation60_spill] sm:$0xff] }
 0xdfd   : > { %v8216_v24 = vpop.eup %8215  ;;  %5916 = vmax.xlane.f32.xlu1 %v13270_v0  ;;  %5982 = vadd.xlane.f32.xlu0 %v13272_v3  ;;  %v5271_v28 = vpop.xlane.xlu2 %5270  ;;  %v4380_v45 = vadd.f32 %v14661_v43, %v13083_v16  ;;  %v14670_v43 = vld [vmem:[#allocation40_spill] sm:$0xff] }
 0xdfe   : > { %8217 = vpow2.f32 %v5954_v2  ;;  %v4759_v60 = vmul.f32 %v8216_v24, %v13117_v1 }
 0xdff   : > { %8219 = vrcp.f32 %v5271_v28  ;;  %v4910_v46 = vpop.f32.mrf.mxu3 }
 0xe00   : > { %v4956_v34 = vadd.f32 %v4910_v46, %v4380_v45  ;;  %v4389_v45 = vadd.f32 %v14670_v43, %v13143_v54 }
 0xe01   : > { %4948 = vmatmul.f32.gmra.mxu3 %v4759_v60 }
 0xe02   : > { %v5457_v25 = vpop.f32.mrf.mxu1 }
 0xe03   : > { %v5503_v53 = vadd.f32 %v5457_v25, %v4956_v34 }
 0xe04   : > { %v13281_v58 = vpop.eup %8217 }
 0xe05   : > { %v8220_v15 = vpop.eup %8219  ;;  %5918 = vmax.xlane.f32.xlu0 %v13279_v8  ;;  %5986 = vadd.xlane.f32.xlu1 %v13281_v58  ;;  %v5273_v41 = vpop.xlane.xlu2 %5272 }
 0xe06   : > { %v4728_v22 = vpop.xlane.xlu1 %4727  ;;  %8221 = vrcp.f32 %v5273_v41  ;;  %v5305_v1 = vmul.f32 %v8220_v15, %v13135_v47  ;;  %v14663_v15 = vld [vmem:[#allocation64_spill] sm:$0xff] }
 0xe07   : > { %8223 = vrcp.f32 %v4728_v22  ;;  %v4913_v24 = vpop.f32.mrf.mxu3  ;;  %v4383_v41 = vadd.f32 %v14663_v15, %v13105_v48  ;;  %v5522_v22 = vadd.f32 %v13297_v55, %v5503_v53  ;;  %v14667_v48 = vld [vmem:[#allocation35_spill] sm:$0xff]  ;;  %v14675_v15 = vld [vmem:[#allocation80_spill] sm:$0xff] }
 0xe08   : > { %5492 = vmatmul.f32.gmra.mxu1 %v5305_v1  ;;  %v5875_v1 = vmax.f32 %v13265_v36, 0.0  ;;  %v4386_v36 = vadd.f32 %v14667_v48, %v13127_v63 }
 0xe09   : > { %v4957_v51 = vadd.f32 %v4913_v24, %v4383_v41  ;;  %v5538_v46 = vmax.f32 %v5522_v22, 0.0  ;;  %v4395_v41 = vadd.f32 %v14675_v15, %v13178_v10 }
 0xe0a   : > { %v5460_v12 = vpop.f32.mrf.mxu1  ;;  %v13316_v14 = vsel %vm14665_vm8, %v5875_v1, -1e+09  ;;  %vm14694_vm8 = vmmov %vm14589_vm0 }
 0xe0c   : > { %v8222_v38 = vpop.eup %8221 }
 0xe0d   : > { %v8224_v39 = vpop.eup %8223  ;;  %5922 = vmax.xlane.f32.xlu1 %v13290_v20  ;;  %v5905_v35 = vpop.xlane.xlu2 %5904  ;;  %v5306_v47 = vmul.f32 %v8222_v38, %v13149_v6  ;;  %v5521_v6 = vadd.f32 %v13297_v55, %v5502_v23 }
 0xe0e   : > { %v5275_v19 = vpop.xlane.xlu1 %5274  ;;  %v5931_v37 = vsub.f32 %v13168_v56, %v5905_v35  ;;  %v4760_v5 = vmul.f32 %v8224_v39, %v13151_v40  ;;  %v5877_v39 = vmax.f32 %v5859_v13, 0.0 }
 0xe0f   : > { %8225 = vrcp.f32 %v5275_v19  ;;  %v5537_v56 = vmax.f32 %v5521_v6, 0.0 }
 0xe10   : > { %v5952_v2 = vmul.f32 1.442695, %v5931_v37  ;;  %4951 = vmatmul.f32.gmra.mxu3 %v4760_v5  ;;  %5495 = vmatmul.f32.gmra.mxu1 %v5306_v47  ;;  %v14668_v37 = vld [vmem:[#allocation63_spill] sm:$0xff] }
 0xe11   : > { %vm14669_vm10 = vnez %v14668_v37 }
 0xe12   : > { %8227 = vpow2.f32 %v5952_v2  ;;  %v5463_v27 = vpop.f32.mrf.mxu1  ;;  %v13328_v5 = vsel %vm14669_vm10, %v5877_v39, -1e+09  ;;  %v14679_v39 = vld [vmem:[#allocation84_spill] sm:$0xff] }
 0xe15   : > { %v8226_v28 = vpop.eup %8225  ;;  %v5909_v60 = vpop.xlane.xlu2 %5908 }
 0xe16   : > { %v5307_v44 = vmul.f32 %v8226_v28, %v13170_v26  ;;  %v5933_v40 = vsub.f32 %v13186_v4, %v5909_v60  ;;  %v4916_v26 = vpop.f32.mrf.mxu3  ;;  %v5504_v4 = vadd.f32 %v5460_v12, %v4957_v51  ;;  %v14673_v60 = vld [vmem:[#allocation78_spill] sm:$0xff] }
 0xe17   : > { %v4958_v19 = vadd.f32 %v4916_v26, %v4386_v36 }
 0xe18   : > { %v13306_v7 = vpop.eup %8227  ;;  %v5956_v16 = vmul.f32 1.442695, %v5933_v40  ;;  %5498 = vmatmul.f32.gmra.mxu1 %v5307_v44  ;;  %7523 = vmatmul.msk.f32.vlgmr.msrb.gmra.mxu3 %vm14662_vm7, %v5537_v56  ;;  %v5523_v25 = vadd.f32 %v13297_v55, %v5504_v4  ;;  %v4392_v44 = vadd.f32 %v14673_v60, %v13160_v52  ;;  %v14677_v52 = vld [vmem:[#allocation82_spill] sm:$0xff]  ;;  %vm14693_vm7 = vmmov %vm14589_vm0 }
 0xe19   : > { %5984 = vadd.xlane.f32.xlu2 %v13306_v7  ;;  %v5505_v23 = vadd.f32 %v5463_v27, %v4958_v19  ;;  %v4398_v31 = vadd.f32 %v14677_v52, %v13189_v57 }
 0xe1a   : > { %8229 = vpow2.f32 %v5956_v16  ;;  %v5539_v47 = vmax.f32 %v5523_v25, 0.0  ;;  %v5466_v2 = vpop.f32.mrf.mxu1 }
 0xe1b   : > { %v5524_v63 = vadd.f32 %v13297_v55, %v5505_v23 }
 0xe1d   : > { %v5540_v34 = vmax.f32 %v5524_v63, 0.0 }
 0xe1e   : > { %v4919_v35 = vpop.f32.mrf.mxu3 }
 0xe1f   : > { %v4959_v24 = vadd.f32 %v4919_v35, %v4389_v45  ;;  %v4401_v35 = vadd.f32 %v14679_v39, %v13191_v61  ;;  %v14681_v45 = vld [vmem:[#allocation85_spill] sm:$0xff] }
 0xe20   : > { %v13318_v38 = vpop.eup %8229  ;;  %7524 = vmatmul.msk.f32.gmra.mxu3 %vm14666_vm9, %v5538_v46 }
 0xe21   : > { %5920 = vmax.xlane.f32.xlu2 %v13316_v14  ;;  %5988 = vadd.xlane.f32.xlu0 %v13318_v38  ;;  %v5506_v28 = vadd.f32 %v5466_v2, %v4959_v24  ;;  %v4404_v2 = vadd.f32 %v14681_v45, %v13193_v59 }
 0xe22   : > { %v5469_v12 = vpop.f32.mrf.mxu1 }
 0xe23   : > { %v5525_v56 = vadd.f32 %v13297_v55, %v5506_v28 }
 0xe25   : > { %v5541_v53 = vmax.f32 %v5525_v56, 0.0 }
 0xe26   : > { %v4922_v6 = vpop.f32.mrf.mxu3 }
 0xe27   : > { %v4960_v54 = vadd.f32 %v4922_v6, %v4392_v44 }
 0xe28   : > { %7525 = vmatmul.msk.f32.gmra.mxu3 %vm14671_vm11, %v5539_v47 }
 0xe29   : > { %5924 = vmax.xlane.f32.xlu0 %v13328_v5  ;;  %v5507_v40 = vadd.f32 %v5469_v12, %v4960_v54 }
 0xe2a   : > { %v5472_v1 = vpop.f32.mrf.mxu1 }
 0xe2b   : > { %v5526_v22 = vadd.f32 %v13297_v55, %v5507_v40 }
 0xe2d   : > { %v5542_v51 = vmax.f32 %v5526_v22, 0.0 }
 0xe2e   : > { %v4925_v16 = vpop.f32.mrf.mxu3 }
 0xe2f   : > { %v4961_v26 = vadd.f32 %v4925_v16, %v4395_v41 }
 0xe30   : > { %7526 = vmatmul.msk.f32.gmra.mxu3 %vm14672_vm12, %v5540_v34 }
 0xe31   : > { %v5508_v46 = vadd.f32 %v5472_v1, %v4961_v26 }
 0xe33   : > { %v5527_v27 = vadd.f32 %v13297_v55, %v5508_v46 }
 0xe35   : > { %v5543_v36 = vmax.f32 %v5527_v27, 0.0 }
 0xe36   : > { %v4928_v4 = vpop.f32.mrf.mxu3 }
 0xe37   : > { %v4962_v13 = vadd.f32 %v4928_v4, %v4398_v31 }
 0xe38   : > { %7527 = vmatmul.msk.f32.gmra.mxu3 %vm14674_vm13, %v5541_v53 }
 0xe3e   : > { %v4931_v10 = vpop.f32.mrf.mxu3 }
 0xe3f   : > { %v4963_v47 = vadd.f32 %v4931_v10, %v4401_v35 }
 0xe40   : > { %7528 = vmatmul.msk.f32.gmra.mxu3 %vm14676_vm14, %v5542_v51 }
 0xe44   : > { %v5475_v48 = vpop.f32.mrf.mxu1 }
 0xe45   : > { %v5509_v25 = vadd.f32 %v5475_v48, %v4962_v13 }
 0xe47   : > { %v5528_v19 = vadd.f32 %v13297_v55, %v5509_v25  ;;  %v14684_v25 = vld [vmem:[#allocation87_spill] sm:$0xff] }
 0xe48   : > { %7529 = vmatmul.msk.f32.gmra.mxu3 %vm14678_vm15, %v5543_v36  ;;  %v4410_v10 = vadd.f32 %v14684_v25, %v13198_v18 }
 0xe49   : > { %v5544_v37 = vmax.f32 %v5528_v19, 0.0 }
 0xe4c   : > { %v5478_v23 = vpop.f32.mrf.mxu1 }
 0xe4d   : > { %v5510_v43 = vadd.f32 %v5478_v23, %v4963_v47 }
 0xe4f   : > { %v5529_v63 = vadd.f32 %v13297_v55, %v5510_v43 }
 0xe50   : > { %7530 = vmatmul.msk.f32.gmra.mxu3 %vm14680_vm2, %v5544_v37  ;;  %v5975_v57 = vpop.xlane.xlu1 %5974 }
 0xe51   : > { %8231 = vrcp.f32 %v5975_v57  ;;  %v5545_v28 = vmax.f32 %v5529_v63, 0.0 }
 0xe52   : > { %v4934_v24 = vpop.f32.mrf.mxu3 }
 0xe53   : > { %v4964_v6 = vadd.f32 %v4934_v24, %v4404_v2  ;;  %v14686_v24 = vld [vmem:[#allocation89_spill] sm:$0xff] }
 0xe54   : > { %v5481_v34 = vpop.f32.mrf.mxu1 }
 0xe55   : > { %v5511_v61 = vadd.f32 %v5481_v34, %v4964_v6  ;;  %v4413_v6 = vadd.f32 %v14686_v24, %v13203_v33 }
 0xe57   : > { %v8232_v12 = vpop.eup %8231  ;;  %v5530_v59 = vadd.f32 %v13297_v55, %v5511_v61 }
 0xe58   : > { %v6022_v60 = vmul.f32 %v8232_v12, %v13208_v30  ;;  %7531 = vmatmul.msk.f32.gmra.mxu3 %vm14589_vm0, %v5545_v28  ;;  %v5911_v44 = vpop.xlane.xlu1 %5910  ;;  %v5977_v56 = vpop.xlane.xlu0 %5976 }
 0xe59   : > { %v5934_v54 = vsub.f32 %v13217_v62, %v5911_v44  ;;  %8233 = vrcp.f32 %v5977_v56  ;;  %v5546_v40 = vmax.f32 %v5530_v59, 0.0  ;;  %v14683_v62 = vld [vmem:[#allocation86_spill] sm:$0xff] }
 0xe5a   : > { %6127 = vmatmul.f32.vlgmr.msrb.gmra.mxu1 %v6022_v60  ;;  %v4937_v15 = vpop.f32.mrf.mxu3  ;;  %v4407_v26 = vadd.f32 %v14683_v62, %v13195_v49 }
 0xe5b   : > { %v5958_v53 = vmul.f32 1.442695, %v5934_v54 }
 0xe5c   : > { %v4965_v4 = vadd.f32 %v4937_v15, %v4407_v26 }
 0xe5d   : > { %8235 = vpow2.f32 %v5958_v53 }
 0xe5f   : > { %v8234_v16 = vpop.eup %8233 }
 0xe60   : > { %7532 = vmatmul.msk.f32.gmra.mxu3 %vm14682_vm1, %v5546_v40  ;;  %v5979_v41 = vpop.xlane.xlu2 %5978  ;;  %v5913_v22 = vpop.xlane.xlu0 %5912  ;;  %v6023_v30 = vmul.f32 %v8234_v16, %v13219_v11 }
 0xe61   : > { %8237 = vrcp.f32 %v5979_v41  ;;  %v5935_v1 = vsub.f32 %v13231_v42, %v5913_v22 }
 0xe62   : > { %6130 = vmatmul.f32.gmra.mxu1 %v6023_v30  ;;  %v4940_v36 = vpop.f32.mrf.mxu3 }
 0xe63   : > { %v13364_v51 = vpop.eup %8235  ;;  %v5960_v46 = vmul.f32 1.442695, %v5935_v1  ;;  %v4966_v47 = vadd.f32 %v4940_v36, %v4410_v10  ;;  %v14692_v36 = vld [vmem:[#allocation92_spill] sm:$0xff] }
 0xe64   : > { %5990 = vadd.xlane.f32.xlu2 %v13364_v51 }
 0xe65   : > { %8239 = vpow2.f32 %v5960_v46  ;;  %v5484_v52 = vpop.f32.mrf.mxu1 }
 0xe66   : > { %v5512_v31 = vadd.f32 %v5484_v52, %v4965_v4  ;;  %v14690_v52 = vld [vmem:[#allocation91_spill] sm:$0xff] }
 0xe67   : > { %v8238_v27 = vpop.eup %8237 }
 0xe68   : > { %v5531_v13 = vadd.f32 %v13297_v55, %v5512_v31  ;;  %v5915_v11 = vpop.xlane.xlu2 %5914  ;;  %v5981_v48 = vpop.xlane.xlu1 %5980  ;;  %v6024_v42 = vmul.f32 %v8238_v27, %v13233_v9  ;;  %v4419_v31 = vadd.f32 %v14690_v52, %v13226_v21 }
 0xe69   : > { %v5936_v49 = vsub.f32 %v13245_v17, %v5915_v11  ;;  %8241 = vrcp.f32 %v5981_v48 }
 0xe6a   : > { %v5547_v39 = vmax.f32 %v5531_v13, 0.0  ;;  %6133 = vmatmul.f32.gmra.mxu1 %v6024_v42 }
 0xe6b   : > { %v13372_v35 = vpop.eup %8239  ;;  %v5962_v19 = vmul.f32 1.442695, %v5936_v49  ;;  %v4422_v49 = vadd.f32 %v14692_v36, %v13250_v32 }
 0xe6c   : > { %7533 = vmatmul.msk.f32.gmra.mxu3 %vm14685_vm5, %v5547_v39  ;;  %5992 = vadd.xlane.f32.xlu1 %v13372_v35 }
 0xe6d   : > { %8243 = vpow2.f32 %v5962_v19  ;;  %v5487_v23 = vpop.f32.mrf.mxu1 }
 0xe6e   : > { %v5513_v9 = vadd.f32 %v5487_v23, %v4966_v47 }
 0xe6f   : > { %v8242_v37 = vpop.eup %8241 }
 0xe70   : > { %v5532_v17 = vadd.f32 %v13297_v55, %v5513_v9  ;;  %v5917_v43 = vpop.xlane.xlu1 %5916  ;;  %v5983_v57 = vpop.xlane.xlu0 %5982  ;;  %v6025_v18 = vmul.f32 %v8242_v37, %v13255_v50 }
 0xe71   : > { %v5937_v45 = vsub.f32 %v13270_v0, %v5917_v43  ;;  %8245 = vrcp.f32 %v5983_v57 }
 0xe72   : > { %v5548_v2 = vmax.f32 %v5532_v17, 0.0  ;;  %6136 = vmatmul.f32.gmra.mxu1 %v6025_v18 }
 0xe73   : > { %v13379_v63 = vpop.eup %8243  ;;  %v5964_v34 = vmul.f32 1.442695, %v5937_v45 }
 0xe74   : > { %v4943_v28 = vpop.f32.mrf.mxu3  ;;  %7534 = vmatmul.msk.f32.gmra.mxu3 %vm14687_vm3, %v5548_v2  ;;  %5994 = vadd.xlane.f32.xlu2 %v13379_v63 }
 0xe75   : > { %8247 = vpow2.f32 %v5964_v34  ;;  %v4967_v61 = vadd.f32 %v4943_v28, %v4413_v6  ;;  %v5490_v12 = vpop.f32.mrf.mxu1 }
 0xe77   : > { %v8246_v50 = vpop.eup %8245  ;;  %v5514_v60 = vadd.f32 %v5490_v12, %v4967_v61 }
 0xe78   : > { %v5987_v0 = vpop.xlane.xlu1 %5986  ;;  %v5919_v44 = vpop.xlane.xlu0 %5918  ;;  %v6026_v56 = vmul.f32 %v8246_v50, %v13272_v3  ;;  %v14689_v3 = vld [vmem:[#allocation90_spill] sm:$0xff] }
 0xe79   : > { %v5533_v54 = vadd.f32 %v13297_v55, %v5514_v60  ;;  %v5938_v59 = vsub.f32 %v13279_v8, %v5919_v44  ;;  %v4416_v22 = vadd.f32 %v14689_v3, %v13212_v29 }
 0xe7a   : > { %6139 = vmatmul.f32.gmra.mxu1 %v6026_v56 }
 0xe7b   : > { %v13388_v33 = vpop.eup %8247  ;;  %v5549_v53 = vmax.f32 %v5533_v54, 0.0  ;;  %v5966_v40 = vmul.f32 1.442695, %v5938_v59 }
 0xe7c   : > { %5996 = vadd.xlane.f32.xlu0 %v13388_v33  ;;  %v4946_v16 = vpop.f32.mrf.mxu3 }
 0xe7d   : > { %8249 = vpow2.f32 %v5966_v40  ;;  %7535 = vmatmul.msk.f32.gmra.mxu3 %vm14688_vm4, %v5549_v53  ;;  %v4968_v1 = vadd.f32 %v4946_v16, %v4416_v22 }
 0xe80   : > { %v5923_v15 = vpop.xlane.xlu1 %5922 }
 0xe81   : > { %v5940_v41 = vsub.f32 %v13290_v20, %v5923_v15 }
 0xe83   : > { %v13395_v30 = vpop.eup %8249  ;;  %v5970_v8 = vmul.f32 1.442695, %v5940_v41 }
 0xe84   : > { %5998 = vadd.xlane.f32.xlu1 %v13395_v30  ;;  %v4949_v4 = vpop.f32.mrf.mxu3 }
 0xe85   : > { %8251 = vpow2.f32 %v5970_v8  ;;  %v5493_v62 = vpop.f32.mrf.mxu1  ;;  %v4969_v13 = vadd.f32 %v4949_v4, %v4419_v31 }
 0xe86   : > { %v5515_v26 = vadd.f32 %v5493_v62, %v4968_v1 }
 0xe88   : > { %v5534_v46 = vadd.f32 %v13297_v55, %v5515_v26 }
 0xe8a   : > { %v5550_v27 = vmax.f32 %v5534_v46, 0.0 }
 0xe8b   : > { %v13401_v20 = vpop.eup %8251 }
 0xe8c   : > { %7536 = vmatmul.msk.f32.gmra.mxu3 %vm14691_vm6, %v5550_v27  ;;  %6002 = vadd.xlane.f32.xlu0 %v13401_v20  ;;  %v5985_v29 = vpop.xlane.xlu2 %5984 }
 0xe8d   : > { %v5496_v11 = vpop.f32.mrf.mxu1  ;;  %8253 = vrcp.f32 %v5985_v29 }
 0xe8e   : > { %v5516_v48 = vadd.f32 %v5496_v11, %v4969_v13  ;;  %8255 = vrcp.f32 %v5987_v0 }
 0xe90   : > { %v5535_v42 = vadd.f32 %v13297_v55, %v5516_v48 }
 0xe92   : > { %v5551_v25 = vmax.f32 %v5535_v42, 0.0 }
 0xe93   : > { %v8254_v10 = vpop.eup %8253  ;;  %v4952_v21 = vpop.f32.mrf.mxu3 }
 0xe94   : > { %v4970_v39 = vadd.f32 %v4952_v21, %v4422_v49  ;;  %7537 = vmatmul.msk.f32.gmra.mxu3 %vm14693_vm7, %v5551_v25  ;;  %v5921_v19 = vpop.xlane.xlu2 %5920  ;;  %v5989_v47 = vpop.xlane.xlu0 %5988  ;;  %v6027_v23 = vmul.f32 %v8254_v10, %v13306_v7 }
 0xe95   : > { %v5499_v9 = vpop.f32.mrf.mxu1  ;;  %v5939_v37 = vsub.f32 %v13316_v14, %v5921_v19  ;;  %v8256_v32 = vpop.eup %8255 }
 0xe96   : > { %v5517_v17 = vadd.f32 %v5499_v9, %v4970_v39  ;;  %6142 = vmatmul.f32.gmra.mxu1 %v6027_v23  ;;  %v6028_v2 = vmul.f32 %v8256_v32, %v13281_v58  ;;  %v13425_v58 = vld [vmem:[%s14058_s13] ss:$0 sm:$0xff] }
 0xe97   : > { %v5968_v43 = vmul.f32 1.442695, %v5939_v37 }
 0xe98   : > { %v5536_v57 = vadd.f32 %v13297_v55, %v5517_v17 }
 0xe99   : > { %8257 = vpow2.f32 %v5968_v43 }
 0xe9a   : > { %v5552_v18 = vmax.f32 %v5536_v57, 0.0  ;;  %8259 = vrcp.f32 %v5989_v47 }
 0xe9b   : > { %v5621_v28 = vpop.f32.mrf.mxu3 }
 0xe9c   : > { %7538 = vmatmul.msk.f32.gmra.mxu3 %vm14694_vm8, %v5552_v18  ;;  %v5925_v45 = vpop.xlane.xlu0 %5924  ;;  %v13430_v50 = vadd.f32 %v13425_v58, %v5621_v28 }
 0xe9d   : > { %v5941_v24 = vsub.f32 %v13328_v5, %v5925_v45 }
 0xe9e   : > { %6145 = vmatmul.f32.gmra.mxu1 %v6028_v2 }
 0xe9f   : > { %v13415_v7 = vpop.eup %8257  ;;  %v5972_v14 = vmul.f32 1.442695, %v5941_v24 }
 0xea0   : > { %6000 = vadd.xlane.f32.xlu2 %v13415_v7  ;;  %v8260_v6 = vpop.eup %8259 }
 0xea1   : > { %8261 = vpow2.f32 %v5972_v14  ;;  %v6029_v55 = vmul.f32 %v8260_v6, %v13318_v38  ;;  %v13478_v14 = vld [vmem:[%s14052_s7] ss:$0 sm:$0xff] }
 0xea3   : > { %v5624_v5 = vpop.f32.mrf.mxu3 }
 0xea4   : > { %v13440_v53 = vadd.f32 %v13425_v58, %v5624_v5 }
 0xea6   : > { %6148 = vmatmul.f32.gmra.mxu1 %v6029_v55 }
 0xea7   : > { %v13419_v34 = vpop.eup %8261 }
 0xea8   : > { %6004 = vadd.xlane.f32.xlu1 %v13419_v34 }
 0xeab   : > { %v5627_v16 = vpop.f32.mrf.mxu3 }
 0xeac   : > { %v13449_v62 = vadd.f32 %v13425_v58, %v5627_v16 }
 0xeb3   : > { %v5630_v52 = vpop.f32.mrf.mxu3 }
 0xebb   : > { %v5633_v43 = vpop.f32.mrf.mxu3 }
 0xebc   : > { %v13481_v6 = vadd.f32 %v13425_v58, %v5633_v43 }
 0xed7   : > { %v13427_v61 = vpop.f32.mrf.mxu1  ;;  %v5991_v12 = vpop.xlane.xlu2 %5990 }
 0xed8   : > { %v6176_v38 = vmax.f32 %v13427_v61, 0.0  ;;  %8263 = vrcp.f32 %v5991_v12 }
 0xeda   : > { %v6192_v60 = vmul.f32 %v6176_v38, %v13430_v50 }
 0xedc   : > { %v7587_v0 = vmul.f32 -1.442695, %v6192_v60 }
 0xede   : > { %v8264_v44 = vpop.eup %8263  ;;  %8265 = vpow2.f32 %v7587_v0 }
 0xedf   : > { %v13436_v56 = vpop.f32.mrf.mxu1  ;;  %v5993_v54 = vpop.xlane.xlu1 %5992  ;;  %v6030_v59 = vmul.f32 %v8264_v44, %v13364_v51 }
 0xee0   : > { %v6177_v40 = vmax.f32 %v13436_v56, 0.0  ;;  %8267 = vrcp.f32 %v5993_v54 }
 0xee1   : > { %6151 = vmatmul.f32.gmra.mxu1 %v6030_v59 }
 0xee2   : > { %v6193_v15 = vmul.f32 %v6177_v40, %v13440_v53 }
 0xee4   : > { %v8266_v41 = vpop.eup %8265  ;;  %v7588_v3 = vmul.f32 -1.442695, %v6193_v15 }
 0xee5   : > { %v6256_v22 = vadd.f32 1.0, %v8266_v41 }
 0xee6   : > { %v8268_v8 = vpop.eup %8267  ;;  %8269 = vpow2.f32 %v7588_v3  ;;  %v14695_v3 = vld [vmem:[#allocation37_spill] sm:$0xff] }
 0xee7   : > { %8271 = vrcp.f32 %v6256_v22  ;;  %v5995_v1 = vpop.xlane.xlu2 %5994  ;;  %v13446_v51 = vpop.f32.mrf.mxu1  ;;  %v6031_v46 = vmul.f32 %v8268_v8, %v13372_v35  ;;  %v13462_v35 = vadd.f32 %v13425_v58, %v5630_v52  ;;  %v6283_v21 = vand.u32 2147483648, %v6256_v22 }
 0xee8   : > { %8273 = vrcp.f32 %v5995_v1  ;;  %v6178_v26 = vmax.f32 %v13446_v51, 0.0  ;;  %v6281_v19 = vand.u32 2147483647, %v6256_v22  ;;  %vm6277_vm10 = vweird.f32 %v6256_v22 }
 0xee9   : > { %6154 = vmatmul.f32.gmra.mxu1 %v6031_v46  ;;  %v6284_v57 = vor.u32 1.1754944e-38, %v6283_v21 }
 0xeea   : > { %v6194_v4 = vmul.f32 %v6178_v26, %v13449_v62  ;;  %vm6282_vm12 = vcmp.eq.f32.partialorder %v6281_v19, 8.507059e+37 }
 0xeec   : > { %v8270_v31 = vpop.eup %8269  ;;  %v7589_v27 = vmul.f32 -1.442695, %v6194_v4 }
 0xeed   : > { %v8272_v13 = vpop.eup %8271  ;;  %v13456_v29 = vadd.f32 1.0, %v8270_v31 }
 0xeee   : > { %v8274_v11 = vpop.eup %8273  ;;  %v6273_v48 = vmul.f32 %v8272_v13, %v6256_v22  ;;  %8275 = vpow2.f32 %v7589_v27  ;;  %vm6278_vm9 = vweird.f32 %v8272_v13  ;;  %v13495_v22 = vadd.f32 %v13478_v14, %v14695_v3 }
 0xeef   : > { %8277 = vrcp.f32 %v13456_v29  ;;  %v13459_v42 = vpop.f32.mrf.mxu1  ;;  %v5997_v25 = vpop.xlane.xlu0 %5996  ;;  %v6032_v10 = vmul.f32 %v8274_v11, %v13379_v63  ;;  %vm6279_vm11 = vmor %vm6277_vm10, %vm6278_vm9  ;;  %v6296_v5 = vand.u32 2147483647, %v13456_v29  ;;  %v6298_v60 = vand.u32 2147483648, %v13456_v29 }
 0xef0   : > { %v6274_v36 = vsub.f32 1.0, %v6273_v48  ;;  %v6179_v49 = vmax.f32 %v13459_v42, 0.0  ;;  %8279 = vrcp.f32 %v5997_v25  ;;  %vm6292_vm14 = vweird.f32 %v13456_v29 }
 0xef1   : > { %6157 = vmatmul.f32.gmra.mxu1 %v6032_v10  ;;  %vm6297_vm2 = vcmp.eq.f32.partialorder %v6296_v5, 8.507059e+37 }
 0xef2   : > { %v6275_v39 = vmul.f32 %v8272_v13, %v6274_v36  ;;  %v6195_v47 = vmul.f32 %v6179_v49, %v13462_v35 }
 0xef4   : > { %v8276_v23 = vpop.eup %8275  ;;  %v6276_v9 = vadd.f32 %v8272_v13, %v6275_v39  ;;  %v7590_v37 = vmul.f32 -1.442695, %v6195_v47  ;;  %v14696_v47 = vld [vmem:[#allocation47_spill] sm:$0xff] }
 0xef5   : > { %v8278_v17 = vpop.eup %8277  ;;  %v13469_v32 = vadd.f32 1.0, %v8276_v23  ;;  %v13514_v23 = vadd.f32 %v13478_v14, %v14696_v47 }
 0xef6   : > { %v6280_v63 = vsel %vm6279_vm11, %v8272_v13, %v6276_v9  ;;  %v6288_v18 = vmul.f32 %v8278_v17, %v13456_v29  ;;  %8281 = vpow2.f32 %v7590_v37  ;;  %v8280_v45 = vpop.eup %8279  ;;  %vm6293_vm13 = vweird.f32 %v8278_v17  ;;  %v13504_v13 = vpop.f32.mrf.mxu3 }
 0xef7   : > { %v6285_v2 = vsel %vm6282_vm12, %v6284_v57, %v6280_v63  ;;  %8283 = vrcp.f32 %v13469_v32  ;;  %v13473_v24 = vpop.f32.mrf.mxu1  ;;  %v5999_v12 = vpop.xlane.xlu1 %5998  ;;  %v6033_v16 = vmul.f32 %v8280_v45, %v13388_v33  ;;  %vm6294_vm15 = vmor %vm6292_vm14, %vm6293_vm13  ;;  %v6311_v36 = vand.u32 2147483647, %v13469_v32 }
 0xef8   : > { %v6528_v55 = vsub.f32 1.0, %v6285_v2  ;;  %v6289_v28 = vsub.f32 1.0, %v6288_v18  ;;  %v6180_v0 = vmax.f32 %v13473_v24, 0.0  ;;  %8285 = vrcp.f32 %v5999_v12 }
 0xef9   : > { %v6512_v44 = vmul.f32 %v6285_v2, %v13430_v50  ;;  %6160 = vmatmul.f32.gmra.mxu1 %v6033_v16  ;;  %v6299_v50 = vor.u32 1.1754944e-38, %v6298_v60  ;;  %v6313_v10 = vand.u32 2147483648, %v13469_v32  ;;  %vm6307_vm1 = vweird.f32 %v13469_v32 }
 0xefa   : > { %v6544_v54 = vmul.f32 %v6528_v55, %v6176_v38  ;;  %v6290_v59 = vmul.f32 %v8278_v17, %v6289_v28  ;;  %v6196_v15 = vmul.f32 %v6180_v0, %v13481_v6  ;;  %vm6312_vm3 = vcmp.eq.f32.partialorder %v6311_v36, 8.507059e+37 }
 0xefc   : > { %v8282_v41 = vpop.eup %8281  ;;  %v13497_v8 = vadd.f32 %v6544_v54, %v6512_v44  ;;  %v6291_v1 = vadd.f32 %v8278_v17, %v6290_v59  ;;  %v7591_v38 = vmul.f32 -1.442695, %v6196_v15  ;;  %v14697_v59 = vld [vmem:[#allocation34_spill] sm:$0xff] }
 0xefd   : > { %v8284_v61 = vpop.eup %8283  ;;  %v6259_v33 = vadd.f32 1.0, %v8282_v41  ;;  %v13530_v16 = vadd.f32 %v13478_v14, %v14697_v59 }
 0xefe   : > { %v6576_v46 = vmul.f32 %v13497_v8, %v13495_v22  ;;  %v6295_v4 = vsel %vm6294_vm15, %v8278_v17, %v6291_v1  ;;  %v6303_v52 = vmul.f32 %v8284_v61, %v13469_v32  ;;  %v8286_v31 = vpop.eup %8285  ;;  %vm6308_vm0 = vweird.f32 %v8284_v61  ;;  %v5639_v12 = vpop.f32.mrf.mxu3 }
 0xeff   : > { %v6300_v27 = vsel %vm6297_vm2, %v6299_v50, %v6295_v4  ;;  %8287 = vrcp.f32 %v6259_v33  ;;  %v6034_v19 = vmul.f32 %v8286_v31, %v13395_v30  ;;  %vm6309_vm5 = vmor %vm6307_vm1, %vm6308_vm0  ;;  %v6314_v17 = vor.u32 1.1754944e-38, %v6313_v10 }
 0xf00   : > { %v7603_v29 = vmul.f32 -1.442695, %v6576_v46  ;;  %v6529_v11 = vsub.f32 1.0, %v6300_v27  ;;  %v6304_v48 = vsub.f32 1.0, %v6303_v52  ;;  %v6513_v25 = vmul.f32 %v6300_v27, %v13440_v53  ;;  %v14698_v27 = vld [vmem:[#allocation44_spill] sm:$0xff] }
 0xf01   : > { %8289 = vpow2.f32 %v7591_v38  ;;  %6163 = vmatmul.f32.gmra.mxu1 %v6034_v19  ;;  %v6326_v55 = vand.u32 2147483647, %v6259_v33  ;;  %v6328_v32 = vand.u32 2147483648, %v6259_v33  ;;  %vm6322_vm6 = vweird.f32 %v6259_v33 }
 0xf02   : > { %8291 = vpow2.f32 %v7603_v29  ;;  %v6545_v21 = vmul.f32 %v6529_v11, %v6177_v40  ;;  %v6305_v39 = vmul.f32 %v8284_v61, %v6304_v48  ;;  %v13548_v29 = vadd.f32 %v13478_v14, %v14698_v27 }
 0xf03   : > { %v6329_v3 = vor.u32 1.1754944e-38, %v6328_v32  ;;  %vm6327_vm8 = vcmp.eq.f32.partialorder %v6326_v55, 8.507059e+37  ;;  %v13552_v11 = vadd.f32 %v13425_v58, %v13504_v13 }
 0xf04   : > { %v13516_v9 = vadd.f32 %v6545_v21, %v6513_v25  ;;  %v6306_v37 = vadd.f32 %v8284_v61, %v6305_v39  ;;  %v13558_v25 = vadd.f32 %v13425_v58, %v5639_v12  ;;  %v6003_v21 = vpop.xlane.xlu0 %6002 }
 0xf05   : > { %v8288_v53 = vpop.eup %8287 }
 0xf06   : > { %v6577_v56 = vmul.f32 %v13516_v9, %v13514_v23  ;;  %v6310_v40 = vsel %vm6309_vm5, %v8284_v61, %v6306_v37  ;;  %v6318_v43 = vmul.f32 %v8288_v53, %v6259_v33  ;;  %vm6323_vm4 = vweird.f32 %v8288_v53 }
 0xf07   : > { %v8290_v30 = vpop.eup %8289  ;;  %v6315_v57 = vsel %vm6312_vm3, %v6314_v17, %v6310_v40  ;;  %vm6324_vm7 = vmor %vm6322_vm6, %vm6323_vm4  ;;  %vm14699_vm4 = vcmask 261120  }
 0xf08   : > { %v8292_v63 = vpop.eup %8291  ;;  %v7604_v18 = vmul.f32 -1.442695, %v6577_v56  ;;  %v6530_v45 = vsub.f32 1.0, %v6315_v57  ;;  %v6319_v2 = vsub.f32 1.0, %v6318_v43  ;;  %v13523_v5 = vadd.f32 1.0, %v8290_v30 }
 0xf09   : > { %v13521_v28 = vadd.f32 1.0, %v8292_v63  ;;  %v6514_v60 = vmul.f32 %v6315_v57, %v13449_v62 }
 0xf0a   : > { %8293 = vpow2.f32 %v7604_v18  ;;  %v6546_v44 = vmul.f32 %v6530_v45, %v6178_v26  ;;  %v6320_v54 = vmul.f32 %v8288_v53, %v6319_v2  ;;  %vm6337_vm11 = vweird.f32 %v13523_v5 }
 0xf0b   : > { %8295 = vrcp.f32 %v13521_v28  ;;  %v6665_v13 = vand.u32 2147483647, %v13521_v28  ;;  %v6667_v39 = vand.u32 2147483648, %v13521_v28  ;;  %vm6661_vm10 = vweird.f32 %v13521_v28 }
 0xf0c   : > { %v13533_v15 = vadd.f32 %v6546_v44, %v6514_v60  ;;  %v6321_v41 = vadd.f32 %v8288_v53, %v6320_v54  ;;  %8297 = vrcp.f32 %v13523_v5  ;;  %v6343_v57 = vand.u32 2147483648, %v13523_v5 }
 0xf0d   : > { %v6668_v18 = vor.u32 1.1754944e-38, %v6667_v39  ;;  %vm6666_vm13 = vcmp.eq.f32.partialorder %v6665_v13, 8.507059e+37  ;;  %v6341_v60 = vand.u32 2147483647, %v13523_v5  ;;  %v8423_v39 = vld [vmem:[%s8679_s2] sm:$0xff] }
 0xf0e   : > { %v6578_v62 = vmul.f32 %v13533_v15, %v13530_v16  ;;  %v6325_v51 = vsel %vm6324_vm7, %v8288_v53, %v6321_v41 }
 0xf0f   : > { %v6330_v26 = vsel %vm6327_vm8, %v6329_v3, %v6325_v51  ;;  %vm6342_vm0 = vcmp.eq.f32.partialorder %v6341_v60, 8.507059e+37  ;;  %v14700_v60 = vld [vmem:[#allocation39_spill] sm:$0xff] }
 0xf10   : > { %v8294_v1 = vpop.eup %8293  ;;  %v7605_v61 = vmul.f32 -1.442695, %v6578_v62  ;;  %v6531_v50 = vsub.f32 1.0, %v6330_v26  ;;  %v6515_v52 = vmul.f32 %v6330_v26, %v13462_v35  ;;  %v5642_v35 = vpop.f32.mrf.mxu3  ;;  %v6344_v62 = vor.u32 1.1754944e-38, %v6343_v57 }
 0xf11   : > { %v8296_v38 = vpop.eup %8295  ;;  %v13538_v46 = vadd.f32 1.0, %v8294_v1  ;;  %v13570_v17 = vadd.f32 %v13425_v58, %v5642_v35 }
 0xf12   : > { %v13540_v4 = vpop.eup %8297  ;;  %v6657_v33 = vmul.f32 %v8296_v38, %v13521_v28  ;;  %8299 = vpow2.f32 %v7605_v61  ;;  %v6547_v31 = vmul.f32 %v6531_v50, %v6179_v49  ;;  %vm6662_vm9 = vweird.f32 %v8296_v38 }
 0xf13   : > { %8301 = vrcp.f32 %v13538_v46  ;;  %v6001_v48 = vpop.xlane.xlu2 %6000  ;;  %v13555_v36 = vpop.f32.mrf.mxu1  ;;  %v6333_v49 = vmul.f32 %v13540_v4, %v13523_v5  ;;  %vm6663_vm12 = vmor %vm6661_vm10, %vm6662_vm9  ;;  %vm6338_vm14 = vweird.f32 %v13540_v4  ;;  %v6680_v3 = vand.u32 2147483647, %v13538_v46 }
 0xf14   : > { %v6658_v10 = vsub.f32 1.0, %v6657_v33  ;;  %v13560_v42 = vadd.f32 %v6547_v31, %v6515_v52  ;;  %v6181_v19 = vmax.f32 %v13555_v36, 0.0  ;;  %8303 = vrcp.f32 %v6001_v48  ;;  %vm6339_vm2 = vmor %vm6337_vm11, %vm6338_vm14 }
 0xf15   : > { %v6334_v53 = vsub.f32 1.0, %v6333_v49  ;;  %8305 = vrcp.f32 %v6003_v21  ;;  %v6682_v26 = vand.u32 2147483648, %v13538_v46  ;;  %vm6676_vm1 = vweird.f32 %v13538_v46  ;;  %vm14701_vm10 = vmmov %vm14699_vm4 }
 0xf16   : > { %v6659_v47 = vmul.f32 %v8296_v38, %v6658_v10  ;;  %v6579_v37 = vmul.f32 %v13560_v42, %v13548_v29  ;;  %v6197_v56 = vmul.f32 %v6181_v19, %v13552_v11  ;;  %vm6681_vm3 = vcmp.eq.f32.partialorder %v6680_v3, 8.507059e+37 }
 0xf17   : > { %v6335_v2 = vmul.f32 %v13540_v4, %v6334_v53  ;;  %v6683_v5 = vor.u32 1.1754944e-38, %v6682_v26  ;;  %v8424_v26 = vld [vmem:[%s8679_s2 + $0x8] sm:$0xff] }
 0xf18   : > { %v8300_v40 = vpop.eup %8299  ;;  %v6660_v43 = vadd.f32 %v8296_v38, %v6659_v47  ;;  %v7606_v30 = vmul.f32 -1.442695, %v6579_v37  ;;  %v7592_v55 = vmul.f32 -1.442695, %v6197_v56 }
 0xf19   : > { %v8302_v63 = vpop.eup %8301  ;;  %v13579_v45 = vadd.f32 1.0, %v8300_v40  ;;  %v6336_v1 = vadd.f32 %v13540_v4, %v6335_v2 }
 0xf1a   : > { %v6664_v28 = vsel %vm6663_vm12, %v8296_v38, %v6660_v43  ;;  %v6672_v32 = vmul.f32 %v8302_v63, %v13538_v46  ;;  %8307 = vpow2.f32 %v7606_v30  ;;  %v8304_v54 = vpop.eup %8303  ;;  %vm6677_vm15 = vweird.f32 %v8302_v63 }
 0xf1b   : > { %v6669_v12 = vsel %vm6666_vm13, %v6668_v18, %v6664_v28  ;;  %8309 = vrcp.f32 %v13579_v45  ;;  %v13587_v44 = vpop.f32.mrf.mxu1  ;;  %v8306_v51 = vpop.eup %8305  ;;  %v6340_v52 = vsel %vm6339_vm2, %v13540_v4, %v6336_v1  ;;  %v6035_v27 = vmul.f32 %v8304_v54, %v13415_v7  ;;  %vm6678_vm5 = vmor %vm6676_vm1, %vm6677_vm15 }
 0xf1c   : > { %v6912_v59 = vsub.f32 1.0, %v6669_v12  ;;  %v6673_v41 = vsub.f32 1.0, %v6672_v32  ;;  %8311 = vpow2.f32 %v7592_v55  ;;  %v6182_v61 = vmax.f32 %v13587_v44, 0.0  ;;  %v6005_v13 = vpop.xlane.xlu1 %6004  ;;  %vm14702_vm2 = vmmov %vm14699_vm4 }
 0xf1d   : > { %v6896_v50 = vmul.f32 %v6669_v12, %v13497_v8  ;;  %v6345_v35 = vsel %vm6342_vm0, %v6344_v62, %v6340_v52  ;;  %6166 = vmatmul.f32.gmra.mxu1 %v6035_v27  ;;  %v6695_v46 = vand.u32 2147483647, %v13579_v45  ;;  %v6697_v40 = vand.u32 2147483648, %v13579_v45 }
 0xf1e   : > { %v6928_v38 = vmul.f32 %v6912_v59, %v13495_v22  ;;  %v6674_v33 = vmul.f32 %v8302_v63, %v6673_v41  ;;  %v6198_v31 = vmul.f32 %v6182_v61, %v13558_v25  ;;  %v6532_v4 = vsub.f32 1.0, %v6345_v35 }
 0xf1f   : > { %v13633_v54 = vadd.f32 %v13478_v14, %v14700_v60  ;;  %v6036_v24 = vmul.f32 %v8306_v51, %v13401_v20  ;;  %vm6691_vm7 = vweird.f32 %v13579_v45  ;;  %v6698_v41 = vor.u32 1.1754944e-38, %v6697_v40 }
 0xf20   : > { %v8308_v8 = vpop.eup %8307  ;;  %v6944_v48 = vadd.f32 %v6928_v38, %v6896_v50  ;;  %v6675_v22 = vadd.f32 %v8302_v63, %v6674_v33  ;;  %v7593_v21 = vmul.f32 -1.442695, %v6198_v31  ;;  %v6548_v18 = vmul.f32 %v6532_v4, %v6180_v0 }
 0xf21   : > { %v8310_v10 = vpop.eup %8309  ;;  %v13609_v49 = vadd.f32 1.0, %v8308_v8  ;;  %vm6696_vm9 = vcmp.eq.f32.partialorder %v6695_v46, 8.507059e+37 }
 0xf22   : > { %v6960_v47 = vadd.f32 %v8423_v39, %v6944_v48  ;;  %v6679_v37 = vsel %vm6678_vm5, %v8302_v63, %v6675_v22  ;;  %v6687_v7 = vmul.f32 %v8310_v10, %v13579_v45  ;;  %v8312_v53 = vpop.eup %8311  ;;  %v6516_v63 = vmul.f32 %v6345_v35, %v13481_v6 }
 0xf23   : > { %v6684_v56 = vsel %vm6681_vm3, %v6683_v5, %v6679_v37  ;;  %8313 = vrcp.f32 %v13609_v49  ;;  %v13616_v43 = vpop.f32.mrf.mxu1  ;;  %vm6692_vm6 = vweird.f32 %v8310_v10  ;;  %v13626_v2 = vadd.f32 1.0, %v8312_v53 }
 0xf24   : > { %6976 = vst.msk [vmem:[%s13619_s19] sm:$0xff] %vm14699_vm4, %v6960_v47  ;;  %v6913_v30 = vsub.f32 1.0, %v6684_v56  ;;  %v6688_v57 = vsub.f32 1.0, %v6687_v7  ;;  %8315 = vrcp.f32 %v6005_v13  ;;  %v6897_v55 = vmul.f32 %v6684_v56, %v13516_v9  ;;  %vm6693_vm8 = vmor %vm6691_vm7, %vm6692_vm6 }
 0xf25   : > { %8317 = vpow2.f32 %v7593_v21  ;;  %v6183_v12 = vmax.f32 %v13616_v43, 0.0  ;;  %v13635_v6 = vadd.f32 %v6548_v18, %v6516_v63  ;;  %6169 = vmatmul.f32.gmra.mxu1 %v6036_v24  ;;  %v6710_v48 = vand.u32 2147483647, %v13609_v49  ;;  %vm14704_vm4 = vmmov %vm14702_vm2 }
 0xf26   : > { %v6929_v28 = vmul.f32 %v6913_v30, %v13514_v23  ;;  %v6689_v32 = vmul.f32 %v8310_v10, %v6688_v57  ;;  %8319 = vrcp.f32 %v13626_v2  ;;  %v6712_v22 = vand.u32 2147483648, %v13609_v49 }
 0xf27   : > { %v6199_v23 = vmul.f32 %v6183_v12, %v13570_v17  ;;  %v6580_v3 = vmul.f32 %v13635_v6, %v13633_v54  ;;  %vm6706_vm12 = vweird.f32 %v13609_v49  ;;  %vm6711_vm14 = vcmp.eq.f32.partialorder %v6710_v48, 8.507059e+37 }
 0xf28   : > { %v6945_v0 = vadd.f32 %v6929_v28, %v6897_v55  ;;  %v6690_v59 = vadd.f32 %v8310_v10, %v6689_v32  ;;  %vm6352_vm0 = vweird.f32 %v13626_v2 }
 0xf29   : > { %v8314_v9 = vpop.eup %8313  ;;  %v7607_v38 = vmul.f32 -1.442695, %v6580_v3  ;;  %v7594_v27 = vmul.f32 -1.442695, %v6199_v23 }
 0xf2a   : > { %v8316_v62 = vpop.eup %8315  ;;  %v6961_v20 = vadd.f32 %v8424_v26, %v6945_v0  ;;  %v6694_v51 = vsel %vm6693_vm8, %v8310_v10, %v6690_v59  ;;  %v6702_v45 = vmul.f32 %v8314_v9, %v13609_v49  ;;  %vm6707_vm11 = vweird.f32 %v8314_v9 }
 0xf2b   : > { %v8318_v1 = vpop.eup %8317  ;;  %v6699_v50 = vsel %vm6696_vm9, %v6698_v41, %v6694_v51  ;;  %8321 = vpow2.f32 %v7607_v38  ;;  %v6037_v21 = vmul.f32 %v8316_v62, %v13419_v34  ;;  %vm6708_vm13 = vmor %vm6706_vm12, %vm6707_vm11  ;;  %v6358_v49 = vand.u32 2147483648, %v13626_v2 }
 0xf2c   : > { %6977 = vst.msk [vmem:[%s13619_s19 + $0x8] sm:$0xff] %vm14701_vm10, %v6961_v20  ;;  %v6914_v33 = vsub.f32 1.0, %v6699_v50  ;;  %v6703_v52 = vsub.f32 1.0, %v6702_v45  ;;  %v13650_v31 = vadd.f32 1.0, %v8318_v1  ;;  %v8320_v8 = vpop.eup %8319  ;;  %v6898_v35 = vmul.f32 %v6699_v50, %v13533_v15  ;;  %v14703_v45 = vld [vmem:[#allocation48_spill] sm:$0xff] }
 0xf2d   : > { %v6348_v4 = vmul.f32 %v8320_v8, %v13626_v2  ;;  %v6713_v15 = vor.u32 1.1754944e-38, %v6712_v22  ;;  %6172 = vmatmul.f32.gmra.mxu1 %v6037_v21  ;;  %vm6353_vm15 = vweird.f32 %v8320_v8  ;;  %v6356_v34 = vand.u32 2147483647, %v13626_v2  ;;  %v8426_v2 = vld [vmem:[%s8679_s2 + $0x18] sm:$0xff] }
 0xf2e   : > { %v6930_v10 = vmul.f32 %v6914_v33, %v13530_v16  ;;  %v6704_v5 = vmul.f32 %v8314_v9, %v6703_v52  ;;  %8323 = vrcp.f32 %v13650_v31  ;;  %v8425_v16 = vld [vmem:[%s8679_s2 + $0x10] sm:$0xff]  ;;  %vm6354_vm1 = vmor %vm6352_vm0, %vm6353_vm15  ;;  %v6359_v32 = vor.u32 1.1754944e-38, %v6358_v49 }
 0xf2f   : > { %v6349_v47 = vsub.f32 1.0, %v6348_v4  ;;  %8325 = vpow2.f32 %v7594_v27  ;;  %vm6357_vm5 = vcmp.eq.f32.partialorder %v6356_v34, 8.507059e+37  ;;  %v13681_v1 = vadd.f32 %v13478_v14, %v14703_v45  ;;  %vm14706_vm0 = vmmov %vm14704_vm4 }
 0xf30   : > { %v6946_v13 = vadd.f32 %v6930_v10, %v6898_v35  ;;  %v6705_v39 = vadd.f32 %v8314_v9, %v6704_v5  ;;  %vm6367_vm6 = vweird.f32 %v13650_v31 }
 0xf31   : > { %v6350_v53 = vmul.f32 %v8320_v8, %v6349_v47  ;;  %v8322_v56 = vpop.eup %8321 }
 0xf32   : > { %v6962_v37 = vadd.f32 %v8425_v16, %v6946_v13  ;;  %v6709_v7 = vsel %vm6708_vm13, %v8314_v9, %v6705_v39  ;;  %v6644_v30 = vadd.f32 1.0, %v8322_v56  ;;  %v14705_v39 = vld [vmem:[#allocation46_spill] sm:$0xff] }
 0xf33   : > { %v6714_v46 = vsel %vm6711_vm14, %v6713_v15, %v6709_v7  ;;  %v6351_v57 = vadd.f32 %v8320_v8, %v6350_v53  ;;  %v13696_v47 = vadd.f32 %v13478_v14, %v14705_v39 }
 0xf34   : > { %6978 = vst.msk [vmem:[%s13619_s19 + $0x10] sm:$0xff] %vm14702_vm2, %v6962_v37  ;;  %v6915_v40 = vsub.f32 1.0, %v6714_v46  ;;  %v8324_v63 = vpop.eup %8323  ;;  %v6899_v55 = vmul.f32 %v6714_v46, %v13560_v42  ;;  %8327 = vrcp.f32 %v6644_v30  ;;  %v6371_v42 = vand.u32 2147483647, %v13650_v31 }
 0xf35   : > { %v8326_v18 = vpop.eup %8325  ;;  %v6355_v60 = vsel %vm6354_vm1, %v8320_v8, %v6351_v57  ;;  %v6363_v24 = vmul.f32 %v8324_v63, %v13650_v31  ;;  %vm6368_vm3 = vweird.f32 %v8324_v63  ;;  %v6725_v8 = vand.u32 2147483647, %v6644_v30 }
 0xf36   : > { %v6931_v28 = vmul.f32 %v6915_v40, %v13548_v29  ;;  %v6360_v59 = vsel %vm6357_vm5, %v6359_v32, %v6355_v60  ;;  %v13670_v23 = vadd.f32 1.0, %v8326_v18  ;;  %v6373_v29 = vand.u32 2147483648, %v13650_v31  ;;  %vm6369_vm7 = vmor %vm6367_vm6, %vm6368_vm3  ;;  %v8427_v60 = vld [vmem:[%s8679_s2 + $0x20] sm:$0xff] }
 0xf37   : > { %v6533_v9 = vsub.f32 1.0, %v6360_v59  ;;  %v6364_v41 = vsub.f32 1.0, %v6363_v24  ;;  %v6517_v62 = vmul.f32 %v6360_v59, %v13552_v11  ;;  %vm6372_vm8 = vcmp.eq.f32.partialorder %v6371_v42, 8.507059e+37 }
 0xf38   : > { %v6947_v0 = vadd.f32 %v6931_v28, %v6899_v55  ;;  %8329 = vrcp.f32 %v13670_v23  ;;  %v6374_v11 = vor.u32 1.1754944e-38, %v6373_v29  ;;  %v6727_v48 = vand.u32 2147483648, %v6644_v30 }
 0xf39   : > { %v6549_v26 = vmul.f32 %v6533_v9, %v6181_v19  ;;  %v6365_v20 = vmul.f32 %v8324_v63, %v6364_v41  ;;  %vm6721_vm10 = vweird.f32 %v6644_v30  ;;  %vm6726_vm12 = vcmp.eq.f32.partialorder %v6725_v8, 8.507059e+37 }
 0xf3a   : > { %v6963_v3 = vadd.f32 %v8426_v2, %v6947_v0  ;;  %v8328_v51 = vpop.eup %8327  ;;  %v6728_v15 = vor.u32 1.1754944e-38, %v6727_v48  ;;  %v6388_v53 = vand.u32 2147483648, %v13670_v23  ;;  %vm6382_vm14 = vweird.f32 %v13670_v23 }
 0xf3b   : > { %v6717_v50 = vmul.f32 %v8328_v51, %v6644_v30  ;;  %v13685_v38 = vadd.f32 %v6549_v26, %v6517_v62  ;;  %v6366_v33 = vadd.f32 %v8324_v63, %v6365_v20  ;;  %vm6722_vm9 = vweird.f32 %v8328_v51 }
 0xf3c   : > { %6979 = vst.msk [vmem:[%s13619_s19 + $0x18] sm:$0xff] %vm14704_vm4, %v6963_v3  ;;  %vm6723_vm11 = vmor %vm6721_vm10, %vm6722_vm9 }
 0xf3d   : > { %v6718_v52 = vsub.f32 1.0, %v6717_v50  ;;  %v6581_v36 = vmul.f32 %v13685_v38, %v13681_v1  ;;  %v6370_v19 = vsel %vm6369_vm7, %v8324_v63, %v6366_v33  ;;  %v6389_v63 = vor.u32 1.1754944e-38, %v6388_v53  ;;  %v8428_v53 = vld [vmem:[%s8679_s2 + $0x28] sm:$0xff]  ;;  %vm14708_vm10 = vmmov %vm14706_vm0 }
 0xf3e   : > { %v8330_v27 = vpop.eup %8329  ;;  %v6375_v22 = vsel %vm6372_vm8, %v6374_v11, %v6370_v19 }
 0xf3f   : > { %v6719_v35 = vmul.f32 %v8328_v51, %v6718_v52  ;;  %v7608_v10 = vmul.f32 -1.442695, %v6581_v36  ;;  %v6534_v5 = vsub.f32 1.0, %v6375_v22  ;;  %v6378_v4 = vmul.f32 %v8330_v27, %v13670_v23 }
 0xf40   : > { %v6518_v21 = vmul.f32 %v6375_v22, %v13558_v25  ;;  %vm6383_vm13 = vweird.f32 %v8330_v27  ;;  %v6386_v25 = vand.u32 2147483647, %v13670_v23  ;;  %v14707_v23 = vld [vmem:[#allocation72_spill] sm:$0xff] }
 0xf41   : > { %v6720_v31 = vadd.f32 %v8328_v51, %v6719_v35  ;;  %8331 = vpow2.f32 %v7608_v10  ;;  %v6550_v13 = vmul.f32 %v6534_v5, %v6182_v61  ;;  %v6379_v16 = vsub.f32 1.0, %v6378_v4  ;;  %vm6384_vm15 = vmor %vm6382_vm14, %vm6383_vm13 }
 0xf42   : > { %vm6387_vm2 = vcmp.eq.f32.partialorder %v6386_v25, 8.507059e+37  ;;  %v13715_v9 = vadd.f32 %v13478_v14, %v14707_v23 }
 0xf43   : > { %v6724_v37 = vsel %vm6723_vm11, %v8328_v51, %v6720_v31  ;;  %v13698_v7 = vadd.f32 %v6550_v13, %v6518_v21  ;;  %v6380_v56 = vmul.f32 %v8330_v27, %v6379_v16 }
 0xf44   : > { %v6729_v49 = vsel %vm6726_vm12, %v6728_v15, %v6724_v37  ;;  %vm14709_vm12 = vmmov %vm14706_vm0 }
 0xf45   : > { %v6916_v44 = vsub.f32 1.0, %v6729_v49  ;;  %v6582_v61 = vmul.f32 %v13698_v7, %v13696_v47  ;;  %v6381_v46 = vadd.f32 %v8330_v27, %v6380_v56  ;;  %v6900_v40 = vmul.f32 %v6729_v49, %v13635_v6 }
 0xf47   : > { %v8332_v34 = vpop.eup %8331  ;;  %v6932_v30 = vmul.f32 %v6916_v44, %v13633_v54  ;;  %v7609_v57 = vmul.f32 -1.442695, %v6582_v61  ;;  %v6385_v55 = vsel %vm6384_vm15, %v8330_v27, %v6381_v46 }
 0xf48   : > { %v6645_v18 = vadd.f32 1.0, %v8332_v34  ;;  %v6390_v32 = vsel %vm6387_vm2, %v6389_v63, %v6385_v55  ;;  %vm14710_vm2 = vmmov %vm14706_vm0 }
 0xf49   : > { %v6948_v28 = vadd.f32 %v6932_v30, %v6900_v40  ;;  %8333 = vpow2.f32 %v7609_v57  ;;  %v6535_v0 = vsub.f32 1.0, %v6390_v32  ;;  %v6519_v59 = vmul.f32 %v6390_v32, %v13570_v17 }
 0xf4a   : > { %8335 = vrcp.f32 %v6645_v18  ;;  %v6742_v17 = vand.u32 2147483648, %v6645_v18  ;;  %v6740_v43 = vand.u32 2147483647, %v6645_v18  ;;  %vm6736_vm5 = vweird.f32 %v6645_v18 }
 0xf4b   : > { %v6964_v24 = vadd.f32 %v8427_v60, %v6948_v28  ;;  %v6551_v54 = vmul.f32 %v6535_v0, %v6183_v12  ;;  %v5645_v12 = vpop.f32.mrf.mxu3  ;;  %v8429_v60 = vld [vmem:[%s8679_s2 + $0x30] sm:$0xff] }
 0xf4c   : > { %v6743_v50 = vor.u32 1.1754944e-38, %v6742_v17  ;;  %vm6741_vm4 = vcmp.eq.f32.partialorder %v6740_v43, 8.507059e+37  ;;  %v13722_v19 = vadd.f32 %v13425_v58, %v5645_v12 }
 0xf4d   : > { %6980 = vst.msk [vmem:[%s13619_s19 + $0x20] sm:$0xff] %vm14706_vm0, %v6964_v24  ;;  %v13717_v41 = vadd.f32 %v6551_v54, %v6519_v59 }
 0xf4f   : > { %v8334_v6 = vpop.eup %8333  ;;  %v6583_v29 = vmul.f32 %v13717_v41, %v13715_v9 }
 0xf50   : > { %v8336_v2 = vpop.eup %8335  ;;  %v6646_v3 = vadd.f32 1.0, %v8334_v6 }
 0xf51   : > { %v6732_v42 = vmul.f32 %v8336_v2, %v6645_v18  ;;  %v7610_v26 = vmul.f32 -1.442695, %v6583_v29  ;;  %vm6737_vm1 = vweird.f32 %v8336_v2 }
 0xf52   : > { %8337 = vrcp.f32 %v6646_v3  ;;  %vm6738_vm3 = vmor %vm6736_vm5, %vm6737_vm1  ;;  %v6755_v48 = vand.u32 2147483647, %v6646_v3  ;;  %v6757_v22 = vand.u32 2147483648, %v6646_v3  ;;  %vm6751_vm7 = vweird.f32 %v6646_v3 }
 0xf53   : > { %v6733_v62 = vsub.f32 1.0, %v6732_v42  ;;  %8339 = vpow2.f32 %v7610_v26  ;;  %v5648_v37 = vpop.f32.mrf.mxu3 }
 0xf54   : > { %v6758_v16 = vor.u32 1.1754944e-38, %v6757_v22  ;;  %vm6756_vm9 = vcmp.eq.f32.partialorder %v6755_v48, 8.507059e+37  ;;  %v13740_v30 = vadd.f32 %v13425_v58, %v5648_v37 }
 0xf55   : > { %v6734_v20 = vmul.f32 %v8336_v2, %v6733_v62 }
 0xf57   : > { %v6735_v51 = vadd.f32 %v8336_v2, %v6734_v20 }
 0xf58   : > { %v8338_v45 = vpop.eup %8337 }
 0xf59   : > { %v6739_v33 = vsel %vm6738_vm3, %v8336_v2, %v6735_v51  ;;  %v6747_v11 = vmul.f32 %v8338_v45, %v6646_v3  ;;  %v8340_v36 = vpop.eup %8339  ;;  %vm6752_vm6 = vweird.f32 %v8338_v45 }
 0xf5a   : > { %v6744_v52 = vsel %vm6741_vm4, %v6743_v50, %v6739_v33  ;;  %v6647_v35 = vadd.f32 1.0, %v8340_v36  ;;  %vm6753_vm8 = vmor %vm6751_vm7, %vm6752_vm6 }
 0xf5b   : > { %v6917_v27 = vsub.f32 1.0, %v6744_v52  ;;  %v6748_v8 = vsub.f32 1.0, %v6747_v11  ;;  %v6901_v5 = vmul.f32 %v6744_v52, %v13685_v38  ;;  %v8430_v52 = vld [vmem:[%s8679_s2 + $0x38] sm:$0xff] }
 0xf5c   : > { %8341 = vrcp.f32 %v6647_v35  ;;  %v6772_v55 = vand.u32 2147483648, %v6647_v35  ;;  %v6770_v0 = vand.u32 2147483647, %v6647_v35  ;;  %vm6766_vm13 = vweird.f32 %v6647_v35 }
 0xf5d   : > { %v6933_v4 = vmul.f32 %v6917_v27, %v13681_v1  ;;  %v6749_v31 = vmul.f32 %v8338_v45, %v6748_v8 }
 0xf5e   : > { %v13724_v10 = vpop.f32.mrf.mxu1  ;;  %v6773_v23 = vor.u32 1.1754944e-38, %v6772_v55  ;;  %vm6771_vm15 = vcmp.eq.f32.partialorder %v6770_v0, 8.507059e+37 }
 0xf5f   : > { %v6184_v21 = vmax.f32 %v13724_v10, 0.0  ;;  %v6949_v13 = vadd.f32 %v6933_v4, %v6901_v5  ;;  %v6750_v39 = vadd.f32 %v8338_v45, %v6749_v31 }
 0xf61   : > { %v6200_v15 = vmul.f32 %v6184_v21, %v13722_v19  ;;  %v6965_v49 = vadd.f32 %v8428_v53, %v6949_v13  ;;  %v6754_v38 = vsel %vm6753_vm8, %v8338_v45, %v6750_v39 }
 0xf62   : > { %v6759_v56 = vsel %vm6756_vm9, %v6758_v16, %v6754_v38  ;;  %v8342_v44 = vpop.eup %8341 }
 0xf63   : > { %v7595_v1 = vmul.f32 -1.442695, %v6200_v15  ;;  %6981 = vst.msk [vmem:[%s13619_s19 + $0x28] sm:$0xff] %vm14708_vm10, %v6965_v49  ;;  %v6918_v25 = vsub.f32 1.0, %v6759_v56  ;;  %v6902_v61 = vmul.f32 %v6759_v56, %v13698_v7  ;;  %v6762_v34 = vmul.f32 %v8342_v44, %v6647_v35  ;;  %v5651_v7 = vpop.f32.mrf.mxu3 }
 0xf64   : > { %vm6767_vm11 = vweird.f32 %v8342_v44  ;;  %v13752_v42 = vadd.f32 %v13425_v58, %v5651_v7 }
 0xf65   : > { %8343 = vpow2.f32 %v7595_v1  ;;  %v6934_v46 = vmul.f32 %v6918_v25, %v13696_v47  ;;  %v6763_v18 = vsub.f32 1.0, %v6762_v34  ;;  %vm6768_vm14 = vmor %vm6766_vm13, %vm6767_vm11  ;;  %v14711_v34 = vld [vmem:[#allocation50_spill] sm:$0xff] }
 0xf66   : > { %v13737_v40 = vpop.f32.mrf.mxu1 }
 0xf67   : > { %v6185_v57 = vmax.f32 %v13737_v40, 0.0  ;;  %v6950_v63 = vadd.f32 %v6934_v46, %v6902_v61  ;;  %v6764_v24 = vmul.f32 %v8342_v44, %v6763_v18 }
 0xf69   : > { %v6201_v28 = vmul.f32 %v6185_v57, %v13740_v30  ;;  %v6966_v47 = vadd.f32 %v8429_v60, %v6950_v63  ;;  %v6765_v6 = vadd.f32 %v8342_v44, %v6764_v24  ;;  %v13784_v63 = vadd.f32 %v13478_v14, %v14711_v34 }
 0xf6b   : > { %v8344_v32 = vpop.eup %8343  ;;  %v7596_v54 = vmul.f32 -1.442695, %v6201_v28  ;;  %6982 = vst.msk [vmem:[%s13619_s19 + $0x30] sm:$0xff] %vm14709_vm12, %v6966_v47  ;;  %v6769_v2 = vsel %vm6768_vm14, %v8342_v44, %v6765_v6  ;;  %v5654_v50 = vpop.f32.mrf.mxu3 }
 0xf6c   : > { %v6264_v59 = vadd.f32 1.0, %v8344_v32  ;;  %v6774_v29 = vsel %vm6771_vm15, %v6773_v23, %v6769_v2 }
 0xf6d   : > { %v6919_v26 = vsub.f32 1.0, %v6774_v29  ;;  %v6903_v20 = vmul.f32 %v6774_v29, %v13717_v41 }
 0xf6e   : > { %8345 = vrcp.f32 %v6264_v59  ;;  %v13749_v3 = vpop.f32.mrf.mxu1  ;;  %v6403_v8 = vand.u32 2147483648, %v6264_v59  ;;  %v6401_v41 = vand.u32 2147483647, %v6264_v59  ;;  %vm6397_vm1 = vweird.f32 %v6264_v59 }
 0xf6f   : > { %8347 = vpow2.f32 %v7596_v54  ;;  %v6186_v62 = vmax.f32 %v13749_v3, 0.0  ;;  %v6935_v43 = vmul.f32 %v6919_v26, %v13715_v9  ;;  %v13768_v9 = vld [vmem:[%s14058_s13] ss:$0 sm:$0xff] }
 0xf70   : > { %v13771_v35 = vadd.f32 %v13768_v9, %v5654_v50  ;;  %v6404_v13 = vor.u32 1.1754944e-38, %v6403_v8  ;;  %vm6402_vm3 = vcmp.eq.f32.partialorder %v6401_v41, 8.507059e+37  ;;  %v14712_v50 = vld [vmem:[#allocation69_spill] sm:$0xff] }
 0xf71   : > { %v6202_v17 = vmul.f32 %v6186_v62, %v13752_v42  ;;  %v6951_v33 = vadd.f32 %v6935_v43, %v6903_v20 }
 0xf73   : > { %v7597_v51 = vmul.f32 -1.442695, %v6202_v17  ;;  %v6967_v36 = vadd.f32 %v8430_v52, %v6951_v33  ;;  %v5657_v38 = vpop.f32.mrf.mxu3  ;;  %v13802_v33 = vadd.f32 %v13478_v14, %v14712_v50 }
 0xf74   : > { %v8346_v12 = vpop.eup %8345  ;;  %v13787_v18 = vadd.f32 %v13768_v9, %v5657_v38 }
 0xf75   : > { %v8348_v45 = vpop.eup %8347  ;;  %v6393_v58 = vmul.f32 %v8346_v12, %v6264_v59  ;;  %8349 = vpow2.f32 %v7597_v51  ;;  %6983 = vst.msk [vmem:[%s13619_s19 + $0x38] sm:$0xff] %vm14710_vm2, %v6967_v36  ;;  %vm6398_vm0 = vweird.f32 %v8346_v12 }
 0xf76   : > { %v6265_v11 = vadd.f32 1.0, %v8348_v45  ;;  %v13763_v22 = vpop.f32.mrf.mxu1  ;;  %vm6399_vm5 = vmor %vm6397_vm1, %vm6398_vm0 }
 0xf77   : > { %v6394_v27 = vsub.f32 1.0, %v6393_v58  ;;  %v6187_v5 = vmax.f32 %v13763_v22, 0.0 }
 0xf78   : > { %8351 = vrcp.f32 %v6265_v11  ;;  %v6418_v55 = vand.u32 2147483648, %v6265_v11  ;;  %v6416_v10 = vand.u32 2147483647, %v6265_v11  ;;  %vm6412_vm6 = vweird.f32 %v6265_v11 }
 0xf79   : > { %v6395_v48 = vmul.f32 %v8346_v12, %v6394_v27  ;;  %v6203_v39 = vmul.f32 %v6187_v5, %v13771_v35 }
 0xf7a   : > { %v6419_v24 = vor.u32 1.1754944e-38, %v6418_v55  ;;  %vm6417_vm8 = vcmp.eq.f32.partialorder %v6416_v10, 8.507059e+37 }
 0xf7b   : > { %v6396_v4 = vadd.f32 %v8346_v12, %v6395_v48  ;;  %v8350_v31 = vpop.eup %8349  ;;  %v7598_v49 = vmul.f32 -1.442695, %v6203_v39 }
 0xf7c   : > { %v6266_v16 = vadd.f32 1.0, %v8350_v31 }
 0xf7d   : > { %v6400_v15 = vsel %vm6399_vm5, %v8346_v12, %v6396_v4 }
 0xf7e   : > { %v8352_v37 = vpop.eup %8351  ;;  %v6405_v53 = vsel %vm6402_vm3, %v6404_v13, %v6400_v15  ;;  %8353 = vrcp.f32 %v6266_v16  ;;  %v13780_v46 = vpop.f32.mrf.mxu1  ;;  %v6431_v20 = vand.u32 2147483647, %v6266_v16  ;;  %v6433_v43 = vand.u32 2147483648, %v6266_v16 }
 0xf7f   : > { %v6536_v1 = vsub.f32 1.0, %v6405_v53  ;;  %v6408_v56 = vmul.f32 %v8352_v37, %v6265_v11  ;;  %v6520_v25 = vmul.f32 %v6405_v53, %v13722_v19  ;;  %8355 = vpow2.f32 %v7598_v49 }
 0xf80   : > { %v6188_v28 = vmax.f32 %v13780_v46, 0.0  ;;  %vm6413_vm4 = vweird.f32 %v8352_v37  ;;  %vm6427_vm10 = vweird.f32 %v6266_v16  ;;  %v6434_v36 = vor.u32 1.1754944e-38, %v6433_v43 }
 0xf81   : > { %v6552_v44 = vmul.f32 %v6536_v1, %v6184_v21  ;;  %v6409_v61 = vsub.f32 1.0, %v6408_v56  ;;  %vm6414_vm7 = vmor %vm6412_vm6, %vm6413_vm4  ;;  %vm6432_vm12 = vcmp.eq.f32.partialorder %v6431_v20, 8.507059e+37 }
 0xf82   : > { %v6204_v21 = vmul.f32 %v6188_v28, %v13787_v18 }
 0xf83   : > { %v13790_v32 = vadd.f32 %v6552_v44, %v6520_v25  ;;  %v6410_v19 = vmul.f32 %v8352_v37, %v6409_v61 }
 0xf84   : > { %v8354_v47 = vpop.eup %8353  ;;  %v7599_v0 = vmul.f32 -1.442695, %v6204_v21 }
 0xf85   : > { %v6584_v7 = vmul.f32 %v13790_v32, %v13784_v63  ;;  %v6411_v60 = vadd.f32 %v8352_v37, %v6410_v19  ;;  %v8356_v59 = vpop.eup %8355  ;;  %v6423_v23 = vmul.f32 %v8354_v47, %v6266_v16  ;;  %vm6428_vm9 = vweird.f32 %v8354_v47  ;;  %v13816_v16 = vld [vmem:[%s14052_s7] ss:$0 sm:$0xff] }
 0xf86   : > { %v6267_v29 = vadd.f32 1.0, %v8356_v59  ;;  %8357 = vpow2.f32 %v7599_v0  ;;  %vm6429_vm11 = vmor %vm6427_vm10, %vm6428_vm9 }
 0xf87   : > { %v7611_v54 = vmul.f32 -1.442695, %v6584_v7  ;;  %v6415_v6 = vsel %vm6414_vm7, %v8352_v37, %v6411_v60  ;;  %v6424_v17 = vsub.f32 1.0, %v6423_v23  ;;  %v14713_v37 = vld [vmem:[#allocation41_spill] sm:$0xff]  ;;  %v5660_v7 = vpop.f32.mrf.mxu3 }
 0xf88   : > { %v6420_v2 = vsel %vm6417_vm8, %v6419_v24, %v6415_v6  ;;  %v13820_v53 = vadd.f32 %v13816_v16, %v14713_v37  ;;  %v6448_v49 = vand.u32 2147483648, %v6267_v29  ;;  %vm6442_vm14 = vweird.f32 %v6267_v29 }
 0xf89   : > { %8359 = vpow2.f32 %v7611_v54  ;;  %v6537_v26 = vsub.f32 1.0, %v6420_v2  ;;  %v6521_v12 = vmul.f32 %v6420_v2, %v13740_v30  ;;  %v6425_v45 = vmul.f32 %v8354_v47, %v6424_v17  ;;  %v14714_v2 = vld [vmem:[#allocation68_spill] sm:$0xff] }
 0xf8a   : > { %8361 = vrcp.f32 %v6267_v29  ;;  %v6449_v25 = vor.u32 1.1754944e-38, %v6448_v49 }
 0xf8b   : > { %v6553_v51 = vmul.f32 %v6537_v26, %v6185_v57  ;;  %v6426_v11 = vadd.f32 %v8354_v47, %v6425_v45 }
 0xf8c   : > { %v8358_v52 = vpop.eup %8357 }
 0xf8d   : > { %v13804_v58 = vadd.f32 %v6553_v51, %v6521_v12  ;;  %v6430_v8 = vsel %vm6429_vm11, %v8354_v47, %v6426_v11  ;;  %v13808_v41 = vadd.f32 1.0, %v8358_v52 }
 0xf8e   : > { %v6435_v48 = vsel %vm6432_vm12, %v6434_v36, %v6430_v8 }
 0xf8f   : > { %v8360_v27 = vpop.eup %8359  ;;  %v6585_v30 = vmul.f32 %v13804_v58, %v13802_v33  ;;  %v6538_v4 = vsub.f32 1.0, %v6435_v48  ;;  %v6522_v13 = vmul.f32 %v6435_v48, %v13752_v42  ;;  %v6446_v42 = vand.u32 2147483647, %v6267_v29 }
 0xf90   : > { %v8362_v40 = vpop.eup %8361  ;;  %v6648_v57 = vadd.f32 1.0, %v8360_v27  ;;  %v6463_v51 = vand.u32 2147483648, %v13808_v41  ;;  %vm6457_vm4 = vweird.f32 %v13808_v41 }
 0xf91   : > { %v7612_v14 = vmul.f32 -1.442695, %v6585_v30  ;;  %v6438_v31 = vmul.f32 %v8362_v40, %v6267_v29  ;;  %v6554_v39 = vmul.f32 %v6538_v4, %v6186_v62  ;;  %vm6443_vm13 = vweird.f32 %v8362_v40 }
 0xf92   : > { %8363 = vrcp.f32 %v6648_v57  ;;  %vm6444_vm15 = vmor %vm6442_vm14, %vm6443_vm13  ;;  %vm6447_vm2 = vcmp.eq.f32.partialorder %v6446_v42, 8.507059e+37  ;;  %v6785_v24 = vand.u32 2147483647, %v6648_v57  ;;  %v6787_v0 = vand.u32 2147483648, %v6648_v57 }
 0xf93   : > { %8365 = vpow2.f32 %v7612_v14  ;;  %v6439_v15 = vsub.f32 1.0, %v6438_v31  ;;  %v13823_v38 = vadd.f32 %v6554_v39, %v6522_v13  ;;  %v13836_v29 = vadd.f32 %v13816_v16, %v14714_v2  ;;  %v5663_v31 = vpop.f32.mrf.mxu3 }
 0xf94   : > { %8367 = vrcp.f32 %v13808_v41  ;;  %vm6781_vm1 = vweird.f32 %v6648_v57  ;;  %v6788_v22 = vor.u32 1.1754944e-38, %v6787_v0  ;;  %vm6786_vm3 = vcmp.eq.f32.partialorder %v6785_v24, 8.507059e+37  ;;  %v14718_v0 = vld [vmem:[#allocation73_spill] sm:$0xff] }
 0xf95   : > { %v6440_v1 = vmul.f32 %v8362_v40, %v6439_v15  ;;  %v6586_v3 = vmul.f32 %v13823_v38, %v13820_v53  ;;  %v6464_v4 = vor.u32 1.1754944e-38, %v6463_v51  ;;  %vm14717_vm13 = vcmask 261120  }
 0xf97   : > { %v6441_v62 = vadd.f32 %v8362_v40, %v6440_v1  ;;  %v7613_v34 = vmul.f32 -1.442695, %v6586_v3 }
 0xf98   : > { %v8364_v56 = vpop.eup %8363 }
 0xf99   : > { %v8366_v44 = vpop.eup %8365  ;;  %v6777_v61 = vmul.f32 %v8364_v56, %v6648_v57  ;;  %v6445_v55 = vsel %vm6444_vm15, %v8362_v40, %v6441_v62  ;;  %8369 = vpow2.f32 %v7613_v34  ;;  %vm6782_vm0 = vweird.f32 %v8364_v56 }
 0xf9a   : > { %v8368_v19 = vpop.eup %8367  ;;  %v13827_v10 = vadd.f32 1.0, %v8366_v44  ;;  %v6450_v21 = vsel %vm6447_vm2, %v6449_v25, %v6445_v55  ;;  %v13838_v26 = vpop.f32.mrf.mxu1  ;;  %vm6783_vm5 = vmor %vm6781_vm1, %vm6782_vm0  ;;  %v8433_v44 = vld [vmem:[%s8679_s2 + $0x40] sm:$0xff] }
 0xf9b   : > { %v6778_v60 = vsub.f32 1.0, %v6777_v61  ;;  %v6539_v47 = vsub.f32 1.0, %v6450_v21  ;;  %v6523_v54 = vmul.f32 %v6450_v21, %v13771_v35  ;;  %v6453_v23 = vmul.f32 %v8368_v19, %v13808_v41  ;;  %vm14719_vm1 = vmmov %vm14717_vm13 }
 0xf9c   : > { %8371 = vrcp.f32 %v13827_v10  ;;  %v6189_v12 = vmax.f32 %v13838_v26, 0.0  ;;  %v13844_v35 = vadd.f32 %v13768_v9, %v5660_v7  ;;  %vm6458_vm6 = vweird.f32 %v8368_v19 }
 0xf9d   : > { %v6779_v59 = vmul.f32 %v8364_v56, %v6778_v60  ;;  %v6555_v6 = vmul.f32 %v6539_v47, %v6187_v5  ;;  %v6454_v43 = vsub.f32 1.0, %v6453_v23  ;;  %v6461_v5 = vand.u32 2147483647, %v13808_v41  ;;  %vm6459_vm9 = vmor %vm6457_vm4, %vm6458_vm6 }
 0xf9e   : > { %v6205_v8 = vmul.f32 %v6189_v12, %v13844_v35  ;;  %v6800_v41 = vand.u32 2147483647, %v13827_v10  ;;  %v6802_v49 = vand.u32 2147483648, %v13827_v10  ;;  %vm6796_vm10 = vweird.f32 %v13827_v10  ;;  %vm14720_vm4 = vmmov %vm14719_vm1 }
 0xf9f   : > { %v6780_v17 = vadd.f32 %v8364_v56, %v6779_v59  ;;  %v13840_v20 = vadd.f32 %v6555_v6, %v6523_v54  ;;  %v8370_v45 = vpop.eup %8369  ;;  %v6455_v52 = vmul.f32 %v8368_v19, %v6454_v43  ;;  %vm13860_vm7 = vcmp.eq.f32.partialorder %v6461_v5, 8.507059e+37 }
 0xfa0   : > { %v13851_v30 = vadd.f32 1.0, %v8370_v45  ;;  %vm6801_vm12 = vcmp.eq.f32.partialorder %v6800_v41, 8.507059e+37  ;;  %v13889_v59 = vadd.f32 %v13816_v16, %v14718_v0 }
 0xfa1   : > { %v6784_v50 = vsel %vm6783_vm5, %v8364_v56, %v6780_v17  ;;  %v6587_v11 = vmul.f32 %v13840_v20, %v13836_v29  ;;  %v6456_v37 = vadd.f32 %v8368_v19, %v6455_v52  ;;  %v5666_v52 = vpop.f32.mrf.mxu3 }
 0xfa2   : > { %v8372_v36 = vpop.eup %8371  ;;  %v6789_v27 = vsel %vm6786_vm3, %v6788_v22, %v6784_v50  ;;  %8373 = vrcp.f32 %v13851_v30  ;;  %v13867_v1 = vpop.f32.mrf.mxu1  ;;  %v6815_v6 = vand.u32 2147483647, %v13851_v30  ;;  %v6817_v22 = vand.u32 2147483648, %v13851_v30 }
 0xfa3   : > { %v6920_v40 = vsub.f32 1.0, %v6789_v27  ;;  %v6792_v57 = vmul.f32 %v8372_v36, %v13827_v10  ;;  %v6904_v48 = vmul.f32 %v6789_v27, %v13790_v32  ;;  %v7614_v15 = vmul.f32 -1.442695, %v6587_v11 }
 0xfa4   : > { %vm6797_vm8 = vweird.f32 %v8372_v36  ;;  %v7600_v32 = vmul.f32 -1.442695, %v6205_v8  ;;  %v6460_v62 = vsel %vm6459_vm9, %v8368_v19, %v6456_v37  ;;  %v6190_v25 = vmax.f32 %v13867_v1, 0.0 }
 0xfa5   : > { %v6936_v13 = vmul.f32 %v6920_v40, %v13784_v63  ;;  %v6793_v39 = vsub.f32 1.0, %v6792_v57  ;;  %8375 = vpow2.f32 %v7614_v15  ;;  %v13870_v63 = vadd.f32 %v13768_v9, %v5663_v31  ;;  %vm6798_vm11 = vmor %vm6796_vm10, %vm6797_vm8  ;;  %v8434_v40 = vld [vmem:[%s8679_s2 + $0x48] sm:$0xff] }
 0xfa6   : > { %v6465_v56 = vsel %vm13860_vm7, %v6464_v4, %v6460_v62  ;;  %8377 = vpow2.f32 %v7600_v32  ;;  %v6803_v19 = vor.u32 1.1754944e-38, %v6802_v49  ;;  %vm6811_vm15 = vweird.f32 %v13851_v30 }
 0xfa7   : > { %v6952_v42 = vadd.f32 %v6936_v13, %v6904_v48  ;;  %v6794_v3 = vmul.f32 %v8372_v36, %v6793_v39  ;;  %v6540_v55 = vsub.f32 1.0, %v6465_v56  ;;  %v6206_v7 = vmul.f32 %v6190_v25, %v13870_v63 }
 0xfa8   : > { %v8374_v21 = vpop.eup %8373  ;;  %v6524_v24 = vmul.f32 %v6465_v56, %v13787_v18  ;;  %vm6816_vm0 = vcmp.eq.f32.partialorder %v6815_v6, 8.507059e+37  ;;  %v13911_v14 = vadd.f32 %v13768_v9, %v5666_v52 }
 0xfa9   : > { %v6968_v61 = vadd.f32 %v8433_v44, %v6952_v42  ;;  %v6795_v34 = vadd.f32 %v8372_v36, %v6794_v3  ;;  %v6807_v47 = vmul.f32 %v8374_v21, %v13851_v30  ;;  %v6556_v10 = vmul.f32 %v6540_v55, %v6188_v28 }
 0xfaa   : > { %v7601_v23 = vmul.f32 -1.442695, %v6206_v7  ;;  %vm6812_vm14 = vweird.f32 %v8374_v21  ;;  %v13906_v8 = vpop.f32.mrf.mxu1 }
 0xfab   : > { %6984 = vst.msk [vmem:[%s13619_s19 + $0x40] sm:$0xff] %vm14717_vm13, %v6968_v61  ;;  %v6799_v60 = vsel %vm6798_vm11, %v8372_v36, %v6795_v34  ;;  %v8376_v2 = vpop.eup %8375  ;;  %v6808_v43 = vsub.f32 1.0, %v6807_v47  ;;  %v13893_v5 = vadd.f32 %v6556_v10, %v6524_v24  ;;  %vm6813_vm2 = vmor %vm6811_vm15, %vm6812_vm14  ;;  %v6191_v31 = vmax.f32 %v13906_v8, 0.0 }
 0xfac   : > { %v6804_v54 = vsel %vm6801_vm12, %v6803_v19, %v6799_v60  ;;  %v8378_v51 = vpop.eup %8377  ;;  %v13896_v46 = vadd.f32 1.0, %v8376_v2  ;;  %8379 = vpow2.f32 %v7601_v23 }
 0xfad   : > { %v6921_v17 = vsub.f32 1.0, %v6804_v54  ;;  %v6905_v18 = vmul.f32 %v6804_v54, %v13804_v58  ;;  %v6809_v45 = vmul.f32 %v8374_v21, %v6808_v43  ;;  %v6588_v50 = vmul.f32 %v13893_v5, %v13889_v59 }
 0xfae   : > { %v13901_v11 = vadd.f32 1.0, %v8378_v51  ;;  %8381 = vrcp.f32 %v13896_v46  ;;  %v6207_v37 = vmul.f32 %v6191_v31, %v13911_v14  ;;  %v6830_v61 = vand.u32 2147483647, %v13896_v46 }
 0xfaf   : > { %v6937_v28 = vmul.f32 %v6921_v17, %v13802_v33  ;;  %v6810_v58 = vadd.f32 %v8374_v21, %v6809_v45  ;;  %v7615_v27 = vmul.f32 -1.442695, %v6588_v50  ;;  %v6818_v33 = vor.u32 1.1754944e-38, %v6817_v22 }
 0xfb0   : > { %8383 = vrcp.f32 %v13901_v11  ;;  %v7602_v44 = vmul.f32 -1.442695, %v6207_v37  ;;  %v6832_v34 = vand.u32 2147483648, %v13896_v46  ;;  %vm6826_vm3 = vweird.f32 %v13896_v46 }
 0xfb1   : > { %v6953_v36 = vadd.f32 %v6937_v28, %v6905_v18  ;;  %v6814_v48 = vsel %vm6813_vm2, %v8374_v21, %v6810_v58  ;;  %8385 = vpow2.f32 %v7615_v27  ;;  %v8435_v21 = vld [vmem:[%s8679_s2 + $0x50] sm:$0xff]  ;;  %v6478_v7 = vand.u32 2147483648, %v13901_v11 }
 0xfb2   : > { %v8380_v30 = vpop.eup %8379  ;;  %v6819_v4 = vsel %vm6816_vm0, %v6818_v33, %v6814_v48  ;;  %v6476_v10 = vand.u32 2147483647, %v13901_v11  ;;  %v6833_v0 = vor.u32 1.1754944e-38, %v6832_v34  ;;  %vm6831_vm8 = vcmp.eq.f32.partialorder %v6830_v61, 8.507059e+37  ;;  %vm14722_vm0 = vmmov %vm14719_vm1 }
 0xfb3   : > { %v6969_v57 = vadd.f32 %v8434_v40, %v6953_v36  ;;  %v6922_v13 = vsub.f32 1.0, %v6819_v4  ;;  %v13916_v39 = vadd.f32 1.0, %v8380_v30  ;;  %v6906_v49 = vmul.f32 %v6819_v4, %v13823_v38 }
 0xfb4   : > { %v8382_v15 = vpop.eup %8381  ;;  %vm6472_vm9 = vweird.f32 %v13901_v11  ;;  %v6479_v17 = vor.u32 1.1754944e-38, %v6478_v7  ;;  %vm6477_vm11 = vcmp.eq.f32.partialorder %v6476_v10, 8.507059e+37 }
 0xfb5   : > { %6985 = vst.msk [vmem:[%s13619_s19 + $0x48] sm:$0xff] %vm14719_vm1, %v6969_v57  ;;  %v6938_v9 = vmul.f32 %v6922_v13, %v13820_v53  ;;  %v6822_v32 = vmul.f32 %v8382_v15, %v13896_v46  ;;  %8387 = vrcp.f32 %v13916_v39  ;;  %vm6827_vm5 = vweird.f32 %v8382_v15 }
 0xfb6   : > { %v8384_v41 = vpop.eup %8383  ;;  %8389 = vpow2.f32 %v7602_v44  ;;  %vm6828_vm7 = vmor %vm6826_vm3, %vm6827_vm5  ;;  %v6491_v22 = vand.u32 2147483647, %v13916_v39  ;;  %v6493_v28 = vand.u32 2147483648, %v13916_v39  ;;  %vm6487_vm13 = vweird.f32 %v13916_v39 }
 0xfb7   : > { %v6468_v42 = vmul.f32 %v8384_v41, %v13901_v11  ;;  %v8386_v3 = vpop.eup %8385  ;;  %v6954_v62 = vadd.f32 %v6938_v9, %v6906_v49  ;;  %v6823_v56 = vsub.f32 1.0, %v6822_v32  ;;  %vm6473_vm6 = vweird.f32 %v8384_v41  ;;  %v14721_v9 = vld [vmem:[#allocation67_spill] sm:$0xff] }
 0xfb8   : > { %v13928_v55 = vadd.f32 1.0, %v8386_v3  ;;  %vm6474_vm10 = vmor %vm6472_vm9, %vm6473_vm6  ;;  %vm6492_vm14 = vcmp.eq.f32.partialorder %v6491_v22, 8.507059e+37  ;;  %v6494_v4 = vor.u32 1.1754944e-38, %v6493_v28  ;;  %v13956_v32 = vadd.f32 %v13816_v16, %v14721_v9 }
 0xfb9   : > { %v6469_v38 = vsub.f32 1.0, %v6468_v42  ;;  %v6970_v53 = vadd.f32 %v8435_v21, %v6954_v62  ;;  %v6824_v19 = vmul.f32 %v8382_v15, %v6823_v56  ;;  %vm14724_vm9 = vmmov %vm14722_vm0 }
 0xfba   : > { %8391 = vrcp.f32 %v13928_v55  ;;  %v6845_v30 = vand.u32 2147483647, %v13928_v55  ;;  %vm6841_vm1 = vweird.f32 %v13928_v55 }
 0xfbb   : > { %v8388_v60 = vpop.eup %8387  ;;  %6986 = vst.msk [vmem:[%s13619_s19 + $0x50] sm:$0xff] %vm14720_vm4, %v6970_v53  ;;  %v6825_v47 = vadd.f32 %v8382_v15, %v6824_v19  ;;  %v6470_v24 = vmul.f32 %v8384_v41, %v6469_v38  ;;  %v14723_v38 = vld [vmem:[#allocation28_spill] sm:$0xff] }
 0xfbc   : > { %v6483_v54 = vmul.f32 %v8388_v60, %v13916_v39  ;;  %v8390_v51 = vpop.eup %8389  ;;  %vm6488_vm12 = vweird.f32 %v8388_v60  ;;  %vm6846_vm3 = vcmp.eq.f32.partialorder %v6845_v30, 8.507059e+37  ;;  %v13971_v21 = vadd.f32 %v13816_v16, %v14723_v38 }
 0xfbd   : > { %v6829_v6 = vsel %vm6828_vm7, %v8382_v15, %v6825_v47  ;;  %v6471_v23 = vadd.f32 %v8384_v41, %v6470_v24  ;;  %v13941_v36 = vadd.f32 1.0, %v8390_v51  ;;  %vm6489_vm15 = vmor %vm6487_vm13, %vm6488_vm12  ;;  %v8436_v15 = vld [vmem:[%s8679_s2 + $0x58] sm:$0xff] }
 0xfbe   : > { %v6834_v2 = vsel %vm6831_vm8, %v6833_v0, %v6829_v6  ;;  %v6484_v43 = vsub.f32 1.0, %v6483_v54 }
 0xfbf   : > { %v6923_v18 = vsub.f32 1.0, %v6834_v2  ;;  %v6475_v46 = vsel %vm6474_vm10, %v8384_v41, %v6471_v23  ;;  %v6907_v11 = vmul.f32 %v6834_v2, %v13840_v20  ;;  %8393 = vrcp.f32 %v13941_v36  ;;  %v8437_v2 = vld [vmem:[%s8679_s2 + $0x60] sm:$0xff] }
 0xfc0   : > { %v8392_v45 = vpop.eup %8391  ;;  %v6480_v50 = vsel %vm6477_vm11, %v6479_v17, %v6475_v46  ;;  %v6485_v52 = vmul.f32 %v8388_v60, %v6484_v43  ;;  %v6847_v20 = vand.u32 2147483648, %v13928_v55  ;;  %vm6502_vm6 = vweird.f32 %v13941_v36 }
 0xfc1   : > { %v6939_v58 = vmul.f32 %v6923_v18, %v13836_v29  ;;  %v6837_v27 = vmul.f32 %v8392_v45, %v13928_v55  ;;  %v6541_v33 = vsub.f32 1.0, %v6480_v50  ;;  %v6525_v29 = vmul.f32 %v6480_v50, %v13844_v35  ;;  %v14725_v50 = vld [vmem:[#allocation32_spill] sm:$0xff] }
 0xfc2   : > { %v6486_v40 = vadd.f32 %v8388_v60, %v6485_v52  ;;  %vm6842_vm2 = vweird.f32 %v8392_v45  ;;  %v13990_v52 = vadd.f32 %v13816_v16, %v14725_v50 }
 0xfc3   : > { %v6955_v57 = vadd.f32 %v6939_v58, %v6907_v11  ;;  %v6838_v48 = vsub.f32 1.0, %v6837_v27  ;;  %v6557_v13 = vmul.f32 %v6541_v33, %v6189_v12  ;;  %vm6843_vm5 = vmor %vm6841_vm1, %vm6842_vm2  ;;  %v6848_v12 = vor.u32 1.1754944e-38, %v6847_v20 }
 0xfc4   : > { %v6490_v39 = vsel %vm6489_vm15, %v8388_v60, %v6486_v40  ;;  %vm14726_vm1 = vmmov %vm14724_vm9 }
 0xfc5   : > { %v6971_v37 = vadd.f32 %v8436_v15, %v6955_v57  ;;  %v6839_v41 = vmul.f32 %v8392_v45, %v6838_v48  ;;  %v6495_v49 = vsel %vm6492_vm14, %v6494_v4, %v6490_v39  ;;  %v13958_v42 = vadd.f32 %v6557_v13, %v6525_v29  ;;  %v8394_v26 = vpop.eup %8393 }
 0xfc6   : > { %v6542_v3 = vsub.f32 1.0, %v6495_v49  ;;  %v6526_v56 = vmul.f32 %v6495_v49, %v13870_v63  ;;  %v6498_v34 = vmul.f32 %v8394_v26, %v13941_v36  ;;  %v6506_v63 = vand.u32 2147483647, %v13941_v36 }
 0xfc7   : > { %6987 = vst.msk [vmem:[%s13619_s19 + $0x58] sm:$0xff] %vm14722_vm0, %v6971_v37  ;;  %v6840_v62 = vadd.f32 %v8392_v45, %v6839_v41  ;;  %v6589_v35 = vmul.f32 %v13958_v42, %v13956_v32  ;;  %vm6503_vm4 = vweird.f32 %v8394_v26 }
 0xfc8   : > { %v6558_v44 = vmul.f32 %v6542_v3, %v6190_v25  ;;  %v6499_v60 = vsub.f32 1.0, %v6498_v34  ;;  %v6508_v25 = vand.u32 2147483648, %v13941_v36  ;;  %vm6504_vm7 = vmor %vm6502_vm6, %vm6503_vm4  ;;  %vm6507_vm8 = vcmp.eq.f32.partialorder %v6506_v63, 8.507059e+37 }
 0xfc9   : > { %v6844_v61 = vsel %vm6843_vm5, %v8392_v45, %v6840_v62  ;;  %v7616_v53 = vmul.f32 -1.442695, %v6589_v35  ;;  %vm14727_vm5 = vmmov %vm14726_vm1 }
 0xfca   : > { %v6849_v55 = vsel %vm6846_vm3, %v6848_v12, %v6844_v61  ;;  %v13973_v19 = vadd.f32 %v6558_v44, %v6526_v56  ;;  %v6500_v10 = vmul.f32 %v8394_v26, %v6499_v60  ;;  %v6509_v23 = vor.u32 1.1754944e-38, %v6508_v25  ;;  %v8438_v61 = vld [vmem:[%s8679_s2 + $0x68] sm:$0xff]  ;;  %v8439_v60 = vld [vmem:[%s8679_s2 + $0x70] sm:$0xff] }
 0xfcb   : > { %v6924_v7 = vsub.f32 1.0, %v6849_v55  ;;  %8395 = vpow2.f32 %v7616_v53  ;;  %v6908_v47 = vmul.f32 %v6849_v55, %v13893_v5 }
 0xfcc   : > { %v6590_v1 = vmul.f32 %v13973_v19, %v13971_v21  ;;  %v6501_v6 = vadd.f32 %v8394_v26, %v6500_v10 }
 0xfcd   : > { %v6940_v24 = vmul.f32 %v6924_v7, %v13889_v59 }
 0xfce   : > { %v7617_v0 = vmul.f32 -1.442695, %v6590_v1  ;;  %v6505_v43 = vsel %vm6504_vm7, %v8394_v26, %v6501_v6 }
 0xfcf   : > { %v6956_v54 = vadd.f32 %v6940_v24, %v6908_v47  ;;  %v6510_v51 = vsel %vm6507_vm8, %v6509_v23, %v6505_v43  ;;  %vm14730_vm8 = vmmov %vm14726_vm1 }
 0xfd0   : > { %8397 = vpow2.f32 %v7617_v0  ;;  %v6543_v5 = vsub.f32 1.0, %v6510_v51  ;;  %v6527_v46 = vmul.f32 %v6510_v51, %v13911_v14 }
 0xfd1   : > { %v6972_v17 = vadd.f32 %v8437_v2, %v6956_v54  ;;  %v8396_v22 = vpop.eup %8395  ;;  %v8440_v2 = vld [vmem:[%s8679_s2 + $0x78] sm:$0xff] }
 0xfd2   : > { %v6653_v59 = vadd.f32 1.0, %v8396_v22  ;;  %v6559_v28 = vmul.f32 %v6543_v5, %v6191_v31 }
 0xfd3   : > { %6988 = vst.msk [vmem:[%s13619_s19 + $0x60] sm:$0xff] %vm14724_vm9, %v6972_v17 }
 0xfd4   : > { %8399 = vrcp.f32 %v6653_v59  ;;  %v13992_v36 = vadd.f32 %v6559_v28, %v6527_v46  ;;  %v6860_v57 = vand.u32 2147483647, %v6653_v59  ;;  %v6862_v8 = vand.u32 2147483648, %v6653_v59 }
 0xfd5   : > { %vm6856_vm11 = vweird.f32 %v6653_v59 }
 0xfd6   : > { %v8398_v18 = vpop.eup %8397  ;;  %v6591_v11 = vmul.f32 %v13992_v36, %v13990_v52  ;;  %vm6861_vm13 = vcmp.eq.f32.partialorder %v6860_v57, 8.507059e+37  ;;  %v6863_v4 = vor.u32 1.1754944e-38, %v6862_v8 }
 0xfd7   : > { %v6654_v45 = vadd.f32 1.0, %v8398_v18 }
 0xfd8   : > { %v7618_v33 = vmul.f32 -1.442695, %v6591_v11 }
 0xfd9   : > { %8401 = vrcp.f32 %v6654_v45  ;;  %v6877_v20 = vand.u32 2147483648, %v6654_v45  ;;  %v6875_v15 = vand.u32 2147483647, %v6654_v45  ;;  %vm6871_vm15 = vweird.f32 %v6654_v45 }
 0xfda   : > { %v8400_v58 = vpop.eup %8399  ;;  %8403 = vpow2.f32 %v7618_v33 }
 0xfdb   : > { %v6852_v27 = vmul.f32 %v8400_v58, %v6653_v59  ;;  %vm6857_vm10 = vweird.f32 %v8400_v58  ;;  %v6878_v3 = vor.u32 1.1754944e-38, %v6877_v20  ;;  %vm6876_vm0 = vcmp.eq.f32.partialorder %v6875_v15, 8.507059e+37 }
 0xfdc   : > { %vm6858_vm12 = vmor %vm6856_vm11, %vm6857_vm10 }
 0xfdd   : > { %v6853_v40 = vsub.f32 1.0, %v6852_v27 }
 0xfdf   : > { %v8402_v14 = vpop.eup %8401  ;;  %v6854_v31 = vmul.f32 %v8400_v58, %v6853_v40 }
 0xfe0   : > { %v6867_v48 = vmul.f32 %v8402_v14, %v6654_v45  ;;  %v8404_v29 = vpop.eup %8403  ;;  %vm6872_vm14 = vweird.f32 %v8402_v14 }
 0xfe1   : > { %v6855_v30 = vadd.f32 %v8400_v58, %v6854_v31  ;;  %v6655_v41 = vadd.f32 1.0, %v8404_v29  ;;  %vm6873_vm2 = vmor %vm6871_vm15, %vm6872_vm14 }
 0xfe2   : > { %v6868_v16 = vsub.f32 1.0, %v6867_v48 }
 0xfe3   : > { %v6859_v13 = vsel %vm6858_vm12, %v8400_v58, %v6855_v30  ;;  %8405 = vrcp.f32 %v6655_v41  ;;  %v6892_v63 = vand.u32 2147483648, %v6655_v41  ;;  %v6890_v47 = vand.u32 2147483647, %v6655_v41 }
 0xfe4   : > { %v6869_v39 = vmul.f32 %v8402_v14, %v6868_v16  ;;  %v6864_v37 = vsel %vm6861_vm13, %v6863_v4, %v6859_v13  ;;  %vm6886_vm4 = vweird.f32 %v6655_v41 }
 0xfe5   : > { %v6925_v49 = vsub.f32 1.0, %v6864_v37  ;;  %v6909_v62 = vmul.f32 %v6864_v37, %v13958_v42  ;;  %vm6891_vm7 = vcmp.eq.f32.partialorder %v6890_v47, 8.507059e+37 }
 0xfe6   : > { %v6870_v9 = vadd.f32 %v8402_v14, %v6869_v39 }
 0xfe7   : > { %v6941_v26 = vmul.f32 %v6925_v49, %v13956_v32 }
 0xfe8   : > { %v6874_v12 = vsel %vm6873_vm2, %v8402_v14, %v6870_v9 }
 0xfe9   : > { %v6879_v35 = vsel %vm6876_vm0, %v6878_v3, %v6874_v12  ;;  %v6957_v56 = vadd.f32 %v6941_v26, %v6909_v62  ;;  %v8406_v53 = vpop.eup %8405 }
 0xfea   : > { %v6926_v44 = vsub.f32 1.0, %v6879_v35  ;;  %v6910_v38 = vmul.f32 %v6879_v35, %v13973_v19  ;;  %v6882_v42 = vmul.f32 %v8406_v53, %v6655_v41  ;;  %vm6887_vm3 = vweird.f32 %v8406_v53 }
 0xfeb   : > { %v6973_v34 = vadd.f32 %v8438_v61, %v6957_v56  ;;  %vm6888_vm6 = vmor %vm6886_vm4, %vm6887_vm3 }
 0xfec   : > { %v6942_v55 = vmul.f32 %v6926_v44, %v13971_v21  ;;  %v6883_v1 = vsub.f32 1.0, %v6882_v42  ;;  %v6893_v21 = vor.u32 1.1754944e-38, %v6892_v63 }
 0xfed   : > { %6989 = vst.msk [vmem:[%s13619_s19 + $0x68] sm:$0xff] %vm14726_vm1, %v6973_v34 }
 0xfee   : > { %v6958_v7 = vadd.f32 %v6942_v55, %v6910_v38  ;;  %v6884_v25 = vmul.f32 %v8406_v53, %v6883_v1 }
 0xff0   : > { %v6974_v32 = vadd.f32 %v8439_v60, %v6958_v7  ;;  %v6885_v24 = vadd.f32 %v8406_v53, %v6884_v25 }
 0xff2   : > { %6990 = vst.msk [vmem:[%s13619_s19 + $0x70] sm:$0xff] %vm14727_vm5, %v6974_v32  ;;  %v6889_v19 = vsel %vm6888_vm6, %v8406_v53, %v6885_v24 }
 0xff3   : > { %v6894_v10 = vsel %vm6891_vm7, %v6893_v21, %v6889_v19 }
 0xff4   : > { %v6927_v0 = vsub.f32 1.0, %v6894_v10  ;;  %v6911_v54 = vmul.f32 %v6894_v10, %v13992_v36 }
 0xff6   : > { %v6943_v6 = vmul.f32 %v6927_v0, %v13990_v52 }
 0xff8   : > { %v6959_v23 = vadd.f32 %v6943_v6, %v6911_v54 }
 0xffa   : > { %v6975_v17 = vadd.f32 %v8440_v2, %v6959_v23 }
 0xffc   : > { %6991 = vst.msk [vmem:[%s13619_s19 + $0x78] sm:$0xff] %vm14730_vm8, %v6975_v17 }
 0xffd   : > { %8468 = shalt.err (!%p8465_p3)
}
 0xffe   : > { %s8517_s2 = smov 128   ;;  %s8518_s1 = smov 8  }
 0xfff   : > { %7643 = dma.vmem_to_hbm [thread:$0]  (%p8652_p5), %s7006_s24, 2048, %s7008_s25, %s6993_s0, %s8517_s2, %s8517_s2, %s8518_s1  }
0x1000 PF: > { %s14731_s19 = sld [smem:[#allocation7_spill]] }
0x1001   : > { %s14732_s4 = sld [smem:[#allocation5_spill]] }
0x1006   : > { %p7649_p4 = scmp.ge.s32.totalorder %s14731_s19, 2 }
0x1007   : > { %s7022_s29 = sand.u32 1, %s14732_s4  }
0x1008   : > { %p7646_p7 = pnand %p7649_p4, %p8656_p6  ;;  %s7023_s3 = scalar_lea.sflag [#allocation3], %s7022_s29 }
0x100a   : > { %p7647_p8 = pneg %p7646_p7 }
0x100c   : > { %8486 = dma.done.wait (%p7647_p8), %s7023_s3, 2048  }
0x100d   : > { %8488 = vsyncadd (%p7647_p8), %s7023_s3, 4294965248  ;;  %s14734_s30 = sld [smem:[#allocation8_spill]]  ;;  %s14737_s27 = smov %s8495_s28 }
0x100e   : > { %s14735_s18 = sld [smem:[#allocation6_spill]] }
0x100f   : > { %s14736_s29 = sld [smem:[#allocation9_spill]] }
0x1013   : > { %p28_p9 = scmp.ge.s32.totalorder %s14734_s30, 4  }
0x1014   : > { %s14738_s28 = smov %s14735_s18 }
0x1015   :  { %30 = sbr.rel (!%p28_p9) target bundleno = 11 (0xb), region = 130 }
0x101a   :  { %7029 = vsyncpa [#allocation3], 1 }
0x101b   :  { %7031 = vsyncpa [#allocation3 + $0x1], 1 }

</bundles_post_ra>
